<compile_context>
chip_gen: v7x
topology: tpu7x:2x2x1
jax: 0.10.0
libtpu: 0.0.40
codegen_flags: <defaults>
</compile_context>

<pallas_src>
import jax
import jax.numpy as jnp
from jax.experimental import pallas as pl
from jax.experimental.pallas import tpu as pltpu


# consts buffer row layout (f32, [10, H]):
_B_UP, _B_R1, _B_R2, _B_R3 = 0, 1, 2, 3          # full-H biases
_B_DA, _W_DB = 4, 5                              # lanes [:128]; lane 64 = bias lane
_S_UP, _S_R1, _S_R2, _S_R3 = 6, 7, 8, 9          # int8 per-out-channel scales
_CONST_ROWS = 10


def predictor_kernel(x_ref, wq_up_ref, wq_res_ref, w_da_ref, consts_ref,
                     out_ref, wdq_up_ref, wdq_res_ref):
    # Dequantize int8 weights -> bf16 VMEM scratch once; the scratch persists
    # across the sequential ("arbitrary") batch grid steps.
    @pl.when(pl.program_id(0) == 0)
    def _dequantize():
        wdq_up_ref[...] = (
            wq_up_ref[...].astype(jnp.float32) * consts_ref[_S_UP:_S_UP + 1, :]
        ).astype(jnp.bfloat16)
        for k in range(3):
            row = _S_R1 + k
            wdq_res_ref[k, :, :] = (
                wq_res_ref[k, :, :].astype(jnp.float32)
                * consts_ref[row:row + 1, :]
            ).astype(jnp.bfloat16)

    def lin(h_f32, w_bf16, bias_f32):
        # bf16 x bf16 MXU matmul, f32 accumulation; bias add stays f32 (VPU).
        return jnp.dot(h_f32.astype(jnp.bfloat16), w_bf16,
                       preferred_element_type=jnp.float32) + bias_f32

    def leaky(h, alpha):
        return jnp.where(h > 0, h, alpha * h)

    x = x_ref[...].astype(jnp.float32)

    # --- up[0]: Linear(F, H) ---
    y = lin(x, wdq_up_ref[...], consts_ref[_B_UP:_B_UP + 1, :])

    # --- ResBlock(H): ReLU(long(y) + y),
    #     long = L -> LeakyReLU(0.1) -> L -> LeakyReLU(0.1) -> L ---
    h = leaky(lin(y, wdq_res_ref[0, :, :], consts_ref[_B_R1:_B_R1 + 1, :]), 0.1)
    h = leaky(lin(h, wdq_res_ref[1, :, :], consts_ref[_B_R2:_B_R2 + 1, :]), 0.1)
    h = lin(h, wdq_res_ref[2, :, :], consts_ref[_B_R3:_B_R3 + 1, :])
    y = jnp.maximum(h + y, 0.0)

    # --- down (eval-mode, exactly folded):
    #   [Linear(H,128) -> Linear(128,64)] == Linear(H,64), zero-padded to 128
    #   Dropout (identity) -> LeakyReLU(0.01)
    #   [Linear(64,32) -> Linear(32,1)]   == Linear(64,1) -> VPU dot + reduce
    # Lane 64 of b_da is a constant 1.0 "bias lane"; lane 64 of the w_db row
    # holds the folded head bias, so the lane reduction includes it. ---
    z = leaky(lin(y, w_da_ref[...], consts_ref[_B_DA:_B_DA + 1, :128]), 0.01)
    pre = jnp.sum(z * consts_ref[_W_DB:_W_DB + 1, :128], axis=-1, keepdims=True)

    # outputs == 1 -> Tanh head, then (tanh(z) + 1) / 2
    out_ref[...] = ((jnp.tanh(pre) + 1.0) * 0.5).astype(out_ref.dtype)


def _quantize_per_out_channel(w):
    """Symmetric int8 per-output-channel quantization of W[in, out]."""
    amax = jnp.max(jnp.abs(w), axis=0)                         # [out]
    scale = jnp.where(amax > 0, amax / 127.0, 1.0).astype(jnp.float32)
    q = jnp.clip(jnp.round(w / scale), -127.0, 127.0).astype(jnp.int8)
    return q, scale


def pack_params(params, features, hidden):
    """Fold adjacent down-path linears, quantize the big weights to int8
    (per-output-channel), pad the head to 128 lanes, and pack all biases +
    scales + the head vector into one f32 consts buffer.

    params: list of 8 (W[in,out] f32, b[1,out] f32) tuples in layer order:
      up(F,H), res1(H,H), res2(H,H), res3(H,H),
      down1(H,128), down2(128,64), down3(64,32), down4(32,1).
    """
    (w_up, b_up), (w1, b1), (w2, b2), (w3, b3), \
        (wd1, bd1), (wd2, bd2), (wd3, bd3), (wd4, bd4) = params
    F, H = features, hidden
    assert H >= 128 and H % 128 == 0, "packing assumes hidden % 128 == 0"
    assert F % 8 == 0, "features must be a multiple of 8 (sublane alignment)"

    # Exact algebraic folds (done once, in f32; Dropout is identity in eval).
    w_da = wd1 @ wd2                  # [H, 64]
    b_da = bd1 @ wd2 + bd2            # [1, 64]
    w_db = wd3 @ wd4                  # [64, 1]
    b_db = bd3 @ wd4 + bd4            # [1, 1]

    # Head kept bf16 (tiny; quantizing a folded product risks accuracy),
    # zero-padded to a full 128-lane vreg.
    w_da_p = jnp.zeros((H, 128), jnp.float32).at[:, :64].set(w_da)

    # int8 per-output-channel weights for the dominant traffic.
    q_up, s_up = _quantize_per_out_channel(w_up)
    q1, s1 = _quantize_per_out_channel(w1)
    q2, s2 = _quantize_per_out_channel(w2)
    q3, s3 = _quantize_per_out_channel(w3)

    consts = jnp.zeros((_CONST_ROWS, H), jnp.float32)
    consts = consts.at[_B_UP].set(b_up[0])
    consts = consts.at[_B_R1].set(b1[0])
    consts = consts.at[_B_R2].set(b2[0])
    consts = consts.at[_B_R3].set(b3[0])
    consts = consts.at[_B_DA, :64].set(b_da[0])
    consts = consts.at[_B_DA, 64].set(1.0)            # constant bias lane
    consts = consts.at[_W_DB, :64].set(w_db[:, 0])
    consts = consts.at[_W_DB, 64].set(b_db[0, 0])     # head bias via bias lane
    consts = consts.at[_S_UP].set(s_up)
    consts = consts.at[_S_R1].set(s1)
    consts = consts.at[_S_R2].set(s2)
    consts = consts.at[_S_R3].set(s3)

    return {
        "wq_up": q_up,                                  # [F, H]     int8
        "wq_res": jnp.stack([q1, q2, q3], axis=0),      # [3, H, H]  int8
        "w_da": w_da_p.astype(jnp.bfloat16),            # [H, 128]   bf16
        "consts": consts,                               # [10, H]    f32
    }


def _round_up(n, m):
    return (n + m - 1) // m * m


def predictor_forward(x, packed, *, tile_b=256):
    """x: [B, F] float32 -> [B, 1] float32 in [0, 1]."""
    B, F = x.shape
    H = packed["wq_res"].shape[1]

    # TILE_B: multiple of 8 (sublane packing); ideally the MXU M height
    # (128 on v5e, 256 on v6e/v7x) once weight traffic is amortized.
    tb = _round_up(min(tile_b, _round_up(B, 8)), 8)
    Bp = _round_up(B, tb)
    xp = x if Bp == B else jnp.pad(x, ((0, Bp - B), (0, 0)))

    def resident(a):
        # Constant block index across the grid -> fetched once, stays in VMEM.
        return pl.BlockSpec(a.shape, lambda i, _nd=a.ndim: (0,) * _nd)

    out = pl.pallas_call(
        predictor_kernel,
        out_shape=jax.ShapeDtypeStruct((Bp, 1), jnp.float32),
        grid_spec=pltpu.PrefetchScalarGridSpec(
            num_scalar_prefetch=0,
            grid=(Bp // tb,),
            in_specs=[
                pl.BlockSpec((tb, F), lambda i: (i, 0)),   # x: batch-tiled
                resident(packed["wq_up"]),
                resident(packed["wq_res"]),
                resident(packed["w_da"]),
                resident(packed["consts"]),
            ],
            out_specs=pl.BlockSpec((tb, 1), lambda i: (i, 0)),
            scratch_shapes=[
                pltpu.VMEM((F, H), jnp.bfloat16),          # dequantized up
                pltpu.VMEM((3, H, H), jnp.bfloat16),       # dequantized ResBlock
            ],
        ),
        # "arbitrary": batch steps must run sequentially on one TC so the
        # step-0 dequant scratch stays valid and the resident weights are not
        # duplicated per core (a v7x "parallel" split doubles weight DMA).
        compiler_params=pltpu.CompilerParams(
            dimension_semantics=("arbitrary",),
        ),
    )(xp, packed["wq_up"], packed["wq_res"], packed["w_da"], packed["consts"])
    return out[:B]


def init_params(key, features, hidden):
    """Deterministic init mimicking PyTorch nn.Linear default (U(+/-1/sqrt(fan_in))).
    Weights are returned already transposed to [in, out], in f32."""
    layer_dims = [
        (features, hidden),   # up[0]
        (hidden, hidden),     # ResBlock L1
        (hidden, hidden),     # ResBlock L2
        (hidden, hidden),     # ResBlock L3
        (hidden, 128),        # down Linear(H, 128)
        (128, 64),            # down Linear(128, 64)
        (64, 32),             # down Linear(64, 32)
        (32, 1),              # down Linear(32, 1)
    ]
    params = []
    for fan_in, fan_out in layer_dims:
        key, kw, kb = jax.random.split(key, 3)
        bound = 1.0 / jnp.sqrt(jnp.float32(fan_in))
        w = jax.random.uniform(kw, (fan_in, fan_out), jnp.float32, -bound, bound)
        b = jax.random.uniform(kb, (1, fan_out), jnp.float32, -bound, bound)
        params.append((w, b))
    return params


def reference_forward(x, params):
    """Pure-JAX f32 reference of the original (unfolded) eval-mode forward.
    Returns (output, pre-tanh logit)."""
    def lin(h, p):
        return h @ p[0] + p[1]

    def leaky(h, alpha):
        return jnp.where(h > 0, h, alpha * h)

    y = lin(x, params[0])
    h = leaky(lin(y, params[1]), 0.1)
    h = leaky(lin(h, params[2]), 0.1)
    h = lin(h, params[3])
    y = jnp.maximum(h + y, 0.0)
    z = lin(y, params[4])
    z = lin(z, params[5])            # Dropout(0.1) is identity in eval
    z = leaky(z, 0.01)
    z = lin(z, params[6])
    z = lin(z, params[7])
    return (jnp.tanh(z) + 1.0) / 2.0, z


if __name__ == "__main__":
    # Small shapes consistent with the module's forward (x is [batch, features]).
    # BATCH not a multiple of TILE_B to exercise the padding path; TILE_B small
    # so the grid has several steps (weights stay VMEM-resident across them).
    BATCH, FEATURES, HIDDEN = 100, 256, 512
    TILE_B = 32

    key = jax.random.PRNGKey(0)
    key, kx = jax.random.split(key)
    x = jax.random.normal(kx, (BATCH, FEATURES), jnp.float32)
    params = init_params(key, FEATURES, HIDDEN)
    packed = pack_params(params, FEATURES, HIDDEN)

    out = predictor_forward(x, packed, tile_b=TILE_B)
    out = jax.block_until_ready(out)

    ref, z_ref = reference_forward(x, params)
    assert out.shape == (BATCH, 1), out.shape
    # int8 per-output-channel weights + bf16 MXU inputs (f32 accumulation).
    assert jnp.allclose(out, ref, atol=3e-2, rtol=3e-2), \
        float(jnp.max(jnp.abs(out - ref)))
    assert bool(jnp.all((out >= 0.0) & (out <= 1.0)))
    # Sign-level check on the pre-tanh logit (away from tanh saturation).
    z_k = jnp.arctanh(jnp.clip(2.0 * out - 1.0, -0.999, 0.999))
    mask = jnp.abs(z_ref) < 1.5
    assert bool(jnp.max(jnp.where(mask, jnp.abs(z_k - z_ref), 0.0)) < 6e-2)

    print("KERNEL_OK")
</pallas_src>

<mosaic_0001>
module attributes {stable_mosaic.version = 11 : i64} {
  func.func @predictor_kernel(%arg0: i32, %arg1: memref<32x256xf32, #tpu.memory_space<vmem>>, %arg2: memref<256x512xi8, #tpu.memory_space<vmem>>, %arg3: memref<3x512x512xi8, #tpu.memory_space<vmem>>, %arg4: memref<512x128xbf16, #tpu.memory_space<vmem>>, %arg5: memref<10x512xf32, #tpu.memory_space<vmem>>, %arg6: memref<32x1xf32, #tpu.memory_space<vmem>>, %arg7: memref<256x512xbf16, #tpu.memory_space<vmem>>, %arg8: memref<3x512x512xbf16, #tpu.memory_space<vmem>>) attributes {dimension_semantics = [#tpu.dimension_semantics<arbitrary>], iteration_bounds = array<i64: 4>, scalar_prefetch = 0 : i64, scratch_operands = 2 : i64, tpu.core_type = #tpu.core_type<tc>, window_params = [{transform_indices = @transform_0, window_bounds = array<i64: 32, 256>}, {pipeline_mode = #tpu.pipeline_mode<synchronous>, transform_indices = @transform_1, window_bounds = array<i64: 256, 512>}, {pipeline_mode = #tpu.pipeline_mode<synchronous>, transform_indices = @transform_2, window_bounds = array<i64: 3, 512, 512>}, {pipeline_mode = #tpu.pipeline_mode<synchronous>, transform_indices = @transform_3, window_bounds = array<i64: 512, 128>}, {pipeline_mode = #tpu.pipeline_mode<synchronous>, transform_indices = @transform_4, window_bounds = array<i64: 10, 512>}, {transform_indices = @transform_5, window_bounds = array<i64: 32, 1>}]} {
    %c0_i32 = arith.constant 0 : i32
    %0 = arith.cmpi eq, %arg0, %c0_i32 : i32
    %1 = arith.extui %0 : i1 to i32
    %c0_i32_0 = arith.constant 0 : i32
    %2 = arith.cmpi ne, %1, %c0_i32_0 : i32
    scf.if %2 {
      %c0_38 = arith.constant 0 : index
      %c0_39 = arith.constant 0 : index
      %66 = vector.load %arg2[%c0_38, %c0_39] : memref<256x512xi8, #tpu.memory_space<vmem>>, vector<256x512xi8>
      %67 = arith.sitofp %66 : vector<256x512xi8> to vector<256x512xf32>
      %c6 = arith.constant 6 : index
      %c0_40 = arith.constant 0 : index
      %68 = vector.load %arg5[%c6, %c0_40] : memref<10x512xf32, #tpu.memory_space<vmem>>, vector<1x512xf32>
      %69 = vector.broadcast %68 : vector<1x512xf32> to vector<256x512xf32>
      %70 = arith.mulf %67, %69 : vector<256x512xf32>
      %71 = arith.truncf %70 : vector<256x512xf32> to vector<256x512xbf16>
      %c0_41 = arith.constant 0 : index
      %c0_42 = arith.constant 0 : index
      %72 = vector.load %arg7[%c0_41, %c0_42] : memref<256x512xbf16, #tpu.memory_space<vmem>>, vector<256x512xbf16>
      tpu.vector_store %arg7[%c0_41, %c0_42], %71 {strides = array<i32>} : memref<256x512xbf16, #tpu.memory_space<vmem>>, vector<256x512xbf16>,
      %c0_43 = arith.constant 0 : index
      %c0_44 = arith.constant 0 : index
      %c0_45 = arith.constant 0 : index
      %73 = vector.load %arg3[%c0_43, %c0_44, %c0_45] : memref<3x512x512xi8, #tpu.memory_space<vmem>>, vector<1x512x512xi8>
      %74 = vector.shape_cast %73 : vector<1x512x512xi8> to vector<512x512xi8>
      %75 = arith.sitofp %74 : vector<512x512xi8> to vector<512x512xf32>
      %c7 = arith.constant 7 : index
      %c0_46 = arith.constant 0 : index
      %76 = vector.load %arg5[%c7, %c0_46] : memref<10x512xf32, #tpu.memory_space<vmem>>, vector<1x512xf32>
      %77 = vector.broadcast %76 : vector<1x512xf32> to vector<512x512xf32>
      %78 = arith.mulf %75, %77 : vector<512x512xf32>
      %79 = arith.truncf %78 : vector<512x512xf32> to vector<512x512xbf16>
      %c0_47 = arith.constant 0 : index
      %c0_48 = arith.constant 0 : index
      %c0_49 = arith.constant 0 : index
      %80 = vector.load %arg8[%c0_47, %c0_48, %c0_49] : memref<3x512x512xbf16, #tpu.memory_space<vmem>>, vector<1x512x512xbf16>
      %81 = vector.shape_cast %80 : vector<1x512x512xbf16> to vector<512x512xbf16>
      %82 = vector.shape_cast %79 : vector<512x512xbf16> to vector<1x512x512xbf16>
      tpu.vector_store %arg8[%c0_47, %c0_48, %c0_49], %82 {strides = array<i32>} : memref<3x512x512xbf16, #tpu.memory_space<vmem>>, vector<1x512x512xbf16>,
      %c1_50 = arith.constant 1 : index
      %c0_51 = arith.constant 0 : index
      %c0_52 = arith.constant 0 : index
      %83 = vector.load %arg3[%c1_50, %c0_51, %c0_52] : memref<3x512x512xi8, #tpu.memory_space<vmem>>, vector<1x512x512xi8>
      %84 = vector.shape_cast %83 : vector<1x512x512xi8> to vector<512x512xi8>
      %85 = arith.sitofp %84 : vector<512x512xi8> to vector<512x512xf32>
      %c8 = arith.constant 8 : index
      %c0_53 = arith.constant 0 : index
      %86 = vector.load %arg5[%c8, %c0_53] : memref<10x512xf32, #tpu.memory_space<vmem>>, vector<1x512xf32>
      %87 = vector.broadcast %86 : vector<1x512xf32> to vector<512x512xf32>
      %88 = arith.mulf %85, %87 : vector<512x512xf32>
      %89 = arith.truncf %88 : vector<512x512xf32> to vector<512x512xbf16>
      %c1_54 = arith.constant 1 : index
      %c0_55 = arith.constant 0 : index
      %c0_56 = arith.constant 0 : index
      %90 = vector.load %arg8[%c1_54, %c0_55, %c0_56] : memref<3x512x512xbf16, #tpu.memory_space<vmem>>, vector<1x512x512xbf16>
      %91 = vector.shape_cast %90 : vector<1x512x512xbf16> to vector<512x512xbf16>
      %92 = vector.shape_cast %89 : vector<512x512xbf16> to vector<1x512x512xbf16>
      tpu.vector_store %arg8[%c1_54, %c0_55, %c0_56], %92 {strides = array<i32>} : memref<3x512x512xbf16, #tpu.memory_space<vmem>>, vector<1x512x512xbf16>,
      %c2_57 = arith.constant 2 : index
      %c0_58 = arith.constant 0 : index
      %c0_59 = arith.constant 0 : index
      %93 = vector.load %arg3[%c2_57, %c0_58, %c0_59] : memref<3x512x512xi8, #tpu.memory_space<vmem>>, vector<1x512x512xi8>
      %94 = vector.shape_cast %93 : vector<1x512x512xi8> to vector<512x512xi8>
      %95 = arith.sitofp %94 : vector<512x512xi8> to vector<512x512xf32>
      %c9 = arith.constant 9 : index
      %c0_60 = arith.constant 0 : index
      %96 = vector.load %arg5[%c9, %c0_60] : memref<10x512xf32, #tpu.memory_space<vmem>>, vector<1x512xf32>
      %97 = vector.broadcast %96 : vector<1x512xf32> to vector<512x512xf32>
      %98 = arith.mulf %95, %97 : vector<512x512xf32>
      %99 = arith.truncf %98 : vector<512x512xf32> to vector<512x512xbf16>
      %c2_61 = arith.constant 2 : index
      %c0_62 = arith.constant 0 : index
      %c0_63 = arith.constant 0 : index
      %100 = vector.load %arg8[%c2_61, %c0_62, %c0_63] : memref<3x512x512xbf16, #tpu.memory_space<vmem>>, vector<1x512x512xbf16>
      %101 = vector.shape_cast %100 : vector<1x512x512xbf16> to vector<512x512xbf16>
      %102 = vector.shape_cast %99 : vector<512x512xbf16> to vector<1x512x512xbf16>
      tpu.vector_store %arg8[%c2_61, %c0_62, %c0_63], %102 {strides = array<i32>} : memref<3x512x512xbf16, #tpu.memory_space<vmem>>, vector<1x512x512xbf16>,
    } else {
    }
    %c0 = arith.constant 0 : index
    %c0_1 = arith.constant 0 : index
    %3 = vector.load %arg1[%c0, %c0_1] : memref<32x256xf32, #tpu.memory_space<vmem>>, vector<32x256xf32>
    %c0_2 = arith.constant 0 : index
    %c0_3 = arith.constant 0 : index
    %4 = vector.load %arg7[%c0_2, %c0_3] : memref<256x512xbf16, #tpu.memory_space<vmem>>, vector<256x512xbf16>
    %c0_4 = arith.constant 0 : index
    %c0_5 = arith.constant 0 : index
    %5 = vector.load %arg5[%c0_4, %c0_5] : memref<10x512xf32, #tpu.memory_space<vmem>>, vector<1x512xf32>
    %6 = arith.truncf %3 : vector<32x256xf32> to vector<32x256xbf16>
    %cst = arith.constant dense<0.000000e+00> : vector<32x512xf32>
    %7 = tpu.matmul %6, %4, %cst {dimension_numbers = #tpu.dot_dimension_numbers<[1], [0], [0], [1], [0, 0, 1, 1], [], []>} : vector<32x256xbf16>, vector<256x512xbf16>, vector<32x512xf32> -> vector<32x512xf32>
    %8 = vector.broadcast %5 : vector<1x512xf32> to vector<32x512xf32>
    %9 = arith.addf %7, %8 : vector<32x512xf32>
    %c0_6 = arith.constant 0 : index
    %c0_7 = arith.constant 0 : index
    %c0_8 = arith.constant 0 : index
    %10 = vector.load %arg8[%c0_6, %c0_7, %c0_8] : memref<3x512x512xbf16, #tpu.memory_space<vmem>>, vector<1x512x512xbf16>
    %11 = vector.shape_cast %10 : vector<1x512x512xbf16> to vector<512x512xbf16>
    %c1 = arith.constant 1 : index
    %c0_9 = arith.constant 0 : index
    %12 = vector.load %arg5[%c1, %c0_9] : memref<10x512xf32, #tpu.memory_space<vmem>>, vector<1x512xf32>
    %13 = arith.truncf %9 : vector<32x512xf32> to vector<32x512xbf16>
    %cst_10 = arith.constant dense<0.000000e+00> : vector<32x512xf32>
    %14 = tpu.matmul %13, %11, %cst_10 {dimension_numbers = #tpu.dot_dimension_numbers<[1], [0], [0], [1], [0, 0, 1, 1], [], []>} : vector<32x512xbf16>, vector<512x512xbf16>, vector<32x512xf32> -> vector<32x512xf32>
    %15 = vector.broadcast %12 : vector<1x512xf32> to vector<32x512xf32>
    %16 = arith.addf %14, %15 : vector<32x512xf32>
    %cst_11 = arith.constant 0.000000e+00 : f32
    %17 = vector.broadcast %cst_11 : f32 to vector<32x512xf32>
    %18 = arith.cmpf ogt, %16, %17 : vector<32x512xf32>
    %cst_12 = arith.constant 1.000000e-01 : f32
    %19 = vector.broadcast %cst_12 : f32 to vector<32x512xf32>
    %20 = arith.mulf %19, %16 : vector<32x512xf32>
    %21 = arith.select %18, %16, %20 : vector<32x512xi1>, vector<32x512xf32>
    %c1_13 = arith.constant 1 : index
    %c0_14 = arith.constant 0 : index
    %c0_15 = arith.constant 0 : index
    %22 = vector.load %arg8[%c1_13, %c0_14, %c0_15] : memref<3x512x512xbf16, #tpu.memory_space<vmem>>, vector<1x512x512xbf16>
    %23 = vector.shape_cast %22 : vector<1x512x512xbf16> to vector<512x512xbf16>
    %c2 = arith.constant 2 : index
    %c0_16 = arith.constant 0 : index
    %24 = vector.load %arg5[%c2, %c0_16] : memref<10x512xf32, #tpu.memory_space<vmem>>, vector<1x512xf32>
    %25 = arith.truncf %21 : vector<32x512xf32> to vector<32x512xbf16>
    %cst_17 = arith.constant dense<0.000000e+00> : vector<32x512xf32>
    %26 = tpu.matmul %25, %23, %cst_17 {dimension_numbers = #tpu.dot_dimension_numbers<[1], [0], [0], [1], [0, 0, 1, 1], [], []>} : vector<32x512xbf16>, vector<512x512xbf16>, vector<32x512xf32> -> vector<32x512xf32>
    %27 = vector.broadcast %24 : vector<1x512xf32> to vector<32x512xf32>
    %28 = arith.addf %26, %27 : vector<32x512xf32>
    %cst_18 = arith.constant 0.000000e+00 : f32
    %29 = vector.broadcast %cst_18 : f32 to vector<32x512xf32>
    %30 = arith.cmpf ogt, %28, %29 : vector<32x512xf32>
    %cst_19 = arith.constant 1.000000e-01 : f32
    %31 = vector.broadcast %cst_19 : f32 to vector<32x512xf32>
    %32 = arith.mulf %31, %28 : vector<32x512xf32>
    %33 = arith.select %30, %28, %32 : vector<32x512xi1>, vector<32x512xf32>
    %c2_20 = arith.constant 2 : index
    %c0_21 = arith.constant 0 : index
    %c0_22 = arith.constant 0 : index
    %34 = vector.load %arg8[%c2_20, %c0_21, %c0_22] : memref<3x512x512xbf16, #tpu.memory_space<vmem>>, vector<1x512x512xbf16>
    %35 = vector.shape_cast %34 : vector<1x512x512xbf16> to vector<512x512xbf16>
    %c3 = arith.constant 3 : index
    %c0_23 = arith.constant 0 : index
    %36 = vector.load %arg5[%c3, %c0_23] : memref<10x512xf32, #tpu.memory_space<vmem>>, vector<1x512xf32>
    %37 = arith.truncf %33 : vector<32x512xf32> to vector<32x512xbf16>
    %cst_24 = arith.constant dense<0.000000e+00> : vector<32x512xf32>
    %38 = tpu.matmul %37, %35, %cst_24 {dimension_numbers = #tpu.dot_dimension_numbers<[1], [0], [0], [1], [0, 0, 1, 1], [], []>} : vector<32x512xbf16>, vector<512x512xbf16>, vector<32x512xf32> -> vector<32x512xf32>
    %39 = vector.broadcast %36 : vector<1x512xf32> to vector<32x512xf32>
    %40 = arith.addf %38, %39 : vector<32x512xf32>
    %41 = arith.addf %40, %9 : vector<32x512xf32>
    %cst_25 = arith.constant 0.000000e+00 : f32
    %42 = vector.broadcast %cst_25 : f32 to vector<32x512xf32>
    %43 = arith.maximumf %41, %42 : vector<32x512xf32>
    %c0_26 = arith.constant 0 : index
    %c0_27 = arith.constant 0 : index
    %44 = vector.load %arg4[%c0_26, %c0_27] : memref<512x128xbf16, #tpu.memory_space<vmem>>, vector<512x128xbf16>
    %c4 = arith.constant 4 : index
    %c0_28 = arith.constant 0 : index
    %45 = vector.load %arg5[%c4, %c0_28] : memref<10x512xf32, #tpu.memory_space<vmem>>, vector<1x128xf32>
    %46 = arith.truncf %43 : vector<32x512xf32> to vector<32x512xbf16>
    %cst_29 = arith.constant dense<0.000000e+00> : vector<32x128xf32>
    %47 = tpu.matmul %46, %44, %cst_29 {dimension_numbers = #tpu.dot_dimension_numbers<[1], [0], [0], [1], [0, 0, 1, 1], [], []>} : vector<32x512xbf16>, vector<512x128xbf16>, vector<32x128xf32> -> vector<32x128xf32>
    %48 = vector.broadcast %45 : vector<1x128xf32> to vector<32x128xf32>
    %49 = arith.addf %47, %48 : vector<32x128xf32>
    %cst_30 = arith.constant 0.000000e+00 : f32
    %50 = vector.broadcast %cst_30 : f32 to vector<32x128xf32>
    %51 = arith.cmpf ogt, %49, %50 : vector<32x128xf32>
    %cst_31 = arith.constant 0.00999999977 : f32
    %52 = vector.broadcast %cst_31 : f32 to vector<32x128xf32>
    %53 = arith.mulf %52, %49 : vector<32x128xf32>
    %54 = arith.select %51, %49, %53 : vector<32x128xi1>, vector<32x128xf32>
    %c5 = arith.constant 5 : index
    %c0_32 = arith.constant 0 : index
    %55 = vector.load %arg5[%c5, %c0_32] : memref<10x512xf32, #tpu.memory_space<vmem>>, vector<1x128xf32>
    %56 = vector.broadcast %55 : vector<1x128xf32> to vector<32x128xf32>
    %57 = arith.mulf %54, %56 : vector<32x128xf32>
    %cst_33 = arith.constant dense<0.000000e+00> : vector<32xf32>
    %58 = vector.multi_reduction <add>, %57, %cst_33 [1] : vector<32x128xf32> to vector<32xf32>
    %59 = vector.shape_cast %58 : vector<32xf32> to vector<32x1xf32>
    %60 = math.tanh %59 : vector<32x1xf32>
    %cst_34 = arith.constant 1.000000e+00 : f32
    %61 = vector.broadcast %cst_34 : f32 to vector<32x1xf32>
    %62 = arith.addf %60, %61 : vector<32x1xf32>
    %cst_35 = arith.constant 5.000000e-01 : f32
    %63 = vector.broadcast %cst_35 : f32 to vector<32x1xf32>
    %64 = arith.mulf %62, %63 : vector<32x1xf32>
    %c0_36 = arith.constant 0 : index
    %c0_37 = arith.constant 0 : index
    %65 = vector.load %arg6[%c0_36, %c0_37] : memref<32x1xf32, #tpu.memory_space<vmem>>, vector<32x1xf32>
    tpu.vector_store %arg6[%c0_36, %c0_37], %64 {strides = array<i32>} : memref<32x1xf32, #tpu.memory_space<vmem>>, vector<32x1xf32>,
    return
  }
  func.func @transform_0(%arg0: i32) -> (i32, i32) {
    %c0_i32 = arith.constant 0 : i32
    %c0_i32_0 = arith.constant 0 : i32
    return %arg0, %c0_i32 : i32, i32
  }
  func.func @transform_1(%arg0: i32) -> (i32, i32) {
    %c0_i32 = arith.constant 0 : i32
    %c0_i32_0 = arith.constant 0 : i32
    %c0_i32_1 = arith.constant 0 : i32
    return %c0_i32, %c0_i32_0 : i32, i32
  }
  func.func @transform_2(%arg0: i32) -> (i32, i32, i32) {
    %c0_i32 = arith.constant 0 : i32
    %c0_i32_0 = arith.constant 0 : i32
    %c0_i32_1 = arith.constant 0 : i32
    %c0_i32_2 = arith.constant 0 : i32
    return %c0_i32, %c0_i32_0, %c0_i32_1 : i32, i32, i32
  }
  func.func @transform_3(%arg0: i32) -> (i32, i32) {
    %c0_i32 = arith.constant 0 : i32
    %c0_i32_0 = arith.constant 0 : i32
    %c0_i32_1 = arith.constant 0 : i32
    return %c0_i32, %c0_i32_0 : i32, i32
  }
  func.func @transform_4(%arg0: i32) -> (i32, i32) {
    %c0_i32 = arith.constant 0 : i32
    %c0_i32_0 = arith.constant 0 : i32
    %c0_i32_1 = arith.constant 0 : i32
    return %c0_i32, %c0_i32_0 : i32, i32
  }
  func.func @transform_5(%arg0: i32) -> (i32, i32) {
    %c0_i32 = arith.constant 0 : i32
    %c0_i32_0 = arith.constant 0 : i32
    return %arg0, %c0_i32 : i32, i32
  }
}

</mosaic_0001>

<bundles_post_ra>
// kernel: tpu_custom_call.1
= control target key start
LH: loop header
LB: loop body
LE: loop exit
PB: predicated region body
PF: predicated region fallthrough
CT: control target
= control target key end

     0   :  { %10 = vsyncpa [#allocation5], 0  ;;  %s8145_s0 = inlined_call_operand.hbm [shape: f32[128,256], index: 0, kind: input, shape index: {}]   ;;  %s8146_s1 = inlined_call_operand.hbm [shape: s8[256,512], index: 1, kind: input, shape index: {}]   ;;  %s8147_s2 = inlined_call_operand.hbm [shape: s8[3,512,512], index: 2, kind: input, shape index: {}]   ;;  %s8148_s3 = inlined_call_operand.hbm [shape: bf16[512,128], index: 3, kind: input, shape index: {}]   ;;  %s8149_s4 = inlined_call_operand.hbm [shape: f32[10,512], index: 4, kind: input, shape index: {}]   ;;  %s8150_s5 = inlined_call_operand.vmem [shape: f32[128,1], index: 5, kind: output, shape index: {}]  }
   0x1   :  { %12 = vsyncpa [#allocation5 + $0x1], 0 }
   0x2   :  { %13 = vsyncpa [#allocation7], 0 }
   0x3   :  { %14 = vsyncpa [#allocation10], 0  ;;  %s6734_s18 = smov 0   ;;  %s6736_s19 = smov 0  }
   0x4   :  { %s6738_s20 = smov 0   ;;  %s6740_s21 = smov 0  }
   0x5 LB: > { %s6753_s22 = sadd.s32 4294967295, %s6691_s21   ;;  %p40_p0 = scmp.ne.s32.totalorder %s6683_s19, %s6679_s18  ;;  %s6691_s21 = sphi %s6740_s21, %s8169_s21   ;;  %s6687_s20 = sphi %s6738_s20, %s8168_s20   ;;  %s6683_s19 = sphi %s6736_s19, %s8167_s19   ;;  %s6679_s18 = sphi %s6734_s18, %s8166_s18  }
   0x6   : > { %p8151_p1 = scmp.eq.s32.totalorder %s6753_s22, 0  ;;  %p6174_p2 = scmp.ge.s32.totalorder %s6691_s21, 1 }
   0x7   : > { %p161_p3 = scmp.lt.s32.totalorder %s6691_s21, 5  ;;  %s6693_s25 = smov [#allocation6]  }
   0x8   : > { %p6762_p5 = por %p8151_p1, %p40_p0  ;;  %s173_s26 = sshll.u32 %s6693_s25, 4  ;;  %s174_s26 = int_to_ptr.vmem [resolvable:$true] %s173_s26 }
   0x9   : > { %p6766_p6 = pnand %p6174_p2, %p161_p3  ;;  %s6694_s28 = smov [#allocation9]  }
   0xa   : > { %s8154_s23 = scalar_select %p6762_p5, 1, 0 }
   0xb   : > { %s8155_s24 = scalar_select %p6766_p6, 1, 0 }
   0xc   : > { %p6399_p7 = pneg %p6766_p6  ;;  %s199_s29 = sshll.u32 %s6694_s28, 4  ;;  %s6778_s29 = int_to_ptr.vmem [resolvable:$true] %s199_s29 }
   0xd   : > { %s6507_s7 = scalar_lea.hbm %s8146_s1, 4096 }
   0xe   : > { %p6774_p8 = pnand %p6399_p7, %p8151_p1  ;;  %p6508_p9 = scmp.ne.s32.totalorder %s8146_s1, %s6507_s7 }
   0xf   : > { %p6514_p13 = scmp.lt.u32.totalorder %s6507_s7, %s8146_s1 }
  0x10   : > { %p6788_p10 = pneg %p6774_p8 }
  0x12   : > { %p6510_p11 = pnand %p6788_p10, %p6508_p9 }
  0x14   : > { %p6511_p12 = pneg %p6510_p11 }
  0x16   : > { %p6516_p0 = pnand %p6514_p13, %p6511_p12 }
  0x18   : > { %6519 = shalt.err (!%p6516_p0)
}
  0x19   : > { %s6520_s13 = scalar_lea.vmem %s174_s26, 4096  ;;  %p6528_p4 = scmp.lt.s32.totalorder %s174_s26, %s174_s26 }
  0x1a   : > { %p6521_p2 = scmp.ne.s32.totalorder %s174_s26, %s6520_s13  ;;  %p6529_p1 = scmp.lt.s32.totalorder %s6520_s13, %s6520_s13 }
  0x1c   : > { %p6523_p3 = pnand %p6521_p2, %p6788_p10  ;;  %p6530_p5 = por %p6529_p1, %p6528_p4 }
  0x1e   : > { %p6524_p7 = pneg %p6523_p3 }
  0x20   : > { %p6531_p6 = pnand %p6530_p5, %p6524_p7 }
  0x22   : > { %6534 = shalt.err (!%p6531_p6)
}
  0x23   : > { %s6695_s14 = smov 512   ;;  %s6696_s15 = smov 32  }
  0x24   : > { %6402 = dma.hbm_to_vmem [thread:$0]  (!%p6774_p8), %s8146_s1, 4096, %s174_s26, [#allocation7], %s6695_s14, %s6695_s14, %s6696_s15  }
  0x25   : > { %s6535_s28 = scalar_lea.hbm %s8148_s3, 4096 }
  0x26   : > { %p6536_p1 = scmp.ne.s32.totalorder %s8148_s3, %s6535_s28  ;;  %p6542_p6 = scmp.lt.u32.totalorder %s6535_s28, %s8148_s3 }
  0x28   : > { %p6538_p4 = pnand %p6536_p1, %p6788_p10 }
  0x2a   : > { %p6539_p5 = pneg %p6538_p4 }
  0x2c   : > { %p6544_p9 = pnand %p6542_p6, %p6539_p5 }
  0x2e   : > { %6547 = shalt.err (!%p6544_p9)
}
  0x2f   : > { %s6548_s26 = scalar_lea.vmem %s6778_s29, 4096  ;;  %p6556_p0 = scmp.lt.s32.totalorder %s6778_s29, %s6778_s29 }
  0x30   : > { %p6549_p11 = scmp.ne.s32.totalorder %s6778_s29, %s6548_s26  ;;  %p6557_p2 = scmp.lt.s32.totalorder %s6548_s26, %s6548_s26 }
  0x32   : > { %p6551_p12 = pnand %p6549_p11, %p6788_p10  ;;  %p6558_p3 = por %p6557_p2, %p6556_p0 }
  0x34   : > { %p6552_p13 = pneg %p6551_p12 }
  0x36   : > { %p6559_p7 = pnand %p6558_p3, %p6552_p13 }
  0x38   : > { %6562 = shalt.err (!%p6559_p7)
}
  0x39   : > { %s6697_s9 = smov 64   ;;  %s6698_s11 = smov 4  }
  0x3a   : > { %6408 = dma.hbm_to_vmem [thread:$0]  (!%p6774_p8), %s8148_s3, 4096, %s6778_s29, [#allocation10], %s6697_s9, %s6697_s9, %s6698_s11  }
  0x3b   : > { %s6699_s16 = smov [#allocation8]   ;;  %s6700_s18 = smov [#allocation11]  }
  0x3c   : > { %s186_s17 = sshll.u32 %s6699_s16, 4  ;;  %s212_s25 = sshll.u32 %s6700_s18, 4  ;;  %s187_s17 = int_to_ptr.vmem [resolvable:$true] %s186_s17  ;;  %s6830_s25 = int_to_ptr.vmem [resolvable:$true] %s212_s25 }
  0x3d   : > { %s6563_s6 = scalar_lea.hbm %s8147_s2, 24576 }
  0x3e   : > { %p6564_p1 = scmp.ne.s32.totalorder %s8147_s2, %s6563_s6  ;;  %p6570_p6 = scmp.lt.u32.totalorder %s6563_s6, %s8147_s2 }
  0x40   : > { %p6566_p4 = pnand %p6564_p1, %p6788_p10 }
  0x42   : > { %p6567_p5 = pneg %p6566_p4 }
  0x44   : > { %p6572_p9 = pnand %p6570_p6, %p6567_p5 }
  0x46   : > { %6575 = shalt.err (!%p6572_p9)
}
  0x47   : > { %s6576_s9 = scalar_lea.vmem %s187_s17, 24576  ;;  %p6584_p0 = scmp.lt.s32.totalorder %s187_s17, %s187_s17 }
  0x48   : > { %p6577_p11 = scmp.ne.s32.totalorder %s187_s17, %s6576_s9  ;;  %p6585_p2 = scmp.lt.s32.totalorder %s6576_s9, %s6576_s9 }
  0x4a   : > { %p6579_p12 = pnand %p6577_p11, %p6788_p10  ;;  %p6586_p3 = por %p6585_p2, %p6584_p0 }
  0x4c   : > { %p6580_p13 = pneg %p6579_p12 }
  0x4e   : > { %p6587_p7 = pnand %p6586_p3, %p6580_p13 }
  0x50   : > { %6590 = shalt.err (!%p6587_p7)
}
  0x51   : > { %6405 = dma.hbm_to_vmem [thread:$0]  (!%p6774_p8), %s8147_s2, 24576, %s187_s17, [#allocation7], %s6695_s14, %s6695_s14, %s6696_s15  }
  0x52   : > { %s6591_s18 = scalar_lea.hbm %s8149_s4, 1024 }
  0x53   : > { %p6592_p1 = scmp.ne.s32.totalorder %s8149_s4, %s6591_s18  ;;  %p6598_p6 = scmp.lt.u32.totalorder %s6591_s18, %s8149_s4 }
  0x55   : > { %p6594_p4 = pnand %p6592_p1, %p6788_p10 }
  0x57   : > { %p6595_p5 = pneg %p6594_p4 }
  0x59   : > { %p6600_p9 = pnand %p6598_p6, %p6595_p5 }
  0x5b   : > { %6603 = shalt.err (!%p6600_p9)
}
  0x5c   : > { %s6604_s17 = scalar_lea.vmem %s6830_s25, 1024  ;;  %p6612_p0 = scmp.lt.s32.totalorder %s6830_s25, %s6830_s25 }
  0x5d   : > { %p6605_p11 = scmp.ne.s32.totalorder %s6830_s25, %s6604_s17  ;;  %p6613_p2 = scmp.lt.s32.totalorder %s6604_s17, %s6604_s17 }
  0x5f   : > { %p6607_p12 = pnand %p6605_p11, %p6788_p10  ;;  %p6614_p3 = por %p6613_p2, %p6612_p0 }
  0x61   : > { %p6608_p13 = pneg %p6607_p12 }
  0x63   : > { %p6615_p7 = pnand %p6614_p3, %p6608_p13 }
  0x65   : > { %6618 = shalt.err (!%p6615_p7)
}
  0x66   : > { %6411 = dma.hbm_to_vmem [thread:$0]  (!%p6774_p8), %s8149_s4, 1024, %s6830_s25, [#allocation10], %s6695_s14, %s6695_s14, %s6696_s15  }
  0x67   : > { %s6880_s10 = sadd.s32 1, %s6691_s21   ;;  %s27_s29 = sadd.s32 1, %s6687_s20 }
  0x68   : > { %s24_s27 = ssub.s32 %s6691_s21, %s6880_s10  ;;  %p34_p1 = scmp.ne.s32.totalorder %s6687_s20, %s6683_s19 }
  0x69   : > { %p25_p10 = scmp.eq.s32.totalorder %s24_s27, 0  ;;  %p35_p4 = scmp.eq.s32.totalorder %s6691_s21, 0 }
  0x6a   : > { %p6420_p6 = scmp.lt.s32.totalorder %s6691_s21, 4  ;;  %s226_s11 = sand.u32 1, %s6687_s20  }
  0x6b   : > { %s6889_s9 = scalar_select %p25_p10, %s6687_s20, %s27_s29  }
  0x6c   : > { %p36_p5 = por %p35_p4, %p34_p1  ;;  %s6228_s12 = sshll.u32 %s6691_s21, 10 }
  0x6d   : > { %s6180_s13 = sshll.u32 %s226_s11, 6  ;;  %s6897_s28 = scalar_lea.hbm %s8145_s0, %s6228_s12 }
  0x6e   : > { %s230_s14 = scalar_lea.vmem [#allocation4], %s6180_s13  ;;  %p6899_p8 = pnand %p6420_p6, %p36_p5 }
  0x6f   : > { %s238_s15 = sshll.u32 %s230_s14, 4  ;;  %s6905_s21 = scalar_lea.sflag [#allocation5], %s226_s11  ;;  %s6903_s15 = int_to_ptr.vmem [resolvable:$true] %s238_s15 }
  0x70   : > { %s6619_s30 = scalar_lea.hbm %s6897_s28, 1024  ;;  %p6621_p11 = pneg %p6899_p8 }
  0x71   : > { %p6620_p9 = scmp.ne.s32.totalorder %s6897_s28, %s6619_s30  ;;  %s6624_s17 = scalar_lea.hbm %s8145_s0, 4096 }
  0x72   : > { %p6625_p0 = scmp.lt.u32.totalorder %s6897_s28, %s8145_s0  ;;  %p6626_p2 = scmp.lt.u32.totalorder %s6624_s17, %s6619_s30 }
  0x73   : > { %p6622_p12 = pnand %p6621_p11, %p6620_p9  ;;  %p6628_p7 = scmp.lt.u32.totalorder %s6619_s30, %s6897_s28 }
  0x74   : > { %p6627_p3 = por %p6626_p2, %p6625_p0 }
  0x75   : > { %p6623_p13 = pneg %p6622_p12 }
  0x76   : > { %p6629_p10 = por %p6628_p7, %p6627_p3 }
  0x78   : > { %p6630_p1 = pnand %p6629_p10, %p6623_p13 }
  0x7a   : > { %6633 = shalt.err (!%p6630_p1)
}
  0x7b   : > { %s6634_s27 = scalar_lea.vmem %s6903_s15, 1024  ;;  %s6701_s29 = smov [#allocation4]  }
  0x7c   : > { %p6635_p4 = scmp.ne.s32.totalorder %s6903_s15, %s6634_s27  ;;  %s6639_s11 = sshll.u32 %s6701_s29, 4  ;;  %s6640_s11 = int_to_ptr.vmem [resolvable:$false] %s6639_s11 }
  0x7d   : > { %s6641_s12 = scalar_lea.vmem %s6640_s11, 2048  ;;  %p6642_p9 = scmp.lt.s32.totalorder %s6903_s15, %s6640_s11 }
  0x7e   : > { %p6637_p5 = pnand %p6635_p4, %p6621_p11  ;;  %p6643_p12 = scmp.lt.s32.totalorder %s6641_s12, %s6634_s27 }
  0x80   : > { %p6638_p6 = pneg %p6637_p5  ;;  %p6644_p0 = por %p6643_p12, %p6642_p9 }
  0x82   : > { %p6645_p2 = pnand %p6644_p0, %p6638_p6 }
  0x84   : > { %6648 = shalt.err (!%p6645_p2)
}
  0x85   : > { %s6702_s13 = smov 256   ;;  %s6703_s16 = smov 16  }
  0x86   : > { %6415 = dma.hbm_to_vmem [thread:$0]  (!%p6899_p8), %s6897_s28, 1024, %s6903_s15, %s6905_s21, %s6702_s13, %s6702_s13, %s6703_s16  }
  0x87   : > { %p8159_p11 = scmp.ne.s32.totalorder %s8155_s24, 0 }
  0x88   : > { %s252_s18 = sand.u32 (!%p8159_p11), 1, %s6683_s19   ;;  %p8160_p13 = scmp.ne.s32.totalorder (!%p8159_p11), %s8154_s23, 0 }
  0x89   : > { %250 = sbr.rel (%p8159_p11) target bundleno = 2499 (0x9c3), region = 40  ;;  %s6185_s14 = sshll.u32 (!%p8159_p11), %s252_s18, 6 }
  0x8a   : > { %s253_s30 = scalar_lea.sflag (!%p8159_p11), [#allocation5], %s252_s18  ;;  %s6936_s6 = scalar_lea.vmem (!%p8159_p11), [#allocation4], %s6185_s14 }
  0x90   : > { %6666 = dma.done.wait (%p8160_p13), %s253_s30, 1024  }
  0x91   : > { %6668 = vsyncadd (%p8160_p13), %s253_s30, 4294966272  ;;  %p8161_p3 = scmp.eq.s32.totalorder %s6753_s22, 0 }
  0x93   : > { %6670 = dma.done.wait (%p8161_p3), [#allocation7], 28672   ;;  %p8162_p8 = pmov %p8161_p3 }
  0x94   : > { %p8163_p7 = pmov %p8161_p3 }
  0x95   : > { %6672 = vsyncadd (%p8162_p8), [#allocation7], 4294938624 }
  0x96   : > { %6674 = dma.done.wait (%p8163_p7), [#allocation10], 5120   ;;  %p8164_p10 = pmov %p8161_p3 }
  0x97   : > { %s6190_s24 = sshll.u32 %s6753_s22, 2  ;;  %p8165_p4 = scmp.ne.s32.totalorder %s6753_s22, 0 }
  0x98   : > { %6676 = vsyncadd (%p8164_p10), [#allocation10], 4294962176  ;;  %p301_p1 = scmp.lt.s32.totalorder %s6190_s24, 15  ;;  %v311_v0 = vld [vmem:[#allocation6] sm:$0xff] (!%p8165_p4)  ;;  %v602_v1 = vlaneseq (!%p8165_p4)  ;;  %v6958_v2 = vld [vmem:[#allocation6 + $0x8] sm:$0xff] (!%p8165_p4) }
  0x99   : > { %310 = sbr.rel (%p8165_p4) target bundleno = 948 (0x3b4), region = 64  ;;  %v343_v3 = vunpack.c.0.s8 (!%p8165_p4), %v311_v0  ;;  %v347_v4 = vunpack.c.1.s8 (!%p8165_p4), %v311_v0  ;;  %v600_v5 = vld [vmem:[#allocation11 + $0x6] ss:$8 sm:$0xf] (!%p8165_p4)  ;;  %v344_v6 = vunpack.c.0.s8 (!%p8165_p4), %v6958_v2  ;;  %v348_v7 = vunpack.c.1.s8 (!%p8165_p4), %v6958_v2 }
  0x9a   : > { %s8171_s24 = smov (!%p301_p1, %s6190_s24), 15  ;;  %v603_v8 = vshrl.u32 (!%p8165_p4), %v602_v1, 7  ;;  %v1455_v9 = vld [vmem:[#allocation11 + $0x7] ss:$8 sm:$0xf] (!%p8165_p4)  ;;  %v351_v12 = vunpack.c.2.s8 (!%p8165_p4), %v311_v0  ;;  %v355_v13 = vunpack.c.3.s8 (!%p8165_p4), %v311_v0  ;;  %v352_v14 = vunpack.c.2.s8 (!%p8165_p4), %v6958_v2 }
  0x9b   : > { %s6191_s28 = sshll.u32 %s8171_s24, 3  ;;  %v6962_v10 = vld [vmem:[#allocation6 + $0x10] sm:$0xff] (!%p8165_p4)  ;;  %v6964_v11 = vld [vmem:[#allocation6 + $0x18] sm:$0xff] (!%p8165_p4)  ;;  %v471_v15 = vcvt.s32.f32 (!%p8165_p4), %v343_v3  ;;  %v475_v16 = vcvt.s32.f32 (!%p8165_p4), %v347_v4  ;;  %v472_v19 = vcvt.s32.f32 (!%p8165_p4), %v344_v6  ;;  %v476_v20 = vcvt.s32.f32 (!%p8165_p4), %v348_v7  ;;  %v315_v6 = vld [vmem:[#allocation6 + $0x20] sm:$0xff] (!%p8165_p4) }
  0x9c   : > { %s6954_s25 = scalar_lea.vmem %s8150_s5, %s6191_s28  ;;  %v2567_v17 = vld [vmem:[#allocation11 + $0x20] ss:$8 sm:$0xf] (!%p8165_p4)  ;;  %v3680_v18 = vld [vmem:[#allocation11 + $0x21] ss:$8 sm:$0xf] (!%p8165_p4)  ;;  %v345_v23 = vunpack.c.0.s8 (!%p8165_p4), %v6962_v10  ;;  %v349_v24 = vunpack.c.1.s8 (!%p8165_p4), %v6962_v10  ;;  %v346_v26 = vunpack.c.0.s8 (!%p8165_p4), %v6964_v11  ;;  %v350_v27 = vunpack.c.1.s8 (!%p8165_p4), %v6964_v11 }
  0x9d   : > { %v604_v21 = vsub.s32 (!%p8165_p4), 0, %v603_v8  ;;  %v608_v22 = vsub.s32 (!%p8165_p4), 1, %v603_v8  ;;  %v612_v25 = vsub.s32 (!%p8165_p4), 2, %v603_v8  ;;  %v616_v28 = vsub.s32 (!%p8165_p4), 3, %v603_v8 }
  0x9e   : > { %v473_v39 = vcvt.s32.f32 (!%p8165_p4), %v345_v23  ;;  %v477_v40 = vcvt.s32.f32 (!%p8165_p4), %v349_v24  ;;  %v474_v48 = vcvt.s32.f32 (!%p8165_p4), %v346_v26  ;;  %v478_v52 = vcvt.s32.f32 (!%p8165_p4), %v350_v27 }
  0x9f   : > { %v6971_v29 = vrot.slane (!%p8165_p4), %v600_v5, %v604_v21  ;;  %v6973_v30 = vrot.slane (!%p8165_p4), %v1455_v9, %v604_v21  ;;  %v6975_v31 = vrot.slane (!%p8165_p4), %v2567_v17, %v604_v21  ;;  %v6977_v32 = vrot.slane (!%p8165_p4), %v3680_v18, %v604_v21 }
  0xa0   : > { %v6979_v33 = vrot.slane %v600_v5, %v608_v22  ;;  %v6981_v34 = vrot.slane %v1455_v9, %v608_v22  ;;  %v6983_v35 = vrot.slane %v2567_v17, %v608_v22  ;;  %v6985_v36 = vrot.slane %v3680_v18, %v608_v22 }
  0xa1   : > { %v622_v37 = vmul.f32 %v6971_v29, %v471_v15  ;;  %v626_v38 = vmul.f32 %v6971_v29, %v475_v16  ;;  %v6991_v43 = vrot.slane %v600_v5, %v612_v25  ;;  %v6993_v44 = vrot.slane %v1455_v9, %v612_v25 }
  0xa2   : > { %v623_v41 = vmul.f32 %v6979_v33, %v472_v19  ;;  %v627_v42 = vmul.f32 %v6979_v33, %v476_v20  ;;  %v6995_v46 = vrot.slane %v2567_v17, %v612_v25  ;;  %v6997_v47 = vrot.slane %v3680_v18, %v612_v25  ;;  %v317_v20 = vld [vmem:[#allocation6 + $0x30] sm:$0xff] }
  0xa3   : > { %v750_v45 = vpack.c.bf16 %v626_v38, %v622_v37  ;;  %v624_v50 = vmul.f32 %v6991_v43, %v473_v39  ;;  %v628_v51 = vmul.f32 %v6991_v43, %v477_v40  ;;  %v7001_v53 = vrot.slane %v600_v5, %v616_v28  ;;  %v318_v37 = vld [vmem:[#allocation6 + $0x38] sm:$0xff] }
  0xa4   : > { %v751_v49 = vpack.c.bf16 %v627_v42, %v623_v41  ;;  %v7003_v54 = vrot.slane %v1455_v9, %v616_v28  ;;  %v7005_v55 = vrot.slane %v2567_v17, %v616_v28  ;;  %v7007_v56 = vrot.slane %v3680_v18, %v616_v28 }
  0xa5   : > { %814 = vst [vmem:[#allocation2] sm:$0xff] %v750_v45  ;;  %v752_v57 = vpack.c.bf16 %v628_v51, %v624_v50  ;;  %v479_v58 = vcvt.s32.f32 %v351_v12  ;;  %v483_v59 = vcvt.s32.f32 %v355_v13  ;;  %v356_v60 = vunpack.c.3.s8 %v6958_v2  ;;  %v316_v12 = vld [vmem:[#allocation6 + $0x28] sm:$0xff] }
  0xa6   : > { %815 = vst [vmem:[#allocation2 + $0x8] sm:$0xff] %v751_v49  ;;  %v625_v61 = vmul.f32 %v7001_v53, %v474_v48  ;;  %v629_v62 = vmul.f32 %v7001_v53, %v478_v52  ;;  %v480_v63 = vcvt.s32.f32 %v352_v14  ;;  %v353_v0 = vunpack.c.2.s8 %v6962_v10 }
  0xa7   : > { %816 = vst [vmem:[#allocation2 + $0x10] sm:$0xff] %v752_v57  ;;  %v630_v1 = vmul.f32 %v6971_v29, %v479_v58  ;;  %v634_v3 = vmul.f32 %v6971_v29, %v483_v59  ;;  %v484_v4 = vcvt.s32.f32 %v356_v60  ;;  %v357_v5 = vunpack.c.3.s8 %v6962_v10 }
  0xa8   : > { %v753_v7 = vpack.c.bf16 %v629_v62, %v625_v61  ;;  %v631_v8 = vmul.f32 %v6979_v33, %v480_v63  ;;  %v481_v2 = vcvt.s32.f32 %v353_v0  ;;  %v354_v9 = vunpack.c.2.s8 %v6964_v11 }
  0xa9   : > { %v754_v13 = vpack.c.bf16 %v634_v3, %v630_v1  ;;  %v635_v14 = vmul.f32 %v6979_v33, %v484_v4  ;;  %v485_v15 = vcvt.s32.f32 %v357_v5  ;;  %v358_v16 = vunpack.c.3.s8 %v6964_v11 }
  0xaa   : > { %817 = vst [vmem:[#allocation2 + $0x18] sm:$0xff] %v753_v7  ;;  %v632_v17 = vmul.f32 %v6991_v43, %v481_v2  ;;  %v482_v18 = vcvt.s32.f32 %v354_v9  ;;  %v359_v19 = vunpack.c.0.s8 %v315_v6  ;;  %v363_v10 = vunpack.c.1.s8 %v315_v6 }
  0xab   : > { %818 = vst [vmem:[#allocation2 + $0x20] sm:$0xff] %v754_v13  ;;  %v755_v21 = vpack.c.bf16 %v635_v14, %v631_v8  ;;  %v636_v22 = vmul.f32 %v6991_v43, %v485_v15  ;;  %v486_v23 = vcvt.s32.f32 %v358_v16  ;;  %v360_v24 = vunpack.c.0.s8 %v316_v12 }
  0xac   : > { %v633_v25 = vmul.f32 %v7001_v53, %v482_v18  ;;  %v487_v26 = vcvt.s32.f32 %v359_v19  ;;  %v491_v27 = vcvt.s32.f32 %v363_v10  ;;  %v364_v28 = vunpack.c.1.s8 %v316_v12  ;;  %v319_v10 = vld [vmem:[#allocation6 + $0x40] sm:$0xff] }
  0xad   : > { %819 = vst [vmem:[#allocation2 + $0x28] sm:$0xff] %v755_v21  ;;  %v756_v11 = vpack.c.bf16 %v636_v22, %v632_v17  ;;  %v637_v38 = vmul.f32 %v7001_v53, %v486_v23  ;;  %v488_v39 = vcvt.s32.f32 %v360_v24  ;;  %v361_v40 = vunpack.c.0.s8 %v317_v20 }
  0xae   : > { %v638_v41 = vmul.f32 %v6971_v29, %v487_v26  ;;  %v642_v42 = vmul.f32 %v6971_v29, %v491_v27  ;;  %v492_v45 = vcvt.s32.f32 %v364_v28  ;;  %v365_v48 = vunpack.c.1.s8 %v317_v20 }
  0xaf   : > { %820 = vst [vmem:[#allocation2 + $0x30] sm:$0xff] %v756_v11  ;;  %v757_v49 = vpack.c.bf16 %v637_v38, %v633_v25  ;;  %v639_v50 = vmul.f32 %v6979_v33, %v488_v39  ;;  %v489_v51 = vcvt.s32.f32 %v361_v40  ;;  %v362_v52 = vunpack.c.0.s8 %v318_v37 }
  0xb0   : > { %v758_v57 = vpack.c.bf16 %v642_v42, %v638_v41  ;;  %v643_v58 = vmul.f32 %v6979_v33, %v492_v45  ;;  %v493_v59 = vcvt.s32.f32 %v365_v48  ;;  %v366_v60 = vunpack.c.1.s8 %v318_v37 }
  0xb1   : > { %821 = vst [vmem:[#allocation2 + $0x38] sm:$0xff] %v757_v49  ;;  %v640_v61 = vmul.f32 %v6991_v43, %v489_v51  ;;  %v490_v62 = vcvt.s32.f32 %v362_v52  ;;  %v367_v63 = vunpack.c.2.s8 %v315_v6  ;;  %v371_v0 = vunpack.c.3.s8 %v315_v6 }
  0xb2   : > { %822 = vst [vmem:[#allocation2 + $0x40] sm:$0xff] %v758_v57  ;;  %v759_v1 = vpack.c.bf16 %v643_v58, %v639_v50  ;;  %v644_v3 = vmul.f32 %v6991_v43, %v493_v59  ;;  %v494_v4 = vcvt.s32.f32 %v366_v60  ;;  %v368_v5 = vunpack.c.2.s8 %v316_v12  ;;  %v322_v57 = vld [vmem:[#allocation6 + $0x58] sm:$0xff] }
  0xb3   : > { %v641_v7 = vmul.f32 %v7001_v53, %v490_v62  ;;  %v495_v8 = vcvt.s32.f32 %v367_v63  ;;  %v499_v2 = vcvt.s32.f32 %v371_v0  ;;  %v372_v9 = vunpack.c.3.s8 %v316_v12  ;;  %v320_v12 = vld [vmem:[#allocation6 + $0x48] sm:$0xff] }
  0xb4   : > { %823 = vst [vmem:[#allocation2 + $0x48] sm:$0xff] %v759_v1  ;;  %v760_v13 = vpack.c.bf16 %v644_v3, %v640_v61  ;;  %v645_v14 = vmul.f32 %v7001_v53, %v494_v4  ;;  %v496_v15 = vcvt.s32.f32 %v368_v5  ;;  %v369_v16 = vunpack.c.2.s8 %v317_v20 }
  0xb5   : > { %v646_v17 = vmul.f32 %v6971_v29, %v495_v8  ;;  %v650_v6 = vmul.f32 %v6971_v29, %v499_v2  ;;  %v500_v18 = vcvt.s32.f32 %v372_v9  ;;  %v373_v19 = vunpack.c.3.s8 %v317_v20  ;;  %v321_v20 = vld [vmem:[#allocation6 + $0x50] sm:$0xff] }
  0xb6   : > { %824 = vst [vmem:[#allocation2 + $0x50] sm:$0xff] %v760_v13  ;;  %v761_v21 = vpack.c.bf16 %v645_v14, %v641_v7  ;;  %v647_v22 = vmul.f32 %v6979_v33, %v496_v15  ;;  %v497_v23 = vcvt.s32.f32 %v369_v16  ;;  %v370_v24 = vunpack.c.2.s8 %v318_v37 }
  0xb7   : > { %v762_v25 = vpack.c.bf16 %v650_v6, %v646_v17  ;;  %v651_v26 = vmul.f32 %v6979_v33, %v500_v18  ;;  %v501_v27 = vcvt.s32.f32 %v373_v19  ;;  %v374_v28 = vunpack.c.3.s8 %v318_v37 }
  0xb8   : > { %825 = vst [vmem:[#allocation2 + $0x58] sm:$0xff] %v761_v21  ;;  %v648_v11 = vmul.f32 %v6991_v43, %v497_v23  ;;  %v498_v38 = vcvt.s32.f32 %v370_v24  ;;  %v375_v39 = vunpack.c.0.s8 %v319_v10  ;;  %v379_v40 = vunpack.c.1.s8 %v319_v10 }
  0xb9   : > { %826 = vst [vmem:[#allocation2 + $0x60] sm:$0xff] %v762_v25  ;;  %v763_v41 = vpack.c.bf16 %v651_v26, %v647_v22  ;;  %v652_v42 = vmul.f32 %v6991_v43, %v501_v27  ;;  %v502_v45 = vcvt.s32.f32 %v374_v28  ;;  %v376_v48 = vunpack.c.0.s8 %v320_v12 }
  0xba   : > { %v649_v49 = vmul.f32 %v7001_v53, %v498_v38  ;;  %v503_v50 = vcvt.s32.f32 %v375_v39  ;;  %v507_v51 = vcvt.s32.f32 %v379_v40  ;;  %v380_v52 = vunpack.c.1.s8 %v320_v12  ;;  %v323_v40 = vld [vmem:[#allocation6 + $0x60] sm:$0xff] }
  0xbb   : > { %827 = vst [vmem:[#allocation2 + $0x68] sm:$0xff] %v763_v41  ;;  %v764_v37 = vpack.c.bf16 %v652_v42, %v648_v11  ;;  %v653_v58 = vmul.f32 %v7001_v53, %v502_v45  ;;  %v504_v59 = vcvt.s32.f32 %v376_v48  ;;  %v377_v60 = vunpack.c.0.s8 %v321_v20 }
  0xbc   : > { %v654_v61 = vmul.f32 %v6971_v29, %v503_v50  ;;  %v658_v62 = vmul.f32 %v6971_v29, %v507_v51  ;;  %v508_v63 = vcvt.s32.f32 %v380_v52  ;;  %v381_v0 = vunpack.c.1.s8 %v321_v20 }
  0xbd   : > { %828 = vst [vmem:[#allocation2 + $0x70] sm:$0xff] %v764_v37  ;;  %v765_v1 = vpack.c.bf16 %v653_v58, %v649_v49  ;;  %v655_v3 = vmul.f32 %v6979_v33, %v504_v59  ;;  %v505_v4 = vcvt.s32.f32 %v377_v60  ;;  %v378_v5 = vunpack.c.0.s8 %v322_v57 }
  0xbe   : > { %v766_v7 = vpack.c.bf16 %v658_v62, %v654_v61  ;;  %v659_v8 = vmul.f32 %v6979_v33, %v508_v63  ;;  %v509_v2 = vcvt.s32.f32 %v381_v0  ;;  %v382_v9 = vunpack.c.1.s8 %v322_v57 }
  0xbf   : > { %829 = vst [vmem:[#allocation2 + $0x78] sm:$0xff] %v765_v1  ;;  %v656_v13 = vmul.f32 %v6991_v43, %v505_v4  ;;  %v506_v14 = vcvt.s32.f32 %v378_v5  ;;  %v383_v15 = vunpack.c.2.s8 %v319_v10  ;;  %v387_v16 = vunpack.c.3.s8 %v319_v10 }
  0xc0   : > { %830 = vst [vmem:[#allocation2 + $0x80] sm:$0xff] %v766_v7  ;;  %v767_v17 = vpack.c.bf16 %v659_v8, %v655_v3  ;;  %v660_v6 = vmul.f32 %v6991_v43, %v509_v2  ;;  %v510_v18 = vcvt.s32.f32 %v382_v9  ;;  %v384_v19 = vunpack.c.2.s8 %v320_v12  ;;  %v326_v7 = vld [vmem:[#allocation6 + $0x78] sm:$0xff] }
  0xc1   : > { %v657_v21 = vmul.f32 %v7001_v53, %v506_v14  ;;  %v511_v22 = vcvt.s32.f32 %v383_v15  ;;  %v515_v23 = vcvt.s32.f32 %v387_v16  ;;  %v388_v24 = vunpack.c.3.s8 %v320_v12  ;;  %v324_v12 = vld [vmem:[#allocation6 + $0x68] sm:$0xff] }
  0xc2   : > { %831 = vst [vmem:[#allocation2 + $0x88] sm:$0xff] %v767_v17  ;;  %v768_v25 = vpack.c.bf16 %v660_v6, %v656_v13  ;;  %v661_v26 = vmul.f32 %v7001_v53, %v510_v18  ;;  %v512_v27 = vcvt.s32.f32 %v384_v19  ;;  %v385_v28 = vunpack.c.2.s8 %v321_v20 }
  0xc3   : > { %v662_v11 = vmul.f32 %v6971_v29, %v511_v22  ;;  %v666_v10 = vmul.f32 %v6971_v29, %v515_v23  ;;  %v516_v38 = vcvt.s32.f32 %v388_v24  ;;  %v389_v39 = vunpack.c.3.s8 %v321_v20  ;;  %v325_v20 = vld [vmem:[#allocation6 + $0x70] sm:$0xff] }
  0xc4   : > { %832 = vst [vmem:[#allocation2 + $0x90] sm:$0xff] %v768_v25  ;;  %v769_v41 = vpack.c.bf16 %v661_v26, %v657_v21  ;;  %v663_v42 = vmul.f32 %v6979_v33, %v512_v27  ;;  %v513_v45 = vcvt.s32.f32 %v385_v28  ;;  %v386_v48 = vunpack.c.2.s8 %v322_v57 }
  0xc5   : > { %v770_v49 = vpack.c.bf16 %v666_v10, %v662_v11  ;;  %v667_v50 = vmul.f32 %v6979_v33, %v516_v38  ;;  %v517_v51 = vcvt.s32.f32 %v389_v39  ;;  %v390_v52 = vunpack.c.3.s8 %v322_v57 }
  0xc6   : > { %833 = vst [vmem:[#allocation2 + $0x98] sm:$0xff] %v769_v41  ;;  %v664_v37 = vmul.f32 %v6991_v43, %v513_v45  ;;  %v514_v58 = vcvt.s32.f32 %v386_v48  ;;  %v391_v59 = vunpack.c.0.s8 %v323_v40  ;;  %v395_v60 = vunpack.c.1.s8 %v323_v40 }
  0xc7   : > { %834 = vst [vmem:[#allocation2 + $0xa0] sm:$0xff] %v770_v49  ;;  %v771_v61 = vpack.c.bf16 %v667_v50, %v663_v42  ;;  %v668_v62 = vmul.f32 %v6991_v43, %v517_v51  ;;  %v518_v63 = vcvt.s32.f32 %v390_v52  ;;  %v392_v0 = vunpack.c.0.s8 %v324_v12 }
  0xc8   : > { %v665_v1 = vmul.f32 %v7001_v53, %v514_v58  ;;  %v519_v3 = vcvt.s32.f32 %v391_v59  ;;  %v523_v4 = vcvt.s32.f32 %v395_v60  ;;  %v396_v5 = vunpack.c.1.s8 %v324_v12  ;;  %v327_v60 = vld [vmem:[#allocation6 + $0x80] sm:$0xff] }
  0xc9   : > { %835 = vst [vmem:[#allocation2 + $0xa8] sm:$0xff] %v771_v61  ;;  %v772_v57 = vpack.c.bf16 %v668_v62, %v664_v37  ;;  %v669_v8 = vmul.f32 %v7001_v53, %v518_v63  ;;  %v520_v2 = vcvt.s32.f32 %v392_v0  ;;  %v393_v9 = vunpack.c.0.s8 %v325_v20 }
  0xca   : > { %v670_v13 = vmul.f32 %v6971_v29, %v519_v3  ;;  %v674_v14 = vmul.f32 %v6971_v29, %v523_v4  ;;  %v524_v15 = vcvt.s32.f32 %v396_v5  ;;  %v397_v16 = vunpack.c.1.s8 %v325_v20 }
  0xcb   : > { %836 = vst [vmem:[#allocation2 + $0xb0] sm:$0xff] %v772_v57  ;;  %v773_v17 = vpack.c.bf16 %v669_v8, %v665_v1  ;;  %v671_v6 = vmul.f32 %v6979_v33, %v520_v2  ;;  %v521_v18 = vcvt.s32.f32 %v393_v9  ;;  %v394_v19 = vunpack.c.0.s8 %v326_v7 }
  0xcc   : > { %v774_v21 = vpack.c.bf16 %v674_v14, %v670_v13  ;;  %v675_v22 = vmul.f32 %v6979_v33, %v524_v15  ;;  %v525_v23 = vcvt.s32.f32 %v397_v16  ;;  %v398_v24 = vunpack.c.1.s8 %v326_v7 }
  0xcd   : > { %837 = vst [vmem:[#allocation2 + $0xb8] sm:$0xff] %v773_v17  ;;  %v672_v25 = vmul.f32 %v6991_v43, %v521_v18  ;;  %v522_v26 = vcvt.s32.f32 %v394_v19  ;;  %v399_v27 = vunpack.c.2.s8 %v323_v40  ;;  %v403_v28 = vunpack.c.3.s8 %v323_v40 }
  0xce   : > { %838 = vst [vmem:[#allocation2 + $0xc0] sm:$0xff] %v774_v21  ;;  %v775_v11 = vpack.c.bf16 %v675_v22, %v671_v6  ;;  %v676_v10 = vmul.f32 %v6991_v43, %v525_v23  ;;  %v526_v38 = vcvt.s32.f32 %v398_v24  ;;  %v400_v39 = vunpack.c.2.s8 %v324_v12  ;;  %v330_v21 = vld [vmem:[#allocation6 + $0x98] sm:$0xff] }
  0xcf   : > { %v673_v41 = vmul.f32 %v7001_v53, %v522_v26  ;;  %v527_v42 = vcvt.s32.f32 %v399_v27  ;;  %v531_v45 = vcvt.s32.f32 %v403_v28  ;;  %v404_v48 = vunpack.c.3.s8 %v324_v12  ;;  %v328_v12 = vld [vmem:[#allocation6 + $0x88] sm:$0xff] }
  0xd0   : > { %839 = vst [vmem:[#allocation2 + $0xc8] sm:$0xff] %v775_v11  ;;  %v776_v49 = vpack.c.bf16 %v676_v10, %v672_v25  ;;  %v677_v50 = vmul.f32 %v7001_v53, %v526_v38  ;;  %v528_v51 = vcvt.s32.f32 %v400_v39  ;;  %v401_v52 = vunpack.c.2.s8 %v325_v20 }
  0xd1   : > { %v678_v37 = vmul.f32 %v6971_v29, %v527_v42  ;;  %v682_v40 = vmul.f32 %v6971_v29, %v531_v45  ;;  %v532_v58 = vcvt.s32.f32 %v404_v48  ;;  %v405_v59 = vunpack.c.3.s8 %v325_v20  ;;  %v329_v20 = vld [vmem:[#allocation6 + $0x90] sm:$0xff] }
  0xd2   : > { %840 = vst [vmem:[#allocation2 + $0xd0] sm:$0xff] %v776_v49  ;;  %v777_v61 = vpack.c.bf16 %v677_v50, %v673_v41  ;;  %v679_v62 = vmul.f32 %v6979_v33, %v528_v51  ;;  %v529_v63 = vcvt.s32.f32 %v401_v52  ;;  %v402_v0 = vunpack.c.2.s8 %v326_v7 }
  0xd3   : > { %v778_v1 = vpack.c.bf16 %v682_v40, %v678_v37  ;;  %v683_v3 = vmul.f32 %v6979_v33, %v532_v58  ;;  %v533_v4 = vcvt.s32.f32 %v405_v59  ;;  %v406_v5 = vunpack.c.3.s8 %v326_v7 }
  0xd4   : > { %841 = vst [vmem:[#allocation2 + $0xd8] sm:$0xff] %v777_v61  ;;  %v680_v57 = vmul.f32 %v6991_v43, %v529_v63  ;;  %v530_v8 = vcvt.s32.f32 %v402_v0  ;;  %v407_v2 = vunpack.c.0.s8 %v327_v60  ;;  %v411_v9 = vunpack.c.1.s8 %v327_v60 }
  0xd5   : > { %842 = vst [vmem:[#allocation2 + $0xe0] sm:$0xff] %v778_v1  ;;  %v779_v13 = vpack.c.bf16 %v683_v3, %v679_v62  ;;  %v684_v14 = vmul.f32 %v6991_v43, %v533_v4  ;;  %v534_v15 = vcvt.s32.f32 %v406_v5  ;;  %v408_v16 = vunpack.c.0.s8 %v328_v12 }
  0xd6   : > { %v681_v17 = vmul.f32 %v7001_v53, %v530_v8  ;;  %v535_v6 = vcvt.s32.f32 %v407_v2  ;;  %v539_v18 = vcvt.s32.f32 %v411_v9  ;;  %v412_v19 = vunpack.c.1.s8 %v328_v12  ;;  %v331_v9 = vld [vmem:[#allocation6 + $0xa0] sm:$0xff] }
  0xd7   : > { %843 = vst [vmem:[#allocation2 + $0xe8] sm:$0xff] %v779_v13  ;;  %v780_v7 = vpack.c.bf16 %v684_v14, %v680_v57  ;;  %v685_v22 = vmul.f32 %v7001_v53, %v534_v15  ;;  %v536_v23 = vcvt.s32.f32 %v408_v16  ;;  %v409_v24 = vunpack.c.0.s8 %v329_v20 }
  0xd8   : > { %v686_v25 = vmul.f32 %v6971_v29, %v535_v6  ;;  %v690_v26 = vmul.f32 %v6971_v29, %v539_v18  ;;  %v540_v27 = vcvt.s32.f32 %v412_v19  ;;  %v413_v28 = vunpack.c.1.s8 %v329_v20 }
  0xd9   : > { %844 = vst [vmem:[#allocation2 + $0xf0] sm:$0xff] %v780_v7  ;;  %v781_v11 = vpack.c.bf16 %v685_v22, %v681_v17  ;;  %v687_v10 = vmul.f32 %v6979_v33, %v536_v23  ;;  %v537_v38 = vcvt.s32.f32 %v409_v24  ;;  %v410_v39 = vunpack.c.0.s8 %v330_v21 }
  0xda   : > { %v782_v41 = vpack.c.bf16 %v690_v26, %v686_v25  ;;  %v691_v42 = vmul.f32 %v6979_v33, %v540_v27  ;;  %v541_v45 = vcvt.s32.f32 %v413_v28  ;;  %v414_v48 = vunpack.c.1.s8 %v330_v21 }
  0xdb   : > { %845 = vst [vmem:[#allocation2 + $0xf8] sm:$0xff] %v781_v11  ;;  %v688_v49 = vmul.f32 %v6991_v43, %v537_v38  ;;  %v538_v50 = vcvt.s32.f32 %v410_v39  ;;  %v415_v51 = vunpack.c.2.s8 %v327_v60  ;;  %v419_v52 = vunpack.c.3.s8 %v327_v60 }
  0xdc   : > { %846 = vst [vmem:[#allocation2 + $0x100] sm:$0xff] %v782_v41  ;;  %v783_v37 = vpack.c.bf16 %v691_v42, %v687_v10  ;;  %v692_v40 = vmul.f32 %v6991_v43, %v541_v45  ;;  %v542_v58 = vcvt.s32.f32 %v414_v48  ;;  %v416_v59 = vunpack.c.2.s8 %v328_v12  ;;  %v334_v41 = vld [vmem:[#allocation6 + $0xb8] sm:$0xff] }
  0xdd   : > { %v689_v61 = vmul.f32 %v7001_v53, %v538_v50  ;;  %v543_v62 = vcvt.s32.f32 %v415_v51  ;;  %v547_v63 = vcvt.s32.f32 %v419_v52  ;;  %v420_v0 = vunpack.c.3.s8 %v328_v12  ;;  %v332_v12 = vld [vmem:[#allocation6 + $0xa8] sm:$0xff] }
  0xde   : > { %847 = vst [vmem:[#allocation2 + $0x108] sm:$0xff] %v783_v37  ;;  %v784_v1 = vpack.c.bf16 %v692_v40, %v688_v49  ;;  %v693_v3 = vmul.f32 %v7001_v53, %v542_v58  ;;  %v544_v4 = vcvt.s32.f32 %v416_v59  ;;  %v417_v5 = vunpack.c.2.s8 %v329_v20 }
  0xdf   : > { %v694_v57 = vmul.f32 %v6971_v29, %v543_v62  ;;  %v698_v60 = vmul.f32 %v6971_v29, %v547_v63  ;;  %v548_v8 = vcvt.s32.f32 %v420_v0  ;;  %v421_v2 = vunpack.c.3.s8 %v329_v20  ;;  %v333_v20 = vld [vmem:[#allocation6 + $0xb0] sm:$0xff] }
  0xe0   : > { %848 = vst [vmem:[#allocation2 + $0x110] sm:$0xff] %v784_v1  ;;  %v785_v13 = vpack.c.bf16 %v693_v3, %v689_v61  ;;  %v695_v14 = vmul.f32 %v6979_v33, %v544_v4  ;;  %v545_v15 = vcvt.s32.f32 %v417_v5  ;;  %v418_v16 = vunpack.c.2.s8 %v330_v21 }
  0xe1   : > { %v786_v17 = vpack.c.bf16 %v698_v60, %v694_v57  ;;  %v699_v6 = vmul.f32 %v6979_v33, %v548_v8  ;;  %v549_v18 = vcvt.s32.f32 %v421_v2  ;;  %v422_v19 = vunpack.c.3.s8 %v330_v21 }
  0xe2   : > { %849 = vst [vmem:[#allocation2 + $0x118] sm:$0xff] %v785_v13  ;;  %v696_v7 = vmul.f32 %v6991_v43, %v545_v15  ;;  %v546_v22 = vcvt.s32.f32 %v418_v16  ;;  %v423_v23 = vunpack.c.0.s8 %v331_v9  ;;  %v427_v24 = vunpack.c.1.s8 %v331_v9 }
  0xe3   : > { %850 = vst [vmem:[#allocation2 + $0x120] sm:$0xff] %v786_v17  ;;  %v787_v25 = vpack.c.bf16 %v699_v6, %v695_v14  ;;  %v700_v26 = vmul.f32 %v6991_v43, %v549_v18  ;;  %v550_v27 = vcvt.s32.f32 %v422_v19  ;;  %v424_v28 = vunpack.c.0.s8 %v332_v12 }
  0xe4   : > { %v697_v11 = vmul.f32 %v7001_v53, %v546_v22  ;;  %v551_v10 = vcvt.s32.f32 %v423_v23  ;;  %v555_v38 = vcvt.s32.f32 %v427_v24  ;;  %v428_v39 = vunpack.c.1.s8 %v332_v12  ;;  %v335_v24 = vld [vmem:[#allocation6 + $0xc0] sm:$0xff] }
  0xe5   : > { %851 = vst [vmem:[#allocation2 + $0x128] sm:$0xff] %v787_v25  ;;  %v788_v21 = vpack.c.bf16 %v700_v26, %v696_v7  ;;  %v701_v42 = vmul.f32 %v7001_v53, %v550_v27  ;;  %v552_v45 = vcvt.s32.f32 %v424_v28  ;;  %v425_v48 = vunpack.c.0.s8 %v333_v20 }
  0xe6   : > { %v702_v49 = vmul.f32 %v6971_v29, %v551_v10  ;;  %v706_v50 = vmul.f32 %v6971_v29, %v555_v38  ;;  %v556_v51 = vcvt.s32.f32 %v428_v39  ;;  %v429_v52 = vunpack.c.1.s8 %v333_v20 }
  0xe7   : > { %852 = vst [vmem:[#allocation2 + $0x130] sm:$0xff] %v788_v21  ;;  %v789_v37 = vpack.c.bf16 %v701_v42, %v697_v11  ;;  %v703_v40 = vmul.f32 %v6979_v33, %v552_v45  ;;  %v553_v58 = vcvt.s32.f32 %v425_v48  ;;  %v426_v59 = vunpack.c.0.s8 %v334_v41 }
  0xe8   : > { %v790_v61 = vpack.c.bf16 %v706_v50, %v702_v49  ;;  %v707_v62 = vmul.f32 %v6979_v33, %v556_v51  ;;  %v557_v63 = vcvt.s32.f32 %v429_v52  ;;  %v430_v0 = vunpack.c.1.s8 %v334_v41 }
  0xe9   : > { %853 = vst [vmem:[#allocation2 + $0x138] sm:$0xff] %v789_v37  ;;  %v704_v1 = vmul.f32 %v6991_v43, %v553_v58  ;;  %v554_v3 = vcvt.s32.f32 %v426_v59  ;;  %v431_v4 = vunpack.c.2.s8 %v331_v9  ;;  %v435_v5 = vunpack.c.3.s8 %v331_v9 }
  0xea   : > { %854 = vst [vmem:[#allocation2 + $0x140] sm:$0xff] %v790_v61  ;;  %v791_v57 = vpack.c.bf16 %v707_v62, %v703_v40  ;;  %v708_v60 = vmul.f32 %v6991_v43, %v557_v63  ;;  %v558_v8 = vcvt.s32.f32 %v430_v0  ;;  %v432_v2 = vunpack.c.2.s8 %v332_v12  ;;  %v338_v61 = vld [vmem:[#allocation6 + $0xd8] sm:$0xff] }
  0xeb   : > { %v705_v13 = vmul.f32 %v7001_v53, %v554_v3  ;;  %v559_v14 = vcvt.s32.f32 %v431_v4  ;;  %v563_v15 = vcvt.s32.f32 %v435_v5  ;;  %v436_v16 = vunpack.c.3.s8 %v332_v12  ;;  %v336_v12 = vld [vmem:[#allocation6 + $0xc8] sm:$0xff] }
  0xec   : > { %855 = vst [vmem:[#allocation2 + $0x148] sm:$0xff] %v791_v57  ;;  %v792_v17 = vpack.c.bf16 %v708_v60, %v704_v1  ;;  %v709_v6 = vmul.f32 %v7001_v53, %v558_v8  ;;  %v560_v18 = vcvt.s32.f32 %v432_v2  ;;  %v433_v19 = vunpack.c.2.s8 %v333_v20 }
  0xed   : > { %v710_v7 = vmul.f32 %v6971_v29, %v559_v14  ;;  %v714_v9 = vmul.f32 %v6971_v29, %v563_v15  ;;  %v564_v22 = vcvt.s32.f32 %v436_v16  ;;  %v437_v23 = vunpack.c.3.s8 %v333_v20  ;;  %v337_v20 = vld [vmem:[#allocation6 + $0xd0] sm:$0xff] }
  0xee   : > { %856 = vst [vmem:[#allocation2 + $0x150] sm:$0xff] %v792_v17  ;;  %v793_v25 = vpack.c.bf16 %v709_v6, %v705_v13  ;;  %v711_v26 = vmul.f32 %v6979_v33, %v560_v18  ;;  %v561_v27 = vcvt.s32.f32 %v433_v19  ;;  %v434_v28 = vunpack.c.2.s8 %v334_v41 }
  0xef   : > { %v794_v11 = vpack.c.bf16 %v714_v9, %v710_v7  ;;  %v715_v10 = vmul.f32 %v6979_v33, %v564_v22  ;;  %v565_v38 = vcvt.s32.f32 %v437_v23  ;;  %v438_v39 = vunpack.c.3.s8 %v334_v41 }
  0xf0   : > { %857 = vst [vmem:[#allocation2 + $0x158] sm:$0xff] %v793_v25  ;;  %v712_v21 = vmul.f32 %v6991_v43, %v561_v27  ;;  %v562_v42 = vcvt.s32.f32 %v434_v28  ;;  %v439_v45 = vunpack.c.0.s8 %v335_v24  ;;  %v443_v48 = vunpack.c.1.s8 %v335_v24 }
  0xf1   : > { %858 = vst [vmem:[#allocation2 + $0x160] sm:$0xff] %v794_v11  ;;  %v795_v49 = vpack.c.bf16 %v715_v10, %v711_v26  ;;  %v716_v50 = vmul.f32 %v6991_v43, %v565_v38  ;;  %v566_v51 = vcvt.s32.f32 %v438_v39  ;;  %v440_v52 = vunpack.c.0.s8 %v336_v12 }
  0xf2   : > { %v713_v37 = vmul.f32 %v7001_v53, %v562_v42  ;;  %v567_v40 = vcvt.s32.f32 %v439_v45  ;;  %v571_v58 = vcvt.s32.f32 %v443_v48  ;;  %v444_v59 = vunpack.c.1.s8 %v336_v12  ;;  %v339_v48 = vld [vmem:[#allocation6 + $0xe0] sm:$0xff] }
  0xf3   : > { %859 = vst [vmem:[#allocation2 + $0x168] sm:$0xff] %v795_v49  ;;  %v796_v41 = vpack.c.bf16 %v716_v50, %v712_v21  ;;  %v717_v62 = vmul.f32 %v7001_v53, %v566_v51  ;;  %v568_v63 = vcvt.s32.f32 %v440_v52  ;;  %v441_v0 = vunpack.c.0.s8 %v337_v20 }
  0xf4   : > { %v718_v1 = vmul.f32 %v6971_v29, %v567_v40  ;;  %v722_v3 = vmul.f32 %v6971_v29, %v571_v58  ;;  %v572_v4 = vcvt.s32.f32 %v444_v59  ;;  %v445_v5 = vunpack.c.1.s8 %v337_v20 }
  0xf5   : > { %860 = vst [vmem:[#allocation2 + $0x170] sm:$0xff] %v796_v41  ;;  %v797_v57 = vpack.c.bf16 %v717_v62, %v713_v37  ;;  %v719_v60 = vmul.f32 %v6979_v33, %v568_v63  ;;  %v569_v8 = vcvt.s32.f32 %v441_v0  ;;  %v442_v2 = vunpack.c.0.s8 %v338_v61 }
  0xf6   : > { %v798_v13 = vpack.c.bf16 %v722_v3, %v718_v1  ;;  %v723_v14 = vmul.f32 %v6979_v33, %v572_v4  ;;  %v573_v15 = vcvt.s32.f32 %v445_v5  ;;  %v446_v16 = vunpack.c.1.s8 %v338_v61 }
  0xf7   : > { %861 = vst [vmem:[#allocation2 + $0x178] sm:$0xff] %v797_v57  ;;  %v720_v17 = vmul.f32 %v6991_v43, %v569_v8  ;;  %v570_v6 = vcvt.s32.f32 %v442_v2  ;;  %v447_v18 = vunpack.c.2.s8 %v335_v24  ;;  %v451_v19 = vunpack.c.3.s8 %v335_v24 }
  0xf8   : > { %862 = vst [vmem:[#allocation2 + $0x180] sm:$0xff] %v798_v13  ;;  %v799_v7 = vpack.c.bf16 %v723_v14, %v719_v60  ;;  %v724_v9 = vmul.f32 %v6991_v43, %v573_v15  ;;  %v574_v22 = vcvt.s32.f32 %v446_v16  ;;  %v448_v23 = vunpack.c.2.s8 %v336_v12  ;;  %v342_v13 = vld [vmem:[#allocation6 + $0xf8] sm:$0xff] }
  0xf9   : > { %v721_v25 = vmul.f32 %v7001_v53, %v570_v6  ;;  %v575_v26 = vcvt.s32.f32 %v447_v18  ;;  %v579_v27 = vcvt.s32.f32 %v451_v19  ;;  %v452_v28 = vunpack.c.3.s8 %v336_v12  ;;  %v340_v12 = vld [vmem:[#allocation6 + $0xe8] sm:$0xff] }
  0xfa   : > { %863 = vst [vmem:[#allocation2 + $0x188] sm:$0xff] %v799_v7  ;;  %v800_v11 = vpack.c.bf16 %v724_v9, %v720_v17  ;;  %v725_v10 = vmul.f32 %v7001_v53, %v574_v22  ;;  %v576_v38 = vcvt.s32.f32 %v448_v23  ;;  %v449_v39 = vunpack.c.2.s8 %v337_v20 }
  0xfb   : > { %v726_v21 = vmul.f32 %v6971_v29, %v575_v26  ;;  %v730_v24 = vmul.f32 %v6971_v29, %v579_v27  ;;  %v580_v42 = vcvt.s32.f32 %v452_v28  ;;  %v453_v45 = vunpack.c.3.s8 %v337_v20  ;;  %v341_v20 = vld [vmem:[#allocation6 + $0xf0] sm:$0xff] }
  0xfc   : > { %864 = vst [vmem:[#allocation2 + $0x190] sm:$0xff] %v800_v11  ;;  %v801_v49 = vpack.c.bf16 %v725_v10, %v721_v25  ;;  %v727_v50 = vmul.f32 %v6979_v33, %v576_v38  ;;  %v577_v51 = vcvt.s32.f32 %v449_v39  ;;  %v450_v52 = vunpack.c.2.s8 %v338_v61 }
  0xfd   : > { %v802_v37 = vpack.c.bf16 %v730_v24, %v726_v21  ;;  %v731_v40 = vmul.f32 %v6979_v33, %v580_v42  ;;  %v581_v58 = vcvt.s32.f32 %v453_v45  ;;  %v454_v59 = vunpack.c.3.s8 %v338_v61 }
  0xfe   : > { %865 = vst [vmem:[#allocation2 + $0x198] sm:$0xff] %v801_v49  ;;  %v728_v41 = vmul.f32 %v6991_v43, %v577_v51  ;;  %v578_v62 = vcvt.s32.f32 %v450_v52  ;;  %v455_v63 = vunpack.c.0.s8 %v339_v48  ;;  %v459_v0 = vunpack.c.1.s8 %v339_v48 }
  0xff   : > { %866 = vst [vmem:[#allocation2 + $0x1a0] sm:$0xff] %v802_v37  ;;  %v803_v1 = vpack.c.bf16 %v731_v40, %v727_v50  ;;  %v732_v3 = vmul.f32 %v6991_v43, %v581_v58  ;;  %v582_v4 = vcvt.s32.f32 %v454_v59  ;;  %v456_v5 = vunpack.c.0.s8 %v340_v12 }
 0x100   : > { %v729_v57 = vmul.f32 %v7001_v53, %v578_v62  ;;  %v583_v60 = vcvt.s32.f32 %v455_v63  ;;  %v587_v8 = vcvt.s32.f32 %v459_v0  ;;  %v460_v2 = vunpack.c.1.s8 %v340_v12  ;;  %v878_v0 = vld [vmem:[#allocation8] sm:$0xff] }
 0x101   : > { %867 = vst [vmem:[#allocation2 + $0x1a8] sm:$0xff] %v803_v1  ;;  %v804_v61 = vpack.c.bf16 %v732_v3, %v728_v41  ;;  %v733_v14 = vmul.f32 %v7001_v53, %v582_v4  ;;  %v584_v15 = vcvt.s32.f32 %v456_v5  ;;  %v457_v16 = vunpack.c.0.s8 %v341_v20 }
 0x102   : > { %v734_v17 = vmul.f32 %v6971_v29, %v583_v60  ;;  %v738_v6 = vmul.f32 %v6971_v29, %v587_v8  ;;  %v588_v18 = vcvt.s32.f32 %v460_v2  ;;  %v461_v19 = vunpack.c.1.s8 %v341_v20 }
 0x103   : > { %868 = vst [vmem:[#allocation2 + $0x1b0] sm:$0xff] %v804_v61  ;;  %v805_v7 = vpack.c.bf16 %v733_v14, %v729_v57  ;;  %v735_v9 = vmul.f32 %v6979_v33, %v584_v15  ;;  %v585_v22 = vcvt.s32.f32 %v457_v16  ;;  %v458_v23 = vunpack.c.0.s8 %v342_v13 }
 0x104   : > { %v806_v25 = vpack.c.bf16 %v738_v6, %v734_v17  ;;  %v739_v26 = vmul.f32 %v6979_v33, %v588_v18  ;;  %v589_v27 = vcvt.s32.f32 %v461_v19  ;;  %v462_v28 = vunpack.c.1.s8 %v342_v13 }
 0x105   : > { %869 = vst [vmem:[#allocation2 + $0x1b8] sm:$0xff] %v805_v7  ;;  %v736_v11 = vmul.f32 %v6991_v43, %v585_v22  ;;  %v586_v10 = vcvt.s32.f32 %v458_v23  ;;  %v463_v38 = vunpack.c.2.s8 %v339_v48  ;;  %v467_v39 = vunpack.c.3.s8 %v339_v48  ;;  %v881_v22 = vld [vmem:[#allocation8 + $0x18] sm:$0xff] }
 0x106   : > { %870 = vst [vmem:[#allocation2 + $0x1c0] sm:$0xff] %v806_v25  ;;  %v807_v21 = vpack.c.bf16 %v739_v26, %v735_v9  ;;  %v740_v24 = vmul.f32 %v6991_v43, %v589_v27  ;;  %v590_v42 = vcvt.s32.f32 %v462_v28  ;;  %v464_v45 = vunpack.c.2.s8 %v340_v12 }
 0x107   : > { %v737_v49 = vmul.f32 %v7001_v53, %v586_v10  ;;  %v591_v50 = vcvt.s32.f32 %v463_v38  ;;  %v595_v51 = vcvt.s32.f32 %v467_v39  ;;  %v468_v52 = vunpack.c.3.s8 %v340_v12  ;;  %v879_v12 = vld [vmem:[#allocation8 + $0x8] sm:$0xff] }
 0x108   : > { %871 = vst [vmem:[#allocation2 + $0x1c8] sm:$0xff] %v807_v21  ;;  %v808_v37 = vpack.c.bf16 %v740_v24, %v736_v11  ;;  %v741_v40 = vmul.f32 %v7001_v53, %v590_v42  ;;  %v592_v58 = vcvt.s32.f32 %v464_v45  ;;  %v465_v59 = vunpack.c.2.s8 %v341_v20 }
 0x109   : > { %v742_v41 = vmul.f32 %v6971_v29, %v591_v50  ;;  %v746_v48 = vmul.f32 %v6971_v29, %v595_v51  ;;  %v596_v62 = vcvt.s32.f32 %v468_v52  ;;  %v469_v63 = vunpack.c.3.s8 %v341_v20  ;;  %v880_v20 = vld [vmem:[#allocation8 + $0x10] sm:$0xff] }
 0x10a   : > { %872 = vst [vmem:[#allocation2 + $0x1d0] sm:$0xff] %v808_v37  ;;  %v809_v1 = vpack.c.bf16 %v741_v40, %v737_v49  ;;  %v743_v3 = vmul.f32 %v6979_v33, %v592_v58  ;;  %v593_v4 = vcvt.s32.f32 %v465_v59  ;;  %v466_v5 = vunpack.c.2.s8 %v342_v13 }
 0x10b   : > { %v810_v57 = vpack.c.bf16 %v746_v48, %v742_v41  ;;  %v747_v60 = vmul.f32 %v6979_v33, %v596_v62  ;;  %v597_v8 = vcvt.s32.f32 %v469_v63  ;;  %v470_v2 = vunpack.c.3.s8 %v342_v13 }
 0x10c   : > { %873 = vst [vmem:[#allocation2 + $0x1d8] sm:$0xff] %v809_v1  ;;  %v744_v61 = vmul.f32 %v6991_v43, %v593_v4  ;;  %v594_v14 = vcvt.s32.f32 %v466_v5  ;;  %v942_v29 = vunpack.c.0.s8 %v878_v0  ;;  %v946_v15 = vunpack.c.1.s8 %v878_v0 }
 0x10d   : > { %874 = vst [vmem:[#allocation2 + $0x1e0] sm:$0xff] %v810_v57  ;;  %v811_v16 = vpack.c.bf16 %v747_v60, %v743_v3  ;;  %v748_v17 = vmul.f32 %v6991_v43, %v597_v8  ;;  %v598_v6 = vcvt.s32.f32 %v470_v2  ;;  %v943_v18 = vunpack.c.0.s8 %v879_v12  ;;  %v882_v2 = vld [vmem:[#allocation8 + $0x20] sm:$0xff] }
 0x10e   : > { %v745_v19 = vmul.f32 %v7001_v53, %v594_v14  ;;  %v1198_v7 = vcvt.s32.f32 %v942_v29  ;;  %v1202_v9 = vcvt.s32.f32 %v946_v15  ;;  %v947_v33 = vunpack.c.1.s8 %v879_v12 }
 0x10f   : > { %875 = vst [vmem:[#allocation2 + $0x1e8] sm:$0xff] %v811_v16  ;;  %v812_v13 = vpack.c.bf16 %v748_v17, %v744_v61  ;;  %v749_v23 = vmul.f32 %v7001_v53, %v598_v6  ;;  %v1199_v25 = vcvt.s32.f32 %v943_v18  ;;  %v944_v26 = vunpack.c.0.s8 %v880_v20 }
 0x110   : > { %v1477_v27 = vmul.f32 %v6973_v30, %v1198_v7  ;;  %v1481_v28 = vmul.f32 %v6973_v30, %v1202_v9  ;;  %v1203_v11 = vcvt.s32.f32 %v947_v33  ;;  %v948_v43 = vunpack.c.1.s8 %v880_v20 }
 0x111   : > { %876 = vst [vmem:[#allocation2 + $0x1f0] sm:$0xff] %v812_v13  ;;  %v813_v10 = vpack.c.bf16 %v749_v23, %v745_v19  ;;  %v1478_v38 = vmul.f32 %v6981_v34, %v1199_v25  ;;  %v1200_v39 = vcvt.s32.f32 %v944_v26  ;;  %v945_v21 = vunpack.c.0.s8 %v881_v22 }
 0x112   : > { %v1733_v24 = vpack.c.bf16 %v1481_v28, %v1477_v27  ;;  %v1482_v42 = vmul.f32 %v6981_v34, %v1203_v11  ;;  %v1204_v45 = vcvt.s32.f32 %v948_v43  ;;  %v949_v49 = vunpack.c.1.s8 %v881_v22 }
 0x113   : > { %877 = vst [vmem:[#allocation2 + $0x1f8] sm:$0xff] %v813_v10  ;;  %v1479_v53 = vmul.f32 %v6993_v44, %v1200_v39  ;;  %v1201_v50 = vcvt.s32.f32 %v945_v21  ;;  %v950_v51 = vunpack.c.2.s8 %v878_v0  ;;  %v954_v52 = vunpack.c.3.s8 %v878_v0  ;;  %v885_v10 = vld [vmem:[#allocation8 + $0x38] sm:$0xff] }
 0x114   : > { %1861 = vst [vmem:[#allocation3] sm:$0xff] %v1733_v24  ;;  %v1734_v37 = vpack.c.bf16 %v1482_v42, %v1478_v38  ;;  %v1483_v40 = vmul.f32 %v6993_v44, %v1204_v45  ;;  %v1205_v58 = vcvt.s32.f32 %v949_v49  ;;  %v951_v59 = vunpack.c.2.s8 %v879_v12 }
 0x115   : > { %v1480_v41 = vmul.f32 %v7003_v54, %v1201_v50  ;;  %v1206_v48 = vcvt.s32.f32 %v950_v51  ;;  %v1210_v62 = vcvt.s32.f32 %v954_v52  ;;  %v955_v63 = vunpack.c.3.s8 %v879_v12  ;;  %v883_v12 = vld [vmem:[#allocation8 + $0x28] sm:$0xff] }
 0x116   : > { %1862 = vst [vmem:[#allocation3 + $0x8] sm:$0xff] %v1734_v37  ;;  %v1735_v1 = vpack.c.bf16 %v1483_v40, %v1479_v53  ;;  %v1484_v3 = vmul.f32 %v7003_v54, %v1205_v58  ;;  %v1207_v4 = vcvt.s32.f32 %v951_v59  ;;  %v952_v5 = vunpack.c.2.s8 %v880_v20 }
 0x117   : > { %v1485_v57 = vmul.f32 %v6973_v30, %v1206_v48  ;;  %v1489_v0 = vmul.f32 %v6973_v30, %v1210_v62  ;;  %v1211_v60 = vcvt.s32.f32 %v955_v63  ;;  %v956_v8 = vunpack.c.3.s8 %v880_v20  ;;  %v884_v20 = vld [vmem:[#allocation8 + $0x30] sm:$0xff] }
 0x118   : > { %1863 = vst [vmem:[#allocation3 + $0x10] sm:$0xff] %v1735_v1  ;;  %v1736_v61 = vpack.c.bf16 %v1484_v3, %v1480_v41  ;;  %v1486_v14 = vmul.f32 %v6981_v34, %v1207_v4  ;;  %v1208_v29 = vcvt.s32.f32 %v952_v5  ;;  %v953_v15 = vunpack.c.2.s8 %v881_v22 }
 0x119   : > { %v1737_v16 = vpack.c.bf16 %v1489_v0, %v1485_v57  ;;  %v1490_v17 = vmul.f32 %v6981_v34, %v1211_v60  ;;  %v1212_v6 = vcvt.s32.f32 %v956_v8  ;;  %v957_v18 = vunpack.c.3.s8 %v881_v22 }
 0x11a   : > { %1864 = vst [vmem:[#allocation3 + $0x18] sm:$0xff] %v1736_v61  ;;  %v1487_v19 = vmul.f32 %v6993_v44, %v1208_v29  ;;  %v1209_v7 = vcvt.s32.f32 %v953_v15  ;;  %v958_v9 = vunpack.c.0.s8 %v882_v2  ;;  %v962_v33 = vunpack.c.1.s8 %v882_v2 }
 0x11b   : > { %1865 = vst [vmem:[#allocation3 + $0x20] sm:$0xff] %v1737_v16  ;;  %v1738_v13 = vpack.c.bf16 %v1490_v17, %v1486_v14  ;;  %v1491_v23 = vmul.f32 %v6993_v44, %v1212_v6  ;;  %v1213_v25 = vcvt.s32.f32 %v957_v18  ;;  %v959_v26 = vunpack.c.0.s8 %v883_v12  ;;  %v886_v18 = vld [vmem:[#allocation8 + $0x40] sm:$0xff] }
 0x11c   : > { %v1488_v27 = vmul.f32 %v7003_v54, %v1209_v7  ;;  %v1214_v28 = vcvt.s32.f32 %v958_v9  ;;  %v1218_v11 = vcvt.s32.f32 %v962_v33  ;;  %v963_v43 = vunpack.c.1.s8 %v883_v12 }
 0x11d   : > { %1866 = vst [vmem:[#allocation3 + $0x28] sm:$0xff] %v1738_v13  ;;  %v1739_v22 = vpack.c.bf16 %v1491_v23, %v1487_v19  ;;  %v1492_v38 = vmul.f32 %v7003_v54, %v1213_v25  ;;  %v1215_v39 = vcvt.s32.f32 %v959_v26  ;;  %v960_v21 = vunpack.c.0.s8 %v884_v20 }
 0x11e   : > { %v1493_v24 = vmul.f32 %v6973_v30, %v1214_v28  ;;  %v1497_v42 = vmul.f32 %v6973_v30, %v1218_v11  ;;  %v1219_v45 = vcvt.s32.f32 %v963_v43  ;;  %v964_v49 = vunpack.c.1.s8 %v884_v20 }
 0x11f   : > { %1867 = vst [vmem:[#allocation3 + $0x30] sm:$0xff] %v1739_v22  ;;  %v1740_v53 = vpack.c.bf16 %v1492_v38, %v1488_v27  ;;  %v1494_v50 = vmul.f32 %v6981_v34, %v1215_v39  ;;  %v1216_v51 = vcvt.s32.f32 %v960_v21  ;;  %v961_v52 = vunpack.c.0.s8 %v885_v10 }
 0x120   : > { %v1741_v37 = vpack.c.bf16 %v1497_v42, %v1493_v24  ;;  %v1498_v40 = vmul.f32 %v6981_v34, %v1219_v45  ;;  %v1220_v58 = vcvt.s32.f32 %v964_v49  ;;  %v965_v59 = vunpack.c.1.s8 %v885_v10 }
 0x121   : > { %1868 = vst [vmem:[#allocation3 + $0x38] sm:$0xff] %v1740_v53  ;;  %v1495_v41 = vmul.f32 %v6993_v44, %v1216_v51  ;;  %v1217_v48 = vcvt.s32.f32 %v961_v52  ;;  %v966_v62 = vunpack.c.2.s8 %v882_v2  ;;  %v970_v63 = vunpack.c.3.s8 %v882_v2  ;;  %v889_v53 = vld [vmem:[#allocation8 + $0x58] sm:$0xff] }
 0x122   : > { %1869 = vst [vmem:[#allocation3 + $0x40] sm:$0xff] %v1741_v37  ;;  %v1742_v1 = vpack.c.bf16 %v1498_v40, %v1494_v50  ;;  %v1499_v3 = vmul.f32 %v6993_v44, %v1220_v58  ;;  %v1221_v4 = vcvt.s32.f32 %v965_v59  ;;  %v967_v5 = vunpack.c.2.s8 %v883_v12 }
 0x123   : > { %v1496_v57 = vmul.f32 %v7003_v54, %v1217_v48  ;;  %v1222_v0 = vcvt.s32.f32 %v966_v62  ;;  %v1226_v60 = vcvt.s32.f32 %v970_v63  ;;  %v971_v8 = vunpack.c.3.s8 %v883_v12  ;;  %v887_v12 = vld [vmem:[#allocation8 + $0x48] sm:$0xff] }
 0x124   : > { %1870 = vst [vmem:[#allocation3 + $0x48] sm:$0xff] %v1742_v1  ;;  %v1743_v61 = vpack.c.bf16 %v1499_v3, %v1495_v41  ;;  %v1500_v14 = vmul.f32 %v7003_v54, %v1221_v4  ;;  %v1223_v29 = vcvt.s32.f32 %v967_v5  ;;  %v968_v15 = vunpack.c.2.s8 %v884_v20 }
 0x125   : > { %v1501_v16 = vmul.f32 %v6973_v30, %v1222_v0  ;;  %v1505_v2 = vmul.f32 %v6973_v30, %v1226_v60  ;;  %v1227_v17 = vcvt.s32.f32 %v971_v8  ;;  %v972_v6 = vunpack.c.3.s8 %v884_v20  ;;  %v888_v20 = vld [vmem:[#allocation8 + $0x50] sm:$0xff] }
 0x126   : > { %1871 = vst [vmem:[#allocation3 + $0x50] sm:$0xff] %v1743_v61  ;;  %v1744_v19 = vpack.c.bf16 %v1500_v14, %v1496_v57  ;;  %v1502_v7 = vmul.f32 %v6981_v34, %v1223_v29  ;;  %v1224_v9 = vcvt.s32.f32 %v968_v15  ;;  %v969_v33 = vunpack.c.2.s8 %v885_v10 }
 0x127   : > { %v1745_v13 = vpack.c.bf16 %v1505_v2, %v1501_v16  ;;  %v1506_v23 = vmul.f32 %v6981_v34, %v1227_v17  ;;  %v1228_v25 = vcvt.s32.f32 %v972_v6  ;;  %v973_v26 = vunpack.c.3.s8 %v885_v10 }
 0x128   : > { %1872 = vst [vmem:[#allocation3 + $0x58] sm:$0xff] %v1744_v19  ;;  %v1503_v27 = vmul.f32 %v6993_v44, %v1224_v9  ;;  %v1225_v28 = vcvt.s32.f32 %v969_v33  ;;  %v974_v11 = vunpack.c.0.s8 %v886_v18  ;;  %v978_v43 = vunpack.c.1.s8 %v886_v18 }
 0x129   : > { %1873 = vst [vmem:[#allocation3 + $0x60] sm:$0xff] %v1745_v13  ;;  %v1746_v22 = vpack.c.bf16 %v1506_v23, %v1502_v7  ;;  %v1507_v38 = vmul.f32 %v6993_v44, %v1228_v25  ;;  %v1229_v39 = vcvt.s32.f32 %v973_v26  ;;  %v975_v21 = vunpack.c.0.s8 %v887_v12  ;;  %v890_v26 = vld [vmem:[#allocation8 + $0x60] sm:$0xff] }
 0x12a   : > { %v1504_v24 = vmul.f32 %v7003_v54, %v1225_v28  ;;  %v1230_v42 = vcvt.s32.f32 %v974_v11  ;;  %v1234_v45 = vcvt.s32.f32 %v978_v43  ;;  %v979_v49 = vunpack.c.1.s8 %v887_v12 }
 0x12b   : > { %1874 = vst [vmem:[#allocation3 + $0x68] sm:$0xff] %v1746_v22  ;;  %v1747_v10 = vpack.c.bf16 %v1507_v38, %v1503_v27  ;;  %v1508_v50 = vmul.f32 %v7003_v54, %v1229_v39  ;;  %v1231_v51 = vcvt.s32.f32 %v975_v21  ;;  %v976_v52 = vunpack.c.0.s8 %v888_v20 }
 0x12c   : > { %v1509_v37 = vmul.f32 %v6973_v30, %v1230_v42  ;;  %v1513_v40 = vmul.f32 %v6973_v30, %v1234_v45  ;;  %v1235_v58 = vcvt.s32.f32 %v979_v49  ;;  %v980_v59 = vunpack.c.1.s8 %v888_v20 }
 0x12d   : > { %1875 = vst [vmem:[#allocation3 + $0x70] sm:$0xff] %v1747_v10  ;;  %v1748_v41 = vpack.c.bf16 %v1508_v50, %v1504_v24  ;;  %v1510_v48 = vmul.f32 %v6981_v34, %v1231_v51  ;;  %v1232_v62 = vcvt.s32.f32 %v976_v52  ;;  %v977_v63 = vunpack.c.0.s8 %v889_v53 }
 0x12e   : > { %v1749_v1 = vpack.c.bf16 %v1513_v40, %v1509_v37  ;;  %v1514_v3 = vmul.f32 %v6981_v34, %v1235_v58  ;;  %v1236_v4 = vcvt.s32.f32 %v980_v59  ;;  %v981_v5 = vunpack.c.1.s8 %v889_v53 }
 0x12f   : > { %1876 = vst [vmem:[#allocation3 + $0x78] sm:$0xff] %v1748_v41  ;;  %v1511_v57 = vmul.f32 %v6993_v44, %v1232_v62  ;;  %v1233_v0 = vcvt.s32.f32 %v977_v63  ;;  %v982_v60 = vunpack.c.2.s8 %v886_v18  ;;  %v986_v8 = vunpack.c.3.s8 %v886_v18  ;;  %v893_v41 = vld [vmem:[#allocation8 + $0x78] sm:$0xff] }
 0x130   : > { %1877 = vst [vmem:[#allocation3 + $0x80] sm:$0xff] %v1749_v1  ;;  %v1750_v61 = vpack.c.bf16 %v1514_v3, %v1510_v48  ;;  %v1515_v14 = vmul.f32 %v6993_v44, %v1236_v4  ;;  %v1237_v29 = vcvt.s32.f32 %v981_v5  ;;  %v983_v15 = vunpack.c.2.s8 %v887_v12 }
 0x131   : > { %v1512_v16 = vmul.f32 %v7003_v54, %v1233_v0  ;;  %v1238_v2 = vcvt.s32.f32 %v982_v60  ;;  %v1242_v17 = vcvt.s32.f32 %v986_v8  ;;  %v987_v6 = vunpack.c.3.s8 %v887_v12  ;;  %v891_v12 = vld [vmem:[#allocation8 + $0x68] sm:$0xff] }
 0x132   : > { %1878 = vst [vmem:[#allocation3 + $0x88] sm:$0xff] %v1750_v61  ;;  %v1751_v19 = vpack.c.bf16 %v1515_v14, %v1511_v57  ;;  %v1516_v7 = vmul.f32 %v7003_v54, %v1237_v29  ;;  %v1239_v9 = vcvt.s32.f32 %v983_v15  ;;  %v984_v33 = vunpack.c.2.s8 %v888_v20 }
 0x133   : > { %v1517_v13 = vmul.f32 %v6973_v30, %v1238_v2  ;;  %v1521_v18 = vmul.f32 %v6973_v30, %v1242_v17  ;;  %v1243_v23 = vcvt.s32.f32 %v987_v6  ;;  %v988_v25 = vunpack.c.3.s8 %v888_v20  ;;  %v892_v20 = vld [vmem:[#allocation8 + $0x70] sm:$0xff] }
 0x134   : > { %1879 = vst [vmem:[#allocation3 + $0x90] sm:$0xff] %v1751_v19  ;;  %v1752_v27 = vpack.c.bf16 %v1516_v7, %v1512_v16  ;;  %v1518_v28 = vmul.f32 %v6981_v34, %v1239_v9  ;;  %v1240_v11 = vcvt.s32.f32 %v984_v33  ;;  %v985_v43 = vunpack.c.2.s8 %v889_v53 }
 0x135   : > { %v1753_v22 = vpack.c.bf16 %v1521_v18, %v1517_v13  ;;  %v1522_v38 = vmul.f32 %v6981_v34, %v1243_v23  ;;  %v1244_v39 = vcvt.s32.f32 %v988_v25  ;;  %v989_v21 = vunpack.c.3.s8 %v889_v53 }
 0x136   : > { %1880 = vst [vmem:[#allocation3 + $0x98] sm:$0xff] %v1752_v27  ;;  %v1519_v24 = vmul.f32 %v6993_v44, %v1240_v11  ;;  %v1241_v42 = vcvt.s32.f32 %v985_v43  ;;  %v990_v45 = vunpack.c.0.s8 %v890_v26  ;;  %v994_v49 = vunpack.c.1.s8 %v890_v26 }
 0x137   : > { %1881 = vst [vmem:[#allocation3 + $0xa0] sm:$0xff] %v1753_v22  ;;  %v1754_v10 = vpack.c.bf16 %v1522_v38, %v1518_v28  ;;  %v1523_v50 = vmul.f32 %v6993_v44, %v1244_v39  ;;  %v1245_v51 = vcvt.s32.f32 %v989_v21  ;;  %v991_v52 = vunpack.c.0.s8 %v891_v12  ;;  %v894_v21 = vld [vmem:[#allocation8 + $0x80] sm:$0xff] }
 0x138   : > { %v1520_v37 = vmul.f32 %v7003_v54, %v1241_v42  ;;  %v1246_v40 = vcvt.s32.f32 %v990_v45  ;;  %v1250_v58 = vcvt.s32.f32 %v994_v49  ;;  %v995_v59 = vunpack.c.1.s8 %v891_v12 }
 0x139   : > { %1882 = vst [vmem:[#allocation3 + $0xa8] sm:$0xff] %v1754_v10  ;;  %v1755_v53 = vpack.c.bf16 %v1523_v50, %v1519_v24  ;;  %v1524_v48 = vmul.f32 %v7003_v54, %v1245_v51  ;;  %v1247_v62 = vcvt.s32.f32 %v991_v52  ;;  %v992_v63 = vunpack.c.0.s8 %v892_v20 }
 0x13a   : > { %v1525_v1 = vmul.f32 %v6973_v30, %v1246_v40  ;;  %v1529_v3 = vmul.f32 %v6973_v30, %v1250_v58  ;;  %v1251_v4 = vcvt.s32.f32 %v995_v59  ;;  %v996_v5 = vunpack.c.1.s8 %v892_v20 }
 0x13b   : > { %1883 = vst [vmem:[#allocation3 + $0xb0] sm:$0xff] %v1755_v53  ;;  %v1756_v57 = vpack.c.bf16 %v1524_v48, %v1520_v37  ;;  %v1526_v0 = vmul.f32 %v6981_v34, %v1247_v62  ;;  %v1248_v60 = vcvt.s32.f32 %v992_v63  ;;  %v993_v8 = vunpack.c.0.s8 %v893_v41 }
 0x13c   : > { %v1757_v61 = vpack.c.bf16 %v1529_v3, %v1525_v1  ;;  %v1530_v14 = vmul.f32 %v6981_v34, %v1251_v4  ;;  %v1252_v29 = vcvt.s32.f32 %v996_v5  ;;  %v997_v15 = vunpack.c.1.s8 %v893_v41 }
 0x13d   : > { %1884 = vst [vmem:[#allocation3 + $0xb8] sm:$0xff] %v1756_v57  ;;  %v1527_v16 = vmul.f32 %v6993_v44, %v1248_v60  ;;  %v1249_v2 = vcvt.s32.f32 %v993_v8  ;;  %v998_v17 = vunpack.c.2.s8 %v890_v26  ;;  %v1002_v6 = vunpack.c.3.s8 %v890_v26  ;;  %v897_v57 = vld [vmem:[#allocation8 + $0x98] sm:$0xff] }
 0x13e   : > { %1885 = vst [vmem:[#allocation3 + $0xc0] sm:$0xff] %v1757_v61  ;;  %v1758_v19 = vpack.c.bf16 %v1530_v14, %v1526_v0  ;;  %v1531_v7 = vmul.f32 %v6993_v44, %v1252_v29  ;;  %v1253_v9 = vcvt.s32.f32 %v997_v15  ;;  %v999_v33 = vunpack.c.2.s8 %v891_v12 }
 0x13f   : > { %v1528_v13 = vmul.f32 %v7003_v54, %v1249_v2  ;;  %v1254_v18 = vcvt.s32.f32 %v998_v17  ;;  %v1258_v23 = vcvt.s32.f32 %v1002_v6  ;;  %v1003_v25 = vunpack.c.3.s8 %v891_v12  ;;  %v895_v12 = vld [vmem:[#allocation8 + $0x88] sm:$0xff] }
 0x140   : > { %1886 = vst [vmem:[#allocation3 + $0xc8] sm:$0xff] %v1758_v19  ;;  %v1759_v27 = vpack.c.bf16 %v1531_v7, %v1527_v16  ;;  %v1532_v28 = vmul.f32 %v7003_v54, %v1253_v9  ;;  %v1255_v11 = vcvt.s32.f32 %v999_v33  ;;  %v1000_v43 = vunpack.c.2.s8 %v892_v20 }
 0x141   : > { %v1533_v22 = vmul.f32 %v6973_v30, %v1254_v18  ;;  %v1537_v26 = vmul.f32 %v6973_v30, %v1258_v23  ;;  %v1259_v38 = vcvt.s32.f32 %v1003_v25  ;;  %v1004_v39 = vunpack.c.3.s8 %v892_v20  ;;  %v896_v20 = vld [vmem:[#allocation8 + $0x90] sm:$0xff] }
 0x142   : > { %1887 = vst [vmem:[#allocation3 + $0xd0] sm:$0xff] %v1759_v27  ;;  %v1760_v24 = vpack.c.bf16 %v1532_v28, %v1528_v13  ;;  %v1534_v42 = vmul.f32 %v6981_v34, %v1255_v11  ;;  %v1256_v45 = vcvt.s32.f32 %v1000_v43  ;;  %v1001_v49 = vunpack.c.2.s8 %v893_v41 }
 0x143   : > { %v1761_v10 = vpack.c.bf16 %v1537_v26, %v1533_v22  ;;  %v1538_v50 = vmul.f32 %v6981_v34, %v1259_v38  ;;  %v1260_v51 = vcvt.s32.f32 %v1004_v39  ;;  %v1005_v52 = vunpack.c.3.s8 %v893_v41 }
 0x144   : > { %1888 = vst [vmem:[#allocation3 + $0xd8] sm:$0xff] %v1760_v24  ;;  %v1535_v37 = vmul.f32 %v6993_v44, %v1256_v45  ;;  %v1257_v40 = vcvt.s32.f32 %v1001_v49  ;;  %v1006_v58 = vunpack.c.0.s8 %v894_v21  ;;  %v1010_v59 = vunpack.c.1.s8 %v894_v21 }
 0x145   : > { %1889 = vst [vmem:[#allocation3 + $0xe0] sm:$0xff] %v1761_v10  ;;  %v1762_v53 = vpack.c.bf16 %v1538_v50, %v1534_v42  ;;  %v1539_v48 = vmul.f32 %v6993_v44, %v1260_v51  ;;  %v1261_v62 = vcvt.s32.f32 %v1005_v52  ;;  %v1007_v63 = vunpack.c.0.s8 %v895_v12  ;;  %v898_v52 = vld [vmem:[#allocation8 + $0xa0] sm:$0xff] }
 0x146   : > { %v1536_v1 = vmul.f32 %v7003_v54, %v1257_v40  ;;  %v1262_v3 = vcvt.s32.f32 %v1006_v58  ;;  %v1266_v4 = vcvt.s32.f32 %v1010_v59  ;;  %v1011_v5 = vunpack.c.1.s8 %v895_v12 }
 0x147   : > { %1890 = vst [vmem:[#allocation3 + $0xe8] sm:$0xff] %v1762_v53  ;;  %v1763_v41 = vpack.c.bf16 %v1539_v48, %v1535_v37  ;;  %v1540_v0 = vmul.f32 %v7003_v54, %v1261_v62  ;;  %v1263_v60 = vcvt.s32.f32 %v1007_v63  ;;  %v1008_v8 = vunpack.c.0.s8 %v896_v20 }
 0x148   : > { %v1541_v61 = vmul.f32 %v6973_v30, %v1262_v3  ;;  %v1545_v14 = vmul.f32 %v6973_v30, %v1266_v4  ;;  %v1267_v29 = vcvt.s32.f32 %v1011_v5  ;;  %v1012_v15 = vunpack.c.1.s8 %v896_v20 }
 0x149   : > { %1891 = vst [vmem:[#allocation3 + $0xf0] sm:$0xff] %v1763_v41  ;;  %v1764_v16 = vpack.c.bf16 %v1540_v0, %v1536_v1  ;;  %v1542_v2 = vmul.f32 %v6981_v34, %v1263_v60  ;;  %v1264_v17 = vcvt.s32.f32 %v1008_v8  ;;  %v1009_v6 = vunpack.c.0.s8 %v897_v57 }
 0x14a   : > { %v1765_v19 = vpack.c.bf16 %v1545_v14, %v1541_v61  ;;  %v1546_v7 = vmul.f32 %v6981_v34, %v1267_v29  ;;  %v1268_v9 = vcvt.s32.f32 %v1012_v15  ;;  %v1013_v33 = vunpack.c.1.s8 %v897_v57 }
 0x14b   : > { %1892 = vst [vmem:[#allocation3 + $0xf8] sm:$0xff] %v1764_v16  ;;  %v1543_v13 = vmul.f32 %v6993_v44, %v1264_v17  ;;  %v1265_v18 = vcvt.s32.f32 %v1009_v6  ;;  %v1014_v23 = vunpack.c.2.s8 %v894_v21  ;;  %v1018_v25 = vunpack.c.3.s8 %v894_v21  ;;  %v901_v16 = vld [vmem:[#allocation8 + $0xb8] sm:$0xff] }
 0x14c   : > { %1893 = vst [vmem:[#allocation3 + $0x100] sm:$0xff] %v1765_v19  ;;  %v1766_v27 = vpack.c.bf16 %v1546_v7, %v1542_v2  ;;  %v1547_v28 = vmul.f32 %v6993_v44, %v1268_v9  ;;  %v1269_v11 = vcvt.s32.f32 %v1013_v33  ;;  %v1015_v43 = vunpack.c.2.s8 %v895_v12 }
 0x14d   : > { %v1544_v22 = vmul.f32 %v7003_v54, %v1265_v18  ;;  %v1270_v26 = vcvt.s32.f32 %v1014_v23  ;;  %v1274_v38 = vcvt.s32.f32 %v1018_v25  ;;  %v1019_v39 = vunpack.c.3.s8 %v895_v12  ;;  %v899_v12 = vld [vmem:[#allocation8 + $0xa8] sm:$0xff] }
 0x14e   : > { %1894 = vst [vmem:[#allocation3 + $0x108] sm:$0xff] %v1766_v27  ;;  %v1767_v24 = vpack.c.bf16 %v1547_v28, %v1543_v13  ;;  %v1548_v42 = vmul.f32 %v7003_v54, %v1269_v11  ;;  %v1271_v45 = vcvt.s32.f32 %v1015_v43  ;;  %v1016_v49 = vunpack.c.2.s8 %v896_v20 }
 0x14f   : > { %v1549_v10 = vmul.f32 %v6973_v30, %v1270_v26  ;;  %v1553_v21 = vmul.f32 %v6973_v30, %v1274_v38  ;;  %v1275_v50 = vcvt.s32.f32 %v1019_v39  ;;  %v1020_v51 = vunpack.c.3.s8 %v896_v20  ;;  %v900_v20 = vld [vmem:[#allocation8 + $0xb0] sm:$0xff] }
 0x150   : > { %1895 = vst [vmem:[#allocation3 + $0x110] sm:$0xff] %v1767_v24  ;;  %v1768_v37 = vpack.c.bf16 %v1548_v42, %v1544_v22  ;;  %v1550_v40 = vmul.f32 %v6981_v34, %v1271_v45  ;;  %v1272_v58 = vcvt.s32.f32 %v1016_v49  ;;  %v1017_v59 = vunpack.c.2.s8 %v897_v57 }
 0x151   : > { %v1769_v53 = vpack.c.bf16 %v1553_v21, %v1549_v10  ;;  %v1554_v48 = vmul.f32 %v6981_v34, %v1275_v50  ;;  %v1276_v62 = vcvt.s32.f32 %v1020_v51  ;;  %v1021_v63 = vunpack.c.3.s8 %v897_v57 }
 0x152   : > { %1896 = vst [vmem:[#allocation3 + $0x118] sm:$0xff] %v1768_v37  ;;  %v1551_v1 = vmul.f32 %v6993_v44, %v1272_v58  ;;  %v1273_v3 = vcvt.s32.f32 %v1017_v59  ;;  %v1022_v4 = vunpack.c.0.s8 %v898_v52  ;;  %v1026_v5 = vunpack.c.1.s8 %v898_v52 }
 0x153   : > { %1897 = vst [vmem:[#allocation3 + $0x120] sm:$0xff] %v1769_v53  ;;  %v1770_v41 = vpack.c.bf16 %v1554_v48, %v1550_v40  ;;  %v1555_v0 = vmul.f32 %v6993_v44, %v1276_v62  ;;  %v1277_v60 = vcvt.s32.f32 %v1021_v63  ;;  %v1023_v8 = vunpack.c.0.s8 %v899_v12  ;;  %v902_v63 = vld [vmem:[#allocation8 + $0xc0] sm:$0xff] }
 0x154   : > { %v1552_v61 = vmul.f32 %v7003_v54, %v1273_v3  ;;  %v1278_v14 = vcvt.s32.f32 %v1022_v4  ;;  %v1282_v29 = vcvt.s32.f32 %v1026_v5  ;;  %v1027_v15 = vunpack.c.1.s8 %v899_v12 }
 0x155   : > { %1898 = vst [vmem:[#allocation3 + $0x128] sm:$0xff] %v1770_v41  ;;  %v1771_v57 = vpack.c.bf16 %v1555_v0, %v1551_v1  ;;  %v1556_v2 = vmul.f32 %v7003_v54, %v1277_v60  ;;  %v1279_v17 = vcvt.s32.f32 %v1023_v8  ;;  %v1024_v6 = vunpack.c.0.s8 %v900_v20 }
 0x156   : > { %v1557_v19 = vmul.f32 %v6973_v30, %v1278_v14  ;;  %v1561_v7 = vmul.f32 %v6973_v30, %v1282_v29  ;;  %v1283_v9 = vcvt.s32.f32 %v1027_v15  ;;  %v1028_v33 = vunpack.c.1.s8 %v900_v20 }
 0x157   : > { %1899 = vst [vmem:[#allocation3 + $0x130] sm:$0xff] %v1771_v57  ;;  %v1772_v13 = vpack.c.bf16 %v1556_v2, %v1552_v61  ;;  %v1558_v18 = vmul.f32 %v6981_v34, %v1279_v17  ;;  %v1280_v23 = vcvt.s32.f32 %v1024_v6  ;;  %v1025_v25 = vunpack.c.0.s8 %v901_v16 }
 0x158   : > { %v1773_v27 = vpack.c.bf16 %v1561_v7, %v1557_v19  ;;  %v1562_v28 = vmul.f32 %v6981_v34, %v1283_v9  ;;  %v1284_v11 = vcvt.s32.f32 %v1028_v33  ;;  %v1029_v43 = vunpack.c.1.s8 %v901_v16 }
 0x159   : > { %1900 = vst [vmem:[#allocation3 + $0x138] sm:$0xff] %v1772_v13  ;;  %v1559_v22 = vmul.f32 %v6993_v44, %v1280_v23  ;;  %v1281_v26 = vcvt.s32.f32 %v1025_v25  ;;  %v1030_v38 = vunpack.c.2.s8 %v898_v52  ;;  %v1034_v39 = vunpack.c.3.s8 %v898_v52  ;;  %v905_v13 = vld [vmem:[#allocation8 + $0xd8] sm:$0xff] }
 0x15a   : > { %1901 = vst [vmem:[#allocation3 + $0x140] sm:$0xff] %v1773_v27  ;;  %v1774_v24 = vpack.c.bf16 %v1562_v28, %v1558_v18  ;;  %v1563_v42 = vmul.f32 %v6993_v44, %v1284_v11  ;;  %v1285_v45 = vcvt.s32.f32 %v1029_v43  ;;  %v1031_v49 = vunpack.c.2.s8 %v899_v12 }
 0x15b   : > { %v1560_v10 = vmul.f32 %v7003_v54, %v1281_v26  ;;  %v1286_v21 = vcvt.s32.f32 %v1030_v38  ;;  %v1290_v50 = vcvt.s32.f32 %v1034_v39  ;;  %v1035_v51 = vunpack.c.3.s8 %v899_v12  ;;  %v903_v12 = vld [vmem:[#allocation8 + $0xc8] sm:$0xff] }
 0x15c   : > { %1902 = vst [vmem:[#allocation3 + $0x148] sm:$0xff] %v1774_v24  ;;  %v1775_v37 = vpack.c.bf16 %v1563_v42, %v1559_v22  ;;  %v1564_v40 = vmul.f32 %v7003_v54, %v1285_v45  ;;  %v1287_v58 = vcvt.s32.f32 %v1031_v49  ;;  %v1032_v59 = vunpack.c.2.s8 %v900_v20 }
 0x15d   : > { %v1565_v53 = vmul.f32 %v6973_v30, %v1286_v21  ;;  %v1569_v52 = vmul.f32 %v6973_v30, %v1290_v50  ;;  %v1291_v48 = vcvt.s32.f32 %v1035_v51  ;;  %v1036_v62 = vunpack.c.3.s8 %v900_v20  ;;  %v904_v20 = vld [vmem:[#allocation8 + $0xd0] sm:$0xff] }
 0x15e   : > { %1903 = vst [vmem:[#allocation3 + $0x150] sm:$0xff] %v1775_v37  ;;  %v1776_v1 = vpack.c.bf16 %v1564_v40, %v1560_v10  ;;  %v1566_v3 = vmul.f32 %v6981_v34, %v1287_v58  ;;  %v1288_v4 = vcvt.s32.f32 %v1032_v59  ;;  %v1033_v5 = vunpack.c.2.s8 %v901_v16 }
 0x15f   : > { %v1777_v41 = vpack.c.bf16 %v1569_v52, %v1565_v53  ;;  %v1570_v0 = vmul.f32 %v6981_v34, %v1291_v48  ;;  %v1292_v60 = vcvt.s32.f32 %v1036_v62  ;;  %v1037_v8 = vunpack.c.3.s8 %v901_v16 }
 0x160   : > { %1904 = vst [vmem:[#allocation3 + $0x158] sm:$0xff] %v1776_v1  ;;  %v1567_v61 = vmul.f32 %v6993_v44, %v1288_v4  ;;  %v1289_v14 = vcvt.s32.f32 %v1033_v5  ;;  %v1038_v29 = vunpack.c.0.s8 %v902_v63  ;;  %v1042_v15 = vunpack.c.1.s8 %v902_v63 }
 0x161   : > { %1905 = vst [vmem:[#allocation3 + $0x160] sm:$0xff] %v1777_v41  ;;  %v1778_v57 = vpack.c.bf16 %v1570_v0, %v1566_v3  ;;  %v1571_v2 = vmul.f32 %v6993_v44, %v1292_v60  ;;  %v1293_v17 = vcvt.s32.f32 %v1037_v8  ;;  %v1039_v6 = vunpack.c.0.s8 %v903_v12  ;;  %v906_v8 = vld [vmem:[#allocation8 + $0xe0] sm:$0xff] }
 0x162   : > { %v1568_v19 = vmul.f32 %v7003_v54, %v1289_v14  ;;  %v1294_v7 = vcvt.s32.f32 %v1038_v29  ;;  %v1298_v9 = vcvt.s32.f32 %v1042_v15  ;;  %v1043_v33 = vunpack.c.1.s8 %v903_v12 }
 0x163   : > { %1906 = vst [vmem:[#allocation3 + $0x168] sm:$0xff] %v1778_v57  ;;  %v1779_v16 = vpack.c.bf16 %v1571_v2, %v1567_v61  ;;  %v1572_v18 = vmul.f32 %v7003_v54, %v1293_v17  ;;  %v1295_v23 = vcvt.s32.f32 %v1039_v6  ;;  %v1040_v25 = vunpack.c.0.s8 %v904_v20 }
 0x164   : > { %v1573_v27 = vmul.f32 %v6973_v30, %v1294_v7  ;;  %v1577_v28 = vmul.f32 %v6973_v30, %v1298_v9  ;;  %v1299_v11 = vcvt.s32.f32 %v1043_v33  ;;  %v1044_v43 = vunpack.c.1.s8 %v904_v20 }
 0x165   : > { %1907 = vst [vmem:[#allocation3 + $0x170] sm:$0xff] %v1779_v16  ;;  %v1780_v22 = vpack.c.bf16 %v1572_v18, %v1568_v19  ;;  %v1574_v26 = vmul.f32 %v6981_v34, %v1295_v23  ;;  %v1296_v38 = vcvt.s32.f32 %v1040_v25  ;;  %v1041_v39 = vunpack.c.0.s8 %v905_v13 }
 0x166   : > { %v1781_v24 = vpack.c.bf16 %v1577_v28, %v1573_v27  ;;  %v1578_v42 = vmul.f32 %v6981_v34, %v1299_v11  ;;  %v1300_v45 = vcvt.s32.f32 %v1044_v43  ;;  %v1045_v49 = vunpack.c.1.s8 %v905_v13 }
 0x167   : > { %1908 = vst [vmem:[#allocation3 + $0x178] sm:$0xff] %v1780_v22  ;;  %v1575_v10 = vmul.f32 %v6993_v44, %v1296_v38  ;;  %v1297_v21 = vcvt.s32.f32 %v1041_v39  ;;  %v1046_v50 = vunpack.c.2.s8 %v902_v63  ;;  %v1050_v51 = vunpack.c.3.s8 %v902_v63  ;;  %v909_v22 = vld [vmem:[#allocation8 + $0xf8] sm:$0xff] }
 0x168   : > { %1909 = vst [vmem:[#allocation3 + $0x180] sm:$0xff] %v1781_v24  ;;  %v1782_v37 = vpack.c.bf16 %v1578_v42, %v1574_v26  ;;  %v1579_v40 = vmul.f32 %v6993_v44, %v1300_v45  ;;  %v1301_v58 = vcvt.s32.f32 %v1045_v49  ;;  %v1047_v59 = vunpack.c.2.s8 %v903_v12 }
 0x169   : > { %v1576_v53 = vmul.f32 %v7003_v54, %v1297_v21  ;;  %v1302_v52 = vcvt.s32.f32 %v1046_v50  ;;  %v1306_v48 = vcvt.s32.f32 %v1050_v51  ;;  %v1051_v62 = vunpack.c.3.s8 %v903_v12  ;;  %v907_v12 = vld [vmem:[#allocation8 + $0xe8] sm:$0xff] }
 0x16a   : > { %1910 = vst [vmem:[#allocation3 + $0x188] sm:$0xff] %v1782_v37  ;;  %v1783_v1 = vpack.c.bf16 %v1579_v40, %v1575_v10  ;;  %v1580_v3 = vmul.f32 %v7003_v54, %v1301_v58  ;;  %v1303_v4 = vcvt.s32.f32 %v1047_v59  ;;  %v1048_v5 = vunpack.c.2.s8 %v904_v20 }
 0x16b   : > { %v1581_v41 = vmul.f32 %v6973_v30, %v1302_v52  ;;  %v1585_v63 = vmul.f32 %v6973_v30, %v1306_v48  ;;  %v1307_v0 = vcvt.s32.f32 %v1051_v62  ;;  %v1052_v60 = vunpack.c.3.s8 %v904_v20  ;;  %v908_v20 = vld [vmem:[#allocation8 + $0xf0] sm:$0xff] }
 0x16c   : > { %1911 = vst [vmem:[#allocation3 + $0x190] sm:$0xff] %v1783_v1  ;;  %v1784_v61 = vpack.c.bf16 %v1580_v3, %v1576_v53  ;;  %v1582_v14 = vmul.f32 %v6981_v34, %v1303_v4  ;;  %v1304_v29 = vcvt.s32.f32 %v1048_v5  ;;  %v1049_v15 = vunpack.c.2.s8 %v905_v13 }
 0x16d   : > { %v1785_v57 = vpack.c.bf16 %v1585_v63, %v1581_v41  ;;  %v1586_v2 = vmul.f32 %v6981_v34, %v1307_v0  ;;  %v1308_v17 = vcvt.s32.f32 %v1052_v60  ;;  %v1053_v6 = vunpack.c.3.s8 %v905_v13 }
 0x16e   : > { %1912 = vst [vmem:[#allocation3 + $0x198] sm:$0xff] %v1784_v61  ;;  %v1583_v19 = vmul.f32 %v6993_v44, %v1304_v29  ;;  %v1305_v7 = vcvt.s32.f32 %v1049_v15  ;;  %v1054_v9 = vunpack.c.0.s8 %v906_v8  ;;  %v1058_v33 = vunpack.c.1.s8 %v906_v8 }
 0x16f   : > { %1913 = vst [vmem:[#allocation3 + $0x1a0] sm:$0xff] %v1785_v57  ;;  %v1786_v16 = vpack.c.bf16 %v1586_v2, %v1582_v14  ;;  %v1587_v18 = vmul.f32 %v6993_v44, %v1308_v17  ;;  %v1309_v23 = vcvt.s32.f32 %v1053_v6  ;;  %v1055_v25 = vunpack.c.0.s8 %v907_v12  ;;  %v910_v6 = vld [vmem:[#allocation8 + $0x100] sm:$0xff] }
 0x170   : > { %v1584_v27 = vmul.f32 %v7003_v54, %v1305_v7  ;;  %v1310_v28 = vcvt.s32.f32 %v1054_v9  ;;  %v1314_v11 = vcvt.s32.f32 %v1058_v33  ;;  %v1059_v43 = vunpack.c.1.s8 %v907_v12 }
 0x171   : > { %1914 = vst [vmem:[#allocation3 + $0x1a8] sm:$0xff] %v1786_v16  ;;  %v1787_v13 = vpack.c.bf16 %v1587_v18, %v1583_v19  ;;  %v1588_v26 = vmul.f32 %v7003_v54, %v1309_v23  ;;  %v1311_v38 = vcvt.s32.f32 %v1055_v25  ;;  %v1056_v39 = vunpack.c.0.s8 %v908_v20 }
 0x172   : > { %v1589_v24 = vmul.f32 %v6973_v30, %v1310_v28  ;;  %v1593_v42 = vmul.f32 %v6973_v30, %v1314_v11  ;;  %v1315_v45 = vcvt.s32.f32 %v1059_v43  ;;  %v1060_v49 = vunpack.c.1.s8 %v908_v20 }
 0x173   : > { %1915 = vst [vmem:[#allocation3 + $0x1b0] sm:$0xff] %v1787_v13  ;;  %v1788_v10 = vpack.c.bf16 %v1588_v26, %v1584_v27  ;;  %v1590_v21 = vmul.f32 %v6981_v34, %v1311_v38  ;;  %v1312_v50 = vcvt.s32.f32 %v1056_v39  ;;  %v1057_v51 = vunpack.c.0.s8 %v909_v22 }
 0x174   : > { %v1789_v37 = vpack.c.bf16 %v1593_v42, %v1589_v24  ;;  %v1594_v40 = vmul.f32 %v6981_v34, %v1315_v45  ;;  %v1316_v58 = vcvt.s32.f32 %v1060_v49  ;;  %v1061_v59 = vunpack.c.1.s8 %v909_v22 }
 0x175   : > { %1916 = vst [vmem:[#allocation3 + $0x1b8] sm:$0xff] %v1788_v10  ;;  %v1591_v53 = vmul.f32 %v6993_v44, %v1312_v50  ;;  %v1313_v52 = vcvt.s32.f32 %v1057_v51  ;;  %v1062_v48 = vunpack.c.2.s8 %v906_v8  ;;  %v1066_v62 = vunpack.c.3.s8 %v906_v8  ;;  %v913_v10 = vld [vmem:[#allocation8 + $0x118] sm:$0xff] }
 0x176   : > { %1917 = vst [vmem:[#allocation3 + $0x1c0] sm:$0xff] %v1789_v37  ;;  %v1790_v1 = vpack.c.bf16 %v1594_v40, %v1590_v21  ;;  %v1595_v3 = vmul.f32 %v6993_v44, %v1316_v58  ;;  %v1317_v4 = vcvt.s32.f32 %v1061_v59  ;;  %v1063_v5 = vunpack.c.2.s8 %v907_v12 }
 0x177   : > { %v1592_v41 = vmul.f32 %v7003_v54, %v1313_v52  ;;  %v1318_v63 = vcvt.s32.f32 %v1062_v48  ;;  %v1322_v0 = vcvt.s32.f32 %v1066_v62  ;;  %v1067_v60 = vunpack.c.3.s8 %v907_v12  ;;  %v911_v12 = vld [vmem:[#allocation8 + $0x108] sm:$0xff] }
 0x178   : > { %1918 = vst [vmem:[#allocation3 + $0x1c8] sm:$0xff] %v1790_v1  ;;  %v1791_v61 = vpack.c.bf16 %v1595_v3, %v1591_v53  ;;  %v1596_v14 = vmul.f32 %v7003_v54, %v1317_v4  ;;  %v1319_v29 = vcvt.s32.f32 %v1063_v5  ;;  %v1064_v15 = vunpack.c.2.s8 %v908_v20 }
 0x179   : > { %v1597_v57 = vmul.f32 %v6973_v30, %v1318_v63  ;;  %v1601_v8 = vmul.f32 %v6973_v30, %v1322_v0  ;;  %v1323_v2 = vcvt.s32.f32 %v1067_v60  ;;  %v1068_v17 = vunpack.c.3.s8 %v908_v20  ;;  %v912_v20 = vld [vmem:[#allocation8 + $0x110] sm:$0xff] }
 0x17a   : > { %1919 = vst [vmem:[#allocation3 + $0x1d0] sm:$0xff] %v1791_v61  ;;  %v1792_v19 = vpack.c.bf16 %v1596_v14, %v1592_v41  ;;  %v1598_v7 = vmul.f32 %v6981_v34, %v1319_v29  ;;  %v1320_v9 = vcvt.s32.f32 %v1064_v15  ;;  %v1065_v33 = vunpack.c.2.s8 %v909_v22 }
 0x17b   : > { %v1793_v16 = vpack.c.bf16 %v1601_v8, %v1597_v57  ;;  %v1602_v18 = vmul.f32 %v6981_v34, %v1323_v2  ;;  %v1324_v23 = vcvt.s32.f32 %v1068_v17  ;;  %v1069_v25 = vunpack.c.3.s8 %v909_v22 }
 0x17c   : > { %1920 = vst [vmem:[#allocation3 + $0x1d8] sm:$0xff] %v1792_v19  ;;  %v1599_v27 = vmul.f32 %v6993_v44, %v1320_v9  ;;  %v1321_v28 = vcvt.s32.f32 %v1065_v33  ;;  %v1070_v11 = vunpack.c.0.s8 %v910_v6  ;;  %v1074_v43 = vunpack.c.1.s8 %v910_v6 }
 0x17d   : > { %1921 = vst [vmem:[#allocation3 + $0x1e0] sm:$0xff] %v1793_v16  ;;  %v1794_v13 = vpack.c.bf16 %v1602_v18, %v1598_v7  ;;  %v1603_v26 = vmul.f32 %v6993_v44, %v1324_v23  ;;  %v1325_v38 = vcvt.s32.f32 %v1069_v25  ;;  %v1071_v39 = vunpack.c.0.s8 %v911_v12  ;;  %v914_v25 = vld [vmem:[#allocation8 + $0x120] sm:$0xff] }
 0x17e   : > { %v1600_v24 = vmul.f32 %v7003_v54, %v1321_v28  ;;  %v1326_v42 = vcvt.s32.f32 %v1070_v11  ;;  %v1330_v45 = vcvt.s32.f32 %v1074_v43  ;;  %v1075_v49 = vunpack.c.1.s8 %v911_v12 }
 0x17f   : > { %1922 = vst [vmem:[#allocation3 + $0x1e8] sm:$0xff] %v1794_v13  ;;  %v1795_v22 = vpack.c.bf16 %v1603_v26, %v1599_v27  ;;  %v1604_v21 = vmul.f32 %v7003_v54, %v1325_v38  ;;  %v1327_v50 = vcvt.s32.f32 %v1071_v39  ;;  %v1072_v51 = vunpack.c.0.s8 %v912_v20 }
 0x180   : > { %v1605_v37 = vmul.f32 %v6973_v30, %v1326_v42  ;;  %v1609_v40 = vmul.f32 %v6973_v30, %v1330_v45  ;;  %v1331_v58 = vcvt.s32.f32 %v1075_v49  ;;  %v1076_v59 = vunpack.c.1.s8 %v912_v20 }
 0x181   : > { %1923 = vst [vmem:[#allocation3 + $0x1f0] sm:$0xff] %v1795_v22  ;;  %v1796_v53 = vpack.c.bf16 %v1604_v21, %v1600_v24  ;;  %v1606_v52 = vmul.f32 %v6981_v34, %v1327_v50  ;;  %v1328_v48 = vcvt.s32.f32 %v1072_v51  ;;  %v1073_v62 = vunpack.c.0.s8 %v913_v10 }
 0x182   : > { %v1797_v1 = vpack.c.bf16 %v1609_v40, %v1605_v37  ;;  %v1610_v3 = vmul.f32 %v6981_v34, %v1331_v58  ;;  %v1332_v4 = vcvt.s32.f32 %v1076_v59  ;;  %v1077_v5 = vunpack.c.1.s8 %v913_v10 }
 0x183   : > { %1924 = vst [vmem:[#allocation3 + $0x1f8] sm:$0xff] %v1796_v53  ;;  %v1607_v41 = vmul.f32 %v6993_v44, %v1328_v48  ;;  %v1329_v63 = vcvt.s32.f32 %v1073_v62  ;;  %v1078_v0 = vunpack.c.2.s8 %v910_v6  ;;  %v1082_v60 = vunpack.c.3.s8 %v910_v6  ;;  %v917_v53 = vld [vmem:[#allocation8 + $0x138] sm:$0xff] }
 0x184   : > { %1925 = vst [vmem:[#allocation3 + $0x200] sm:$0xff] %v1797_v1  ;;  %v1798_v61 = vpack.c.bf16 %v1610_v3, %v1606_v52  ;;  %v1611_v14 = vmul.f32 %v6993_v44, %v1332_v4  ;;  %v1333_v29 = vcvt.s32.f32 %v1077_v5  ;;  %v1079_v15 = vunpack.c.2.s8 %v911_v12 }
 0x185   : > { %v1608_v57 = vmul.f32 %v7003_v54, %v1329_v63  ;;  %v1334_v8 = vcvt.s32.f32 %v1078_v0  ;;  %v1338_v2 = vcvt.s32.f32 %v1082_v60  ;;  %v1083_v17 = vunpack.c.3.s8 %v911_v12  ;;  %v915_v12 = vld [vmem:[#allocation8 + $0x128] sm:$0xff] }
 0x186   : > { %1926 = vst [vmem:[#allocation3 + $0x208] sm:$0xff] %v1798_v61  ;;  %v1799_v19 = vpack.c.bf16 %v1611_v14, %v1607_v41  ;;  %v1612_v7 = vmul.f32 %v7003_v54, %v1333_v29  ;;  %v1335_v9 = vcvt.s32.f32 %v1079_v15  ;;  %v1080_v33 = vunpack.c.2.s8 %v912_v20 }
 0x187   : > { %v1613_v16 = vmul.f32 %v6973_v30, %v1334_v8  ;;  %v1617_v6 = vmul.f32 %v6973_v30, %v1338_v2  ;;  %v1339_v18 = vcvt.s32.f32 %v1083_v17  ;;  %v1084_v23 = vunpack.c.3.s8 %v912_v20  ;;  %v916_v20 = vld [vmem:[#allocation8 + $0x130] sm:$0xff] }
 0x188   : > { %1927 = vst [vmem:[#allocation3 + $0x210] sm:$0xff] %v1799_v19  ;;  %v1800_v27 = vpack.c.bf16 %v1612_v7, %v1608_v57  ;;  %v1614_v28 = vmul.f32 %v6981_v34, %v1335_v9  ;;  %v1336_v11 = vcvt.s32.f32 %v1080_v33  ;;  %v1081_v43 = vunpack.c.2.s8 %v913_v10 }
 0x189   : > { %v1801_v13 = vpack.c.bf16 %v1617_v6, %v1613_v16  ;;  %v1618_v26 = vmul.f32 %v6981_v34, %v1339_v18  ;;  %v1340_v38 = vcvt.s32.f32 %v1084_v23  ;;  %v1085_v39 = vunpack.c.3.s8 %v913_v10 }
 0x18a   : > { %1928 = vst [vmem:[#allocation3 + $0x218] sm:$0xff] %v1800_v27  ;;  %v1615_v24 = vmul.f32 %v6993_v44, %v1336_v11  ;;  %v1337_v42 = vcvt.s32.f32 %v1081_v43  ;;  %v1086_v45 = vunpack.c.0.s8 %v914_v25  ;;  %v1090_v49 = vunpack.c.1.s8 %v914_v25 }
 0x18b   : > { %1929 = vst [vmem:[#allocation3 + $0x220] sm:$0xff] %v1801_v13  ;;  %v1802_v22 = vpack.c.bf16 %v1618_v26, %v1614_v28  ;;  %v1619_v21 = vmul.f32 %v6993_v44, %v1340_v38  ;;  %v1341_v50 = vcvt.s32.f32 %v1085_v39  ;;  %v1087_v51 = vunpack.c.0.s8 %v915_v12  ;;  %v918_v39 = vld [vmem:[#allocation8 + $0x140] sm:$0xff] }
 0x18c   : > { %v1616_v37 = vmul.f32 %v7003_v54, %v1337_v42  ;;  %v1342_v40 = vcvt.s32.f32 %v1086_v45  ;;  %v1346_v58 = vcvt.s32.f32 %v1090_v49  ;;  %v1091_v59 = vunpack.c.1.s8 %v915_v12 }
 0x18d   : > { %1930 = vst [vmem:[#allocation3 + $0x228] sm:$0xff] %v1802_v22  ;;  %v1803_v10 = vpack.c.bf16 %v1619_v21, %v1615_v24  ;;  %v1620_v52 = vmul.f32 %v7003_v54, %v1341_v50  ;;  %v1343_v48 = vcvt.s32.f32 %v1087_v51  ;;  %v1088_v62 = vunpack.c.0.s8 %v916_v20 }
 0x18e   : > { %v1621_v1 = vmul.f32 %v6973_v30, %v1342_v40  ;;  %v1625_v3 = vmul.f32 %v6973_v30, %v1346_v58  ;;  %v1347_v4 = vcvt.s32.f32 %v1091_v59  ;;  %v1092_v5 = vunpack.c.1.s8 %v916_v20 }
 0x18f   : > { %1931 = vst [vmem:[#allocation3 + $0x230] sm:$0xff] %v1803_v10  ;;  %v1804_v41 = vpack.c.bf16 %v1620_v52, %v1616_v37  ;;  %v1622_v63 = vmul.f32 %v6981_v34, %v1343_v48  ;;  %v1344_v0 = vcvt.s32.f32 %v1088_v62  ;;  %v1089_v60 = vunpack.c.0.s8 %v917_v53 }
 0x190   : > { %v1805_v61 = vpack.c.bf16 %v1625_v3, %v1621_v1  ;;  %v1626_v14 = vmul.f32 %v6981_v34, %v1347_v4  ;;  %v1348_v29 = vcvt.s32.f32 %v1092_v5  ;;  %v1093_v15 = vunpack.c.1.s8 %v917_v53 }
 0x191   : > { %1932 = vst [vmem:[#allocation3 + $0x238] sm:$0xff] %v1804_v41  ;;  %v1623_v57 = vmul.f32 %v6993_v44, %v1344_v0  ;;  %v1345_v8 = vcvt.s32.f32 %v1089_v60  ;;  %v1094_v2 = vunpack.c.2.s8 %v914_v25  ;;  %v1098_v17 = vunpack.c.3.s8 %v914_v25  ;;  %v921_v41 = vld [vmem:[#allocation8 + $0x158] sm:$0xff] }
 0x192   : > { %1933 = vst [vmem:[#allocation3 + $0x240] sm:$0xff] %v1805_v61  ;;  %v1806_v19 = vpack.c.bf16 %v1626_v14, %v1622_v63  ;;  %v1627_v7 = vmul.f32 %v6993_v44, %v1348_v29  ;;  %v1349_v9 = vcvt.s32.f32 %v1093_v15  ;;  %v1095_v33 = vunpack.c.2.s8 %v915_v12 }
 0x193   : > { %v1624_v16 = vmul.f32 %v7003_v54, %v1345_v8  ;;  %v1350_v6 = vcvt.s32.f32 %v1094_v2  ;;  %v1354_v18 = vcvt.s32.f32 %v1098_v17  ;;  %v1099_v23 = vunpack.c.3.s8 %v915_v12  ;;  %v919_v12 = vld [vmem:[#allocation8 + $0x148] sm:$0xff] }
 0x194   : > { %1934 = vst [vmem:[#allocation3 + $0x248] sm:$0xff] %v1806_v19  ;;  %v1807_v27 = vpack.c.bf16 %v1627_v7, %v1623_v57  ;;  %v1628_v28 = vmul.f32 %v7003_v54, %v1349_v9  ;;  %v1351_v11 = vcvt.s32.f32 %v1095_v33  ;;  %v1096_v43 = vunpack.c.2.s8 %v916_v20 }
 0x195   : > { %v1629_v13 = vmul.f32 %v6973_v30, %v1350_v6  ;;  %v1633_v25 = vmul.f32 %v6973_v30, %v1354_v18  ;;  %v1355_v26 = vcvt.s32.f32 %v1099_v23  ;;  %v1100_v38 = vunpack.c.3.s8 %v916_v20  ;;  %v920_v20 = vld [vmem:[#allocation8 + $0x150] sm:$0xff] }
 0x196   : > { %1935 = vst [vmem:[#allocation3 + $0x250] sm:$0xff] %v1807_v27  ;;  %v1808_v24 = vpack.c.bf16 %v1628_v28, %v1624_v16  ;;  %v1630_v42 = vmul.f32 %v6981_v34, %v1351_v11  ;;  %v1352_v45 = vcvt.s32.f32 %v1096_v43  ;;  %v1097_v49 = vunpack.c.2.s8 %v917_v53 }
 0x197   : > { %v1809_v22 = vpack.c.bf16 %v1633_v25, %v1629_v13  ;;  %v1634_v21 = vmul.f32 %v6981_v34, %v1355_v26  ;;  %v1356_v50 = vcvt.s32.f32 %v1100_v38  ;;  %v1101_v51 = vunpack.c.3.s8 %v917_v53 }
 0x198   : > { %1936 = vst [vmem:[#allocation3 + $0x258] sm:$0xff] %v1808_v24  ;;  %v1631_v37 = vmul.f32 %v6993_v44, %v1352_v45  ;;  %v1353_v40 = vcvt.s32.f32 %v1097_v49  ;;  %v1102_v58 = vunpack.c.0.s8 %v918_v39  ;;  %v1106_v59 = vunpack.c.1.s8 %v918_v39 }
 0x199   : > { %1937 = vst [vmem:[#allocation3 + $0x260] sm:$0xff] %v1809_v22  ;;  %v1810_v10 = vpack.c.bf16 %v1634_v21, %v1630_v42  ;;  %v1635_v52 = vmul.f32 %v6993_v44, %v1356_v50  ;;  %v1357_v48 = vcvt.s32.f32 %v1101_v51  ;;  %v1103_v62 = vunpack.c.0.s8 %v919_v12  ;;  %v922_v51 = vld [vmem:[#allocation8 + $0x160] sm:$0xff] }
 0x19a   : > { %v1632_v1 = vmul.f32 %v7003_v54, %v1353_v40  ;;  %v1358_v3 = vcvt.s32.f32 %v1102_v58  ;;  %v1362_v4 = vcvt.s32.f32 %v1106_v59  ;;  %v1107_v5 = vunpack.c.1.s8 %v919_v12 }
 0x19b   : > { %1938 = vst [vmem:[#allocation3 + $0x268] sm:$0xff] %v1810_v10  ;;  %v1811_v53 = vpack.c.bf16 %v1635_v52, %v1631_v37  ;;  %v1636_v63 = vmul.f32 %v7003_v54, %v1357_v48  ;;  %v1359_v0 = vcvt.s32.f32 %v1103_v62  ;;  %v1104_v60 = vunpack.c.0.s8 %v920_v20 }
 0x19c   : > { %v1637_v61 = vmul.f32 %v6973_v30, %v1358_v3  ;;  %v1641_v14 = vmul.f32 %v6973_v30, %v1362_v4  ;;  %v1363_v29 = vcvt.s32.f32 %v1107_v5  ;;  %v1108_v15 = vunpack.c.1.s8 %v920_v20 }
 0x19d   : > { %1939 = vst [vmem:[#allocation3 + $0x270] sm:$0xff] %v1811_v53  ;;  %v1812_v57 = vpack.c.bf16 %v1636_v63, %v1632_v1  ;;  %v1638_v8 = vmul.f32 %v6981_v34, %v1359_v0  ;;  %v1360_v2 = vcvt.s32.f32 %v1104_v60  ;;  %v1105_v17 = vunpack.c.0.s8 %v921_v41 }
 0x19e   : > { %v1813_v19 = vpack.c.bf16 %v1641_v14, %v1637_v61  ;;  %v1642_v7 = vmul.f32 %v6981_v34, %v1363_v29  ;;  %v1364_v9 = vcvt.s32.f32 %v1108_v15  ;;  %v1109_v33 = vunpack.c.1.s8 %v921_v41 }
 0x19f   : > { %1940 = vst [vmem:[#allocation3 + $0x278] sm:$0xff] %v1812_v57  ;;  %v1639_v16 = vmul.f32 %v6993_v44, %v1360_v2  ;;  %v1361_v6 = vcvt.s32.f32 %v1105_v17  ;;  %v1110_v18 = vunpack.c.2.s8 %v918_v39  ;;  %v1114_v23 = vunpack.c.3.s8 %v918_v39  ;;  %v925_v57 = vld [vmem:[#allocation8 + $0x178] sm:$0xff] }
 0x1a0   : > { %1941 = vst [vmem:[#allocation3 + $0x280] sm:$0xff] %v1813_v19  ;;  %v1814_v27 = vpack.c.bf16 %v1642_v7, %v1638_v8  ;;  %v1643_v28 = vmul.f32 %v6993_v44, %v1364_v9  ;;  %v1365_v11 = vcvt.s32.f32 %v1109_v33  ;;  %v1111_v43 = vunpack.c.2.s8 %v919_v12 }
 0x1a1   : > { %v1640_v13 = vmul.f32 %v7003_v54, %v1361_v6  ;;  %v1366_v25 = vcvt.s32.f32 %v1110_v18  ;;  %v1370_v26 = vcvt.s32.f32 %v1114_v23  ;;  %v1115_v38 = vunpack.c.3.s8 %v919_v12  ;;  %v923_v12 = vld [vmem:[#allocation8 + $0x168] sm:$0xff] }
 0x1a2   : > { %1942 = vst [vmem:[#allocation3 + $0x288] sm:$0xff] %v1814_v27  ;;  %v1815_v24 = vpack.c.bf16 %v1643_v28, %v1639_v16  ;;  %v1644_v42 = vmul.f32 %v7003_v54, %v1365_v11  ;;  %v1367_v45 = vcvt.s32.f32 %v1111_v43  ;;  %v1112_v49 = vunpack.c.2.s8 %v920_v20 }
 0x1a3   : > { %v1645_v22 = vmul.f32 %v6973_v30, %v1366_v25  ;;  %v1649_v39 = vmul.f32 %v6973_v30, %v1370_v26  ;;  %v1371_v21 = vcvt.s32.f32 %v1115_v38  ;;  %v1116_v50 = vunpack.c.3.s8 %v920_v20  ;;  %v924_v20 = vld [vmem:[#allocation8 + $0x170] sm:$0xff] }
 0x1a4   : > { %1943 = vst [vmem:[#allocation3 + $0x290] sm:$0xff] %v1815_v24  ;;  %v1816_v37 = vpack.c.bf16 %v1644_v42, %v1640_v13  ;;  %v1646_v40 = vmul.f32 %v6981_v34, %v1367_v45  ;;  %v1368_v58 = vcvt.s32.f32 %v1112_v49  ;;  %v1113_v59 = vunpack.c.2.s8 %v921_v41 }
 0x1a5   : > { %v1817_v10 = vpack.c.bf16 %v1649_v39, %v1645_v22  ;;  %v1650_v52 = vmul.f32 %v6981_v34, %v1371_v21  ;;  %v1372_v48 = vcvt.s32.f32 %v1116_v50  ;;  %v1117_v62 = vunpack.c.3.s8 %v921_v41 }
 0x1a6   : > { %1944 = vst [vmem:[#allocation3 + $0x298] sm:$0xff] %v1816_v37  ;;  %v1647_v1 = vmul.f32 %v6993_v44, %v1368_v58  ;;  %v1369_v3 = vcvt.s32.f32 %v1113_v59  ;;  %v1118_v4 = vunpack.c.0.s8 %v922_v51  ;;  %v1122_v5 = vunpack.c.1.s8 %v922_v51 }
 0x1a7   : > { %1945 = vst [vmem:[#allocation3 + $0x2a0] sm:$0xff] %v1817_v10  ;;  %v1818_v53 = vpack.c.bf16 %v1650_v52, %v1646_v40  ;;  %v1651_v63 = vmul.f32 %v6993_v44, %v1372_v48  ;;  %v1373_v0 = vcvt.s32.f32 %v1117_v62  ;;  %v1119_v60 = vunpack.c.0.s8 %v923_v12  ;;  %v926_v62 = vld [vmem:[#allocation8 + $0x180] sm:$0xff] }
 0x1a8   : > { %v1648_v61 = vmul.f32 %v7003_v54, %v1369_v3  ;;  %v1374_v14 = vcvt.s32.f32 %v1118_v4  ;;  %v1378_v29 = vcvt.s32.f32 %v1122_v5  ;;  %v1123_v15 = vunpack.c.1.s8 %v923_v12 }
 0x1a9   : > { %1946 = vst [vmem:[#allocation3 + $0x2a8] sm:$0xff] %v1818_v53  ;;  %v1819_v41 = vpack.c.bf16 %v1651_v63, %v1647_v1  ;;  %v1652_v8 = vmul.f32 %v7003_v54, %v1373_v0  ;;  %v1375_v2 = vcvt.s32.f32 %v1119_v60  ;;  %v1120_v17 = vunpack.c.0.s8 %v924_v20 }
 0x1aa   : > { %v1653_v19 = vmul.f32 %v6973_v30, %v1374_v14  ;;  %v1657_v7 = vmul.f32 %v6973_v30, %v1378_v29  ;;  %v1379_v9 = vcvt.s32.f32 %v1123_v15  ;;  %v1124_v33 = vunpack.c.1.s8 %v924_v20 }
 0x1ab   : > { %1947 = vst [vmem:[#allocation3 + $0x2b0] sm:$0xff] %v1819_v41  ;;  %v1820_v16 = vpack.c.bf16 %v1652_v8, %v1648_v61  ;;  %v1654_v6 = vmul.f32 %v6981_v34, %v1375_v2  ;;  %v1376_v18 = vcvt.s32.f32 %v1120_v17  ;;  %v1121_v23 = vunpack.c.0.s8 %v925_v57 }
 0x1ac   : > { %v1821_v27 = vpack.c.bf16 %v1657_v7, %v1653_v19  ;;  %v1658_v28 = vmul.f32 %v6981_v34, %v1379_v9  ;;  %v1380_v11 = vcvt.s32.f32 %v1124_v33  ;;  %v1125_v43 = vunpack.c.1.s8 %v925_v57 }
 0x1ad   : > { %1948 = vst [vmem:[#allocation3 + $0x2b8] sm:$0xff] %v1820_v16  ;;  %v1655_v13 = vmul.f32 %v6993_v44, %v1376_v18  ;;  %v1377_v25 = vcvt.s32.f32 %v1121_v23  ;;  %v1126_v26 = vunpack.c.2.s8 %v922_v51  ;;  %v1130_v38 = vunpack.c.3.s8 %v922_v51  ;;  %v929_v16 = vld [vmem:[#allocation8 + $0x198] sm:$0xff] }
 0x1ae   : > { %1949 = vst [vmem:[#allocation3 + $0x2c0] sm:$0xff] %v1821_v27  ;;  %v1822_v24 = vpack.c.bf16 %v1658_v28, %v1654_v6  ;;  %v1659_v42 = vmul.f32 %v6993_v44, %v1380_v11  ;;  %v1381_v45 = vcvt.s32.f32 %v1125_v43  ;;  %v1127_v49 = vunpack.c.2.s8 %v923_v12 }
 0x1af   : > { %v1656_v22 = vmul.f32 %v7003_v54, %v1377_v25  ;;  %v1382_v39 = vcvt.s32.f32 %v1126_v26  ;;  %v1386_v21 = vcvt.s32.f32 %v1130_v38  ;;  %v1131_v50 = vunpack.c.3.s8 %v923_v12  ;;  %v927_v12 = vld [vmem:[#allocation8 + $0x188] sm:$0xff] }
 0x1b0   : > { %1950 = vst [vmem:[#allocation3 + $0x2c8] sm:$0xff] %v1822_v24  ;;  %v1823_v37 = vpack.c.bf16 %v1659_v42, %v1655_v13  ;;  %v1660_v40 = vmul.f32 %v7003_v54, %v1381_v45  ;;  %v1383_v58 = vcvt.s32.f32 %v1127_v49  ;;  %v1128_v59 = vunpack.c.2.s8 %v924_v20 }
 0x1b1   : > { %v1661_v10 = vmul.f32 %v6973_v30, %v1382_v39  ;;  %v1665_v51 = vmul.f32 %v6973_v30, %v1386_v21  ;;  %v1387_v52 = vcvt.s32.f32 %v1131_v50  ;;  %v1132_v48 = vunpack.c.3.s8 %v924_v20  ;;  %v928_v20 = vld [vmem:[#allocation8 + $0x190] sm:$0xff] }
 0x1b2   : > { %1951 = vst [vmem:[#allocation3 + $0x2d0] sm:$0xff] %v1823_v37  ;;  %v1824_v1 = vpack.c.bf16 %v1660_v40, %v1656_v22  ;;  %v1662_v3 = vmul.f32 %v6981_v34, %v1383_v58  ;;  %v1384_v4 = vcvt.s32.f32 %v1128_v59  ;;  %v1129_v5 = vunpack.c.2.s8 %v925_v57 }
 0x1b3   : > { %v1825_v53 = vpack.c.bf16 %v1665_v51, %v1661_v10  ;;  %v1666_v63 = vmul.f32 %v6981_v34, %v1387_v52  ;;  %v1388_v0 = vcvt.s32.f32 %v1132_v48  ;;  %v1133_v60 = vunpack.c.3.s8 %v925_v57 }
 0x1b4   : > { %1952 = vst [vmem:[#allocation3 + $0x2d8] sm:$0xff] %v1824_v1  ;;  %v1663_v61 = vmul.f32 %v6993_v44, %v1384_v4  ;;  %v1385_v14 = vcvt.s32.f32 %v1129_v5  ;;  %v1134_v29 = vunpack.c.0.s8 %v926_v62  ;;  %v1138_v15 = vunpack.c.1.s8 %v926_v62 }
 0x1b5   : > { %1953 = vst [vmem:[#allocation3 + $0x2e0] sm:$0xff] %v1825_v53  ;;  %v1826_v41 = vpack.c.bf16 %v1666_v63, %v1662_v3  ;;  %v1667_v8 = vmul.f32 %v6993_v44, %v1388_v0  ;;  %v1389_v2 = vcvt.s32.f32 %v1133_v60  ;;  %v1135_v17 = vunpack.c.0.s8 %v927_v12  ;;  %v930_v60 = vld [vmem:[#allocation8 + $0x1a0] sm:$0xff] }
 0x1b6   : > { %v1664_v19 = vmul.f32 %v7003_v54, %v1385_v14  ;;  %v1390_v7 = vcvt.s32.f32 %v1134_v29  ;;  %v1394_v9 = vcvt.s32.f32 %v1138_v15  ;;  %v1139_v33 = vunpack.c.1.s8 %v927_v12 }
 0x1b7   : > { %1954 = vst [vmem:[#allocation3 + $0x2e8] sm:$0xff] %v1826_v41  ;;  %v1827_v57 = vpack.c.bf16 %v1667_v8, %v1663_v61  ;;  %v1668_v6 = vmul.f32 %v7003_v54, %v1389_v2  ;;  %v1391_v18 = vcvt.s32.f32 %v1135_v17  ;;  %v1136_v23 = vunpack.c.0.s8 %v928_v20 }
 0x1b8   : > { %v1669_v27 = vmul.f32 %v6973_v30, %v1390_v7  ;;  %v1673_v28 = vmul.f32 %v6973_v30, %v1394_v9  ;;  %v1395_v11 = vcvt.s32.f32 %v1139_v33  ;;  %v1140_v43 = vunpack.c.1.s8 %v928_v20 }
 0x1b9   : > { %1955 = vst [vmem:[#allocation3 + $0x2f0] sm:$0xff] %v1827_v57  ;;  %v1828_v13 = vpack.c.bf16 %v1668_v6, %v1664_v19  ;;  %v1670_v25 = vmul.f32 %v6981_v34, %v1391_v18  ;;  %v1392_v26 = vcvt.s32.f32 %v1136_v23  ;;  %v1137_v38 = vunpack.c.0.s8 %v929_v16 }
 0x1ba   : > { %v1829_v24 = vpack.c.bf16 %v1673_v28, %v1669_v27  ;;  %v1674_v42 = vmul.f32 %v6981_v34, %v1395_v11  ;;  %v1396_v45 = vcvt.s32.f32 %v1140_v43  ;;  %v1141_v49 = vunpack.c.1.s8 %v929_v16 }
 0x1bb   : > { %1956 = vst [vmem:[#allocation3 + $0x2f8] sm:$0xff] %v1828_v13  ;;  %v1671_v22 = vmul.f32 %v6993_v44, %v1392_v26  ;;  %v1393_v39 = vcvt.s32.f32 %v1137_v38  ;;  %v1142_v21 = vunpack.c.2.s8 %v926_v62  ;;  %v1146_v50 = vunpack.c.3.s8 %v926_v62  ;;  %v933_v13 = vld [vmem:[#allocation8 + $0x1b8] sm:$0xff] }
 0x1bc   : > { %1957 = vst [vmem:[#allocation3 + $0x300] sm:$0xff] %v1829_v24  ;;  %v1830_v37 = vpack.c.bf16 %v1674_v42, %v1670_v25  ;;  %v1675_v40 = vmul.f32 %v6993_v44, %v1396_v45  ;;  %v1397_v58 = vcvt.s32.f32 %v1141_v49  ;;  %v1143_v59 = vunpack.c.2.s8 %v927_v12 }
 0x1bd   : > { %v1672_v10 = vmul.f32 %v7003_v54, %v1393_v39  ;;  %v1398_v51 = vcvt.s32.f32 %v1142_v21  ;;  %v1402_v52 = vcvt.s32.f32 %v1146_v50  ;;  %v1147_v48 = vunpack.c.3.s8 %v927_v12  ;;  %v931_v12 = vld [vmem:[#allocation8 + $0x1a8] sm:$0xff] }
 0x1be   : > { %1958 = vst [vmem:[#allocation3 + $0x308] sm:$0xff] %v1830_v37  ;;  %v1831_v1 = vpack.c.bf16 %v1675_v40, %v1671_v22  ;;  %v1676_v3 = vmul.f32 %v7003_v54, %v1397_v58  ;;  %v1399_v4 = vcvt.s32.f32 %v1143_v59  ;;  %v1144_v5 = vunpack.c.2.s8 %v928_v20 }
 0x1bf   : > { %v1677_v53 = vmul.f32 %v6973_v30, %v1398_v51  ;;  %v1681_v62 = vmul.f32 %v6973_v30, %v1402_v52  ;;  %v1403_v63 = vcvt.s32.f32 %v1147_v48  ;;  %v1148_v0 = vunpack.c.3.s8 %v928_v20  ;;  %v932_v20 = vld [vmem:[#allocation8 + $0x1b0] sm:$0xff] }
 0x1c0   : > { %1959 = vst [vmem:[#allocation3 + $0x310] sm:$0xff] %v1831_v1  ;;  %v1832_v61 = vpack.c.bf16 %v1676_v3, %v1672_v10  ;;  %v1678_v14 = vmul.f32 %v6981_v34, %v1399_v4  ;;  %v1400_v29 = vcvt.s32.f32 %v1144_v5  ;;  %v1145_v15 = vunpack.c.2.s8 %v929_v16 }
 0x1c1   : > { %v1833_v41 = vpack.c.bf16 %v1681_v62, %v1677_v53  ;;  %v1682_v8 = vmul.f32 %v6981_v34, %v1403_v63  ;;  %v1404_v2 = vcvt.s32.f32 %v1148_v0  ;;  %v1149_v17 = vunpack.c.3.s8 %v929_v16 }
 0x1c2   : > { %1960 = vst [vmem:[#allocation3 + $0x318] sm:$0xff] %v1832_v61  ;;  %v1679_v19 = vmul.f32 %v6993_v44, %v1400_v29  ;;  %v1401_v7 = vcvt.s32.f32 %v1145_v15  ;;  %v1150_v9 = vunpack.c.0.s8 %v930_v60  ;;  %v1154_v33 = vunpack.c.1.s8 %v930_v60 }
 0x1c3   : > { %1961 = vst [vmem:[#allocation3 + $0x320] sm:$0xff] %v1833_v41  ;;  %v1834_v57 = vpack.c.bf16 %v1682_v8, %v1678_v14  ;;  %v1683_v6 = vmul.f32 %v6993_v44, %v1404_v2  ;;  %v1405_v18 = vcvt.s32.f32 %v1149_v17  ;;  %v1151_v23 = vunpack.c.0.s8 %v931_v12  ;;  %v934_v17 = vld [vmem:[#allocation8 + $0x1c0] sm:$0xff] }
 0x1c4   : > { %v1680_v27 = vmul.f32 %v7003_v54, %v1401_v7  ;;  %v1406_v28 = vcvt.s32.f32 %v1150_v9  ;;  %v1410_v11 = vcvt.s32.f32 %v1154_v33  ;;  %v1155_v43 = vunpack.c.1.s8 %v931_v12 }
 0x1c5   : > { %1962 = vst [vmem:[#allocation3 + $0x328] sm:$0xff] %v1834_v57  ;;  %v1835_v16 = vpack.c.bf16 %v1683_v6, %v1679_v19  ;;  %v1684_v25 = vmul.f32 %v7003_v54, %v1405_v18  ;;  %v1407_v26 = vcvt.s32.f32 %v1151_v23  ;;  %v1152_v38 = vunpack.c.0.s8 %v932_v20 }
 0x1c6   : > { %v1685_v24 = vmul.f32 %v6973_v30, %v1406_v28  ;;  %v1689_v42 = vmul.f32 %v6973_v30, %v1410_v11  ;;  %v1411_v45 = vcvt.s32.f32 %v1155_v43  ;;  %v1156_v49 = vunpack.c.1.s8 %v932_v20 }
 0x1c7   : > { %1963 = vst [vmem:[#allocation3 + $0x330] sm:$0xff] %v1835_v16  ;;  %v1836_v22 = vpack.c.bf16 %v1684_v25, %v1680_v27  ;;  %v1686_v39 = vmul.f32 %v6981_v34, %v1407_v26  ;;  %v1408_v21 = vcvt.s32.f32 %v1152_v38  ;;  %v1153_v50 = vunpack.c.0.s8 %v933_v13 }
 0x1c8   : > { %v1837_v37 = vpack.c.bf16 %v1689_v42, %v1685_v24  ;;  %v1690_v40 = vmul.f32 %v6981_v34, %v1411_v45  ;;  %v1412_v58 = vcvt.s32.f32 %v1156_v49  ;;  %v1157_v59 = vunpack.c.1.s8 %v933_v13 }
 0x1c9   : > { %1964 = vst [vmem:[#allocation3 + $0x338] sm:$0xff] %v1836_v22  ;;  %v1687_v10 = vmul.f32 %v6993_v44, %v1408_v21  ;;  %v1409_v51 = vcvt.s32.f32 %v1153_v50  ;;  %v1158_v52 = vunpack.c.2.s8 %v930_v60  ;;  %v1162_v48 = vunpack.c.3.s8 %v930_v60  ;;  %v937_v22 = vld [vmem:[#allocation8 + $0x1d8] sm:$0xff] }
 0x1ca   : > { %1965 = vst [vmem:[#allocation3 + $0x340] sm:$0xff] %v1837_v37  ;;  %v1838_v1 = vpack.c.bf16 %v1690_v40, %v1686_v39  ;;  %v1691_v3 = vmul.f32 %v6993_v44, %v1412_v58  ;;  %v1413_v4 = vcvt.s32.f32 %v1157_v59  ;;  %v1159_v5 = vunpack.c.2.s8 %v931_v12 }
 0x1cb   : > { %v1688_v53 = vmul.f32 %v7003_v54, %v1409_v51  ;;  %v1414_v62 = vcvt.s32.f32 %v1158_v52  ;;  %v1418_v63 = vcvt.s32.f32 %v1162_v48  ;;  %v1163_v0 = vunpack.c.3.s8 %v931_v12  ;;  %v935_v12 = vld [vmem:[#allocation8 + $0x1c8] sm:$0xff] }
 0x1cc   : > { %1966 = vst [vmem:[#allocation3 + $0x348] sm:$0xff] %v1838_v1  ;;  %v1839_v61 = vpack.c.bf16 %v1691_v3, %v1687_v10  ;;  %v1692_v14 = vmul.f32 %v7003_v54, %v1413_v4  ;;  %v1415_v29 = vcvt.s32.f32 %v1159_v5  ;;  %v1160_v15 = vunpack.c.2.s8 %v932_v20 }
 0x1cd   : > { %v1693_v41 = vmul.f32 %v6973_v30, %v1414_v62  ;;  %v1697_v60 = vmul.f32 %v6973_v30, %v1418_v63  ;;  %v1419_v8 = vcvt.s32.f32 %v1163_v0  ;;  %v1164_v2 = vunpack.c.3.s8 %v932_v20  ;;  %v936_v20 = vld [vmem:[#allocation8 + $0x1d0] sm:$0xff] }
 0x1ce   : > { %1967 = vst [vmem:[#allocation3 + $0x350] sm:$0xff] %v1839_v61  ;;  %v1840_v19 = vpack.c.bf16 %v1692_v14, %v1688_v53  ;;  %v1694_v7 = vmul.f32 %v6981_v34, %v1415_v29  ;;  %v1416_v9 = vcvt.s32.f32 %v1160_v15  ;;  %v1161_v33 = vunpack.c.2.s8 %v933_v13 }
 0x1cf   : > { %v1841_v57 = vpack.c.bf16 %v1697_v60, %v1693_v41  ;;  %v1698_v6 = vmul.f32 %v6981_v34, %v1419_v8  ;;  %v1420_v18 = vcvt.s32.f32 %v1164_v2  ;;  %v1165_v23 = vunpack.c.3.s8 %v933_v13 }
 0x1d0   : > { %1968 = vst [vmem:[#allocation3 + $0x358] sm:$0xff] %v1840_v19  ;;  %v1695_v27 = vmul.f32 %v6993_v44, %v1416_v9  ;;  %v1417_v28 = vcvt.s32.f32 %v1161_v33  ;;  %v1166_v11 = vunpack.c.0.s8 %v934_v17  ;;  %v1170_v43 = vunpack.c.1.s8 %v934_v17 }
 0x1d1   : > { %1969 = vst [vmem:[#allocation3 + $0x360] sm:$0xff] %v1841_v57  ;;  %v1842_v16 = vpack.c.bf16 %v1698_v6, %v1694_v7  ;;  %v1699_v25 = vmul.f32 %v6993_v44, %v1420_v18  ;;  %v1421_v26 = vcvt.s32.f32 %v1165_v23  ;;  %v1167_v38 = vunpack.c.0.s8 %v935_v12  ;;  %v938_v23 = vld [vmem:[#allocation8 + $0x1e0] sm:$0xff] }
 0x1d2   : > { %v1696_v24 = vmul.f32 %v7003_v54, %v1417_v28  ;;  %v1422_v42 = vcvt.s32.f32 %v1166_v11  ;;  %v1426_v45 = vcvt.s32.f32 %v1170_v43  ;;  %v1171_v49 = vunpack.c.1.s8 %v935_v12 }
 0x1d3   : > { %1970 = vst [vmem:[#allocation3 + $0x368] sm:$0xff] %v1842_v16  ;;  %v1843_v13 = vpack.c.bf16 %v1699_v25, %v1695_v27  ;;  %v1700_v39 = vmul.f32 %v7003_v54, %v1421_v26  ;;  %v1423_v21 = vcvt.s32.f32 %v1167_v38  ;;  %v1168_v50 = vunpack.c.0.s8 %v936_v20 }
 0x1d4   : > { %v1701_v37 = vmul.f32 %v6973_v30, %v1422_v42  ;;  %v1705_v40 = vmul.f32 %v6973_v30, %v1426_v45  ;;  %v1427_v58 = vcvt.s32.f32 %v1171_v49  ;;  %v1172_v59 = vunpack.c.1.s8 %v936_v20 }
 0x1d5   : > { %1971 = vst [vmem:[#allocation3 + $0x370] sm:$0xff] %v1843_v13  ;;  %v1844_v10 = vpack.c.bf16 %v1700_v39, %v1696_v24  ;;  %v1702_v51 = vmul.f32 %v6981_v34, %v1423_v21  ;;  %v1424_v52 = vcvt.s32.f32 %v1168_v50  ;;  %v1169_v48 = vunpack.c.0.s8 %v937_v22 }
 0x1d6   : > { %v1845_v1 = vpack.c.bf16 %v1705_v40, %v1701_v37  ;;  %v1706_v3 = vmul.f32 %v6981_v34, %v1427_v58  ;;  %v1428_v4 = vcvt.s32.f32 %v1172_v59  ;;  %v1173_v5 = vunpack.c.1.s8 %v937_v22 }
 0x1d7   : > { %1972 = vst [vmem:[#allocation3 + $0x378] sm:$0xff] %v1844_v10  ;;  %v1703_v53 = vmul.f32 %v6993_v44, %v1424_v52  ;;  %v1425_v62 = vcvt.s32.f32 %v1169_v48  ;;  %v1174_v63 = vunpack.c.2.s8 %v934_v17  ;;  %v1178_v0 = vunpack.c.3.s8 %v934_v17  ;;  %v941_v10 = vld [vmem:[#allocation8 + $0x1f8] sm:$0xff] }
 0x1d8   : > { %1973 = vst [vmem:[#allocation3 + $0x380] sm:$0xff] %v1845_v1  ;;  %v1846_v61 = vpack.c.bf16 %v1706_v3, %v1702_v51  ;;  %v1707_v14 = vmul.f32 %v6993_v44, %v1428_v4  ;;  %v1429_v29 = vcvt.s32.f32 %v1173_v5  ;;  %v1175_v15 = vunpack.c.2.s8 %v935_v12 }
 0x1d9   : > { %v1704_v41 = vmul.f32 %v7003_v54, %v1425_v62  ;;  %v1430_v60 = vcvt.s32.f32 %v1174_v63  ;;  %v1434_v8 = vcvt.s32.f32 %v1178_v0  ;;  %v1179_v2 = vunpack.c.3.s8 %v935_v12  ;;  %v939_v12 = vld [vmem:[#allocation8 + $0x1e8] sm:$0xff] }
 0x1da   : > { %1974 = vst [vmem:[#allocation3 + $0x388] sm:$0xff] %v1846_v61  ;;  %v1847_v19 = vpack.c.bf16 %v1707_v14, %v1703_v53  ;;  %v1708_v7 = vmul.f32 %v7003_v54, %v1429_v29  ;;  %v1431_v9 = vcvt.s32.f32 %v1175_v15  ;;  %v1176_v33 = vunpack.c.2.s8 %v936_v20 }
 0x1db   : > { %v1709_v57 = vmul.f32 %v6973_v30, %v1430_v60  ;;  %v1713_v17 = vmul.f32 %v6973_v30, %v1434_v8  ;;  %v1435_v6 = vcvt.s32.f32 %v1179_v2  ;;  %v1180_v18 = vunpack.c.3.s8 %v936_v20  ;;  %v940_v20 = vld [vmem:[#allocation8 + $0x1f0] sm:$0xff] }
 0x1dc   : > { %1975 = vst [vmem:[#allocation3 + $0x390] sm:$0xff] %v1847_v19  ;;  %v1848_v27 = vpack.c.bf16 %v1708_v7, %v1704_v41  ;;  %v1710_v28 = vmul.f32 %v6981_v34, %v1431_v9  ;;  %v1432_v11 = vcvt.s32.f32 %v1176_v33  ;;  %v1177_v43 = vunpack.c.2.s8 %v937_v22 }
 0x1dd   : > { %v1849_v16 = vpack.c.bf16 %v1713_v17, %v1709_v57  ;;  %v1714_v25 = vmul.f32 %v6981_v34, %v1435_v6  ;;  %v1436_v26 = vcvt.s32.f32 %v1180_v18  ;;  %v1181_v38 = vunpack.c.3.s8 %v937_v22 }
 0x1de   : > { %1976 = vst [vmem:[#allocation3 + $0x398] sm:$0xff] %v1848_v27  ;;  %v1711_v24 = vmul.f32 %v6993_v44, %v1432_v11  ;;  %v1433_v42 = vcvt.s32.f32 %v1177_v43  ;;  %v1182_v45 = vunpack.c.0.s8 %v938_v23  ;;  %v1186_v49 = vunpack.c.1.s8 %v938_v23 }
 0x1df   : > { %1977 = vst [vmem:[#allocation3 + $0x3a0] sm:$0xff] %v1849_v16  ;;  %v1850_v13 = vpack.c.bf16 %v1714_v25, %v1710_v28  ;;  %v1715_v39 = vmul.f32 %v6993_v44, %v1436_v26  ;;  %v1437_v21 = vcvt.s32.f32 %v1181_v38  ;;  %v1183_v50 = vunpack.c.0.s8 %v939_v12  ;;  %v1990_v38 = vld [vmem:[#allocation8 + $0x200] sm:$0xff] }
 0x1e0   : > { %v1712_v37 = vmul.f32 %v7003_v54, %v1433_v42  ;;  %v1438_v40 = vcvt.s32.f32 %v1182_v45  ;;  %v1442_v58 = vcvt.s32.f32 %v1186_v49  ;;  %v1187_v59 = vunpack.c.1.s8 %v939_v12 }
 0x1e1   : > { %1978 = vst [vmem:[#allocation3 + $0x3a8] sm:$0xff] %v1850_v13  ;;  %v1851_v22 = vpack.c.bf16 %v1715_v39, %v1711_v24  ;;  %v1716_v51 = vmul.f32 %v7003_v54, %v1437_v21  ;;  %v1439_v52 = vcvt.s32.f32 %v1183_v50  ;;  %v1184_v48 = vunpack.c.0.s8 %v940_v20 }
 0x1e2   : > { %v1717_v1 = vmul.f32 %v6973_v30, %v1438_v40  ;;  %v1721_v3 = vmul.f32 %v6973_v30, %v1442_v58  ;;  %v1443_v4 = vcvt.s32.f32 %v1187_v59  ;;  %v1188_v5 = vunpack.c.1.s8 %v940_v20 }
 0x1e3   : > { %1979 = vst [vmem:[#allocation3 + $0x3b0] sm:$0xff] %v1851_v22  ;;  %v1852_v53 = vpack.c.bf16 %v1716_v51, %v1712_v37  ;;  %v1718_v62 = vmul.f32 %v6981_v34, %v1439_v52  ;;  %v1440_v63 = vcvt.s32.f32 %v1184_v48  ;;  %v1185_v0 = vunpack.c.0.s8 %v941_v10 }
 0x1e4   : > { %v1853_v61 = vpack.c.bf16 %v1721_v3, %v1717_v1  ;;  %v1722_v14 = vmul.f32 %v6981_v34, %v1443_v4  ;;  %v1444_v29 = vcvt.s32.f32 %v1188_v5  ;;  %v1189_v15 = vunpack.c.1.s8 %v941_v10  ;;  %v1993_v4 = vld [vmem:[#allocation8 + $0x218] sm:$0xff] }
 0x1e5   : > { %1980 = vst [vmem:[#allocation3 + $0x3b8] sm:$0xff] %v1852_v53  ;;  %v1719_v41 = vmul.f32 %v6993_v44, %v1440_v63  ;;  %v1441_v60 = vcvt.s32.f32 %v1185_v0  ;;  %v1190_v8 = vunpack.c.2.s8 %v938_v23  ;;  %v1194_v2 = vunpack.c.3.s8 %v938_v23 }
 0x1e6   : > { %1981 = vst [vmem:[#allocation3 + $0x3c0] sm:$0xff] %v1853_v61  ;;  %v1854_v19 = vpack.c.bf16 %v1722_v14, %v1718_v62  ;;  %v1723_v7 = vmul.f32 %v6993_v44, %v1444_v29  ;;  %v1445_v9 = vcvt.s32.f32 %v1189_v15  ;;  %v1191_v33 = vunpack.c.2.s8 %v939_v12 }
 0x1e7   : > { %v1720_v57 = vmul.f32 %v7003_v54, %v1441_v60  ;;  %v1446_v17 = vcvt.s32.f32 %v1190_v8  ;;  %v1450_v6 = vcvt.s32.f32 %v1194_v2  ;;  %v1195_v18 = vunpack.c.3.s8 %v939_v12  ;;  %v1991_v12 = vld [vmem:[#allocation8 + $0x208] sm:$0xff] }
 0x1e8   : > { %1982 = vst [vmem:[#allocation3 + $0x3c8] sm:$0xff] %v1854_v19  ;;  %v1855_v27 = vpack.c.bf16 %v1723_v7, %v1719_v41  ;;  %v1724_v28 = vmul.f32 %v7003_v54, %v1445_v9  ;;  %v1447_v11 = vcvt.s32.f32 %v1191_v33  ;;  %v1192_v43 = vunpack.c.2.s8 %v940_v20 }
 0x1e9   : > { %v1725_v16 = vmul.f32 %v6973_v30, %v1446_v17  ;;  %v1729_v23 = vmul.f32 %v6973_v30, %v1450_v6  ;;  %v1451_v25 = vcvt.s32.f32 %v1195_v18  ;;  %v1196_v26 = vunpack.c.3.s8 %v940_v20  ;;  %v1992_v20 = vld [vmem:[#allocation8 + $0x210] sm:$0xff] }
 0x1ea   : > { %1983 = vst [vmem:[#allocation3 + $0x3d0] sm:$0xff] %v1855_v27  ;;  %v1856_v24 = vpack.c.bf16 %v1724_v28, %v1720_v57  ;;  %v1726_v42 = vmul.f32 %v6981_v34, %v1447_v11  ;;  %v1448_v45 = vcvt.s32.f32 %v1192_v43  ;;  %v1193_v49 = vunpack.c.2.s8 %v941_v10 }
 0x1eb   : > { %v1857_v13 = vpack.c.bf16 %v1729_v23, %v1725_v16  ;;  %v1730_v39 = vmul.f32 %v6981_v34, %v1451_v25  ;;  %v1452_v21 = vcvt.s32.f32 %v1196_v26  ;;  %v1197_v50 = vunpack.c.3.s8 %v941_v10 }
 0x1ec   : > { %1984 = vst [vmem:[#allocation3 + $0x3d8] sm:$0xff] %v1856_v24  ;;  %v1727_v37 = vmul.f32 %v6993_v44, %v1448_v45  ;;  %v1449_v40 = vcvt.s32.f32 %v1193_v49  ;;  %v2054_v30 = vunpack.c.0.s8 %v1990_v38  ;;  %v2058_v58 = vunpack.c.1.s8 %v1990_v38  ;;  %v1994_v49 = vld [vmem:[#allocation8 + $0x220] sm:$0xff] }
 0x1ed   : > { %1985 = vst [vmem:[#allocation3 + $0x3e0] sm:$0xff] %v1857_v13  ;;  %v1858_v59 = vpack.c.bf16 %v1730_v39, %v1726_v42  ;;  %v1731_v22 = vmul.f32 %v6993_v44, %v1452_v21  ;;  %v1453_v51 = vcvt.s32.f32 %v1197_v50  ;;  %v2055_v52 = vunpack.c.0.s8 %v1991_v12 }
 0x1ee   : > { %v1728_v48 = vmul.f32 %v7003_v54, %v1449_v40  ;;  %v2310_v1 = vcvt.s32.f32 %v2054_v30  ;;  %v2314_v3 = vcvt.s32.f32 %v2058_v58  ;;  %v2059_v34 = vunpack.c.1.s8 %v1991_v12 }
 0x1ef   : > { %1986 = vst [vmem:[#allocation3 + $0x3e8] sm:$0xff] %v1858_v59  ;;  %v1859_v10 = vpack.c.bf16 %v1731_v22, %v1727_v37  ;;  %v1732_v5 = vmul.f32 %v7003_v54, %v1453_v51  ;;  %v2311_v53 = vcvt.s32.f32 %v2055_v52  ;;  %v2056_v62 = vunpack.c.0.s8 %v1992_v20 }
 0x1f0   : > { %v2589_v63 = vmul.f32 %v6975_v31, %v2310_v1  ;;  %v2593_v0 = vmul.f32 %v6975_v31, %v2314_v3  ;;  %v2315_v61 = vcvt.s32.f32 %v2059_v34  ;;  %v2060_v44 = vunpack.c.1.s8 %v1992_v20 }
 0x1f1   : > { %1987 = vst [vmem:[#allocation3 + $0x3f0] sm:$0xff] %v1859_v10  ;;  %v1860_v14 = vpack.c.bf16 %v1732_v5, %v1728_v48  ;;  %v2590_v29 = vmul.f32 %v6983_v35, %v2311_v53  ;;  %v2312_v15 = vcvt.s32.f32 %v2056_v62  ;;  %v2057_v41 = vunpack.c.0.s8 %v1993_v4 }
 0x1f2   : > { %v2845_v60 = vpack.c.bf16 %v2593_v0, %v2589_v63  ;;  %v2594_v8 = vmul.f32 %v6983_v35, %v2315_v61  ;;  %v2316_v2 = vcvt.s32.f32 %v2060_v44  ;;  %v2061_v19 = vunpack.c.1.s8 %v1993_v4  ;;  %v1997_v63 = vld [vmem:[#allocation8 + $0x238] sm:$0xff] }
 0x1f3   : > { %1988 = vst [vmem:[#allocation3 + $0x3f8] sm:$0xff] %v1860_v14  ;;  %v2591_v54 = vmul.f32 %v6995_v46, %v2312_v15  ;;  %v2313_v7 = vcvt.s32.f32 %v2057_v41  ;;  %v2062_v9 = vunpack.c.2.s8 %v1990_v38  ;;  %v2066_v33 = vunpack.c.3.s8 %v1990_v38 }
 0x1f4   : > { %2974 = vst [vmem:[#allocation3 + $0x400] sm:$0xff] %v2845_v60  ;;  %v2846_v57 = vpack.c.bf16 %v2594_v8, %v2590_v29  ;;  %v2595_v17 = vmul.f32 %v6995_v46, %v2316_v2  ;;  %v2317_v6 = vcvt.s32.f32 %v2061_v19  ;;  %v2063_v18 = vunpack.c.2.s8 %v1991_v12 }
 0x1f5   : > { %v2592_v27 = vmul.f32 %v7005_v55, %v2313_v7  ;;  %v2318_v28 = vcvt.s32.f32 %v2062_v9  ;;  %v2322_v11 = vcvt.s32.f32 %v2066_v33  ;;  %v2067_v43 = vunpack.c.3.s8 %v1991_v12  ;;  %v1995_v12 = vld [vmem:[#allocation8 + $0x228] sm:$0xff] }
 0x1f6   : > { %2975 = vst [vmem:[#allocation3 + $0x408] sm:$0xff] %v2846_v57  ;;  %v2847_v16 = vpack.c.bf16 %v2595_v17, %v2591_v54  ;;  %v2596_v23 = vmul.f32 %v7005_v55, %v2317_v6  ;;  %v2319_v25 = vcvt.s32.f32 %v2063_v18  ;;  %v2064_v26 = vunpack.c.2.s8 %v1992_v20 }
 0x1f7   : > { %v2597_v24 = vmul.f32 %v6975_v31, %v2318_v28  ;;  %v2601_v38 = vmul.f32 %v6975_v31, %v2322_v11  ;;  %v2323_v42 = vcvt.s32.f32 %v2067_v43  ;;  %v2068_v45 = vunpack.c.3.s8 %v1992_v20  ;;  %v1996_v20 = vld [vmem:[#allocation8 + $0x230] sm:$0xff] }
 0x1f8   : > { %2976 = vst [vmem:[#allocation3 + $0x410] sm:$0xff] %v2847_v16  ;;  %v2848_v13 = vpack.c.bf16 %v2596_v23, %v2592_v27  ;;  %v2598_v39 = vmul.f32 %v6983_v35, %v2319_v25  ;;  %v2320_v21 = vcvt.s32.f32 %v2064_v26  ;;  %v2065_v50 = vunpack.c.2.s8 %v1993_v4 }
 0x1f9   : > { %v2849_v37 = vpack.c.bf16 %v2601_v38, %v2597_v24  ;;  %v2602_v40 = vmul.f32 %v6983_v35, %v2323_v42  ;;  %v2324_v30 = vcvt.s32.f32 %v2068_v45  ;;  %v2069_v58 = vunpack.c.3.s8 %v1993_v4 }
 0x1fa   : > { %2977 = vst [vmem:[#allocation3 + $0x418] sm:$0xff] %v2848_v13  ;;  %v2599_v59 = vmul.f32 %v6995_v46, %v2320_v21  ;;  %v2321_v22 = vcvt.s32.f32 %v2065_v50  ;;  %v2070_v51 = vunpack.c.0.s8 %v1994_v49  ;;  %v2074_v52 = vunpack.c.1.s8 %v1994_v49  ;;  %v1998_v50 = vld [vmem:[#allocation8 + $0x240] sm:$0xff] }
 0x1fb   : > { %2978 = vst [vmem:[#allocation3 + $0x420] sm:$0xff] %v2849_v37  ;;  %v2850_v48 = vpack.c.bf16 %v2602_v40, %v2598_v39  ;;  %v2603_v1 = vmul.f32 %v6995_v46, %v2324_v30  ;;  %v2325_v3 = vcvt.s32.f32 %v2069_v58  ;;  %v2071_v34 = vunpack.c.0.s8 %v1995_v12 }
 0x1fc   : > { %v2600_v10 = vmul.f32 %v7005_v55, %v2321_v22  ;;  %v2326_v5 = vcvt.s32.f32 %v2070_v51  ;;  %v2330_v53 = vcvt.s32.f32 %v2074_v52  ;;  %v2075_v62 = vunpack.c.1.s8 %v1995_v12 }
 0x1fd   : > { %2979 = vst [vmem:[#allocation3 + $0x428] sm:$0xff] %v2850_v48  ;;  %v2851_v4 = vpack.c.bf16 %v2603_v1, %v2599_v59  ;;  %v2604_v0 = vmul.f32 %v7005_v55, %v2325_v3  ;;  %v2327_v61 = vcvt.s32.f32 %v2071_v34  ;;  %v2072_v44 = vunpack.c.0.s8 %v1996_v20 }
 0x1fe   : > { %v2605_v14 = vmul.f32 %v6975_v31, %v2326_v5  ;;  %v2609_v29 = vmul.f32 %v6975_v31, %v2330_v53  ;;  %v2331_v15 = vcvt.s32.f32 %v2075_v62  ;;  %v2076_v41 = vunpack.c.1.s8 %v1996_v20 }
 0x1ff   : > { %2980 = vst [vmem:[#allocation3 + $0x430] sm:$0xff] %v2851_v4  ;;  %v2852_v60 = vpack.c.bf16 %v2604_v0, %v2600_v10  ;;  %v2606_v8 = vmul.f32 %v6983_v35, %v2327_v61  ;;  %v2328_v2 = vcvt.s32.f32 %v2072_v44  ;;  %v2073_v19 = vunpack.c.0.s8 %v1997_v63 }
 0x200   : > { %v2853_v54 = vpack.c.bf16 %v2609_v29, %v2605_v14  ;;  %v2610_v7 = vmul.f32 %v6983_v35, %v2331_v15  ;;  %v2332_v9 = vcvt.s32.f32 %v2076_v41  ;;  %v2077_v33 = vunpack.c.1.s8 %v1997_v63  ;;  %v2001_v14 = vld [vmem:[#allocation8 + $0x258] sm:$0xff] }
 0x201   : > { %2981 = vst [vmem:[#allocation3 + $0x438] sm:$0xff] %v2852_v60  ;;  %v2607_v57 = vmul.f32 %v6995_v46, %v2328_v2  ;;  %v2329_v17 = vcvt.s32.f32 %v2073_v19  ;;  %v2078_v6 = vunpack.c.2.s8 %v1994_v49  ;;  %v2082_v18 = vunpack.c.3.s8 %v1994_v49 }
 0x202   : > { %2982 = vst [vmem:[#allocation3 + $0x440] sm:$0xff] %v2853_v54  ;;  %v2854_v27 = vpack.c.bf16 %v2610_v7, %v2606_v8  ;;  %v2611_v28 = vmul.f32 %v6995_v46, %v2332_v9  ;;  %v2333_v11 = vcvt.s32.f32 %v2077_v33  ;;  %v2079_v43 = vunpack.c.2.s8 %v1995_v12 }
 0x203   : > { %v2608_v16 = vmul.f32 %v7005_v55, %v2329_v17  ;;  %v2334_v23 = vcvt.s32.f32 %v2078_v6  ;;  %v2338_v25 = vcvt.s32.f32 %v2082_v18  ;;  %v2083_v26 = vunpack.c.3.s8 %v1995_v12  ;;  %v1999_v12 = vld [vmem:[#allocation8 + $0x248] sm:$0xff] }
 0x204   : > { %2983 = vst [vmem:[#allocation3 + $0x448] sm:$0xff] %v2854_v27  ;;  %v2855_v24 = vpack.c.bf16 %v2611_v28, %v2607_v57  ;;  %v2612_v38 = vmul.f32 %v7005_v55, %v2333_v11  ;;  %v2335_v42 = vcvt.s32.f32 %v2079_v43  ;;  %v2080_v45 = vunpack.c.2.s8 %v1996_v20 }
 0x205   : > { %v2613_v13 = vmul.f32 %v6975_v31, %v2334_v23  ;;  %v2617_v49 = vmul.f32 %v6975_v31, %v2338_v25  ;;  %v2339_v39 = vcvt.s32.f32 %v2083_v26  ;;  %v2084_v21 = vunpack.c.3.s8 %v1996_v20  ;;  %v2000_v20 = vld [vmem:[#allocation8 + $0x250] sm:$0xff] }
 0x206   : > { %2984 = vst [vmem:[#allocation3 + $0x450] sm:$0xff] %v2855_v24  ;;  %v2856_v37 = vpack.c.bf16 %v2612_v38, %v2608_v16  ;;  %v2614_v40 = vmul.f32 %v6983_v35, %v2335_v42  ;;  %v2336_v30 = vcvt.s32.f32 %v2080_v45  ;;  %v2081_v58 = vunpack.c.2.s8 %v1997_v63 }
 0x207   : > { %v2857_v59 = vpack.c.bf16 %v2617_v49, %v2613_v13  ;;  %v2618_v22 = vmul.f32 %v6983_v35, %v2339_v39  ;;  %v2340_v51 = vcvt.s32.f32 %v2084_v21  ;;  %v2085_v52 = vunpack.c.3.s8 %v1997_v63 }
 0x208   : > { %2985 = vst [vmem:[#allocation3 + $0x458] sm:$0xff] %v2856_v37  ;;  %v2615_v48 = vmul.f32 %v6995_v46, %v2336_v30  ;;  %v2337_v1 = vcvt.s32.f32 %v2081_v58  ;;  %v2086_v3 = vunpack.c.0.s8 %v1998_v50  ;;  %v2090_v34 = vunpack.c.1.s8 %v1998_v50  ;;  %v2002_v58 = vld [vmem:[#allocation8 + $0x260] sm:$0xff] }
 0x209   : > { %2986 = vst [vmem:[#allocation3 + $0x460] sm:$0xff] %v2857_v59  ;;  %v2858_v10 = vpack.c.bf16 %v2618_v22, %v2614_v40  ;;  %v2619_v5 = vmul.f32 %v6995_v46, %v2340_v51  ;;  %v2341_v53 = vcvt.s32.f32 %v2085_v52  ;;  %v2087_v62 = vunpack.c.0.s8 %v1999_v12 }
 0x20a   : > { %v2616_v4 = vmul.f32 %v7005_v55, %v2337_v1  ;;  %v2342_v0 = vcvt.s32.f32 %v2086_v3  ;;  %v2346_v61 = vcvt.s32.f32 %v2090_v34  ;;  %v2091_v44 = vunpack.c.1.s8 %v1999_v12 }
 0x20b   : > { %2987 = vst [vmem:[#allocation3 + $0x468] sm:$0xff] %v2858_v10  ;;  %v2859_v63 = vpack.c.bf16 %v2619_v5, %v2615_v48  ;;  %v2620_v29 = vmul.f32 %v7005_v55, %v2341_v53  ;;  %v2343_v15 = vcvt.s32.f32 %v2087_v62  ;;  %v2088_v41 = vunpack.c.0.s8 %v2000_v20 }
 0x20c   : > { %v2621_v60 = vmul.f32 %v6975_v31, %v2342_v0  ;;  %v2625_v8 = vmul.f32 %v6975_v31, %v2346_v61  ;;  %v2347_v2 = vcvt.s32.f32 %v2091_v44  ;;  %v2092_v19 = vunpack.c.1.s8 %v2000_v20 }
 0x20d   : > { %2988 = vst [vmem:[#allocation3 + $0x470] sm:$0xff] %v2859_v63  ;;  %v2860_v54 = vpack.c.bf16 %v2620_v29, %v2616_v4  ;;  %v2622_v7 = vmul.f32 %v6983_v35, %v2343_v15  ;;  %v2344_v9 = vcvt.s32.f32 %v2088_v41  ;;  %v2089_v33 = vunpack.c.0.s8 %v2001_v14 }
 0x20e   : > { %v2861_v57 = vpack.c.bf16 %v2625_v8, %v2621_v60  ;;  %v2626_v17 = vmul.f32 %v6983_v35, %v2347_v2  ;;  %v2348_v6 = vcvt.s32.f32 %v2092_v19  ;;  %v2093_v18 = vunpack.c.1.s8 %v2001_v14  ;;  %v2005_v60 = vld [vmem:[#allocation8 + $0x278] sm:$0xff] }
 0x20f   : > { %2989 = vst [vmem:[#allocation3 + $0x478] sm:$0xff] %v2860_v54  ;;  %v2623_v27 = vmul.f32 %v6995_v46, %v2344_v9  ;;  %v2345_v28 = vcvt.s32.f32 %v2089_v33  ;;  %v2094_v11 = vunpack.c.2.s8 %v1998_v50  ;;  %v2098_v43 = vunpack.c.3.s8 %v1998_v50 }
 0x210   : > { %2990 = vst [vmem:[#allocation3 + $0x480] sm:$0xff] %v2861_v57  ;;  %v2862_v16 = vpack.c.bf16 %v2626_v17, %v2622_v7  ;;  %v2627_v23 = vmul.f32 %v6995_v46, %v2348_v6  ;;  %v2349_v25 = vcvt.s32.f32 %v2093_v18  ;;  %v2095_v26 = vunpack.c.2.s8 %v1999_v12 }
 0x211   : > { %v2624_v24 = vmul.f32 %v7005_v55, %v2345_v28  ;;  %v2350_v38 = vcvt.s32.f32 %v2094_v11  ;;  %v2354_v42 = vcvt.s32.f32 %v2098_v43  ;;  %v2099_v45 = vunpack.c.3.s8 %v1999_v12  ;;  %v2003_v12 = vld [vmem:[#allocation8 + $0x268] sm:$0xff] }
 0x212   : > { %2991 = vst [vmem:[#allocation3 + $0x488] sm:$0xff] %v2862_v16  ;;  %v2863_v13 = vpack.c.bf16 %v2627_v23, %v2623_v27  ;;  %v2628_v49 = vmul.f32 %v7005_v55, %v2349_v25  ;;  %v2351_v39 = vcvt.s32.f32 %v2095_v26  ;;  %v2096_v21 = vunpack.c.2.s8 %v2000_v20 }
 0x213   : > { %v2629_v37 = vmul.f32 %v6975_v31, %v2350_v38  ;;  %v2633_v50 = vmul.f32 %v6975_v31, %v2354_v42  ;;  %v2355_v40 = vcvt.s32.f32 %v2099_v45  ;;  %v2100_v30 = vunpack.c.3.s8 %v2000_v20  ;;  %v2004_v20 = vld [vmem:[#allocation8 + $0x270] sm:$0xff] }
 0x214   : > { %2992 = vst [vmem:[#allocation3 + $0x490] sm:$0xff] %v2863_v13  ;;  %v2864_v59 = vpack.c.bf16 %v2628_v49, %v2624_v24  ;;  %v2630_v22 = vmul.f32 %v6983_v35, %v2351_v39  ;;  %v2352_v51 = vcvt.s32.f32 %v2096_v21  ;;  %v2097_v52 = vunpack.c.2.s8 %v2001_v14 }
 0x215   : > { %v2865_v48 = vpack.c.bf16 %v2633_v50, %v2629_v37  ;;  %v2634_v1 = vmul.f32 %v6983_v35, %v2355_v40  ;;  %v2356_v3 = vcvt.s32.f32 %v2100_v30  ;;  %v2101_v34 = vunpack.c.3.s8 %v2001_v14 }
 0x216   : > { %2993 = vst [vmem:[#allocation3 + $0x498] sm:$0xff] %v2864_v59  ;;  %v2631_v10 = vmul.f32 %v6995_v46, %v2352_v51  ;;  %v2353_v5 = vcvt.s32.f32 %v2097_v52  ;;  %v2102_v53 = vunpack.c.0.s8 %v2002_v58  ;;  %v2106_v62 = vunpack.c.1.s8 %v2002_v58  ;;  %v2006_v52 = vld [vmem:[#allocation8 + $0x280] sm:$0xff] }
 0x217   : > { %2994 = vst [vmem:[#allocation3 + $0x4a0] sm:$0xff] %v2865_v48  ;;  %v2866_v4 = vpack.c.bf16 %v2634_v1, %v2630_v22  ;;  %v2635_v0 = vmul.f32 %v6995_v46, %v2356_v3  ;;  %v2357_v61 = vcvt.s32.f32 %v2101_v34  ;;  %v2103_v44 = vunpack.c.0.s8 %v2003_v12 }
 0x218   : > { %v2632_v63 = vmul.f32 %v7005_v55, %v2353_v5  ;;  %v2358_v29 = vcvt.s32.f32 %v2102_v53  ;;  %v2362_v15 = vcvt.s32.f32 %v2106_v62  ;;  %v2107_v41 = vunpack.c.1.s8 %v2003_v12 }
 0x219   : > { %2995 = vst [vmem:[#allocation3 + $0x4a8] sm:$0xff] %v2866_v4  ;;  %v2867_v14 = vpack.c.bf16 %v2635_v0, %v2631_v10  ;;  %v2636_v8 = vmul.f32 %v7005_v55, %v2357_v61  ;;  %v2359_v2 = vcvt.s32.f32 %v2103_v44  ;;  %v2104_v19 = vunpack.c.0.s8 %v2004_v20 }
 0x21a   : > { %v2637_v54 = vmul.f32 %v6975_v31, %v2358_v29  ;;  %v2641_v7 = vmul.f32 %v6975_v31, %v2362_v15  ;;  %v2363_v9 = vcvt.s32.f32 %v2107_v41  ;;  %v2108_v33 = vunpack.c.1.s8 %v2004_v20 }
 0x21b   : > { %2996 = vst [vmem:[#allocation3 + $0x4b0] sm:$0xff] %v2867_v14  ;;  %v2868_v57 = vpack.c.bf16 %v2636_v8, %v2632_v63  ;;  %v2638_v17 = vmul.f32 %v6983_v35, %v2359_v2  ;;  %v2360_v6 = vcvt.s32.f32 %v2104_v19  ;;  %v2105_v18 = vunpack.c.0.s8 %v2005_v60 }
 0x21c   : > { %v2869_v27 = vpack.c.bf16 %v2641_v7, %v2637_v54  ;;  %v2642_v28 = vmul.f32 %v6983_v35, %v2363_v9  ;;  %v2364_v11 = vcvt.s32.f32 %v2108_v33  ;;  %v2109_v43 = vunpack.c.1.s8 %v2005_v60  ;;  %v2009_v54 = vld [vmem:[#allocation8 + $0x298] sm:$0xff] }
 0x21d   : > { %2997 = vst [vmem:[#allocation3 + $0x4b8] sm:$0xff] %v2868_v57  ;;  %v2639_v16 = vmul.f32 %v6995_v46, %v2360_v6  ;;  %v2361_v23 = vcvt.s32.f32 %v2105_v18  ;;  %v2110_v25 = vunpack.c.2.s8 %v2002_v58  ;;  %v2114_v26 = vunpack.c.3.s8 %v2002_v58 }
 0x21e   : > { %2998 = vst [vmem:[#allocation3 + $0x4c0] sm:$0xff] %v2869_v27  ;;  %v2870_v24 = vpack.c.bf16 %v2642_v28, %v2638_v17  ;;  %v2643_v38 = vmul.f32 %v6995_v46, %v2364_v11  ;;  %v2365_v42 = vcvt.s32.f32 %v2109_v43  ;;  %v2111_v45 = vunpack.c.2.s8 %v2003_v12 }
 0x21f   : > { %v2640_v13 = vmul.f32 %v7005_v55, %v2361_v23  ;;  %v2366_v49 = vcvt.s32.f32 %v2110_v25  ;;  %v2370_v39 = vcvt.s32.f32 %v2114_v26  ;;  %v2115_v21 = vunpack.c.3.s8 %v2003_v12  ;;  %v2007_v12 = vld [vmem:[#allocation8 + $0x288] sm:$0xff] }
 0x220   : > { %2999 = vst [vmem:[#allocation3 + $0x4c8] sm:$0xff] %v2870_v24  ;;  %v2871_v37 = vpack.c.bf16 %v2643_v38, %v2639_v16  ;;  %v2644_v50 = vmul.f32 %v7005_v55, %v2365_v42  ;;  %v2367_v40 = vcvt.s32.f32 %v2111_v45  ;;  %v2112_v30 = vunpack.c.2.s8 %v2004_v20 }
 0x221   : > { %v2645_v59 = vmul.f32 %v6975_v31, %v2366_v49  ;;  %v2649_v58 = vmul.f32 %v6975_v31, %v2370_v39  ;;  %v2371_v22 = vcvt.s32.f32 %v2115_v21  ;;  %v2116_v51 = vunpack.c.3.s8 %v2004_v20  ;;  %v2008_v20 = vld [vmem:[#allocation8 + $0x290] sm:$0xff] }
 0x222   : > { %3000 = vst [vmem:[#allocation3 + $0x4d0] sm:$0xff] %v2871_v37  ;;  %v2872_v48 = vpack.c.bf16 %v2644_v50, %v2640_v13  ;;  %v2646_v1 = vmul.f32 %v6983_v35, %v2367_v40  ;;  %v2368_v3 = vcvt.s32.f32 %v2112_v30  ;;  %v2113_v34 = vunpack.c.2.s8 %v2005_v60 }
 0x223   : > { %v2873_v10 = vpack.c.bf16 %v2649_v58, %v2645_v59  ;;  %v2650_v5 = vmul.f32 %v6983_v35, %v2371_v22  ;;  %v2372_v53 = vcvt.s32.f32 %v2116_v51  ;;  %v2117_v62 = vunpack.c.3.s8 %v2005_v60 }
 0x224   : > { %3001 = vst [vmem:[#allocation3 + $0x4d8] sm:$0xff] %v2872_v48  ;;  %v2647_v4 = vmul.f32 %v6995_v46, %v2368_v3  ;;  %v2369_v0 = vcvt.s32.f32 %v2113_v34  ;;  %v2118_v61 = vunpack.c.0.s8 %v2006_v52  ;;  %v2122_v44 = vunpack.c.1.s8 %v2006_v52  ;;  %v2010_v34 = vld [vmem:[#allocation8 + $0x2a0] sm:$0xff] }
 0x225   : > { %3002 = vst [vmem:[#allocation3 + $0x4e0] sm:$0xff] %v2873_v10  ;;  %v2874_v63 = vpack.c.bf16 %v2650_v5, %v2646_v1  ;;  %v2651_v29 = vmul.f32 %v6995_v46, %v2372_v53  ;;  %v2373_v15 = vcvt.s32.f32 %v2117_v62  ;;  %v2119_v41 = vunpack.c.0.s8 %v2007_v12 }
 0x226   : > { %v2648_v14 = vmul.f32 %v7005_v55, %v2369_v0  ;;  %v2374_v8 = vcvt.s32.f32 %v2118_v61  ;;  %v2378_v2 = vcvt.s32.f32 %v2122_v44  ;;  %v2123_v19 = vunpack.c.1.s8 %v2007_v12 }
 0x227   : > { %3003 = vst [vmem:[#allocation3 + $0x4e8] sm:$0xff] %v2874_v63  ;;  %v2875_v60 = vpack.c.bf16 %v2651_v29, %v2647_v4  ;;  %v2652_v7 = vmul.f32 %v7005_v55, %v2373_v15  ;;  %v2375_v9 = vcvt.s32.f32 %v2119_v41  ;;  %v2120_v33 = vunpack.c.0.s8 %v2008_v20 }
 0x228   : > { %v2653_v57 = vmul.f32 %v6975_v31, %v2374_v8  ;;  %v2657_v17 = vmul.f32 %v6975_v31, %v2378_v2  ;;  %v2379_v6 = vcvt.s32.f32 %v2123_v19  ;;  %v2124_v18 = vunpack.c.1.s8 %v2008_v20 }
 0x229   : > { %3004 = vst [vmem:[#allocation3 + $0x4f0] sm:$0xff] %v2875_v60  ;;  %v2876_v27 = vpack.c.bf16 %v2652_v7, %v2648_v14  ;;  %v2654_v28 = vmul.f32 %v6983_v35, %v2375_v9  ;;  %v2376_v11 = vcvt.s32.f32 %v2120_v33  ;;  %v2121_v43 = vunpack.c.0.s8 %v2009_v54 }
 0x22a   : > { %v2877_v16 = vpack.c.bf16 %v2657_v17, %v2653_v57  ;;  %v2658_v23 = vmul.f32 %v6983_v35, %v2379_v6  ;;  %v2380_v25 = vcvt.s32.f32 %v2124_v18  ;;  %v2125_v26 = vunpack.c.1.s8 %v2009_v54  ;;  %v2013_v57 = vld [vmem:[#allocation8 + $0x2b8] sm:$0xff] }
 0x22b   : > { %3005 = vst [vmem:[#allocation3 + $0x4f8] sm:$0xff] %v2876_v27  ;;  %v2655_v24 = vmul.f32 %v6995_v46, %v2376_v11  ;;  %v2377_v38 = vcvt.s32.f32 %v2121_v43  ;;  %v2126_v42 = vunpack.c.2.s8 %v2006_v52  ;;  %v2130_v45 = vunpack.c.3.s8 %v2006_v52 }
 0x22c   : > { %3006 = vst [vmem:[#allocation3 + $0x500] sm:$0xff] %v2877_v16  ;;  %v2878_v13 = vpack.c.bf16 %v2658_v23, %v2654_v28  ;;  %v2659_v49 = vmul.f32 %v6995_v46, %v2380_v25  ;;  %v2381_v39 = vcvt.s32.f32 %v2125_v26  ;;  %v2127_v21 = vunpack.c.2.s8 %v2007_v12 }
 0x22d   : > { %v2656_v37 = vmul.f32 %v7005_v55, %v2377_v38  ;;  %v2382_v50 = vcvt.s32.f32 %v2126_v42  ;;  %v2386_v40 = vcvt.s32.f32 %v2130_v45  ;;  %v2131_v30 = vunpack.c.3.s8 %v2007_v12  ;;  %v2011_v12 = vld [vmem:[#allocation8 + $0x2a8] sm:$0xff] }
 0x22e   : > { %3007 = vst [vmem:[#allocation3 + $0x508] sm:$0xff] %v2878_v13  ;;  %v2879_v59 = vpack.c.bf16 %v2659_v49, %v2655_v24  ;;  %v2660_v58 = vmul.f32 %v7005_v55, %v2381_v39  ;;  %v2383_v22 = vcvt.s32.f32 %v2127_v21  ;;  %v2128_v51 = vunpack.c.2.s8 %v2008_v20 }
 0x22f   : > { %v2661_v48 = vmul.f32 %v6975_v31, %v2382_v50  ;;  %v2665_v52 = vmul.f32 %v6975_v31, %v2386_v40  ;;  %v2387_v1 = vcvt.s32.f32 %v2131_v30  ;;  %v2132_v3 = vunpack.c.3.s8 %v2008_v20  ;;  %v2012_v20 = vld [vmem:[#allocation8 + $0x2b0] sm:$0xff] }
 0x230   : > { %3008 = vst [vmem:[#allocation3 + $0x510] sm:$0xff] %v2879_v59  ;;  %v2880_v10 = vpack.c.bf16 %v2660_v58, %v2656_v37  ;;  %v2662_v5 = vmul.f32 %v6983_v35, %v2383_v22  ;;  %v2384_v53 = vcvt.s32.f32 %v2128_v51  ;;  %v2129_v62 = vunpack.c.2.s8 %v2009_v54 }
 0x231   : > { %v2881_v4 = vpack.c.bf16 %v2665_v52, %v2661_v48  ;;  %v2666_v0 = vmul.f32 %v6983_v35, %v2387_v1  ;;  %v2388_v61 = vcvt.s32.f32 %v2132_v3  ;;  %v2133_v44 = vunpack.c.3.s8 %v2009_v54 }
 0x232   : > { %3009 = vst [vmem:[#allocation3 + $0x518] sm:$0xff] %v2880_v10  ;;  %v2663_v63 = vmul.f32 %v6995_v46, %v2384_v53  ;;  %v2385_v29 = vcvt.s32.f32 %v2129_v62  ;;  %v2134_v15 = vunpack.c.0.s8 %v2010_v34  ;;  %v2138_v41 = vunpack.c.1.s8 %v2010_v34  ;;  %v2014_v62 = vld [vmem:[#allocation8 + $0x2c0] sm:$0xff] }
 0x233   : > { %3010 = vst [vmem:[#allocation3 + $0x520] sm:$0xff] %v2881_v4  ;;  %v2882_v14 = vpack.c.bf16 %v2666_v0, %v2662_v5  ;;  %v2667_v8 = vmul.f32 %v6995_v46, %v2388_v61  ;;  %v2389_v2 = vcvt.s32.f32 %v2133_v44  ;;  %v2135_v19 = vunpack.c.0.s8 %v2011_v12 }
 0x234   : > { %v2664_v60 = vmul.f32 %v7005_v55, %v2385_v29  ;;  %v2390_v7 = vcvt.s32.f32 %v2134_v15  ;;  %v2394_v9 = vcvt.s32.f32 %v2138_v41  ;;  %v2139_v33 = vunpack.c.1.s8 %v2011_v12 }
 0x235   : > { %3011 = vst [vmem:[#allocation3 + $0x528] sm:$0xff] %v2882_v14  ;;  %v2883_v54 = vpack.c.bf16 %v2667_v8, %v2663_v63  ;;  %v2668_v17 = vmul.f32 %v7005_v55, %v2389_v2  ;;  %v2391_v6 = vcvt.s32.f32 %v2135_v19  ;;  %v2136_v18 = vunpack.c.0.s8 %v2012_v20 }
 0x236   : > { %v2669_v27 = vmul.f32 %v6975_v31, %v2390_v7  ;;  %v2673_v28 = vmul.f32 %v6975_v31, %v2394_v9  ;;  %v2395_v11 = vcvt.s32.f32 %v2139_v33  ;;  %v2140_v43 = vunpack.c.1.s8 %v2012_v20 }
 0x237   : > { %3012 = vst [vmem:[#allocation3 + $0x530] sm:$0xff] %v2883_v54  ;;  %v2884_v16 = vpack.c.bf16 %v2668_v17, %v2664_v60  ;;  %v2670_v23 = vmul.f32 %v6983_v35, %v2391_v6  ;;  %v2392_v25 = vcvt.s32.f32 %v2136_v18  ;;  %v2137_v26 = vunpack.c.0.s8 %v2013_v57 }
 0x238   : > { %v2885_v24 = vpack.c.bf16 %v2673_v28, %v2669_v27  ;;  %v2674_v38 = vmul.f32 %v6983_v35, %v2395_v11  ;;  %v2396_v42 = vcvt.s32.f32 %v2140_v43  ;;  %v2141_v45 = vunpack.c.1.s8 %v2013_v57  ;;  %v2017_v27 = vld [vmem:[#allocation8 + $0x2d8] sm:$0xff] }
 0x239   : > { %3013 = vst [vmem:[#allocation3 + $0x538] sm:$0xff] %v2884_v16  ;;  %v2671_v13 = vmul.f32 %v6995_v46, %v2392_v25  ;;  %v2393_v49 = vcvt.s32.f32 %v2137_v26  ;;  %v2142_v39 = vunpack.c.2.s8 %v2010_v34  ;;  %v2146_v21 = vunpack.c.3.s8 %v2010_v34 }
 0x23a   : > { %3014 = vst [vmem:[#allocation3 + $0x540] sm:$0xff] %v2885_v24  ;;  %v2886_v37 = vpack.c.bf16 %v2674_v38, %v2670_v23  ;;  %v2675_v50 = vmul.f32 %v6995_v46, %v2396_v42  ;;  %v2397_v40 = vcvt.s32.f32 %v2141_v45  ;;  %v2143_v30 = vunpack.c.2.s8 %v2011_v12 }
 0x23b   : > { %v2672_v59 = vmul.f32 %v7005_v55, %v2393_v49  ;;  %v2398_v58 = vcvt.s32.f32 %v2142_v39  ;;  %v2402_v22 = vcvt.s32.f32 %v2146_v21  ;;  %v2147_v51 = vunpack.c.3.s8 %v2011_v12  ;;  %v2015_v12 = vld [vmem:[#allocation8 + $0x2c8] sm:$0xff] }
 0x23c   : > { %3015 = vst [vmem:[#allocation3 + $0x548] sm:$0xff] %v2886_v37  ;;  %v2887_v48 = vpack.c.bf16 %v2675_v50, %v2671_v13  ;;  %v2676_v52 = vmul.f32 %v7005_v55, %v2397_v40  ;;  %v2399_v1 = vcvt.s32.f32 %v2143_v30  ;;  %v2144_v3 = vunpack.c.2.s8 %v2012_v20 }
 0x23d   : > { %v2677_v10 = vmul.f32 %v6975_v31, %v2398_v58  ;;  %v2681_v34 = vmul.f32 %v6975_v31, %v2402_v22  ;;  %v2403_v5 = vcvt.s32.f32 %v2147_v51  ;;  %v2148_v53 = vunpack.c.3.s8 %v2012_v20  ;;  %v2016_v20 = vld [vmem:[#allocation8 + $0x2d0] sm:$0xff] }
 0x23e   : > { %3016 = vst [vmem:[#allocation3 + $0x550] sm:$0xff] %v2887_v48  ;;  %v2888_v4 = vpack.c.bf16 %v2676_v52, %v2672_v59  ;;  %v2678_v0 = vmul.f32 %v6983_v35, %v2399_v1  ;;  %v2400_v61 = vcvt.s32.f32 %v2144_v3  ;;  %v2145_v44 = vunpack.c.2.s8 %v2013_v57 }
 0x23f   : > { %v2889_v63 = vpack.c.bf16 %v2681_v34, %v2677_v10  ;;  %v2682_v29 = vmul.f32 %v6983_v35, %v2403_v5  ;;  %v2404_v15 = vcvt.s32.f32 %v2148_v53  ;;  %v2149_v41 = vunpack.c.3.s8 %v2013_v57 }
 0x240   : > { %3017 = vst [vmem:[#allocation3 + $0x558] sm:$0xff] %v2888_v4  ;;  %v2679_v14 = vmul.f32 %v6995_v46, %v2400_v61  ;;  %v2401_v8 = vcvt.s32.f32 %v2145_v44  ;;  %v2150_v2 = vunpack.c.0.s8 %v2014_v62  ;;  %v2154_v19 = vunpack.c.1.s8 %v2014_v62  ;;  %v2018_v44 = vld [vmem:[#allocation8 + $0x2e0] sm:$0xff] }
 0x241   : > { %3018 = vst [vmem:[#allocation3 + $0x560] sm:$0xff] %v2889_v63  ;;  %v2890_v60 = vpack.c.bf16 %v2682_v29, %v2678_v0  ;;  %v2683_v7 = vmul.f32 %v6995_v46, %v2404_v15  ;;  %v2405_v9 = vcvt.s32.f32 %v2149_v41  ;;  %v2151_v33 = vunpack.c.0.s8 %v2015_v12 }
 0x242   : > { %v2680_v54 = vmul.f32 %v7005_v55, %v2401_v8  ;;  %v2406_v17 = vcvt.s32.f32 %v2150_v2  ;;  %v2410_v6 = vcvt.s32.f32 %v2154_v19  ;;  %v2155_v18 = vunpack.c.1.s8 %v2015_v12 }
 0x243   : > { %3019 = vst [vmem:[#allocation3 + $0x568] sm:$0xff] %v2890_v60  ;;  %v2891_v57 = vpack.c.bf16 %v2683_v7, %v2679_v14  ;;  %v2684_v28 = vmul.f32 %v7005_v55, %v2405_v9  ;;  %v2407_v11 = vcvt.s32.f32 %v2151_v33  ;;  %v2152_v43 = vunpack.c.0.s8 %v2016_v20 }
 0x244   : > { %v2685_v16 = vmul.f32 %v6975_v31, %v2406_v17  ;;  %v2689_v23 = vmul.f32 %v6975_v31, %v2410_v6  ;;  %v2411_v25 = vcvt.s32.f32 %v2155_v18  ;;  %v2156_v26 = vunpack.c.1.s8 %v2016_v20 }
 0x245   : > { %3020 = vst [vmem:[#allocation3 + $0x570] sm:$0xff] %v2891_v57  ;;  %v2892_v24 = vpack.c.bf16 %v2684_v28, %v2680_v54  ;;  %v2686_v38 = vmul.f32 %v6983_v35, %v2407_v11  ;;  %v2408_v42 = vcvt.s32.f32 %v2152_v43  ;;  %v2153_v45 = vunpack.c.0.s8 %v2017_v27 }
 0x246   : > { %v2893_v13 = vpack.c.bf16 %v2689_v23, %v2685_v16  ;;  %v2690_v49 = vmul.f32 %v6983_v35, %v2411_v25  ;;  %v2412_v39 = vcvt.s32.f32 %v2156_v26  ;;  %v2157_v21 = vunpack.c.1.s8 %v2017_v27  ;;  %v2021_v16 = vld [vmem:[#allocation8 + $0x2f8] sm:$0xff] }
 0x247   : > { %3021 = vst [vmem:[#allocation3 + $0x578] sm:$0xff] %v2892_v24  ;;  %v2687_v37 = vmul.f32 %v6995_v46, %v2408_v42  ;;  %v2409_v50 = vcvt.s32.f32 %v2153_v45  ;;  %v2158_v40 = vunpack.c.2.s8 %v2014_v62  ;;  %v2162_v30 = vunpack.c.3.s8 %v2014_v62 }
 0x248   : > { %3022 = vst [vmem:[#allocation3 + $0x580] sm:$0xff] %v2893_v13  ;;  %v2894_v59 = vpack.c.bf16 %v2690_v49, %v2686_v38  ;;  %v2691_v58 = vmul.f32 %v6995_v46, %v2412_v39  ;;  %v2413_v22 = vcvt.s32.f32 %v2157_v21  ;;  %v2159_v51 = vunpack.c.2.s8 %v2015_v12 }
 0x249   : > { %v2688_v48 = vmul.f32 %v7005_v55, %v2409_v50  ;;  %v2414_v52 = vcvt.s32.f32 %v2158_v40  ;;  %v2418_v1 = vcvt.s32.f32 %v2162_v30  ;;  %v2163_v3 = vunpack.c.3.s8 %v2015_v12  ;;  %v2019_v12 = vld [vmem:[#allocation8 + $0x2e8] sm:$0xff] }
 0x24a   : > { %3023 = vst [vmem:[#allocation3 + $0x588] sm:$0xff] %v2894_v59  ;;  %v2895_v10 = vpack.c.bf16 %v2691_v58, %v2687_v37  ;;  %v2692_v34 = vmul.f32 %v7005_v55, %v2413_v22  ;;  %v2415_v5 = vcvt.s32.f32 %v2159_v51  ;;  %v2160_v53 = vunpack.c.2.s8 %v2016_v20 }
 0x24b   : > { %v2693_v4 = vmul.f32 %v6975_v31, %v2414_v52  ;;  %v2697_v62 = vmul.f32 %v6975_v31, %v2418_v1  ;;  %v2419_v0 = vcvt.s32.f32 %v2163_v3  ;;  %v2164_v61 = vunpack.c.3.s8 %v2016_v20  ;;  %v2020_v20 = vld [vmem:[#allocation8 + $0x2f0] sm:$0xff] }
 0x24c   : > { %3024 = vst [vmem:[#allocation3 + $0x590] sm:$0xff] %v2895_v10  ;;  %v2896_v63 = vpack.c.bf16 %v2692_v34, %v2688_v48  ;;  %v2694_v29 = vmul.f32 %v6983_v35, %v2415_v5  ;;  %v2416_v15 = vcvt.s32.f32 %v2160_v53  ;;  %v2161_v41 = vunpack.c.2.s8 %v2017_v27 }
 0x24d   : > { %v2897_v14 = vpack.c.bf16 %v2697_v62, %v2693_v4  ;;  %v2698_v8 = vmul.f32 %v6983_v35, %v2419_v0  ;;  %v2420_v2 = vcvt.s32.f32 %v2164_v61  ;;  %v2165_v19 = vunpack.c.3.s8 %v2017_v27 }
 0x24e   : > { %3025 = vst [vmem:[#allocation3 + $0x598] sm:$0xff] %v2896_v63  ;;  %v2695_v60 = vmul.f32 %v6995_v46, %v2416_v15  ;;  %v2417_v7 = vcvt.s32.f32 %v2161_v41  ;;  %v2166_v9 = vunpack.c.0.s8 %v2018_v44  ;;  %v2170_v33 = vunpack.c.1.s8 %v2018_v44  ;;  %v2022_v41 = vld [vmem:[#allocation8 + $0x300] sm:$0xff] }
 0x24f   : > { %3026 = vst [vmem:[#allocation3 + $0x5a0] sm:$0xff] %v2897_v14  ;;  %v2898_v54 = vpack.c.bf16 %v2698_v8, %v2694_v29  ;;  %v2699_v17 = vmul.f32 %v6995_v46, %v2420_v2  ;;  %v2421_v6 = vcvt.s32.f32 %v2165_v19  ;;  %v2167_v18 = vunpack.c.0.s8 %v2019_v12 }
 0x250   : > { %v2696_v57 = vmul.f32 %v7005_v55, %v2417_v7  ;;  %v2422_v28 = vcvt.s32.f32 %v2166_v9  ;;  %v2426_v11 = vcvt.s32.f32 %v2170_v33  ;;  %v2171_v43 = vunpack.c.1.s8 %v2019_v12 }
 0x251   : > { %3027 = vst [vmem:[#allocation3 + $0x5a8] sm:$0xff] %v2898_v54  ;;  %v2899_v27 = vpack.c.bf16 %v2699_v17, %v2695_v60  ;;  %v2700_v23 = vmul.f32 %v7005_v55, %v2421_v6  ;;  %v2423_v25 = vcvt.s32.f32 %v2167_v18  ;;  %v2168_v26 = vunpack.c.0.s8 %v2020_v20 }
 0x252   : > { %v2701_v24 = vmul.f32 %v6975_v31, %v2422_v28  ;;  %v2705_v38 = vmul.f32 %v6975_v31, %v2426_v11  ;;  %v2427_v42 = vcvt.s32.f32 %v2171_v43  ;;  %v2172_v45 = vunpack.c.1.s8 %v2020_v20 }
 0x253   : > { %3028 = vst [vmem:[#allocation3 + $0x5b0] sm:$0xff] %v2899_v27  ;;  %v2900_v13 = vpack.c.bf16 %v2700_v23, %v2696_v57  ;;  %v2702_v49 = vmul.f32 %v6983_v35, %v2423_v25  ;;  %v2424_v39 = vcvt.s32.f32 %v2168_v26  ;;  %v2169_v21 = vunpack.c.0.s8 %v2021_v16 }
 0x254   : > { %v2901_v37 = vpack.c.bf16 %v2705_v38, %v2701_v24  ;;  %v2706_v50 = vmul.f32 %v6983_v35, %v2427_v42  ;;  %v2428_v40 = vcvt.s32.f32 %v2172_v45  ;;  %v2173_v30 = vunpack.c.1.s8 %v2021_v16  ;;  %v2025_v24 = vld [vmem:[#allocation8 + $0x318] sm:$0xff] }
 0x255   : > { %3029 = vst [vmem:[#allocation3 + $0x5b8] sm:$0xff] %v2900_v13  ;;  %v2703_v59 = vmul.f32 %v6995_v46, %v2424_v39  ;;  %v2425_v58 = vcvt.s32.f32 %v2169_v21  ;;  %v2174_v22 = vunpack.c.2.s8 %v2018_v44  ;;  %v2178_v51 = vunpack.c.3.s8 %v2018_v44 }
 0x256   : > { %3030 = vst [vmem:[#allocation3 + $0x5c0] sm:$0xff] %v2901_v37  ;;  %v2902_v48 = vpack.c.bf16 %v2706_v50, %v2702_v49  ;;  %v2707_v52 = vmul.f32 %v6995_v46, %v2428_v40  ;;  %v2429_v1 = vcvt.s32.f32 %v2173_v30  ;;  %v2175_v3 = vunpack.c.2.s8 %v2019_v12 }
 0x257   : > { %v2704_v10 = vmul.f32 %v7005_v55, %v2425_v58  ;;  %v2430_v34 = vcvt.s32.f32 %v2174_v22  ;;  %v2434_v5 = vcvt.s32.f32 %v2178_v51  ;;  %v2179_v53 = vunpack.c.3.s8 %v2019_v12  ;;  %v2023_v12 = vld [vmem:[#allocation8 + $0x308] sm:$0xff] }
 0x258   : > { %3031 = vst [vmem:[#allocation3 + $0x5c8] sm:$0xff] %v2902_v48  ;;  %v2903_v4 = vpack.c.bf16 %v2707_v52, %v2703_v59  ;;  %v2708_v62 = vmul.f32 %v7005_v55, %v2429_v1  ;;  %v2431_v0 = vcvt.s32.f32 %v2175_v3  ;;  %v2176_v61 = vunpack.c.2.s8 %v2020_v20 }
 0x259   : > { %v2709_v63 = vmul.f32 %v6975_v31, %v2430_v34  ;;  %v2713_v44 = vmul.f32 %v6975_v31, %v2434_v5  ;;  %v2435_v29 = vcvt.s32.f32 %v2179_v53  ;;  %v2180_v15 = vunpack.c.3.s8 %v2020_v20  ;;  %v2024_v20 = vld [vmem:[#allocation8 + $0x310] sm:$0xff] }
 0x25a   : > { %3032 = vst [vmem:[#allocation3 + $0x5d0] sm:$0xff] %v2903_v4  ;;  %v2904_v14 = vpack.c.bf16 %v2708_v62, %v2704_v10  ;;  %v2710_v8 = vmul.f32 %v6983_v35, %v2431_v0  ;;  %v2432_v2 = vcvt.s32.f32 %v2176_v61  ;;  %v2177_v19 = vunpack.c.2.s8 %v2021_v16 }
 0x25b   : > { %v2905_v60 = vpack.c.bf16 %v2713_v44, %v2709_v63  ;;  %v2714_v7 = vmul.f32 %v6983_v35, %v2435_v29  ;;  %v2436_v9 = vcvt.s32.f32 %v2180_v15  ;;  %v2181_v33 = vunpack.c.3.s8 %v2021_v16 }
 0x25c   : > { %3033 = vst [vmem:[#allocation3 + $0x5d8] sm:$0xff] %v2904_v14  ;;  %v2711_v54 = vmul.f32 %v6995_v46, %v2432_v2  ;;  %v2433_v17 = vcvt.s32.f32 %v2177_v19  ;;  %v2182_v6 = vunpack.c.0.s8 %v2022_v41  ;;  %v2186_v18 = vunpack.c.1.s8 %v2022_v41  ;;  %v2026_v19 = vld [vmem:[#allocation8 + $0x320] sm:$0xff] }
 0x25d   : > { %3034 = vst [vmem:[#allocation3 + $0x5e0] sm:$0xff] %v2905_v60  ;;  %v2906_v57 = vpack.c.bf16 %v2714_v7, %v2710_v8  ;;  %v2715_v28 = vmul.f32 %v6995_v46, %v2436_v9  ;;  %v2437_v11 = vcvt.s32.f32 %v2181_v33  ;;  %v2183_v43 = vunpack.c.0.s8 %v2023_v12 }
 0x25e   : > { %v2712_v27 = vmul.f32 %v7005_v55, %v2433_v17  ;;  %v2438_v23 = vcvt.s32.f32 %v2182_v6  ;;  %v2442_v25 = vcvt.s32.f32 %v2186_v18  ;;  %v2187_v26 = vunpack.c.1.s8 %v2023_v12 }
 0x25f   : > { %3035 = vst [vmem:[#allocation3 + $0x5e8] sm:$0xff] %v2906_v57  ;;  %v2907_v16 = vpack.c.bf16 %v2715_v28, %v2711_v54  ;;  %v2716_v38 = vmul.f32 %v7005_v55, %v2437_v11  ;;  %v2439_v42 = vcvt.s32.f32 %v2183_v43  ;;  %v2184_v45 = vunpack.c.0.s8 %v2024_v20 }
 0x260   : > { %v2717_v13 = vmul.f32 %v6975_v31, %v2438_v23  ;;  %v2721_v49 = vmul.f32 %v6975_v31, %v2442_v25  ;;  %v2443_v39 = vcvt.s32.f32 %v2187_v26  ;;  %v2188_v21 = vunpack.c.1.s8 %v2024_v20 }
 0x261   : > { %3036 = vst [vmem:[#allocation3 + $0x5f0] sm:$0xff] %v2907_v16  ;;  %v2908_v37 = vpack.c.bf16 %v2716_v38, %v2712_v27  ;;  %v2718_v50 = vmul.f32 %v6983_v35, %v2439_v42  ;;  %v2440_v40 = vcvt.s32.f32 %v2184_v45  ;;  %v2185_v30 = vunpack.c.0.s8 %v2025_v24 }
 0x262   : > { %v2909_v59 = vpack.c.bf16 %v2721_v49, %v2717_v13  ;;  %v2722_v58 = vmul.f32 %v6983_v35, %v2443_v39  ;;  %v2444_v22 = vcvt.s32.f32 %v2188_v21  ;;  %v2189_v51 = vunpack.c.1.s8 %v2025_v24  ;;  %v2029_v13 = vld [vmem:[#allocation8 + $0x338] sm:$0xff] }
 0x263   : > { %3037 = vst [vmem:[#allocation3 + $0x5f8] sm:$0xff] %v2908_v37  ;;  %v2719_v48 = vmul.f32 %v6995_v46, %v2440_v40  ;;  %v2441_v52 = vcvt.s32.f32 %v2185_v30  ;;  %v2190_v1 = vunpack.c.2.s8 %v2022_v41  ;;  %v2194_v3 = vunpack.c.3.s8 %v2022_v41 }
 0x264   : > { %3038 = vst [vmem:[#allocation3 + $0x600] sm:$0xff] %v2909_v59  ;;  %v2910_v10 = vpack.c.bf16 %v2722_v58, %v2718_v50  ;;  %v2723_v34 = vmul.f32 %v6995_v46, %v2444_v22  ;;  %v2445_v5 = vcvt.s32.f32 %v2189_v51  ;;  %v2191_v53 = vunpack.c.2.s8 %v2023_v12 }
 0x265   : > { %v2720_v4 = vmul.f32 %v7005_v55, %v2441_v52  ;;  %v2446_v62 = vcvt.s32.f32 %v2190_v1  ;;  %v2450_v0 = vcvt.s32.f32 %v2194_v3  ;;  %v2195_v61 = vunpack.c.3.s8 %v2023_v12  ;;  %v2027_v12 = vld [vmem:[#allocation8 + $0x328] sm:$0xff] }
 0x266   : > { %3039 = vst [vmem:[#allocation3 + $0x608] sm:$0xff] %v2910_v10  ;;  %v2911_v63 = vpack.c.bf16 %v2723_v34, %v2719_v48  ;;  %v2724_v44 = vmul.f32 %v7005_v55, %v2445_v5  ;;  %v2447_v29 = vcvt.s32.f32 %v2191_v53  ;;  %v2192_v15 = vunpack.c.2.s8 %v2024_v20 }
 0x267   : > { %v2725_v14 = vmul.f32 %v6975_v31, %v2446_v62  ;;  %v2729_v41 = vmul.f32 %v6975_v31, %v2450_v0  ;;  %v2451_v8 = vcvt.s32.f32 %v2195_v61  ;;  %v2196_v2 = vunpack.c.3.s8 %v2024_v20  ;;  %v2028_v20 = vld [vmem:[#allocation8 + $0x330] sm:$0xff] }
 0x268   : > { %3040 = vst [vmem:[#allocation3 + $0x610] sm:$0xff] %v2911_v63  ;;  %v2912_v60 = vpack.c.bf16 %v2724_v44, %v2720_v4  ;;  %v2726_v7 = vmul.f32 %v6983_v35, %v2447_v29  ;;  %v2448_v9 = vcvt.s32.f32 %v2192_v15  ;;  %v2193_v33 = vunpack.c.2.s8 %v2025_v24 }
 0x269   : > { %v2913_v54 = vpack.c.bf16 %v2729_v41, %v2725_v14  ;;  %v2730_v17 = vmul.f32 %v6983_v35, %v2451_v8  ;;  %v2452_v6 = vcvt.s32.f32 %v2196_v2  ;;  %v2197_v18 = vunpack.c.3.s8 %v2025_v24 }
 0x26a   : > { %3041 = vst [vmem:[#allocation3 + $0x618] sm:$0xff] %v2912_v60  ;;  %v2727_v57 = vmul.f32 %v6995_v46, %v2448_v9  ;;  %v2449_v28 = vcvt.s32.f32 %v2193_v33  ;;  %v2198_v11 = vunpack.c.0.s8 %v2026_v19  ;;  %v2202_v43 = vunpack.c.1.s8 %v2026_v19  ;;  %v2030_v33 = vld [vmem:[#allocation8 + $0x340] sm:$0xff] }
 0x26b   : > { %3042 = vst [vmem:[#allocation3 + $0x620] sm:$0xff] %v2913_v54  ;;  %v2914_v27 = vpack.c.bf16 %v2730_v17, %v2726_v7  ;;  %v2731_v23 = vmul.f32 %v6995_v46, %v2452_v6  ;;  %v2453_v25 = vcvt.s32.f32 %v2197_v18  ;;  %v2199_v26 = vunpack.c.0.s8 %v2027_v12 }
 0x26c   : > { %v2728_v16 = vmul.f32 %v7005_v55, %v2449_v28  ;;  %v2454_v38 = vcvt.s32.f32 %v2198_v11  ;;  %v2458_v42 = vcvt.s32.f32 %v2202_v43  ;;  %v2203_v45 = vunpack.c.1.s8 %v2027_v12 }
 0x26d   : > { %3043 = vst [vmem:[#allocation3 + $0x628] sm:$0xff] %v2914_v27  ;;  %v2915_v24 = vpack.c.bf16 %v2731_v23, %v2727_v57  ;;  %v2732_v49 = vmul.f32 %v7005_v55, %v2453_v25  ;;  %v2455_v39 = vcvt.s32.f32 %v2199_v26  ;;  %v2200_v21 = vunpack.c.0.s8 %v2028_v20 }
 0x26e   : > { %v2733_v37 = vmul.f32 %v6975_v31, %v2454_v38  ;;  %v2737_v50 = vmul.f32 %v6975_v31, %v2458_v42  ;;  %v2459_v40 = vcvt.s32.f32 %v2203_v45  ;;  %v2204_v30 = vunpack.c.1.s8 %v2028_v20 }
 0x26f   : > { %3044 = vst [vmem:[#allocation3 + $0x630] sm:$0xff] %v2915_v24  ;;  %v2916_v59 = vpack.c.bf16 %v2732_v49, %v2728_v16  ;;  %v2734_v58 = vmul.f32 %v6983_v35, %v2455_v39  ;;  %v2456_v22 = vcvt.s32.f32 %v2200_v21  ;;  %v2201_v51 = vunpack.c.0.s8 %v2029_v13 }
 0x270   : > { %v2917_v48 = vpack.c.bf16 %v2737_v50, %v2733_v37  ;;  %v2738_v52 = vmul.f32 %v6983_v35, %v2459_v40  ;;  %v2460_v1 = vcvt.s32.f32 %v2204_v30  ;;  %v2205_v3 = vunpack.c.1.s8 %v2029_v13  ;;  %v2033_v37 = vld [vmem:[#allocation8 + $0x358] sm:$0xff] }
 0x271   : > { %3045 = vst [vmem:[#allocation3 + $0x638] sm:$0xff] %v2916_v59  ;;  %v2735_v10 = vmul.f32 %v6995_v46, %v2456_v22  ;;  %v2457_v34 = vcvt.s32.f32 %v2201_v51  ;;  %v2206_v5 = vunpack.c.2.s8 %v2026_v19  ;;  %v2210_v53 = vunpack.c.3.s8 %v2026_v19 }
 0x272   : > { %3046 = vst [vmem:[#allocation3 + $0x640] sm:$0xff] %v2917_v48  ;;  %v2918_v4 = vpack.c.bf16 %v2738_v52, %v2734_v58  ;;  %v2739_v62 = vmul.f32 %v6995_v46, %v2460_v1  ;;  %v2461_v0 = vcvt.s32.f32 %v2205_v3  ;;  %v2207_v61 = vunpack.c.2.s8 %v2027_v12 }
 0x273   : > { %v2736_v63 = vmul.f32 %v7005_v55, %v2457_v34  ;;  %v2462_v44 = vcvt.s32.f32 %v2206_v5  ;;  %v2466_v29 = vcvt.s32.f32 %v2210_v53  ;;  %v2211_v15 = vunpack.c.3.s8 %v2027_v12  ;;  %v2031_v12 = vld [vmem:[#allocation8 + $0x348] sm:$0xff] }
 0x274   : > { %3047 = vst [vmem:[#allocation3 + $0x648] sm:$0xff] %v2918_v4  ;;  %v2919_v14 = vpack.c.bf16 %v2739_v62, %v2735_v10  ;;  %v2740_v41 = vmul.f32 %v7005_v55, %v2461_v0  ;;  %v2463_v8 = vcvt.s32.f32 %v2207_v61  ;;  %v2208_v2 = vunpack.c.2.s8 %v2028_v20 }
 0x275   : > { %v2741_v60 = vmul.f32 %v6975_v31, %v2462_v44  ;;  %v2745_v19 = vmul.f32 %v6975_v31, %v2466_v29  ;;  %v2467_v7 = vcvt.s32.f32 %v2211_v15  ;;  %v2212_v9 = vunpack.c.3.s8 %v2028_v20  ;;  %v2032_v20 = vld [vmem:[#allocation8 + $0x350] sm:$0xff] }
 0x276   : > { %3048 = vst [vmem:[#allocation3 + $0x650] sm:$0xff] %v2919_v14  ;;  %v2920_v54 = vpack.c.bf16 %v2740_v41, %v2736_v63  ;;  %v2742_v17 = vmul.f32 %v6983_v35, %v2463_v8  ;;  %v2464_v6 = vcvt.s32.f32 %v2208_v2  ;;  %v2209_v18 = vunpack.c.2.s8 %v2029_v13 }
 0x277   : > { %v2921_v57 = vpack.c.bf16 %v2745_v19, %v2741_v60  ;;  %v2746_v28 = vmul.f32 %v6983_v35, %v2467_v7  ;;  %v2468_v11 = vcvt.s32.f32 %v2212_v9  ;;  %v2213_v43 = vunpack.c.3.s8 %v2029_v13 }
 0x278   : > { %3049 = vst [vmem:[#allocation3 + $0x658] sm:$0xff] %v2920_v54  ;;  %v2743_v27 = vmul.f32 %v6995_v46, %v2464_v6  ;;  %v2465_v23 = vcvt.s32.f32 %v2209_v18  ;;  %v2214_v25 = vunpack.c.0.s8 %v2030_v33  ;;  %v2218_v26 = vunpack.c.1.s8 %v2030_v33  ;;  %v2034_v18 = vld [vmem:[#allocation8 + $0x360] sm:$0xff] }
 0x279   : > { %3050 = vst [vmem:[#allocation3 + $0x660] sm:$0xff] %v2921_v57  ;;  %v2922_v16 = vpack.c.bf16 %v2746_v28, %v2742_v17  ;;  %v2747_v38 = vmul.f32 %v6995_v46, %v2468_v11  ;;  %v2469_v42 = vcvt.s32.f32 %v2213_v43  ;;  %v2215_v45 = vunpack.c.0.s8 %v2031_v12 }
 0x27a   : > { %v2744_v24 = vmul.f32 %v7005_v55, %v2465_v23  ;;  %v2470_v49 = vcvt.s32.f32 %v2214_v25  ;;  %v2474_v39 = vcvt.s32.f32 %v2218_v26  ;;  %v2219_v21 = vunpack.c.1.s8 %v2031_v12 }
 0x27b   : > { %3051 = vst [vmem:[#allocation3 + $0x668] sm:$0xff] %v2922_v16  ;;  %v2923_v13 = vpack.c.bf16 %v2747_v38, %v2743_v27  ;;  %v2748_v50 = vmul.f32 %v7005_v55, %v2469_v42  ;;  %v2471_v40 = vcvt.s32.f32 %v2215_v45  ;;  %v2216_v30 = vunpack.c.0.s8 %v2032_v20 }
 0x27c   : > { %v2749_v59 = vmul.f32 %v6975_v31, %v2470_v49  ;;  %v2753_v58 = vmul.f32 %v6975_v31, %v2474_v39  ;;  %v2475_v22 = vcvt.s32.f32 %v2219_v21  ;;  %v2220_v51 = vunpack.c.1.s8 %v2032_v20 }
 0x27d   : > { %3052 = vst [vmem:[#allocation3 + $0x670] sm:$0xff] %v2923_v13  ;;  %v2924_v48 = vpack.c.bf16 %v2748_v50, %v2744_v24  ;;  %v2750_v52 = vmul.f32 %v6983_v35, %v2471_v40  ;;  %v2472_v1 = vcvt.s32.f32 %v2216_v30  ;;  %v2217_v3 = vunpack.c.0.s8 %v2033_v37 }
 0x27e   : > { %v2925_v10 = vpack.c.bf16 %v2753_v58, %v2749_v59  ;;  %v2754_v34 = vmul.f32 %v6983_v35, %v2475_v22  ;;  %v2476_v5 = vcvt.s32.f32 %v2220_v51  ;;  %v2221_v53 = vunpack.c.1.s8 %v2033_v37  ;;  %v2037_v59 = vld [vmem:[#allocation8 + $0x378] sm:$0xff] }
 0x27f   : > { %3053 = vst [vmem:[#allocation3 + $0x678] sm:$0xff] %v2924_v48  ;;  %v2751_v4 = vmul.f32 %v6995_v46, %v2472_v1  ;;  %v2473_v62 = vcvt.s32.f32 %v2217_v3  ;;  %v2222_v0 = vunpack.c.2.s8 %v2030_v33  ;;  %v2226_v61 = vunpack.c.3.s8 %v2030_v33 }
 0x280   : > { %3054 = vst [vmem:[#allocation3 + $0x680] sm:$0xff] %v2925_v10  ;;  %v2926_v63 = vpack.c.bf16 %v2754_v34, %v2750_v52  ;;  %v2755_v44 = vmul.f32 %v6995_v46, %v2476_v5  ;;  %v2477_v29 = vcvt.s32.f32 %v2221_v53  ;;  %v2223_v15 = vunpack.c.2.s8 %v2031_v12 }
 0x281   : > { %v2752_v14 = vmul.f32 %v7005_v55, %v2473_v62  ;;  %v2478_v41 = vcvt.s32.f32 %v2222_v0  ;;  %v2482_v8 = vcvt.s32.f32 %v2226_v61  ;;  %v2227_v2 = vunpack.c.3.s8 %v2031_v12  ;;  %v2035_v12 = vld [vmem:[#allocation8 + $0x368] sm:$0xff] }
 0x282   : > { %3055 = vst [vmem:[#allocation3 + $0x688] sm:$0xff] %v2926_v63  ;;  %v2927_v60 = vpack.c.bf16 %v2755_v44, %v2751_v4  ;;  %v2756_v19 = vmul.f32 %v7005_v55, %v2477_v29  ;;  %v2479_v7 = vcvt.s32.f32 %v2223_v15  ;;  %v2224_v9 = vunpack.c.2.s8 %v2032_v20 }
 0x283   : > { %v2757_v54 = vmul.f32 %v6975_v31, %v2478_v41  ;;  %v2761_v33 = vmul.f32 %v6975_v31, %v2482_v8  ;;  %v2483_v17 = vcvt.s32.f32 %v2227_v2  ;;  %v2228_v6 = vunpack.c.3.s8 %v2032_v20  ;;  %v2036_v20 = vld [vmem:[#allocation8 + $0x370] sm:$0xff] }
 0x284   : > { %3056 = vst [vmem:[#allocation3 + $0x690] sm:$0xff] %v2927_v60  ;;  %v2928_v57 = vpack.c.bf16 %v2756_v19, %v2752_v14  ;;  %v2758_v28 = vmul.f32 %v6983_v35, %v2479_v7  ;;  %v2480_v11 = vcvt.s32.f32 %v2224_v9  ;;  %v2225_v43 = vunpack.c.2.s8 %v2033_v37 }
 0x285   : > { %v2929_v27 = vpack.c.bf16 %v2761_v33, %v2757_v54  ;;  %v2762_v23 = vmul.f32 %v6983_v35, %v2483_v17  ;;  %v2484_v25 = vcvt.s32.f32 %v2228_v6  ;;  %v2229_v26 = vunpack.c.3.s8 %v2033_v37 }
 0x286   : > { %3057 = vst [vmem:[#allocation3 + $0x698] sm:$0xff] %v2928_v57  ;;  %v2759_v16 = vmul.f32 %v6995_v46, %v2480_v11  ;;  %v2481_v38 = vcvt.s32.f32 %v2225_v43  ;;  %v2230_v42 = vunpack.c.0.s8 %v2034_v18  ;;  %v2234_v45 = vunpack.c.1.s8 %v2034_v18  ;;  %v2038_v43 = vld [vmem:[#allocation8 + $0x380] sm:$0xff] }
 0x287   : > { %3058 = vst [vmem:[#allocation3 + $0x6a0] sm:$0xff] %v2929_v27  ;;  %v2930_v24 = vpack.c.bf16 %v2762_v23, %v2758_v28  ;;  %v2763_v49 = vmul.f32 %v6995_v46, %v2484_v25  ;;  %v2485_v39 = vcvt.s32.f32 %v2229_v26  ;;  %v2231_v21 = vunpack.c.0.s8 %v2035_v12 }
 0x288   : > { %v2760_v13 = vmul.f32 %v7005_v55, %v2481_v38  ;;  %v2486_v50 = vcvt.s32.f32 %v2230_v42  ;;  %v2490_v40 = vcvt.s32.f32 %v2234_v45  ;;  %v2235_v30 = vunpack.c.1.s8 %v2035_v12 }
 0x289   : > { %3059 = vst [vmem:[#allocation3 + $0x6a8] sm:$0xff] %v2930_v24  ;;  %v2931_v37 = vpack.c.bf16 %v2763_v49, %v2759_v16  ;;  %v2764_v58 = vmul.f32 %v7005_v55, %v2485_v39  ;;  %v2487_v22 = vcvt.s32.f32 %v2231_v21  ;;  %v2232_v51 = vunpack.c.0.s8 %v2036_v20 }
 0x28a   : > { %v2765_v48 = vmul.f32 %v6975_v31, %v2486_v50  ;;  %v2769_v52 = vmul.f32 %v6975_v31, %v2490_v40  ;;  %v2491_v1 = vcvt.s32.f32 %v2235_v30  ;;  %v2236_v3 = vunpack.c.1.s8 %v2036_v20 }
 0x28b   : > { %3060 = vst [vmem:[#allocation3 + $0x6b0] sm:$0xff] %v2931_v37  ;;  %v2932_v10 = vpack.c.bf16 %v2764_v58, %v2760_v13  ;;  %v2766_v34 = vmul.f32 %v6983_v35, %v2487_v22  ;;  %v2488_v5 = vcvt.s32.f32 %v2232_v51  ;;  %v2233_v53 = vunpack.c.0.s8 %v2037_v59 }
 0x28c   : > { %v2933_v4 = vpack.c.bf16 %v2769_v52, %v2765_v48  ;;  %v2770_v62 = vmul.f32 %v6983_v35, %v2491_v1  ;;  %v2492_v0 = vcvt.s32.f32 %v2236_v3  ;;  %v2237_v61 = vunpack.c.1.s8 %v2037_v59  ;;  %v2041_v48 = vld [vmem:[#allocation8 + $0x398] sm:$0xff] }
 0x28d   : > { %3061 = vst [vmem:[#allocation3 + $0x6b8] sm:$0xff] %v2932_v10  ;;  %v2767_v63 = vmul.f32 %v6995_v46, %v2488_v5  ;;  %v2489_v44 = vcvt.s32.f32 %v2233_v53  ;;  %v2238_v29 = vunpack.c.2.s8 %v2034_v18  ;;  %v2242_v15 = vunpack.c.3.s8 %v2034_v18 }
 0x28e   : > { %3062 = vst [vmem:[#allocation3 + $0x6c0] sm:$0xff] %v2933_v4  ;;  %v2934_v14 = vpack.c.bf16 %v2770_v62, %v2766_v34  ;;  %v2771_v41 = vmul.f32 %v6995_v46, %v2492_v0  ;;  %v2493_v8 = vcvt.s32.f32 %v2237_v61  ;;  %v2239_v2 = vunpack.c.2.s8 %v2035_v12 }
 0x28f   : > { %v2768_v60 = vmul.f32 %v7005_v55, %v2489_v44  ;;  %v2494_v19 = vcvt.s32.f32 %v2238_v29  ;;  %v2498_v7 = vcvt.s32.f32 %v2242_v15  ;;  %v2243_v9 = vunpack.c.3.s8 %v2035_v12  ;;  %v2039_v12 = vld [vmem:[#allocation8 + $0x388] sm:$0xff] }
 0x290   : > { %3063 = vst [vmem:[#allocation3 + $0x6c8] sm:$0xff] %v2934_v14  ;;  %v2935_v54 = vpack.c.bf16 %v2771_v41, %v2767_v63  ;;  %v2772_v33 = vmul.f32 %v7005_v55, %v2493_v8  ;;  %v2495_v17 = vcvt.s32.f32 %v2239_v2  ;;  %v2240_v6 = vunpack.c.2.s8 %v2036_v20 }
 0x291   : > { %v2773_v57 = vmul.f32 %v6975_v31, %v2494_v19  ;;  %v2777_v18 = vmul.f32 %v6975_v31, %v2498_v7  ;;  %v2499_v28 = vcvt.s32.f32 %v2243_v9  ;;  %v2244_v11 = vunpack.c.3.s8 %v2036_v20  ;;  %v2040_v20 = vld [vmem:[#allocation8 + $0x390] sm:$0xff] }
 0x292   : > { %3064 = vst [vmem:[#allocation3 + $0x6d0] sm:$0xff] %v2935_v54  ;;  %v2936_v27 = vpack.c.bf16 %v2772_v33, %v2768_v60  ;;  %v2774_v23 = vmul.f32 %v6983_v35, %v2495_v17  ;;  %v2496_v25 = vcvt.s32.f32 %v2240_v6  ;;  %v2241_v26 = vunpack.c.2.s8 %v2037_v59 }
 0x293   : > { %v2937_v16 = vpack.c.bf16 %v2777_v18, %v2773_v57  ;;  %v2778_v38 = vmul.f32 %v6983_v35, %v2499_v28  ;;  %v2500_v42 = vcvt.s32.f32 %v2244_v11  ;;  %v2245_v45 = vunpack.c.3.s8 %v2037_v59 }
 0x294   : > { %3065 = vst [vmem:[#allocation3 + $0x6d8] sm:$0xff] %v2936_v27  ;;  %v2775_v24 = vmul.f32 %v6995_v46, %v2496_v25  ;;  %v2497_v49 = vcvt.s32.f32 %v2241_v26  ;;  %v2246_v39 = vunpack.c.0.s8 %v2038_v43  ;;  %v2250_v21 = vunpack.c.1.s8 %v2038_v43  ;;  %v2042_v26 = vld [vmem:[#allocation8 + $0x3a0] sm:$0xff] }
 0x295   : > { %3066 = vst [vmem:[#allocation3 + $0x6e0] sm:$0xff] %v2937_v16  ;;  %v2938_v13 = vpack.c.bf16 %v2778_v38, %v2774_v23  ;;  %v2779_v50 = vmul.f32 %v6995_v46, %v2500_v42  ;;  %v2501_v40 = vcvt.s32.f32 %v2245_v45  ;;  %v2247_v30 = vunpack.c.0.s8 %v2039_v12 }
 0x296   : > { %v2776_v37 = vmul.f32 %v7005_v55, %v2497_v49  ;;  %v2502_v58 = vcvt.s32.f32 %v2246_v39  ;;  %v2506_v22 = vcvt.s32.f32 %v2250_v21  ;;  %v2251_v51 = vunpack.c.1.s8 %v2039_v12 }
 0x297   : > { %3067 = vst [vmem:[#allocation3 + $0x6e8] sm:$0xff] %v2938_v13  ;;  %v2939_v59 = vpack.c.bf16 %v2779_v50, %v2775_v24  ;;  %v2780_v52 = vmul.f32 %v7005_v55, %v2501_v40  ;;  %v2503_v1 = vcvt.s32.f32 %v2247_v30  ;;  %v2248_v3 = vunpack.c.0.s8 %v2040_v20 }
 0x298   : > { %v2781_v10 = vmul.f32 %v6975_v31, %v2502_v58  ;;  %v2785_v34 = vmul.f32 %v6975_v31, %v2506_v22  ;;  %v2507_v5 = vcvt.s32.f32 %v2251_v51  ;;  %v2252_v53 = vunpack.c.1.s8 %v2040_v20 }
 0x299   : > { %3068 = vst [vmem:[#allocation3 + $0x6f0] sm:$0xff] %v2939_v59  ;;  %v2940_v4 = vpack.c.bf16 %v2780_v52, %v2776_v37  ;;  %v2782_v62 = vmul.f32 %v6983_v35, %v2503_v1  ;;  %v2504_v0 = vcvt.s32.f32 %v2248_v3  ;;  %v2249_v61 = vunpack.c.0.s8 %v2041_v48 }
 0x29a   : > { %v2941_v63 = vpack.c.bf16 %v2785_v34, %v2781_v10  ;;  %v2786_v44 = vmul.f32 %v6983_v35, %v2507_v5  ;;  %v2508_v29 = vcvt.s32.f32 %v2252_v53  ;;  %v2253_v15 = vunpack.c.1.s8 %v2041_v48  ;;  %v2045_v10 = vld [vmem:[#allocation8 + $0x3b8] sm:$0xff] }
 0x29b   : > { %3069 = vst [vmem:[#allocation3 + $0x6f8] sm:$0xff] %v2940_v4  ;;  %v2783_v14 = vmul.f32 %v6995_v46, %v2504_v0  ;;  %v2505_v41 = vcvt.s32.f32 %v2249_v61  ;;  %v2254_v8 = vunpack.c.2.s8 %v2038_v43  ;;  %v2258_v2 = vunpack.c.3.s8 %v2038_v43 }
 0x29c   : > { %3070 = vst [vmem:[#allocation3 + $0x700] sm:$0xff] %v2941_v63  ;;  %v2942_v60 = vpack.c.bf16 %v2786_v44, %v2782_v62  ;;  %v2787_v19 = vmul.f32 %v6995_v46, %v2508_v29  ;;  %v2509_v7 = vcvt.s32.f32 %v2253_v15  ;;  %v2255_v9 = vunpack.c.2.s8 %v2039_v12 }
 0x29d   : > { %v2784_v54 = vmul.f32 %v7005_v55, %v2505_v41  ;;  %v2510_v33 = vcvt.s32.f32 %v2254_v8  ;;  %v2514_v17 = vcvt.s32.f32 %v2258_v2  ;;  %v2259_v6 = vunpack.c.3.s8 %v2039_v12  ;;  %v2043_v12 = vld [vmem:[#allocation8 + $0x3a8] sm:$0xff] }
 0x29e   : > { %3071 = vst [vmem:[#allocation3 + $0x708] sm:$0xff] %v2942_v60  ;;  %v2943_v57 = vpack.c.bf16 %v2787_v19, %v2783_v14  ;;  %v2788_v18 = vmul.f32 %v7005_v55, %v2509_v7  ;;  %v2511_v28 = vcvt.s32.f32 %v2255_v9  ;;  %v2256_v11 = vunpack.c.2.s8 %v2040_v20 }
 0x29f   : > { %v2789_v27 = vmul.f32 %v6975_v31, %v2510_v33  ;;  %v2793_v43 = vmul.f32 %v6975_v31, %v2514_v17  ;;  %v2515_v23 = vcvt.s32.f32 %v2259_v6  ;;  %v2260_v25 = vunpack.c.3.s8 %v2040_v20  ;;  %v2044_v20 = vld [vmem:[#allocation8 + $0x3b0] sm:$0xff] }
 0x2a0   : > { %3072 = vst [vmem:[#allocation3 + $0x710] sm:$0xff] %v2943_v57  ;;  %v2944_v16 = vpack.c.bf16 %v2788_v18, %v2784_v54  ;;  %v2790_v38 = vmul.f32 %v6983_v35, %v2511_v28  ;;  %v2512_v42 = vcvt.s32.f32 %v2256_v11  ;;  %v2257_v45 = vunpack.c.2.s8 %v2041_v48 }
 0x2a1   : > { %v2945_v24 = vpack.c.bf16 %v2793_v43, %v2789_v27  ;;  %v2794_v49 = vmul.f32 %v6983_v35, %v2515_v23  ;;  %v2516_v39 = vcvt.s32.f32 %v2260_v25  ;;  %v2261_v21 = vunpack.c.3.s8 %v2041_v48 }
 0x2a2   : > { %3073 = vst [vmem:[#allocation3 + $0x718] sm:$0xff] %v2944_v16  ;;  %v2791_v13 = vmul.f32 %v6995_v46, %v2512_v42  ;;  %v2513_v50 = vcvt.s32.f32 %v2257_v45  ;;  %v2262_v40 = vunpack.c.0.s8 %v2042_v26  ;;  %v2266_v30 = vunpack.c.1.s8 %v2042_v26  ;;  %v2046_v45 = vld [vmem:[#allocation8 + $0x3c0] sm:$0xff] }
 0x2a3   : > { %3074 = vst [vmem:[#allocation3 + $0x720] sm:$0xff] %v2945_v24  ;;  %v2946_v37 = vpack.c.bf16 %v2794_v49, %v2790_v38  ;;  %v2795_v58 = vmul.f32 %v6995_v46, %v2516_v39  ;;  %v2517_v22 = vcvt.s32.f32 %v2261_v21  ;;  %v2263_v51 = vunpack.c.0.s8 %v2043_v12 }
 0x2a4   : > { %v2792_v59 = vmul.f32 %v7005_v55, %v2513_v50  ;;  %v2518_v52 = vcvt.s32.f32 %v2262_v40  ;;  %v2522_v1 = vcvt.s32.f32 %v2266_v30  ;;  %v2267_v3 = vunpack.c.1.s8 %v2043_v12 }
 0x2a5   : > { %3075 = vst [vmem:[#allocation3 + $0x728] sm:$0xff] %v2946_v37  ;;  %v2947_v48 = vpack.c.bf16 %v2795_v58, %v2791_v13  ;;  %v2796_v34 = vmul.f32 %v7005_v55, %v2517_v22  ;;  %v2519_v5 = vcvt.s32.f32 %v2263_v51  ;;  %v2264_v53 = vunpack.c.0.s8 %v2044_v20 }
 0x2a6   : > { %v2797_v4 = vmul.f32 %v6975_v31, %v2518_v52  ;;  %v2801_v62 = vmul.f32 %v6975_v31, %v2522_v1  ;;  %v2523_v0 = vcvt.s32.f32 %v2267_v3  ;;  %v2268_v61 = vunpack.c.1.s8 %v2044_v20 }
 0x2a7   : > { %3076 = vst [vmem:[#allocation3 + $0x730] sm:$0xff] %v2947_v48  ;;  %v2948_v63 = vpack.c.bf16 %v2796_v34, %v2792_v59  ;;  %v2798_v44 = vmul.f32 %v6983_v35, %v2519_v5  ;;  %v2520_v29 = vcvt.s32.f32 %v2264_v53  ;;  %v2265_v15 = vunpack.c.0.s8 %v2045_v10 }
 0x2a8   : > { %v2949_v14 = vpack.c.bf16 %v2801_v62, %v2797_v4  ;;  %v2802_v41 = vmul.f32 %v6983_v35, %v2523_v0  ;;  %v2524_v8 = vcvt.s32.f32 %v2268_v61  ;;  %v2269_v2 = vunpack.c.1.s8 %v2045_v10  ;;  %v2049_v4 = vld [vmem:[#allocation8 + $0x3d8] sm:$0xff] }
 0x2a9   : > { %3077 = vst [vmem:[#allocation3 + $0x738] sm:$0xff] %v2948_v63  ;;  %v2799_v60 = vmul.f32 %v6995_v46, %v2520_v29  ;;  %v2521_v19 = vcvt.s32.f32 %v2265_v15  ;;  %v2270_v7 = vunpack.c.2.s8 %v2042_v26  ;;  %v2274_v9 = vunpack.c.3.s8 %v2042_v26 }
 0x2aa   : > { %3078 = vst [vmem:[#allocation3 + $0x740] sm:$0xff] %v2949_v14  ;;  %v2950_v54 = vpack.c.bf16 %v2802_v41, %v2798_v44  ;;  %v2803_v33 = vmul.f32 %v6995_v46, %v2524_v8  ;;  %v2525_v17 = vcvt.s32.f32 %v2269_v2  ;;  %v2271_v6 = vunpack.c.2.s8 %v2043_v12 }
 0x2ab   : > { %v2800_v57 = vmul.f32 %v7005_v55, %v2521_v19  ;;  %v2526_v18 = vcvt.s32.f32 %v2270_v7  ;;  %v2530_v28 = vcvt.s32.f32 %v2274_v9  ;;  %v2275_v11 = vunpack.c.3.s8 %v2043_v12  ;;  %v2047_v12 = vld [vmem:[#allocation8 + $0x3c8] sm:$0xff] }
 0x2ac   : > { %3079 = vst [vmem:[#allocation3 + $0x748] sm:$0xff] %v2950_v54  ;;  %v2951_v27 = vpack.c.bf16 %v2803_v33, %v2799_v60  ;;  %v2804_v43 = vmul.f32 %v7005_v55, %v2525_v17  ;;  %v2527_v23 = vcvt.s32.f32 %v2271_v6  ;;  %v2272_v25 = vunpack.c.2.s8 %v2044_v20 }
 0x2ad   : > { %v2805_v16 = vmul.f32 %v6975_v31, %v2526_v18  ;;  %v2809_v26 = vmul.f32 %v6975_v31, %v2530_v28  ;;  %v2531_v38 = vcvt.s32.f32 %v2275_v11  ;;  %v2276_v42 = vunpack.c.3.s8 %v2044_v20  ;;  %v2048_v20 = vld [vmem:[#allocation8 + $0x3d0] sm:$0xff] }
 0x2ae   : > { %3080 = vst [vmem:[#allocation3 + $0x750] sm:$0xff] %v2951_v27  ;;  %v2952_v24 = vpack.c.bf16 %v2804_v43, %v2800_v57  ;;  %v2806_v49 = vmul.f32 %v6983_v35, %v2527_v23  ;;  %v2528_v39 = vcvt.s32.f32 %v2272_v25  ;;  %v2273_v21 = vunpack.c.2.s8 %v2045_v10 }
 0x2af   : > { %v2953_v13 = vpack.c.bf16 %v2809_v26, %v2805_v16  ;;  %v2810_v50 = vmul.f32 %v6983_v35, %v2531_v38  ;;  %v2532_v40 = vcvt.s32.f32 %v2276_v42  ;;  %v2277_v30 = vunpack.c.3.s8 %v2045_v10 }
 0x2b0   : > { %3081 = vst [vmem:[#allocation3 + $0x758] sm:$0xff] %v2952_v24  ;;  %v2807_v37 = vmul.f32 %v6995_v46, %v2528_v39  ;;  %v2529_v58 = vcvt.s32.f32 %v2273_v21  ;;  %v2278_v22 = vunpack.c.0.s8 %v2046_v45  ;;  %v2282_v51 = vunpack.c.1.s8 %v2046_v45  ;;  %v2050_v21 = vld [vmem:[#allocation8 + $0x3e0] sm:$0xff] }
 0x2b1   : > { %3082 = vst [vmem:[#allocation3 + $0x760] sm:$0xff] %v2953_v13  ;;  %v2954_v59 = vpack.c.bf16 %v2810_v50, %v2806_v49  ;;  %v2811_v52 = vmul.f32 %v6995_v46, %v2532_v40  ;;  %v2533_v1 = vcvt.s32.f32 %v2277_v30  ;;  %v2279_v3 = vunpack.c.0.s8 %v2047_v12 }
 0x2b2   : > { %v2808_v48 = vmul.f32 %v7005_v55, %v2529_v58  ;;  %v2534_v34 = vcvt.s32.f32 %v2278_v22  ;;  %v2538_v5 = vcvt.s32.f32 %v2282_v51  ;;  %v2283_v53 = vunpack.c.1.s8 %v2047_v12 }
 0x2b3   : > { %3083 = vst [vmem:[#allocation3 + $0x768] sm:$0xff] %v2954_v59  ;;  %v2955_v10 = vpack.c.bf16 %v2811_v52, %v2807_v37  ;;  %v2812_v62 = vmul.f32 %v7005_v55, %v2533_v1  ;;  %v2535_v0 = vcvt.s32.f32 %v2279_v3  ;;  %v2280_v61 = vunpack.c.0.s8 %v2048_v20 }
 0x2b4   : > { %v2813_v63 = vmul.f32 %v6975_v31, %v2534_v34  ;;  %v2817_v44 = vmul.f32 %v6975_v31, %v2538_v5  ;;  %v2539_v29 = vcvt.s32.f32 %v2283_v53  ;;  %v2284_v15 = vunpack.c.1.s8 %v2048_v20 }
 0x2b5   : > { %3084 = vst [vmem:[#allocation3 + $0x770] sm:$0xff] %v2955_v10  ;;  %v2956_v14 = vpack.c.bf16 %v2812_v62, %v2808_v48  ;;  %v2814_v41 = vmul.f32 %v6983_v35, %v2535_v0  ;;  %v2536_v8 = vcvt.s32.f32 %v2280_v61  ;;  %v2281_v2 = vunpack.c.0.s8 %v2049_v4 }
 0x2b6   : > { %v2957_v60 = vpack.c.bf16 %v2817_v44, %v2813_v63  ;;  %v2818_v19 = vmul.f32 %v6983_v35, %v2539_v29  ;;  %v2540_v7 = vcvt.s32.f32 %v2284_v15  ;;  %v2285_v9 = vunpack.c.1.s8 %v2049_v4  ;;  %v2053_v63 = vld [vmem:[#allocation8 + $0x3f8] sm:$0xff] }
 0x2b7   : > { %3085 = vst [vmem:[#allocation3 + $0x778] sm:$0xff] %v2956_v14  ;;  %v2815_v54 = vmul.f32 %v6995_v46, %v2536_v8  ;;  %v2537_v33 = vcvt.s32.f32 %v2281_v2  ;;  %v2286_v17 = vunpack.c.2.s8 %v2046_v45  ;;  %v2290_v6 = vunpack.c.3.s8 %v2046_v45 }
 0x2b8   : > { %3086 = vst [vmem:[#allocation3 + $0x780] sm:$0xff] %v2957_v60  ;;  %v2958_v57 = vpack.c.bf16 %v2818_v19, %v2814_v41  ;;  %v2819_v18 = vmul.f32 %v6995_v46, %v2540_v7  ;;  %v2541_v28 = vcvt.s32.f32 %v2285_v9  ;;  %v2287_v11 = vunpack.c.2.s8 %v2047_v12 }
 0x2b9   : > { %v2816_v27 = vmul.f32 %v7005_v55, %v2537_v33  ;;  %v2542_v43 = vcvt.s32.f32 %v2286_v17  ;;  %v2546_v23 = vcvt.s32.f32 %v2290_v6  ;;  %v2291_v25 = vunpack.c.3.s8 %v2047_v12  ;;  %v2051_v12 = vld [vmem:[#allocation8 + $0x3e8] sm:$0xff] }
 0x2ba   : > { %3087 = vst [vmem:[#allocation3 + $0x788] sm:$0xff] %v2958_v57  ;;  %v2959_v16 = vpack.c.bf16 %v2819_v18, %v2815_v54  ;;  %v2820_v26 = vmul.f32 %v7005_v55, %v2541_v28  ;;  %v2543_v38 = vcvt.s32.f32 %v2287_v11  ;;  %v2288_v42 = vunpack.c.2.s8 %v2048_v20 }
 0x2bb   : > { %v2821_v24 = vmul.f32 %v6975_v31, %v2542_v43  ;;  %v2825_v45 = vmul.f32 %v6975_v31, %v2546_v23  ;;  %v2547_v49 = vcvt.s32.f32 %v2291_v25  ;;  %v2292_v39 = vunpack.c.3.s8 %v2048_v20  ;;  %v2052_v20 = vld [vmem:[#allocation8 + $0x3f0] sm:$0xff] }
 0x2bc   : > { %3088 = vst [vmem:[#allocation3 + $0x790] sm:$0xff] %v2959_v16  ;;  %v2960_v13 = vpack.c.bf16 %v2820_v26, %v2816_v27  ;;  %v2822_v50 = vmul.f32 %v6983_v35, %v2543_v38  ;;  %v2544_v40 = vcvt.s32.f32 %v2288_v42  ;;  %v2289_v30 = vunpack.c.2.s8 %v2049_v4 }
 0x2bd   : > { %v2961_v37 = vpack.c.bf16 %v2825_v45, %v2821_v24  ;;  %v2826_v58 = vmul.f32 %v6983_v35, %v2547_v49  ;;  %v2548_v22 = vcvt.s32.f32 %v2292_v39  ;;  %v2293_v51 = vunpack.c.3.s8 %v2049_v4 }
 0x2be   : > { %3089 = vst [vmem:[#allocation3 + $0x798] sm:$0xff] %v2960_v13  ;;  %v2823_v59 = vmul.f32 %v6995_v46, %v2544_v40  ;;  %v2545_v52 = vcvt.s32.f32 %v2289_v30  ;;  %v2294_v1 = vunpack.c.0.s8 %v2050_v21  ;;  %v2298_v3 = vunpack.c.1.s8 %v2050_v21  ;;  %v3103_v30 = vld [vmem:[#allocation8 + $0x400] sm:$0xff] }
 0x2bf   : > { %3090 = vst [vmem:[#allocation3 + $0x7a0] sm:$0xff] %v2961_v37  ;;  %v2962_v48 = vpack.c.bf16 %v2826_v58, %v2822_v50  ;;  %v2827_v34 = vmul.f32 %v6995_v46, %v2548_v22  ;;  %v2549_v5 = vcvt.s32.f32 %v2293_v51  ;;  %v2295_v53 = vunpack.c.0.s8 %v2051_v12 }
 0x2c0   : > { %v2824_v10 = vmul.f32 %v7005_v55, %v2545_v52  ;;  %v2550_v62 = vcvt.s32.f32 %v2294_v1  ;;  %v2554_v0 = vcvt.s32.f32 %v2298_v3  ;;  %v2299_v61 = vunpack.c.1.s8 %v2051_v12 }
 0x2c1   : > { %3091 = vst [vmem:[#allocation3 + $0x7a8] sm:$0xff] %v2962_v48  ;;  %v2963_v4 = vpack.c.bf16 %v2827_v34, %v2823_v59  ;;  %v2828_v44 = vmul.f32 %v7005_v55, %v2549_v5  ;;  %v2551_v29 = vcvt.s32.f32 %v2295_v53  ;;  %v2296_v15 = vunpack.c.0.s8 %v2052_v20 }
 0x2c2   : > { %v2829_v14 = vmul.f32 %v6975_v31, %v2550_v62  ;;  %v2833_v41 = vmul.f32 %v6975_v31, %v2554_v0  ;;  %v2555_v8 = vcvt.s32.f32 %v2299_v61  ;;  %v2300_v2 = vunpack.c.1.s8 %v2052_v20 }
 0x2c3   : > { %3092 = vst [vmem:[#allocation3 + $0x7b0] sm:$0xff] %v2963_v4  ;;  %v2964_v60 = vpack.c.bf16 %v2828_v44, %v2824_v10  ;;  %v2830_v19 = vmul.f32 %v6983_v35, %v2551_v29  ;;  %v2552_v7 = vcvt.s32.f32 %v2296_v15  ;;  %v2297_v9 = vunpack.c.0.s8 %v2053_v63  ;;  %v3106_v29 = vld [vmem:[#allocation8 + $0x418] sm:$0xff] }
 0x2c4   : > { %v2965_v54 = vpack.c.bf16 %v2833_v41, %v2829_v14  ;;  %v2834_v33 = vmul.f32 %v6983_v35, %v2555_v8  ;;  %v2556_v17 = vcvt.s32.f32 %v2300_v2  ;;  %v2301_v6 = vunpack.c.1.s8 %v2053_v63 }
 0x2c5   : > { %3093 = vst [vmem:[#allocation3 + $0x7b8] sm:$0xff] %v2964_v60  ;;  %v2831_v57 = vmul.f32 %v6995_v46, %v2552_v7  ;;  %v2553_v18 = vcvt.s32.f32 %v2297_v9  ;;  %v2302_v28 = vunpack.c.2.s8 %v2050_v21  ;;  %v2306_v11 = vunpack.c.3.s8 %v2050_v21 }
 0x2c6   : > { %3094 = vst [vmem:[#allocation3 + $0x7c0] sm:$0xff] %v2965_v54  ;;  %v2966_v27 = vpack.c.bf16 %v2834_v33, %v2830_v19  ;;  %v2835_v43 = vmul.f32 %v6995_v46, %v2556_v17  ;;  %v2557_v23 = vcvt.s32.f32 %v2301_v6  ;;  %v2303_v25 = vunpack.c.2.s8 %v2051_v12 }
 0x2c7   : > { %v2832_v16 = vmul.f32 %v7005_v55, %v2553_v18  ;;  %v2558_v26 = vcvt.s32.f32 %v2302_v28  ;;  %v2562_v38 = vcvt.s32.f32 %v2306_v11  ;;  %v2307_v42 = vunpack.c.3.s8 %v2051_v12  ;;  %v3104_v12 = vld [vmem:[#allocation8 + $0x408] sm:$0xff] }
 0x2c8   : > { %3095 = vst [vmem:[#allocation3 + $0x7c8] sm:$0xff] %v2966_v27  ;;  %v2967_v24 = vpack.c.bf16 %v2835_v43, %v2831_v57  ;;  %v2836_v45 = vmul.f32 %v7005_v55, %v2557_v23  ;;  %v2559_v49 = vcvt.s32.f32 %v2303_v25  ;;  %v2304_v39 = vunpack.c.2.s8 %v2052_v20 }
 0x2c9   : > { %v2837_v13 = vmul.f32 %v6975_v31, %v2558_v26  ;;  %v2841_v21 = vmul.f32 %v6975_v31, %v2562_v38  ;;  %v2563_v50 = vcvt.s32.f32 %v2307_v42  ;;  %v2308_v40 = vunpack.c.3.s8 %v2052_v20  ;;  %v3105_v20 = vld [vmem:[#allocation8 + $0x410] sm:$0xff] }
 0x2ca   : > { %3096 = vst [vmem:[#allocation3 + $0x7d0] sm:$0xff] %v2967_v24  ;;  %v2968_v37 = vpack.c.bf16 %v2836_v45, %v2832_v16  ;;  %v2838_v58 = vmul.f32 %v6983_v35, %v2559_v49  ;;  %v2560_v22 = vcvt.s32.f32 %v2304_v39  ;;  %v2305_v51 = vunpack.c.2.s8 %v2053_v63 }
 0x2cb   : > { %v2969_v59 = vpack.c.bf16 %v2841_v21, %v2837_v13  ;;  %v2842_v52 = vmul.f32 %v6983_v35, %v2563_v50  ;;  %v2564_v1 = vcvt.s32.f32 %v2308_v40  ;;  %v2309_v3 = vunpack.c.3.s8 %v2053_v63 }
 0x2cc   : > { %3097 = vst [vmem:[#allocation3 + $0x7d8] sm:$0xff] %v2968_v37  ;;  %v2839_v48 = vmul.f32 %v6995_v46, %v2560_v22  ;;  %v2561_v34 = vcvt.s32.f32 %v2305_v51  ;;  %v3167_v31 = vunpack.c.0.s8 %v3103_v30  ;;  %v3171_v5 = vunpack.c.1.s8 %v3103_v30 }
 0x2cd   : > { %3098 = vst [vmem:[#allocation3 + $0x7e0] sm:$0xff] %v2969_v59  ;;  %v2970_v53 = vpack.c.bf16 %v2842_v52, %v2838_v58  ;;  %v2843_v10 = vmul.f32 %v6995_v46, %v2564_v1  ;;  %v2565_v62 = vcvt.s32.f32 %v2309_v3  ;;  %v3168_v0 = vunpack.c.0.s8 %v3104_v12 }
 0x2ce   : > { %v2840_v61 = vmul.f32 %v7005_v55, %v2561_v34  ;;  %v3423_v4 = vcvt.s32.f32 %v3167_v31  ;;  %v3427_v44 = vcvt.s32.f32 %v3171_v5  ;;  %v3172_v35 = vunpack.c.1.s8 %v3104_v12 }
 0x2cf   : > { %3099 = vst [vmem:[#allocation3 + $0x7e8] sm:$0xff] %v2970_v53  ;;  %v2971_v63 = vpack.c.bf16 %v2843_v10, %v2839_v48  ;;  %v2844_v15 = vmul.f32 %v7005_v55, %v2565_v62  ;;  %v3424_v14 = vcvt.s32.f32 %v3168_v0  ;;  %v3169_v41 = vunpack.c.0.s8 %v3105_v20 }
 0x2d0   : > { %v3702_v8 = vmul.f32 %v6977_v32, %v3423_v4  ;;  %v3706_v2 = vmul.f32 %v6977_v32, %v3427_v44  ;;  %v3428_v60 = vcvt.s32.f32 %v3172_v35  ;;  %v3173_v46 = vunpack.c.1.s8 %v3105_v20 }
 0x2d1   : > { %3100 = vst [vmem:[#allocation3 + $0x7f0] sm:$0xff] %v2971_v63  ;;  %v2972_v19 = vpack.c.bf16 %v2844_v15, %v2840_v61  ;;  %v3703_v7 = vmul.f32 %v6985_v36, %v3424_v14  ;;  %v3425_v9 = vcvt.s32.f32 %v3169_v41  ;;  %v3170_v54 = vunpack.c.0.s8 %v3106_v29  ;;  %v3110_v63 = vld [vmem:[#allocation8 + $0x438] sm:$0xff] }
 0x2d2   : > { %v3958_v33 = vpack.c.bf16 %v3706_v2, %v3702_v8  ;;  %v3707_v17 = vmul.f32 %v6985_v36, %v3428_v60  ;;  %v3429_v6 = vcvt.s32.f32 %v3173_v46  ;;  %v3174_v57 = vunpack.c.1.s8 %v3106_v29 }
 0x2d3   : > { %3101 = vst [vmem:[#allocation3 + $0x7f8] sm:$0xff] %v2972_v19  ;;  %v3704_v55 = vmul.f32 %v6997_v47, %v3425_v9  ;;  %v3426_v18 = vcvt.s32.f32 %v3170_v54  ;;  %v3175_v28 = vunpack.c.2.s8 %v3103_v30  ;;  %v3179_v11 = vunpack.c.3.s8 %v3103_v30  ;;  %v3107_v30 = vld [vmem:[#allocation8 + $0x420] sm:$0xff] }
 0x2d4   : > { %4087 = vst [vmem:[#allocation3 + $0x800] sm:$0xff] %v3958_v33  ;;  %v3959_v27 = vpack.c.bf16 %v3707_v17, %v3703_v7  ;;  %v3708_v43 = vmul.f32 %v6997_v47, %v3429_v6  ;;  %v3430_v23 = vcvt.s32.f32 %v3174_v57  ;;  %v3176_v25 = vunpack.c.2.s8 %v3104_v12 }
 0x2d5   : > { %v3705_v16 = vmul.f32 %v7007_v56, %v3426_v18  ;;  %v3431_v26 = vcvt.s32.f32 %v3175_v28  ;;  %v3435_v38 = vcvt.s32.f32 %v3179_v11  ;;  %v3180_v42 = vunpack.c.3.s8 %v3104_v12  ;;  %v3108_v12 = vld [vmem:[#allocation8 + $0x428] sm:$0xff] }
 0x2d6   : > { %4088 = vst [vmem:[#allocation3 + $0x808] sm:$0xff] %v3959_v27  ;;  %v3960_v24 = vpack.c.bf16 %v3708_v43, %v3704_v55  ;;  %v3709_v45 = vmul.f32 %v7007_v56, %v3430_v23  ;;  %v3432_v49 = vcvt.s32.f32 %v3176_v25  ;;  %v3177_v39 = vunpack.c.2.s8 %v3105_v20 }
 0x2d7   : > { %v3710_v13 = vmul.f32 %v6977_v32, %v3431_v26  ;;  %v3714_v21 = vmul.f32 %v6977_v32, %v3435_v38  ;;  %v3436_v50 = vcvt.s32.f32 %v3180_v42  ;;  %v3181_v40 = vunpack.c.3.s8 %v3105_v20  ;;  %v3109_v20 = vld [vmem:[#allocation8 + $0x430] sm:$0xff] }
 0x2d8   : > { %4089 = vst [vmem:[#allocation3 + $0x810] sm:$0xff] %v3960_v24  ;;  %v3961_v37 = vpack.c.bf16 %v3709_v45, %v3705_v16  ;;  %v3711_v58 = vmul.f32 %v6985_v36, %v3432_v49  ;;  %v3433_v22 = vcvt.s32.f32 %v3177_v39  ;;  %v3178_v51 = vunpack.c.2.s8 %v3106_v29 }
 0x2d9   : > { %v3962_v59 = vpack.c.bf16 %v3714_v21, %v3710_v13  ;;  %v3715_v52 = vmul.f32 %v6985_v36, %v3436_v50  ;;  %v3437_v1 = vcvt.s32.f32 %v3181_v40  ;;  %v3182_v3 = vunpack.c.3.s8 %v3106_v29 }
 0x2da   : > { %4090 = vst [vmem:[#allocation3 + $0x818] sm:$0xff] %v3961_v37  ;;  %v3712_v48 = vmul.f32 %v6997_v47, %v3433_v22  ;;  %v3434_v34 = vcvt.s32.f32 %v3178_v51  ;;  %v3183_v31 = vunpack.c.0.s8 %v3107_v30  ;;  %v3187_v5 = vunpack.c.1.s8 %v3107_v30 }
 0x2db   : > { %4091 = vst [vmem:[#allocation3 + $0x820] sm:$0xff] %v3962_v59  ;;  %v3963_v53 = vpack.c.bf16 %v3715_v52, %v3711_v58  ;;  %v3716_v10 = vmul.f32 %v6997_v47, %v3437_v1  ;;  %v3438_v62 = vcvt.s32.f32 %v3182_v3  ;;  %v3184_v0 = vunpack.c.0.s8 %v3108_v12 }
 0x2dc   : > { %v3713_v61 = vmul.f32 %v7007_v56, %v3434_v34  ;;  %v3439_v4 = vcvt.s32.f32 %v3183_v31  ;;  %v3443_v44 = vcvt.s32.f32 %v3187_v5  ;;  %v3188_v35 = vunpack.c.1.s8 %v3108_v12 }
 0x2dd   : > { %4092 = vst [vmem:[#allocation3 + $0x828] sm:$0xff] %v3963_v53  ;;  %v3964_v29 = vpack.c.bf16 %v3716_v10, %v3712_v48  ;;  %v3717_v15 = vmul.f32 %v7007_v56, %v3438_v62  ;;  %v3440_v14 = vcvt.s32.f32 %v3184_v0  ;;  %v3185_v41 = vunpack.c.0.s8 %v3109_v20 }
 0x2de   : > { %v3718_v8 = vmul.f32 %v6977_v32, %v3439_v4  ;;  %v3722_v2 = vmul.f32 %v6977_v32, %v3443_v44  ;;  %v3444_v60 = vcvt.s32.f32 %v3188_v35  ;;  %v3189_v46 = vunpack.c.1.s8 %v3109_v20 }
 0x2df   : > { %4093 = vst [vmem:[#allocation3 + $0x830] sm:$0xff] %v3964_v29  ;;  %v3965_v19 = vpack.c.bf16 %v3717_v15, %v3713_v61  ;;  %v3719_v7 = vmul.f32 %v6985_v36, %v3440_v14  ;;  %v3441_v9 = vcvt.s32.f32 %v3185_v41  ;;  %v3186_v54 = vunpack.c.0.s8 %v3110_v63  ;;  %v3114_v29 = vld [vmem:[#allocation8 + $0x458] sm:$0xff] }
 0x2e0   : > { %v3966_v33 = vpack.c.bf16 %v3722_v2, %v3718_v8  ;;  %v3723_v17 = vmul.f32 %v6985_v36, %v3444_v60  ;;  %v3445_v6 = vcvt.s32.f32 %v3189_v46  ;;  %v3190_v57 = vunpack.c.1.s8 %v3110_v63 }
 0x2e1   : > { %4094 = vst [vmem:[#allocation3 + $0x838] sm:$0xff] %v3965_v19  ;;  %v3720_v55 = vmul.f32 %v6997_v47, %v3441_v9  ;;  %v3442_v18 = vcvt.s32.f32 %v3186_v54  ;;  %v3191_v28 = vunpack.c.2.s8 %v3107_v30  ;;  %v3195_v11 = vunpack.c.3.s8 %v3107_v30  ;;  %v3111_v30 = vld [vmem:[#allocation8 + $0x440] sm:$0xff] }
 0x2e2   : > { %4095 = vst [vmem:[#allocation3 + $0x840] sm:$0xff] %v3966_v33  ;;  %v3967_v27 = vpack.c.bf16 %v3723_v17, %v3719_v7  ;;  %v3724_v43 = vmul.f32 %v6997_v47, %v3445_v6  ;;  %v3446_v23 = vcvt.s32.f32 %v3190_v57  ;;  %v3192_v25 = vunpack.c.2.s8 %v3108_v12 }
 0x2e3   : > { %v3721_v16 = vmul.f32 %v7007_v56, %v3442_v18  ;;  %v3447_v26 = vcvt.s32.f32 %v3191_v28  ;;  %v3451_v38 = vcvt.s32.f32 %v3195_v11  ;;  %v3196_v42 = vunpack.c.3.s8 %v3108_v12  ;;  %v3112_v12 = vld [vmem:[#allocation8 + $0x448] sm:$0xff] }
 0x2e4   : > { %4096 = vst [vmem:[#allocation3 + $0x848] sm:$0xff] %v3967_v27  ;;  %v3968_v24 = vpack.c.bf16 %v3724_v43, %v3720_v55  ;;  %v3725_v45 = vmul.f32 %v7007_v56, %v3446_v23  ;;  %v3448_v49 = vcvt.s32.f32 %v3192_v25  ;;  %v3193_v39 = vunpack.c.2.s8 %v3109_v20 }
 0x2e5   : > { %v3726_v13 = vmul.f32 %v6977_v32, %v3447_v26  ;;  %v3730_v21 = vmul.f32 %v6977_v32, %v3451_v38  ;;  %v3452_v50 = vcvt.s32.f32 %v3196_v42  ;;  %v3197_v40 = vunpack.c.3.s8 %v3109_v20  ;;  %v3113_v20 = vld [vmem:[#allocation8 + $0x450] sm:$0xff] }
 0x2e6   : > { %4097 = vst [vmem:[#allocation3 + $0x850] sm:$0xff] %v3968_v24  ;;  %v3969_v37 = vpack.c.bf16 %v3725_v45, %v3721_v16  ;;  %v3727_v58 = vmul.f32 %v6985_v36, %v3448_v49  ;;  %v3449_v22 = vcvt.s32.f32 %v3193_v39  ;;  %v3194_v51 = vunpack.c.2.s8 %v3110_v63 }
 0x2e7   : > { %v3970_v59 = vpack.c.bf16 %v3730_v21, %v3726_v13  ;;  %v3731_v52 = vmul.f32 %v6985_v36, %v3452_v50  ;;  %v3453_v1 = vcvt.s32.f32 %v3197_v40  ;;  %v3198_v3 = vunpack.c.3.s8 %v3110_v63 }
 0x2e8   : > { %4098 = vst [vmem:[#allocation3 + $0x858] sm:$0xff] %v3969_v37  ;;  %v3728_v48 = vmul.f32 %v6997_v47, %v3449_v22  ;;  %v3450_v34 = vcvt.s32.f32 %v3194_v51  ;;  %v3199_v31 = vunpack.c.0.s8 %v3111_v30  ;;  %v3203_v5 = vunpack.c.1.s8 %v3111_v30 }
 0x2e9   : > { %4099 = vst [vmem:[#allocation3 + $0x860] sm:$0xff] %v3970_v59  ;;  %v3971_v53 = vpack.c.bf16 %v3731_v52, %v3727_v58  ;;  %v3732_v10 = vmul.f32 %v6997_v47, %v3453_v1  ;;  %v3454_v62 = vcvt.s32.f32 %v3198_v3  ;;  %v3200_v0 = vunpack.c.0.s8 %v3112_v12 }
 0x2ea   : > { %v3729_v61 = vmul.f32 %v7007_v56, %v3450_v34  ;;  %v3455_v4 = vcvt.s32.f32 %v3199_v31  ;;  %v3459_v44 = vcvt.s32.f32 %v3203_v5  ;;  %v3204_v35 = vunpack.c.1.s8 %v3112_v12 }
 0x2eb   : > { %4100 = vst [vmem:[#allocation3 + $0x868] sm:$0xff] %v3971_v53  ;;  %v3972_v63 = vpack.c.bf16 %v3732_v10, %v3728_v48  ;;  %v3733_v15 = vmul.f32 %v7007_v56, %v3454_v62  ;;  %v3456_v14 = vcvt.s32.f32 %v3200_v0  ;;  %v3201_v41 = vunpack.c.0.s8 %v3113_v20 }
 0x2ec   : > { %v3734_v8 = vmul.f32 %v6977_v32, %v3455_v4  ;;  %v3738_v2 = vmul.f32 %v6977_v32, %v3459_v44  ;;  %v3460_v60 = vcvt.s32.f32 %v3204_v35  ;;  %v3205_v46 = vunpack.c.1.s8 %v3113_v20 }
 0x2ed   : > { %4101 = vst [vmem:[#allocation3 + $0x870] sm:$0xff] %v3972_v63  ;;  %v3973_v19 = vpack.c.bf16 %v3733_v15, %v3729_v61  ;;  %v3735_v7 = vmul.f32 %v6985_v36, %v3456_v14  ;;  %v3457_v9 = vcvt.s32.f32 %v3201_v41  ;;  %v3202_v54 = vunpack.c.0.s8 %v3114_v29  ;;  %v3118_v63 = vld [vmem:[#allocation8 + $0x478] sm:$0xff] }
 0x2ee   : > { %v3974_v33 = vpack.c.bf16 %v3738_v2, %v3734_v8  ;;  %v3739_v17 = vmul.f32 %v6985_v36, %v3460_v60  ;;  %v3461_v6 = vcvt.s32.f32 %v3205_v46  ;;  %v3206_v57 = vunpack.c.1.s8 %v3114_v29 }
 0x2ef   : > { %4102 = vst [vmem:[#allocation3 + $0x878] sm:$0xff] %v3973_v19  ;;  %v3736_v55 = vmul.f32 %v6997_v47, %v3457_v9  ;;  %v3458_v18 = vcvt.s32.f32 %v3202_v54  ;;  %v3207_v28 = vunpack.c.2.s8 %v3111_v30  ;;  %v3211_v11 = vunpack.c.3.s8 %v3111_v30  ;;  %v3115_v30 = vld [vmem:[#allocation8 + $0x460] sm:$0xff] }
 0x2f0   : > { %4103 = vst [vmem:[#allocation3 + $0x880] sm:$0xff] %v3974_v33  ;;  %v3975_v27 = vpack.c.bf16 %v3739_v17, %v3735_v7  ;;  %v3740_v43 = vmul.f32 %v6997_v47, %v3461_v6  ;;  %v3462_v23 = vcvt.s32.f32 %v3206_v57  ;;  %v3208_v25 = vunpack.c.2.s8 %v3112_v12 }
 0x2f1   : > { %v3737_v16 = vmul.f32 %v7007_v56, %v3458_v18  ;;  %v3463_v26 = vcvt.s32.f32 %v3207_v28  ;;  %v3467_v38 = vcvt.s32.f32 %v3211_v11  ;;  %v3212_v42 = vunpack.c.3.s8 %v3112_v12  ;;  %v3116_v12 = vld [vmem:[#allocation8 + $0x468] sm:$0xff] }
 0x2f2   : > { %4104 = vst [vmem:[#allocation3 + $0x888] sm:$0xff] %v3975_v27  ;;  %v3976_v24 = vpack.c.bf16 %v3740_v43, %v3736_v55  ;;  %v3741_v45 = vmul.f32 %v7007_v56, %v3462_v23  ;;  %v3464_v49 = vcvt.s32.f32 %v3208_v25  ;;  %v3209_v39 = vunpack.c.2.s8 %v3113_v20 }
 0x2f3   : > { %v3742_v13 = vmul.f32 %v6977_v32, %v3463_v26  ;;  %v3746_v21 = vmul.f32 %v6977_v32, %v3467_v38  ;;  %v3468_v50 = vcvt.s32.f32 %v3212_v42  ;;  %v3213_v40 = vunpack.c.3.s8 %v3113_v20  ;;  %v3117_v20 = vld [vmem:[#allocation8 + $0x470] sm:$0xff] }
 0x2f4   : > { %4105 = vst [vmem:[#allocation3 + $0x890] sm:$0xff] %v3976_v24  ;;  %v3977_v37 = vpack.c.bf16 %v3741_v45, %v3737_v16  ;;  %v3743_v58 = vmul.f32 %v6985_v36, %v3464_v49  ;;  %v3465_v22 = vcvt.s32.f32 %v3209_v39  ;;  %v3210_v51 = vunpack.c.2.s8 %v3114_v29 }
 0x2f5   : > { %v3978_v59 = vpack.c.bf16 %v3746_v21, %v3742_v13  ;;  %v3747_v52 = vmul.f32 %v6985_v36, %v3468_v50  ;;  %v3469_v1 = vcvt.s32.f32 %v3213_v40  ;;  %v3214_v3 = vunpack.c.3.s8 %v3114_v29 }
 0x2f6   : > { %4106 = vst [vmem:[#allocation3 + $0x898] sm:$0xff] %v3977_v37  ;;  %v3744_v48 = vmul.f32 %v6997_v47, %v3465_v22  ;;  %v3466_v34 = vcvt.s32.f32 %v3210_v51  ;;  %v3215_v31 = vunpack.c.0.s8 %v3115_v30  ;;  %v3219_v5 = vunpack.c.1.s8 %v3115_v30 }
 0x2f7   : > { %4107 = vst [vmem:[#allocation3 + $0x8a0] sm:$0xff] %v3978_v59  ;;  %v3979_v53 = vpack.c.bf16 %v3747_v52, %v3743_v58  ;;  %v3748_v10 = vmul.f32 %v6997_v47, %v3469_v1  ;;  %v3470_v62 = vcvt.s32.f32 %v3214_v3  ;;  %v3216_v0 = vunpack.c.0.s8 %v3116_v12 }
 0x2f8   : > { %v3745_v61 = vmul.f32 %v7007_v56, %v3466_v34  ;;  %v3471_v4 = vcvt.s32.f32 %v3215_v31  ;;  %v3475_v44 = vcvt.s32.f32 %v3219_v5  ;;  %v3220_v35 = vunpack.c.1.s8 %v3116_v12 }
 0x2f9   : > { %4108 = vst [vmem:[#allocation3 + $0x8a8] sm:$0xff] %v3979_v53  ;;  %v3980_v29 = vpack.c.bf16 %v3748_v10, %v3744_v48  ;;  %v3749_v15 = vmul.f32 %v7007_v56, %v3470_v62  ;;  %v3472_v14 = vcvt.s32.f32 %v3216_v0  ;;  %v3217_v41 = vunpack.c.0.s8 %v3117_v20 }
 0x2fa   : > { %v3750_v8 = vmul.f32 %v6977_v32, %v3471_v4  ;;  %v3754_v2 = vmul.f32 %v6977_v32, %v3475_v44  ;;  %v3476_v60 = vcvt.s32.f32 %v3220_v35  ;;  %v3221_v46 = vunpack.c.1.s8 %v3117_v20 }
 0x2fb   : > { %4109 = vst [vmem:[#allocation3 + $0x8b0] sm:$0xff] %v3980_v29  ;;  %v3981_v19 = vpack.c.bf16 %v3749_v15, %v3745_v61  ;;  %v3751_v7 = vmul.f32 %v6985_v36, %v3472_v14  ;;  %v3473_v9 = vcvt.s32.f32 %v3217_v41  ;;  %v3218_v54 = vunpack.c.0.s8 %v3118_v63  ;;  %v3122_v29 = vld [vmem:[#allocation8 + $0x498] sm:$0xff] }
 0x2fc   : > { %v3982_v33 = vpack.c.bf16 %v3754_v2, %v3750_v8  ;;  %v3755_v17 = vmul.f32 %v6985_v36, %v3476_v60  ;;  %v3477_v6 = vcvt.s32.f32 %v3221_v46  ;;  %v3222_v57 = vunpack.c.1.s8 %v3118_v63 }
 0x2fd   : > { %4110 = vst [vmem:[#allocation3 + $0x8b8] sm:$0xff] %v3981_v19  ;;  %v3752_v55 = vmul.f32 %v6997_v47, %v3473_v9  ;;  %v3474_v18 = vcvt.s32.f32 %v3218_v54  ;;  %v3223_v28 = vunpack.c.2.s8 %v3115_v30  ;;  %v3227_v11 = vunpack.c.3.s8 %v3115_v30  ;;  %v3119_v30 = vld [vmem:[#allocation8 + $0x480] sm:$0xff] }
 0x2fe   : > { %4111 = vst [vmem:[#allocation3 + $0x8c0] sm:$0xff] %v3982_v33  ;;  %v3983_v27 = vpack.c.bf16 %v3755_v17, %v3751_v7  ;;  %v3756_v43 = vmul.f32 %v6997_v47, %v3477_v6  ;;  %v3478_v23 = vcvt.s32.f32 %v3222_v57  ;;  %v3224_v25 = vunpack.c.2.s8 %v3116_v12 }
 0x2ff   : > { %v3753_v16 = vmul.f32 %v7007_v56, %v3474_v18  ;;  %v3479_v26 = vcvt.s32.f32 %v3223_v28  ;;  %v3483_v38 = vcvt.s32.f32 %v3227_v11  ;;  %v3228_v42 = vunpack.c.3.s8 %v3116_v12  ;;  %v3120_v12 = vld [vmem:[#allocation8 + $0x488] sm:$0xff] }
 0x300   : > { %4112 = vst [vmem:[#allocation3 + $0x8c8] sm:$0xff] %v3983_v27  ;;  %v3984_v24 = vpack.c.bf16 %v3756_v43, %v3752_v55  ;;  %v3757_v45 = vmul.f32 %v7007_v56, %v3478_v23  ;;  %v3480_v49 = vcvt.s32.f32 %v3224_v25  ;;  %v3225_v39 = vunpack.c.2.s8 %v3117_v20 }
 0x301   : > { %v3758_v13 = vmul.f32 %v6977_v32, %v3479_v26  ;;  %v3762_v21 = vmul.f32 %v6977_v32, %v3483_v38  ;;  %v3484_v50 = vcvt.s32.f32 %v3228_v42  ;;  %v3229_v40 = vunpack.c.3.s8 %v3117_v20  ;;  %v3121_v20 = vld [vmem:[#allocation8 + $0x490] sm:$0xff] }
 0x302   : > { %4113 = vst [vmem:[#allocation3 + $0x8d0] sm:$0xff] %v3984_v24  ;;  %v3985_v37 = vpack.c.bf16 %v3757_v45, %v3753_v16  ;;  %v3759_v58 = vmul.f32 %v6985_v36, %v3480_v49  ;;  %v3481_v22 = vcvt.s32.f32 %v3225_v39  ;;  %v3226_v51 = vunpack.c.2.s8 %v3118_v63 }
 0x303   : > { %v3986_v59 = vpack.c.bf16 %v3762_v21, %v3758_v13  ;;  %v3763_v52 = vmul.f32 %v6985_v36, %v3484_v50  ;;  %v3485_v1 = vcvt.s32.f32 %v3229_v40  ;;  %v3230_v3 = vunpack.c.3.s8 %v3118_v63 }
 0x304   : > { %4114 = vst [vmem:[#allocation3 + $0x8d8] sm:$0xff] %v3985_v37  ;;  %v3760_v48 = vmul.f32 %v6997_v47, %v3481_v22  ;;  %v3482_v34 = vcvt.s32.f32 %v3226_v51  ;;  %v3231_v31 = vunpack.c.0.s8 %v3119_v30  ;;  %v3235_v5 = vunpack.c.1.s8 %v3119_v30 }
 0x305   : > { %4115 = vst [vmem:[#allocation3 + $0x8e0] sm:$0xff] %v3986_v59  ;;  %v3987_v53 = vpack.c.bf16 %v3763_v52, %v3759_v58  ;;  %v3764_v10 = vmul.f32 %v6997_v47, %v3485_v1  ;;  %v3486_v62 = vcvt.s32.f32 %v3230_v3  ;;  %v3232_v0 = vunpack.c.0.s8 %v3120_v12 }
 0x306   : > { %v3761_v61 = vmul.f32 %v7007_v56, %v3482_v34  ;;  %v3487_v4 = vcvt.s32.f32 %v3231_v31  ;;  %v3491_v44 = vcvt.s32.f32 %v3235_v5  ;;  %v3236_v35 = vunpack.c.1.s8 %v3120_v12 }
 0x307   : > { %4116 = vst [vmem:[#allocation3 + $0x8e8] sm:$0xff] %v3987_v53  ;;  %v3988_v63 = vpack.c.bf16 %v3764_v10, %v3760_v48  ;;  %v3765_v15 = vmul.f32 %v7007_v56, %v3486_v62  ;;  %v3488_v14 = vcvt.s32.f32 %v3232_v0  ;;  %v3233_v41 = vunpack.c.0.s8 %v3121_v20 }
 0x308   : > { %v3766_v8 = vmul.f32 %v6977_v32, %v3487_v4  ;;  %v3770_v2 = vmul.f32 %v6977_v32, %v3491_v44  ;;  %v3492_v60 = vcvt.s32.f32 %v3236_v35  ;;  %v3237_v46 = vunpack.c.1.s8 %v3121_v20 }
 0x309   : > { %4117 = vst [vmem:[#allocation3 + $0x8f0] sm:$0xff] %v3988_v63  ;;  %v3989_v19 = vpack.c.bf16 %v3765_v15, %v3761_v61  ;;  %v3767_v7 = vmul.f32 %v6985_v36, %v3488_v14  ;;  %v3489_v9 = vcvt.s32.f32 %v3233_v41  ;;  %v3234_v54 = vunpack.c.0.s8 %v3122_v29  ;;  %v3126_v63 = vld [vmem:[#allocation8 + $0x4b8] sm:$0xff] }
 0x30a   : > { %v3990_v33 = vpack.c.bf16 %v3770_v2, %v3766_v8  ;;  %v3771_v17 = vmul.f32 %v6985_v36, %v3492_v60  ;;  %v3493_v6 = vcvt.s32.f32 %v3237_v46  ;;  %v3238_v57 = vunpack.c.1.s8 %v3122_v29 }
 0x30b   : > { %4118 = vst [vmem:[#allocation3 + $0x8f8] sm:$0xff] %v3989_v19  ;;  %v3768_v55 = vmul.f32 %v6997_v47, %v3489_v9  ;;  %v3490_v18 = vcvt.s32.f32 %v3234_v54  ;;  %v3239_v28 = vunpack.c.2.s8 %v3119_v30  ;;  %v3243_v11 = vunpack.c.3.s8 %v3119_v30  ;;  %v3123_v30 = vld [vmem:[#allocation8 + $0x4a0] sm:$0xff] }
 0x30c   : > { %4119 = vst [vmem:[#allocation3 + $0x900] sm:$0xff] %v3990_v33  ;;  %v3991_v27 = vpack.c.bf16 %v3771_v17, %v3767_v7  ;;  %v3772_v43 = vmul.f32 %v6997_v47, %v3493_v6  ;;  %v3494_v23 = vcvt.s32.f32 %v3238_v57  ;;  %v3240_v25 = vunpack.c.2.s8 %v3120_v12 }
 0x30d   : > { %v3769_v16 = vmul.f32 %v7007_v56, %v3490_v18  ;;  %v3495_v26 = vcvt.s32.f32 %v3239_v28  ;;  %v3499_v38 = vcvt.s32.f32 %v3243_v11  ;;  %v3244_v42 = vunpack.c.3.s8 %v3120_v12  ;;  %v3124_v12 = vld [vmem:[#allocation8 + $0x4a8] sm:$0xff] }
 0x30e   : > { %4120 = vst [vmem:[#allocation3 + $0x908] sm:$0xff] %v3991_v27  ;;  %v3992_v24 = vpack.c.bf16 %v3772_v43, %v3768_v55  ;;  %v3773_v45 = vmul.f32 %v7007_v56, %v3494_v23  ;;  %v3496_v49 = vcvt.s32.f32 %v3240_v25  ;;  %v3241_v39 = vunpack.c.2.s8 %v3121_v20 }
 0x30f   : > { %v3774_v13 = vmul.f32 %v6977_v32, %v3495_v26  ;;  %v3778_v21 = vmul.f32 %v6977_v32, %v3499_v38  ;;  %v3500_v50 = vcvt.s32.f32 %v3244_v42  ;;  %v3245_v40 = vunpack.c.3.s8 %v3121_v20  ;;  %v3125_v20 = vld [vmem:[#allocation8 + $0x4b0] sm:$0xff] }
 0x310   : > { %4121 = vst [vmem:[#allocation3 + $0x910] sm:$0xff] %v3992_v24  ;;  %v3993_v37 = vpack.c.bf16 %v3773_v45, %v3769_v16  ;;  %v3775_v58 = vmul.f32 %v6985_v36, %v3496_v49  ;;  %v3497_v22 = vcvt.s32.f32 %v3241_v39  ;;  %v3242_v51 = vunpack.c.2.s8 %v3122_v29 }
 0x311   : > { %v3994_v59 = vpack.c.bf16 %v3778_v21, %v3774_v13  ;;  %v3779_v52 = vmul.f32 %v6985_v36, %v3500_v50  ;;  %v3501_v1 = vcvt.s32.f32 %v3245_v40  ;;  %v3246_v3 = vunpack.c.3.s8 %v3122_v29 }
 0x312   : > { %4122 = vst [vmem:[#allocation3 + $0x918] sm:$0xff] %v3993_v37  ;;  %v3776_v48 = vmul.f32 %v6997_v47, %v3497_v22  ;;  %v3498_v34 = vcvt.s32.f32 %v3242_v51  ;;  %v3247_v31 = vunpack.c.0.s8 %v3123_v30  ;;  %v3251_v5 = vunpack.c.1.s8 %v3123_v30 }
 0x313   : > { %4123 = vst [vmem:[#allocation3 + $0x920] sm:$0xff] %v3994_v59  ;;  %v3995_v53 = vpack.c.bf16 %v3779_v52, %v3775_v58  ;;  %v3780_v10 = vmul.f32 %v6997_v47, %v3501_v1  ;;  %v3502_v62 = vcvt.s32.f32 %v3246_v3  ;;  %v3248_v0 = vunpack.c.0.s8 %v3124_v12 }
 0x314   : > { %v3777_v61 = vmul.f32 %v7007_v56, %v3498_v34  ;;  %v3503_v4 = vcvt.s32.f32 %v3247_v31  ;;  %v3507_v44 = vcvt.s32.f32 %v3251_v5  ;;  %v3252_v35 = vunpack.c.1.s8 %v3124_v12 }
 0x315   : > { %4124 = vst [vmem:[#allocation3 + $0x928] sm:$0xff] %v3995_v53  ;;  %v3996_v29 = vpack.c.bf16 %v3780_v10, %v3776_v48  ;;  %v3781_v15 = vmul.f32 %v7007_v56, %v3502_v62  ;;  %v3504_v14 = vcvt.s32.f32 %v3248_v0  ;;  %v3249_v41 = vunpack.c.0.s8 %v3125_v20 }
 0x316   : > { %v3782_v8 = vmul.f32 %v6977_v32, %v3503_v4  ;;  %v3786_v2 = vmul.f32 %v6977_v32, %v3507_v44  ;;  %v3508_v60 = vcvt.s32.f32 %v3252_v35  ;;  %v3253_v46 = vunpack.c.1.s8 %v3125_v20 }
 0x317   : > { %4125 = vst [vmem:[#allocation3 + $0x930] sm:$0xff] %v3996_v29  ;;  %v3997_v19 = vpack.c.bf16 %v3781_v15, %v3777_v61  ;;  %v3783_v7 = vmul.f32 %v6985_v36, %v3504_v14  ;;  %v3505_v9 = vcvt.s32.f32 %v3249_v41  ;;  %v3250_v54 = vunpack.c.0.s8 %v3126_v63  ;;  %v3130_v29 = vld [vmem:[#allocation8 + $0x4d8] sm:$0xff] }
 0x318   : > { %v3998_v33 = vpack.c.bf16 %v3786_v2, %v3782_v8  ;;  %v3787_v17 = vmul.f32 %v6985_v36, %v3508_v60  ;;  %v3509_v6 = vcvt.s32.f32 %v3253_v46  ;;  %v3254_v57 = vunpack.c.1.s8 %v3126_v63 }
 0x319   : > { %4126 = vst [vmem:[#allocation3 + $0x938] sm:$0xff] %v3997_v19  ;;  %v3784_v55 = vmul.f32 %v6997_v47, %v3505_v9  ;;  %v3506_v18 = vcvt.s32.f32 %v3250_v54  ;;  %v3255_v28 = vunpack.c.2.s8 %v3123_v30  ;;  %v3259_v11 = vunpack.c.3.s8 %v3123_v30  ;;  %v3127_v30 = vld [vmem:[#allocation8 + $0x4c0] sm:$0xff] }
 0x31a   : > { %4127 = vst [vmem:[#allocation3 + $0x940] sm:$0xff] %v3998_v33  ;;  %v3999_v27 = vpack.c.bf16 %v3787_v17, %v3783_v7  ;;  %v3788_v43 = vmul.f32 %v6997_v47, %v3509_v6  ;;  %v3510_v23 = vcvt.s32.f32 %v3254_v57  ;;  %v3256_v25 = vunpack.c.2.s8 %v3124_v12 }
 0x31b   : > { %v3785_v16 = vmul.f32 %v7007_v56, %v3506_v18  ;;  %v3511_v26 = vcvt.s32.f32 %v3255_v28  ;;  %v3515_v38 = vcvt.s32.f32 %v3259_v11  ;;  %v3260_v42 = vunpack.c.3.s8 %v3124_v12  ;;  %v3128_v12 = vld [vmem:[#allocation8 + $0x4c8] sm:$0xff] }
 0x31c   : > { %4128 = vst [vmem:[#allocation3 + $0x948] sm:$0xff] %v3999_v27  ;;  %v4000_v24 = vpack.c.bf16 %v3788_v43, %v3784_v55  ;;  %v3789_v45 = vmul.f32 %v7007_v56, %v3510_v23  ;;  %v3512_v49 = vcvt.s32.f32 %v3256_v25  ;;  %v3257_v39 = vunpack.c.2.s8 %v3125_v20 }
 0x31d   : > { %v3790_v13 = vmul.f32 %v6977_v32, %v3511_v26  ;;  %v3794_v21 = vmul.f32 %v6977_v32, %v3515_v38  ;;  %v3516_v50 = vcvt.s32.f32 %v3260_v42  ;;  %v3261_v40 = vunpack.c.3.s8 %v3125_v20  ;;  %v3129_v20 = vld [vmem:[#allocation8 + $0x4d0] sm:$0xff] }
 0x31e   : > { %4129 = vst [vmem:[#allocation3 + $0x950] sm:$0xff] %v4000_v24  ;;  %v4001_v37 = vpack.c.bf16 %v3789_v45, %v3785_v16  ;;  %v3791_v58 = vmul.f32 %v6985_v36, %v3512_v49  ;;  %v3513_v22 = vcvt.s32.f32 %v3257_v39  ;;  %v3258_v51 = vunpack.c.2.s8 %v3126_v63 }
 0x31f   : > { %v4002_v59 = vpack.c.bf16 %v3794_v21, %v3790_v13  ;;  %v3795_v52 = vmul.f32 %v6985_v36, %v3516_v50  ;;  %v3517_v1 = vcvt.s32.f32 %v3261_v40  ;;  %v3262_v3 = vunpack.c.3.s8 %v3126_v63 }
 0x320   : > { %4130 = vst [vmem:[#allocation3 + $0x958] sm:$0xff] %v4001_v37  ;;  %v3792_v48 = vmul.f32 %v6997_v47, %v3513_v22  ;;  %v3514_v34 = vcvt.s32.f32 %v3258_v51  ;;  %v3263_v31 = vunpack.c.0.s8 %v3127_v30  ;;  %v3267_v5 = vunpack.c.1.s8 %v3127_v30 }
 0x321   : > { %4131 = vst [vmem:[#allocation3 + $0x960] sm:$0xff] %v4002_v59  ;;  %v4003_v53 = vpack.c.bf16 %v3795_v52, %v3791_v58  ;;  %v3796_v10 = vmul.f32 %v6997_v47, %v3517_v1  ;;  %v3518_v62 = vcvt.s32.f32 %v3262_v3  ;;  %v3264_v0 = vunpack.c.0.s8 %v3128_v12 }
 0x322   : > { %v3793_v61 = vmul.f32 %v7007_v56, %v3514_v34  ;;  %v3519_v4 = vcvt.s32.f32 %v3263_v31  ;;  %v3523_v44 = vcvt.s32.f32 %v3267_v5  ;;  %v3268_v35 = vunpack.c.1.s8 %v3128_v12 }
 0x323   : > { %4132 = vst [vmem:[#allocation3 + $0x968] sm:$0xff] %v4003_v53  ;;  %v4004_v63 = vpack.c.bf16 %v3796_v10, %v3792_v48  ;;  %v3797_v15 = vmul.f32 %v7007_v56, %v3518_v62  ;;  %v3520_v14 = vcvt.s32.f32 %v3264_v0  ;;  %v3265_v41 = vunpack.c.0.s8 %v3129_v20 }
 0x324   : > { %v3798_v8 = vmul.f32 %v6977_v32, %v3519_v4  ;;  %v3802_v2 = vmul.f32 %v6977_v32, %v3523_v44  ;;  %v3524_v60 = vcvt.s32.f32 %v3268_v35  ;;  %v3269_v46 = vunpack.c.1.s8 %v3129_v20 }
 0x325   : > { %4133 = vst [vmem:[#allocation3 + $0x970] sm:$0xff] %v4004_v63  ;;  %v4005_v19 = vpack.c.bf16 %v3797_v15, %v3793_v61  ;;  %v3799_v7 = vmul.f32 %v6985_v36, %v3520_v14  ;;  %v3521_v9 = vcvt.s32.f32 %v3265_v41  ;;  %v3266_v54 = vunpack.c.0.s8 %v3130_v29  ;;  %v3134_v63 = vld [vmem:[#allocation8 + $0x4f8] sm:$0xff] }
 0x326   : > { %v4006_v33 = vpack.c.bf16 %v3802_v2, %v3798_v8  ;;  %v3803_v17 = vmul.f32 %v6985_v36, %v3524_v60  ;;  %v3525_v6 = vcvt.s32.f32 %v3269_v46  ;;  %v3270_v57 = vunpack.c.1.s8 %v3130_v29 }
 0x327   : > { %4134 = vst [vmem:[#allocation3 + $0x978] sm:$0xff] %v4005_v19  ;;  %v3800_v55 = vmul.f32 %v6997_v47, %v3521_v9  ;;  %v3522_v18 = vcvt.s32.f32 %v3266_v54  ;;  %v3271_v28 = vunpack.c.2.s8 %v3127_v30  ;;  %v3275_v11 = vunpack.c.3.s8 %v3127_v30  ;;  %v3131_v30 = vld [vmem:[#allocation8 + $0x4e0] sm:$0xff] }
 0x328   : > { %4135 = vst [vmem:[#allocation3 + $0x980] sm:$0xff] %v4006_v33  ;;  %v4007_v27 = vpack.c.bf16 %v3803_v17, %v3799_v7  ;;  %v3804_v43 = vmul.f32 %v6997_v47, %v3525_v6  ;;  %v3526_v23 = vcvt.s32.f32 %v3270_v57  ;;  %v3272_v25 = vunpack.c.2.s8 %v3128_v12 }
 0x329   : > { %v3801_v16 = vmul.f32 %v7007_v56, %v3522_v18  ;;  %v3527_v26 = vcvt.s32.f32 %v3271_v28  ;;  %v3531_v38 = vcvt.s32.f32 %v3275_v11  ;;  %v3276_v42 = vunpack.c.3.s8 %v3128_v12  ;;  %v3132_v12 = vld [vmem:[#allocation8 + $0x4e8] sm:$0xff] }
 0x32a   : > { %4136 = vst [vmem:[#allocation3 + $0x988] sm:$0xff] %v4007_v27  ;;  %v4008_v24 = vpack.c.bf16 %v3804_v43, %v3800_v55  ;;  %v3805_v45 = vmul.f32 %v7007_v56, %v3526_v23  ;;  %v3528_v49 = vcvt.s32.f32 %v3272_v25  ;;  %v3273_v39 = vunpack.c.2.s8 %v3129_v20 }
 0x32b   : > { %v3806_v13 = vmul.f32 %v6977_v32, %v3527_v26  ;;  %v3810_v21 = vmul.f32 %v6977_v32, %v3531_v38  ;;  %v3532_v50 = vcvt.s32.f32 %v3276_v42  ;;  %v3277_v40 = vunpack.c.3.s8 %v3129_v20  ;;  %v3133_v20 = vld [vmem:[#allocation8 + $0x4f0] sm:$0xff] }
 0x32c   : > { %4137 = vst [vmem:[#allocation3 + $0x990] sm:$0xff] %v4008_v24  ;;  %v4009_v37 = vpack.c.bf16 %v3805_v45, %v3801_v16  ;;  %v3807_v58 = vmul.f32 %v6985_v36, %v3528_v49  ;;  %v3529_v22 = vcvt.s32.f32 %v3273_v39  ;;  %v3274_v51 = vunpack.c.2.s8 %v3130_v29 }
 0x32d   : > { %v4010_v59 = vpack.c.bf16 %v3810_v21, %v3806_v13  ;;  %v3811_v52 = vmul.f32 %v6985_v36, %v3532_v50  ;;  %v3533_v1 = vcvt.s32.f32 %v3277_v40  ;;  %v3278_v3 = vunpack.c.3.s8 %v3130_v29 }
 0x32e   : > { %4138 = vst [vmem:[#allocation3 + $0x998] sm:$0xff] %v4009_v37  ;;  %v3808_v48 = vmul.f32 %v6997_v47, %v3529_v22  ;;  %v3530_v34 = vcvt.s32.f32 %v3274_v51  ;;  %v3279_v31 = vunpack.c.0.s8 %v3131_v30  ;;  %v3283_v5 = vunpack.c.1.s8 %v3131_v30 }
 0x32f   : > { %4139 = vst [vmem:[#allocation3 + $0x9a0] sm:$0xff] %v4010_v59  ;;  %v4011_v53 = vpack.c.bf16 %v3811_v52, %v3807_v58  ;;  %v3812_v10 = vmul.f32 %v6997_v47, %v3533_v1  ;;  %v3534_v62 = vcvt.s32.f32 %v3278_v3  ;;  %v3280_v0 = vunpack.c.0.s8 %v3132_v12 }
 0x330   : > { %v3809_v61 = vmul.f32 %v7007_v56, %v3530_v34  ;;  %v3535_v4 = vcvt.s32.f32 %v3279_v31  ;;  %v3539_v44 = vcvt.s32.f32 %v3283_v5  ;;  %v3284_v35 = vunpack.c.1.s8 %v3132_v12 }
 0x331   : > { %4140 = vst [vmem:[#allocation3 + $0x9a8] sm:$0xff] %v4011_v53  ;;  %v4012_v29 = vpack.c.bf16 %v3812_v10, %v3808_v48  ;;  %v3813_v15 = vmul.f32 %v7007_v56, %v3534_v62  ;;  %v3536_v14 = vcvt.s32.f32 %v3280_v0  ;;  %v3281_v41 = vunpack.c.0.s8 %v3133_v20 }
 0x332   : > { %v3814_v8 = vmul.f32 %v6977_v32, %v3535_v4  ;;  %v3818_v2 = vmul.f32 %v6977_v32, %v3539_v44  ;;  %v3540_v60 = vcvt.s32.f32 %v3284_v35  ;;  %v3285_v46 = vunpack.c.1.s8 %v3133_v20 }
 0x333   : > { %4141 = vst [vmem:[#allocation3 + $0x9b0] sm:$0xff] %v4012_v29  ;;  %v4013_v19 = vpack.c.bf16 %v3813_v15, %v3809_v61  ;;  %v3815_v7 = vmul.f32 %v6985_v36, %v3536_v14  ;;  %v3537_v9 = vcvt.s32.f32 %v3281_v41  ;;  %v3282_v54 = vunpack.c.0.s8 %v3134_v63  ;;  %v3138_v29 = vld [vmem:[#allocation8 + $0x518] sm:$0xff] }
 0x334   : > { %v4014_v33 = vpack.c.bf16 %v3818_v2, %v3814_v8  ;;  %v3819_v17 = vmul.f32 %v6985_v36, %v3540_v60  ;;  %v3541_v6 = vcvt.s32.f32 %v3285_v46  ;;  %v3286_v57 = vunpack.c.1.s8 %v3134_v63 }
 0x335   : > { %4142 = vst [vmem:[#allocation3 + $0x9b8] sm:$0xff] %v4013_v19  ;;  %v3816_v55 = vmul.f32 %v6997_v47, %v3537_v9  ;;  %v3538_v18 = vcvt.s32.f32 %v3282_v54  ;;  %v3287_v28 = vunpack.c.2.s8 %v3131_v30  ;;  %v3291_v11 = vunpack.c.3.s8 %v3131_v30  ;;  %v3135_v30 = vld [vmem:[#allocation8 + $0x500] sm:$0xff] }
 0x336   : > { %4143 = vst [vmem:[#allocation3 + $0x9c0] sm:$0xff] %v4014_v33  ;;  %v4015_v27 = vpack.c.bf16 %v3819_v17, %v3815_v7  ;;  %v3820_v43 = vmul.f32 %v6997_v47, %v3541_v6  ;;  %v3542_v23 = vcvt.s32.f32 %v3286_v57  ;;  %v3288_v25 = vunpack.c.2.s8 %v3132_v12 }
 0x337   : > { %v3817_v16 = vmul.f32 %v7007_v56, %v3538_v18  ;;  %v3543_v26 = vcvt.s32.f32 %v3287_v28  ;;  %v3547_v38 = vcvt.s32.f32 %v3291_v11  ;;  %v3292_v42 = vunpack.c.3.s8 %v3132_v12  ;;  %v3136_v12 = vld [vmem:[#allocation8 + $0x508] sm:$0xff] }
 0x338   : > { %4144 = vst [vmem:[#allocation3 + $0x9c8] sm:$0xff] %v4015_v27  ;;  %v4016_v24 = vpack.c.bf16 %v3820_v43, %v3816_v55  ;;  %v3821_v45 = vmul.f32 %v7007_v56, %v3542_v23  ;;  %v3544_v49 = vcvt.s32.f32 %v3288_v25  ;;  %v3289_v39 = vunpack.c.2.s8 %v3133_v20 }
 0x339   : > { %v3822_v13 = vmul.f32 %v6977_v32, %v3543_v26  ;;  %v3826_v21 = vmul.f32 %v6977_v32, %v3547_v38  ;;  %v3548_v50 = vcvt.s32.f32 %v3292_v42  ;;  %v3293_v40 = vunpack.c.3.s8 %v3133_v20  ;;  %v3137_v20 = vld [vmem:[#allocation8 + $0x510] sm:$0xff] }
 0x33a   : > { %4145 = vst [vmem:[#allocation3 + $0x9d0] sm:$0xff] %v4016_v24  ;;  %v4017_v37 = vpack.c.bf16 %v3821_v45, %v3817_v16  ;;  %v3823_v58 = vmul.f32 %v6985_v36, %v3544_v49  ;;  %v3545_v22 = vcvt.s32.f32 %v3289_v39  ;;  %v3290_v51 = vunpack.c.2.s8 %v3134_v63 }
 0x33b   : > { %v4018_v59 = vpack.c.bf16 %v3826_v21, %v3822_v13  ;;  %v3827_v52 = vmul.f32 %v6985_v36, %v3548_v50  ;;  %v3549_v1 = vcvt.s32.f32 %v3293_v40  ;;  %v3294_v3 = vunpack.c.3.s8 %v3134_v63 }
 0x33c   : > { %4146 = vst [vmem:[#allocation3 + $0x9d8] sm:$0xff] %v4017_v37  ;;  %v3824_v48 = vmul.f32 %v6997_v47, %v3545_v22  ;;  %v3546_v34 = vcvt.s32.f32 %v3290_v51  ;;  %v3295_v31 = vunpack.c.0.s8 %v3135_v30  ;;  %v3299_v5 = vunpack.c.1.s8 %v3135_v30 }
 0x33d   : > { %4147 = vst [vmem:[#allocation3 + $0x9e0] sm:$0xff] %v4018_v59  ;;  %v4019_v53 = vpack.c.bf16 %v3827_v52, %v3823_v58  ;;  %v3828_v10 = vmul.f32 %v6997_v47, %v3549_v1  ;;  %v3550_v62 = vcvt.s32.f32 %v3294_v3  ;;  %v3296_v0 = vunpack.c.0.s8 %v3136_v12 }
 0x33e   : > { %v3825_v61 = vmul.f32 %v7007_v56, %v3546_v34  ;;  %v3551_v4 = vcvt.s32.f32 %v3295_v31  ;;  %v3555_v44 = vcvt.s32.f32 %v3299_v5  ;;  %v3300_v35 = vunpack.c.1.s8 %v3136_v12 }
 0x33f   : > { %4148 = vst [vmem:[#allocation3 + $0x9e8] sm:$0xff] %v4019_v53  ;;  %v4020_v63 = vpack.c.bf16 %v3828_v10, %v3824_v48  ;;  %v3829_v15 = vmul.f32 %v7007_v56, %v3550_v62  ;;  %v3552_v14 = vcvt.s32.f32 %v3296_v0  ;;  %v3297_v41 = vunpack.c.0.s8 %v3137_v20 }
 0x340   : > { %v3830_v8 = vmul.f32 %v6977_v32, %v3551_v4  ;;  %v3834_v2 = vmul.f32 %v6977_v32, %v3555_v44  ;;  %v3556_v60 = vcvt.s32.f32 %v3300_v35  ;;  %v3301_v46 = vunpack.c.1.s8 %v3137_v20 }
 0x341   : > { %4149 = vst [vmem:[#allocation3 + $0x9f0] sm:$0xff] %v4020_v63  ;;  %v4021_v19 = vpack.c.bf16 %v3829_v15, %v3825_v61  ;;  %v3831_v7 = vmul.f32 %v6985_v36, %v3552_v14  ;;  %v3553_v9 = vcvt.s32.f32 %v3297_v41  ;;  %v3298_v54 = vunpack.c.0.s8 %v3138_v29  ;;  %v3142_v63 = vld [vmem:[#allocation8 + $0x538] sm:$0xff] }
 0x342   : > { %v4022_v33 = vpack.c.bf16 %v3834_v2, %v3830_v8  ;;  %v3835_v17 = vmul.f32 %v6985_v36, %v3556_v60  ;;  %v3557_v6 = vcvt.s32.f32 %v3301_v46  ;;  %v3302_v57 = vunpack.c.1.s8 %v3138_v29 }
 0x343   : > { %4150 = vst [vmem:[#allocation3 + $0x9f8] sm:$0xff] %v4021_v19  ;;  %v3832_v55 = vmul.f32 %v6997_v47, %v3553_v9  ;;  %v3554_v18 = vcvt.s32.f32 %v3298_v54  ;;  %v3303_v28 = vunpack.c.2.s8 %v3135_v30  ;;  %v3307_v11 = vunpack.c.3.s8 %v3135_v30  ;;  %v3139_v30 = vld [vmem:[#allocation8 + $0x520] sm:$0xff] }
 0x344   : > { %4151 = vst [vmem:[#allocation3 + $0xa00] sm:$0xff] %v4022_v33  ;;  %v4023_v27 = vpack.c.bf16 %v3835_v17, %v3831_v7  ;;  %v3836_v43 = vmul.f32 %v6997_v47, %v3557_v6  ;;  %v3558_v23 = vcvt.s32.f32 %v3302_v57  ;;  %v3304_v25 = vunpack.c.2.s8 %v3136_v12 }
 0x345   : > { %v3833_v16 = vmul.f32 %v7007_v56, %v3554_v18  ;;  %v3559_v26 = vcvt.s32.f32 %v3303_v28  ;;  %v3563_v38 = vcvt.s32.f32 %v3307_v11  ;;  %v3308_v42 = vunpack.c.3.s8 %v3136_v12  ;;  %v3140_v12 = vld [vmem:[#allocation8 + $0x528] sm:$0xff] }
 0x346   : > { %4152 = vst [vmem:[#allocation3 + $0xa08] sm:$0xff] %v4023_v27  ;;  %v4024_v24 = vpack.c.bf16 %v3836_v43, %v3832_v55  ;;  %v3837_v45 = vmul.f32 %v7007_v56, %v3558_v23  ;;  %v3560_v49 = vcvt.s32.f32 %v3304_v25  ;;  %v3305_v39 = vunpack.c.2.s8 %v3137_v20 }
 0x347   : > { %v3838_v13 = vmul.f32 %v6977_v32, %v3559_v26  ;;  %v3842_v21 = vmul.f32 %v6977_v32, %v3563_v38  ;;  %v3564_v50 = vcvt.s32.f32 %v3308_v42  ;;  %v3309_v40 = vunpack.c.3.s8 %v3137_v20  ;;  %v3141_v20 = vld [vmem:[#allocation8 + $0x530] sm:$0xff] }
 0x348   : > { %4153 = vst [vmem:[#allocation3 + $0xa10] sm:$0xff] %v4024_v24  ;;  %v4025_v37 = vpack.c.bf16 %v3837_v45, %v3833_v16  ;;  %v3839_v58 = vmul.f32 %v6985_v36, %v3560_v49  ;;  %v3561_v22 = vcvt.s32.f32 %v3305_v39  ;;  %v3306_v51 = vunpack.c.2.s8 %v3138_v29 }
 0x349   : > { %v4026_v59 = vpack.c.bf16 %v3842_v21, %v3838_v13  ;;  %v3843_v52 = vmul.f32 %v6985_v36, %v3564_v50  ;;  %v3565_v1 = vcvt.s32.f32 %v3309_v40  ;;  %v3310_v3 = vunpack.c.3.s8 %v3138_v29 }
 0x34a   : > { %4154 = vst [vmem:[#allocation3 + $0xa18] sm:$0xff] %v4025_v37  ;;  %v3840_v48 = vmul.f32 %v6997_v47, %v3561_v22  ;;  %v3562_v34 = vcvt.s32.f32 %v3306_v51  ;;  %v3311_v31 = vunpack.c.0.s8 %v3139_v30  ;;  %v3315_v5 = vunpack.c.1.s8 %v3139_v30 }
 0x34b   : > { %4155 = vst [vmem:[#allocation3 + $0xa20] sm:$0xff] %v4026_v59  ;;  %v4027_v53 = vpack.c.bf16 %v3843_v52, %v3839_v58  ;;  %v3844_v10 = vmul.f32 %v6997_v47, %v3565_v1  ;;  %v3566_v62 = vcvt.s32.f32 %v3310_v3  ;;  %v3312_v0 = vunpack.c.0.s8 %v3140_v12 }
 0x34c   : > { %v3841_v61 = vmul.f32 %v7007_v56, %v3562_v34  ;;  %v3567_v4 = vcvt.s32.f32 %v3311_v31  ;;  %v3571_v44 = vcvt.s32.f32 %v3315_v5  ;;  %v3316_v35 = vunpack.c.1.s8 %v3140_v12 }
 0x34d   : > { %4156 = vst [vmem:[#allocation3 + $0xa28] sm:$0xff] %v4027_v53  ;;  %v4028_v29 = vpack.c.bf16 %v3844_v10, %v3840_v48  ;;  %v3845_v15 = vmul.f32 %v7007_v56, %v3566_v62  ;;  %v3568_v14 = vcvt.s32.f32 %v3312_v0  ;;  %v3313_v41 = vunpack.c.0.s8 %v3141_v20 }
 0x34e   : > { %v3846_v8 = vmul.f32 %v6977_v32, %v3567_v4  ;;  %v3850_v2 = vmul.f32 %v6977_v32, %v3571_v44  ;;  %v3572_v60 = vcvt.s32.f32 %v3316_v35  ;;  %v3317_v46 = vunpack.c.1.s8 %v3141_v20 }
 0x34f   : > { %4157 = vst [vmem:[#allocation3 + $0xa30] sm:$0xff] %v4028_v29  ;;  %v4029_v19 = vpack.c.bf16 %v3845_v15, %v3841_v61  ;;  %v3847_v7 = vmul.f32 %v6985_v36, %v3568_v14  ;;  %v3569_v9 = vcvt.s32.f32 %v3313_v41  ;;  %v3314_v54 = vunpack.c.0.s8 %v3142_v63  ;;  %v3146_v29 = vld [vmem:[#allocation8 + $0x558] sm:$0xff] }
 0x350   : > { %v4030_v33 = vpack.c.bf16 %v3850_v2, %v3846_v8  ;;  %v3851_v17 = vmul.f32 %v6985_v36, %v3572_v60  ;;  %v3573_v6 = vcvt.s32.f32 %v3317_v46  ;;  %v3318_v57 = vunpack.c.1.s8 %v3142_v63 }
 0x351   : > { %4158 = vst [vmem:[#allocation3 + $0xa38] sm:$0xff] %v4029_v19  ;;  %v3848_v55 = vmul.f32 %v6997_v47, %v3569_v9  ;;  %v3570_v18 = vcvt.s32.f32 %v3314_v54  ;;  %v3319_v28 = vunpack.c.2.s8 %v3139_v30  ;;  %v3323_v11 = vunpack.c.3.s8 %v3139_v30  ;;  %v3143_v30 = vld [vmem:[#allocation8 + $0x540] sm:$0xff] }
 0x352   : > { %4159 = vst [vmem:[#allocation3 + $0xa40] sm:$0xff] %v4030_v33  ;;  %v4031_v27 = vpack.c.bf16 %v3851_v17, %v3847_v7  ;;  %v3852_v43 = vmul.f32 %v6997_v47, %v3573_v6  ;;  %v3574_v23 = vcvt.s32.f32 %v3318_v57  ;;  %v3320_v25 = vunpack.c.2.s8 %v3140_v12 }
 0x353   : > { %v3849_v16 = vmul.f32 %v7007_v56, %v3570_v18  ;;  %v3575_v26 = vcvt.s32.f32 %v3319_v28  ;;  %v3579_v38 = vcvt.s32.f32 %v3323_v11  ;;  %v3324_v42 = vunpack.c.3.s8 %v3140_v12  ;;  %v3144_v12 = vld [vmem:[#allocation8 + $0x548] sm:$0xff] }
 0x354   : > { %4160 = vst [vmem:[#allocation3 + $0xa48] sm:$0xff] %v4031_v27  ;;  %v4032_v24 = vpack.c.bf16 %v3852_v43, %v3848_v55  ;;  %v3853_v45 = vmul.f32 %v7007_v56, %v3574_v23  ;;  %v3576_v49 = vcvt.s32.f32 %v3320_v25  ;;  %v3321_v39 = vunpack.c.2.s8 %v3141_v20 }
 0x355   : > { %v3854_v13 = vmul.f32 %v6977_v32, %v3575_v26  ;;  %v3858_v21 = vmul.f32 %v6977_v32, %v3579_v38  ;;  %v3580_v50 = vcvt.s32.f32 %v3324_v42  ;;  %v3325_v40 = vunpack.c.3.s8 %v3141_v20  ;;  %v3145_v20 = vld [vmem:[#allocation8 + $0x550] sm:$0xff] }
 0x356   : > { %4161 = vst [vmem:[#allocation3 + $0xa50] sm:$0xff] %v4032_v24  ;;  %v4033_v37 = vpack.c.bf16 %v3853_v45, %v3849_v16  ;;  %v3855_v58 = vmul.f32 %v6985_v36, %v3576_v49  ;;  %v3577_v22 = vcvt.s32.f32 %v3321_v39  ;;  %v3322_v51 = vunpack.c.2.s8 %v3142_v63 }
 0x357   : > { %v4034_v59 = vpack.c.bf16 %v3858_v21, %v3854_v13  ;;  %v3859_v52 = vmul.f32 %v6985_v36, %v3580_v50  ;;  %v3581_v1 = vcvt.s32.f32 %v3325_v40  ;;  %v3326_v3 = vunpack.c.3.s8 %v3142_v63 }
 0x358   : > { %4162 = vst [vmem:[#allocation3 + $0xa58] sm:$0xff] %v4033_v37  ;;  %v3856_v48 = vmul.f32 %v6997_v47, %v3577_v22  ;;  %v3578_v34 = vcvt.s32.f32 %v3322_v51  ;;  %v3327_v31 = vunpack.c.0.s8 %v3143_v30  ;;  %v3331_v5 = vunpack.c.1.s8 %v3143_v30 }
 0x359   : > { %4163 = vst [vmem:[#allocation3 + $0xa60] sm:$0xff] %v4034_v59  ;;  %v4035_v53 = vpack.c.bf16 %v3859_v52, %v3855_v58  ;;  %v3860_v10 = vmul.f32 %v6997_v47, %v3581_v1  ;;  %v3582_v62 = vcvt.s32.f32 %v3326_v3  ;;  %v3328_v0 = vunpack.c.0.s8 %v3144_v12 }
 0x35a   : > { %v3857_v61 = vmul.f32 %v7007_v56, %v3578_v34  ;;  %v3583_v4 = vcvt.s32.f32 %v3327_v31  ;;  %v3587_v44 = vcvt.s32.f32 %v3331_v5  ;;  %v3332_v35 = vunpack.c.1.s8 %v3144_v12 }
 0x35b   : > { %4164 = vst [vmem:[#allocation3 + $0xa68] sm:$0xff] %v4035_v53  ;;  %v4036_v63 = vpack.c.bf16 %v3860_v10, %v3856_v48  ;;  %v3861_v15 = vmul.f32 %v7007_v56, %v3582_v62  ;;  %v3584_v14 = vcvt.s32.f32 %v3328_v0  ;;  %v3329_v41 = vunpack.c.0.s8 %v3145_v20 }
 0x35c   : > { %v3862_v8 = vmul.f32 %v6977_v32, %v3583_v4  ;;  %v3866_v2 = vmul.f32 %v6977_v32, %v3587_v44  ;;  %v3588_v60 = vcvt.s32.f32 %v3332_v35  ;;  %v3333_v46 = vunpack.c.1.s8 %v3145_v20 }
 0x35d   : > { %4165 = vst [vmem:[#allocation3 + $0xa70] sm:$0xff] %v4036_v63  ;;  %v4037_v19 = vpack.c.bf16 %v3861_v15, %v3857_v61  ;;  %v3863_v7 = vmul.f32 %v6985_v36, %v3584_v14  ;;  %v3585_v9 = vcvt.s32.f32 %v3329_v41  ;;  %v3330_v54 = vunpack.c.0.s8 %v3146_v29  ;;  %v3150_v63 = vld [vmem:[#allocation8 + $0x578] sm:$0xff] }
 0x35e   : > { %v4038_v33 = vpack.c.bf16 %v3866_v2, %v3862_v8  ;;  %v3867_v17 = vmul.f32 %v6985_v36, %v3588_v60  ;;  %v3589_v6 = vcvt.s32.f32 %v3333_v46  ;;  %v3334_v57 = vunpack.c.1.s8 %v3146_v29 }
 0x35f   : > { %4166 = vst [vmem:[#allocation3 + $0xa78] sm:$0xff] %v4037_v19  ;;  %v3864_v55 = vmul.f32 %v6997_v47, %v3585_v9  ;;  %v3586_v18 = vcvt.s32.f32 %v3330_v54  ;;  %v3335_v28 = vunpack.c.2.s8 %v3143_v30  ;;  %v3339_v11 = vunpack.c.3.s8 %v3143_v30  ;;  %v3147_v30 = vld [vmem:[#allocation8 + $0x560] sm:$0xff] }
 0x360   : > { %4167 = vst [vmem:[#allocation3 + $0xa80] sm:$0xff] %v4038_v33  ;;  %v4039_v27 = vpack.c.bf16 %v3867_v17, %v3863_v7  ;;  %v3868_v43 = vmul.f32 %v6997_v47, %v3589_v6  ;;  %v3590_v23 = vcvt.s32.f32 %v3334_v57  ;;  %v3336_v25 = vunpack.c.2.s8 %v3144_v12 }
 0x361   : > { %v3865_v16 = vmul.f32 %v7007_v56, %v3586_v18  ;;  %v3591_v26 = vcvt.s32.f32 %v3335_v28  ;;  %v3595_v38 = vcvt.s32.f32 %v3339_v11  ;;  %v3340_v42 = vunpack.c.3.s8 %v3144_v12  ;;  %v3148_v12 = vld [vmem:[#allocation8 + $0x568] sm:$0xff] }
 0x362   : > { %4168 = vst [vmem:[#allocation3 + $0xa88] sm:$0xff] %v4039_v27  ;;  %v4040_v24 = vpack.c.bf16 %v3868_v43, %v3864_v55  ;;  %v3869_v45 = vmul.f32 %v7007_v56, %v3590_v23  ;;  %v3592_v49 = vcvt.s32.f32 %v3336_v25  ;;  %v3337_v39 = vunpack.c.2.s8 %v3145_v20 }
 0x363   : > { %v3870_v13 = vmul.f32 %v6977_v32, %v3591_v26  ;;  %v3874_v21 = vmul.f32 %v6977_v32, %v3595_v38  ;;  %v3596_v50 = vcvt.s32.f32 %v3340_v42  ;;  %v3341_v40 = vunpack.c.3.s8 %v3145_v20  ;;  %v3149_v20 = vld [vmem:[#allocation8 + $0x570] sm:$0xff] }
 0x364   : > { %4169 = vst [vmem:[#allocation3 + $0xa90] sm:$0xff] %v4040_v24  ;;  %v4041_v37 = vpack.c.bf16 %v3869_v45, %v3865_v16  ;;  %v3871_v58 = vmul.f32 %v6985_v36, %v3592_v49  ;;  %v3593_v22 = vcvt.s32.f32 %v3337_v39  ;;  %v3338_v51 = vunpack.c.2.s8 %v3146_v29 }
 0x365   : > { %v4042_v59 = vpack.c.bf16 %v3874_v21, %v3870_v13  ;;  %v3875_v52 = vmul.f32 %v6985_v36, %v3596_v50  ;;  %v3597_v1 = vcvt.s32.f32 %v3341_v40  ;;  %v3342_v3 = vunpack.c.3.s8 %v3146_v29 }
 0x366   : > { %4170 = vst [vmem:[#allocation3 + $0xa98] sm:$0xff] %v4041_v37  ;;  %v3872_v48 = vmul.f32 %v6997_v47, %v3593_v22  ;;  %v3594_v34 = vcvt.s32.f32 %v3338_v51  ;;  %v3343_v31 = vunpack.c.0.s8 %v3147_v30  ;;  %v3347_v5 = vunpack.c.1.s8 %v3147_v30 }
 0x367   : > { %4171 = vst [vmem:[#allocation3 + $0xaa0] sm:$0xff] %v4042_v59  ;;  %v4043_v53 = vpack.c.bf16 %v3875_v52, %v3871_v58  ;;  %v3876_v10 = vmul.f32 %v6997_v47, %v3597_v1  ;;  %v3598_v62 = vcvt.s32.f32 %v3342_v3  ;;  %v3344_v0 = vunpack.c.0.s8 %v3148_v12 }
 0x368   : > { %v3873_v61 = vmul.f32 %v7007_v56, %v3594_v34  ;;  %v3599_v4 = vcvt.s32.f32 %v3343_v31  ;;  %v3603_v44 = vcvt.s32.f32 %v3347_v5  ;;  %v3348_v35 = vunpack.c.1.s8 %v3148_v12 }
 0x369   : > { %4172 = vst [vmem:[#allocation3 + $0xaa8] sm:$0xff] %v4043_v53  ;;  %v4044_v29 = vpack.c.bf16 %v3876_v10, %v3872_v48  ;;  %v3877_v15 = vmul.f32 %v7007_v56, %v3598_v62  ;;  %v3600_v14 = vcvt.s32.f32 %v3344_v0  ;;  %v3345_v41 = vunpack.c.0.s8 %v3149_v20 }
 0x36a   : > { %v3878_v8 = vmul.f32 %v6977_v32, %v3599_v4  ;;  %v3882_v2 = vmul.f32 %v6977_v32, %v3603_v44  ;;  %v3604_v60 = vcvt.s32.f32 %v3348_v35  ;;  %v3349_v46 = vunpack.c.1.s8 %v3149_v20 }
 0x36b   : > { %4173 = vst [vmem:[#allocation3 + $0xab0] sm:$0xff] %v4044_v29  ;;  %v4045_v19 = vpack.c.bf16 %v3877_v15, %v3873_v61  ;;  %v3879_v7 = vmul.f32 %v6985_v36, %v3600_v14  ;;  %v3601_v9 = vcvt.s32.f32 %v3345_v41  ;;  %v3346_v54 = vunpack.c.0.s8 %v3150_v63  ;;  %v3154_v29 = vld [vmem:[#allocation8 + $0x598] sm:$0xff] }
 0x36c   : > { %v4046_v33 = vpack.c.bf16 %v3882_v2, %v3878_v8  ;;  %v3883_v17 = vmul.f32 %v6985_v36, %v3604_v60  ;;  %v3605_v6 = vcvt.s32.f32 %v3349_v46  ;;  %v3350_v57 = vunpack.c.1.s8 %v3150_v63 }
 0x36d   : > { %4174 = vst [vmem:[#allocation3 + $0xab8] sm:$0xff] %v4045_v19  ;;  %v3880_v55 = vmul.f32 %v6997_v47, %v3601_v9  ;;  %v3602_v18 = vcvt.s32.f32 %v3346_v54  ;;  %v3351_v28 = vunpack.c.2.s8 %v3147_v30  ;;  %v3355_v11 = vunpack.c.3.s8 %v3147_v30  ;;  %v3151_v30 = vld [vmem:[#allocation8 + $0x580] sm:$0xff] }
 0x36e   : > { %4175 = vst [vmem:[#allocation3 + $0xac0] sm:$0xff] %v4046_v33  ;;  %v4047_v27 = vpack.c.bf16 %v3883_v17, %v3879_v7  ;;  %v3884_v43 = vmul.f32 %v6997_v47, %v3605_v6  ;;  %v3606_v23 = vcvt.s32.f32 %v3350_v57  ;;  %v3352_v25 = vunpack.c.2.s8 %v3148_v12 }
 0x36f   : > { %v3881_v16 = vmul.f32 %v7007_v56, %v3602_v18  ;;  %v3607_v26 = vcvt.s32.f32 %v3351_v28  ;;  %v3611_v38 = vcvt.s32.f32 %v3355_v11  ;;  %v3356_v42 = vunpack.c.3.s8 %v3148_v12  ;;  %v3152_v12 = vld [vmem:[#allocation8 + $0x588] sm:$0xff] }
 0x370   : > { %4176 = vst [vmem:[#allocation3 + $0xac8] sm:$0xff] %v4047_v27  ;;  %v4048_v24 = vpack.c.bf16 %v3884_v43, %v3880_v55  ;;  %v3885_v45 = vmul.f32 %v7007_v56, %v3606_v23  ;;  %v3608_v49 = vcvt.s32.f32 %v3352_v25  ;;  %v3353_v39 = vunpack.c.2.s8 %v3149_v20 }
 0x371   : > { %v3886_v13 = vmul.f32 %v6977_v32, %v3607_v26  ;;  %v3890_v21 = vmul.f32 %v6977_v32, %v3611_v38  ;;  %v3612_v50 = vcvt.s32.f32 %v3356_v42  ;;  %v3357_v40 = vunpack.c.3.s8 %v3149_v20  ;;  %v3153_v20 = vld [vmem:[#allocation8 + $0x590] sm:$0xff] }
 0x372   : > { %4177 = vst [vmem:[#allocation3 + $0xad0] sm:$0xff] %v4048_v24  ;;  %v4049_v37 = vpack.c.bf16 %v3885_v45, %v3881_v16  ;;  %v3887_v58 = vmul.f32 %v6985_v36, %v3608_v49  ;;  %v3609_v22 = vcvt.s32.f32 %v3353_v39  ;;  %v3354_v51 = vunpack.c.2.s8 %v3150_v63 }
 0x373   : > { %v4050_v59 = vpack.c.bf16 %v3890_v21, %v3886_v13  ;;  %v3891_v52 = vmul.f32 %v6985_v36, %v3612_v50  ;;  %v3613_v1 = vcvt.s32.f32 %v3357_v40  ;;  %v3358_v3 = vunpack.c.3.s8 %v3150_v63 }
 0x374   : > { %4178 = vst [vmem:[#allocation3 + $0xad8] sm:$0xff] %v4049_v37  ;;  %v3888_v48 = vmul.f32 %v6997_v47, %v3609_v22  ;;  %v3610_v34 = vcvt.s32.f32 %v3354_v51  ;;  %v3359_v31 = vunpack.c.0.s8 %v3151_v30  ;;  %v3363_v5 = vunpack.c.1.s8 %v3151_v30 }
 0x375   : > { %4179 = vst [vmem:[#allocation3 + $0xae0] sm:$0xff] %v4050_v59  ;;  %v4051_v53 = vpack.c.bf16 %v3891_v52, %v3887_v58  ;;  %v3892_v10 = vmul.f32 %v6997_v47, %v3613_v1  ;;  %v3614_v62 = vcvt.s32.f32 %v3358_v3  ;;  %v3360_v0 = vunpack.c.0.s8 %v3152_v12 }
 0x376   : > { %v3889_v61 = vmul.f32 %v7007_v56, %v3610_v34  ;;  %v3615_v4 = vcvt.s32.f32 %v3359_v31  ;;  %v3619_v44 = vcvt.s32.f32 %v3363_v5  ;;  %v3364_v35 = vunpack.c.1.s8 %v3152_v12 }
 0x377   : > { %4180 = vst [vmem:[#allocation3 + $0xae8] sm:$0xff] %v4051_v53  ;;  %v4052_v63 = vpack.c.bf16 %v3892_v10, %v3888_v48  ;;  %v3893_v15 = vmul.f32 %v7007_v56, %v3614_v62  ;;  %v3616_v14 = vcvt.s32.f32 %v3360_v0  ;;  %v3361_v41 = vunpack.c.0.s8 %v3153_v20 }
 0x378   : > { %v3894_v8 = vmul.f32 %v6977_v32, %v3615_v4  ;;  %v3898_v2 = vmul.f32 %v6977_v32, %v3619_v44  ;;  %v3620_v60 = vcvt.s32.f32 %v3364_v35  ;;  %v3365_v46 = vunpack.c.1.s8 %v3153_v20 }
 0x379   : > { %4181 = vst [vmem:[#allocation3 + $0xaf0] sm:$0xff] %v4052_v63  ;;  %v4053_v19 = vpack.c.bf16 %v3893_v15, %v3889_v61  ;;  %v3895_v7 = vmul.f32 %v6985_v36, %v3616_v14  ;;  %v3617_v9 = vcvt.s32.f32 %v3361_v41  ;;  %v3362_v54 = vunpack.c.0.s8 %v3154_v29  ;;  %v3158_v63 = vld [vmem:[#allocation8 + $0x5b8] sm:$0xff] }
 0x37a   : > { %v4054_v33 = vpack.c.bf16 %v3898_v2, %v3894_v8  ;;  %v3899_v17 = vmul.f32 %v6985_v36, %v3620_v60  ;;  %v3621_v6 = vcvt.s32.f32 %v3365_v46  ;;  %v3366_v57 = vunpack.c.1.s8 %v3154_v29 }
 0x37b   : > { %4182 = vst [vmem:[#allocation3 + $0xaf8] sm:$0xff] %v4053_v19  ;;  %v3896_v55 = vmul.f32 %v6997_v47, %v3617_v9  ;;  %v3618_v18 = vcvt.s32.f32 %v3362_v54  ;;  %v3367_v28 = vunpack.c.2.s8 %v3151_v30  ;;  %v3371_v11 = vunpack.c.3.s8 %v3151_v30  ;;  %v3155_v30 = vld [vmem:[#allocation8 + $0x5a0] sm:$0xff] }
 0x37c   : > { %4183 = vst [vmem:[#allocation3 + $0xb00] sm:$0xff] %v4054_v33  ;;  %v4055_v27 = vpack.c.bf16 %v3899_v17, %v3895_v7  ;;  %v3900_v43 = vmul.f32 %v6997_v47, %v3621_v6  ;;  %v3622_v23 = vcvt.s32.f32 %v3366_v57  ;;  %v3368_v25 = vunpack.c.2.s8 %v3152_v12 }
 0x37d   : > { %v3897_v16 = vmul.f32 %v7007_v56, %v3618_v18  ;;  %v3623_v26 = vcvt.s32.f32 %v3367_v28  ;;  %v3627_v38 = vcvt.s32.f32 %v3371_v11  ;;  %v3372_v42 = vunpack.c.3.s8 %v3152_v12  ;;  %v3156_v12 = vld [vmem:[#allocation8 + $0x5a8] sm:$0xff] }
 0x37e   : > { %4184 = vst [vmem:[#allocation3 + $0xb08] sm:$0xff] %v4055_v27  ;;  %v4056_v24 = vpack.c.bf16 %v3900_v43, %v3896_v55  ;;  %v3901_v45 = vmul.f32 %v7007_v56, %v3622_v23  ;;  %v3624_v49 = vcvt.s32.f32 %v3368_v25  ;;  %v3369_v39 = vunpack.c.2.s8 %v3153_v20 }
 0x37f   : > { %v3902_v13 = vmul.f32 %v6977_v32, %v3623_v26  ;;  %v3906_v21 = vmul.f32 %v6977_v32, %v3627_v38  ;;  %v3628_v50 = vcvt.s32.f32 %v3372_v42  ;;  %v3373_v40 = vunpack.c.3.s8 %v3153_v20  ;;  %v3157_v20 = vld [vmem:[#allocation8 + $0x5b0] sm:$0xff] }
 0x380   : > { %4185 = vst [vmem:[#allocation3 + $0xb10] sm:$0xff] %v4056_v24  ;;  %v4057_v37 = vpack.c.bf16 %v3901_v45, %v3897_v16  ;;  %v3903_v58 = vmul.f32 %v6985_v36, %v3624_v49  ;;  %v3625_v22 = vcvt.s32.f32 %v3369_v39  ;;  %v3370_v51 = vunpack.c.2.s8 %v3154_v29 }
 0x381   : > { %v4058_v59 = vpack.c.bf16 %v3906_v21, %v3902_v13  ;;  %v3907_v52 = vmul.f32 %v6985_v36, %v3628_v50  ;;  %v3629_v1 = vcvt.s32.f32 %v3373_v40  ;;  %v3374_v3 = vunpack.c.3.s8 %v3154_v29 }
 0x382   : > { %4186 = vst [vmem:[#allocation3 + $0xb18] sm:$0xff] %v4057_v37  ;;  %v3904_v48 = vmul.f32 %v6997_v47, %v3625_v22  ;;  %v3626_v34 = vcvt.s32.f32 %v3370_v51  ;;  %v3375_v31 = vunpack.c.0.s8 %v3155_v30  ;;  %v3379_v5 = vunpack.c.1.s8 %v3155_v30 }
 0x383   : > { %4187 = vst [vmem:[#allocation3 + $0xb20] sm:$0xff] %v4058_v59  ;;  %v4059_v53 = vpack.c.bf16 %v3907_v52, %v3903_v58  ;;  %v3908_v10 = vmul.f32 %v6997_v47, %v3629_v1  ;;  %v3630_v62 = vcvt.s32.f32 %v3374_v3  ;;  %v3376_v0 = vunpack.c.0.s8 %v3156_v12 }
 0x384   : > { %v3905_v61 = vmul.f32 %v7007_v56, %v3626_v34  ;;  %v3631_v4 = vcvt.s32.f32 %v3375_v31  ;;  %v3635_v44 = vcvt.s32.f32 %v3379_v5  ;;  %v3380_v35 = vunpack.c.1.s8 %v3156_v12 }
 0x385   : > { %4188 = vst [vmem:[#allocation3 + $0xb28] sm:$0xff] %v4059_v53  ;;  %v4060_v29 = vpack.c.bf16 %v3908_v10, %v3904_v48  ;;  %v3909_v15 = vmul.f32 %v7007_v56, %v3630_v62  ;;  %v3632_v14 = vcvt.s32.f32 %v3376_v0  ;;  %v3377_v41 = vunpack.c.0.s8 %v3157_v20 }
 0x386   : > { %v3910_v8 = vmul.f32 %v6977_v32, %v3631_v4  ;;  %v3914_v2 = vmul.f32 %v6977_v32, %v3635_v44  ;;  %v3636_v60 = vcvt.s32.f32 %v3380_v35  ;;  %v3381_v46 = vunpack.c.1.s8 %v3157_v20 }
 0x387   : > { %4189 = vst [vmem:[#allocation3 + $0xb30] sm:$0xff] %v4060_v29  ;;  %v4061_v19 = vpack.c.bf16 %v3909_v15, %v3905_v61  ;;  %v3911_v7 = vmul.f32 %v6985_v36, %v3632_v14  ;;  %v3633_v9 = vcvt.s32.f32 %v3377_v41  ;;  %v3378_v54 = vunpack.c.0.s8 %v3158_v63  ;;  %v3162_v29 = vld [vmem:[#allocation8 + $0x5d8] sm:$0xff] }
 0x388   : > { %v4062_v33 = vpack.c.bf16 %v3914_v2, %v3910_v8  ;;  %v3915_v17 = vmul.f32 %v6985_v36, %v3636_v60  ;;  %v3637_v6 = vcvt.s32.f32 %v3381_v46  ;;  %v3382_v57 = vunpack.c.1.s8 %v3158_v63 }
 0x389   : > { %4190 = vst [vmem:[#allocation3 + $0xb38] sm:$0xff] %v4061_v19  ;;  %v3912_v55 = vmul.f32 %v6997_v47, %v3633_v9  ;;  %v3634_v18 = vcvt.s32.f32 %v3378_v54  ;;  %v3383_v28 = vunpack.c.2.s8 %v3155_v30  ;;  %v3387_v11 = vunpack.c.3.s8 %v3155_v30  ;;  %v3159_v30 = vld [vmem:[#allocation8 + $0x5c0] sm:$0xff] }
 0x38a   : > { %4191 = vst [vmem:[#allocation3 + $0xb40] sm:$0xff] %v4062_v33  ;;  %v4063_v27 = vpack.c.bf16 %v3915_v17, %v3911_v7  ;;  %v3916_v43 = vmul.f32 %v6997_v47, %v3637_v6  ;;  %v3638_v23 = vcvt.s32.f32 %v3382_v57  ;;  %v3384_v25 = vunpack.c.2.s8 %v3156_v12 }
 0x38b   : > { %v3913_v16 = vmul.f32 %v7007_v56, %v3634_v18  ;;  %v3639_v26 = vcvt.s32.f32 %v3383_v28  ;;  %v3643_v38 = vcvt.s32.f32 %v3387_v11  ;;  %v3388_v42 = vunpack.c.3.s8 %v3156_v12  ;;  %v3160_v12 = vld [vmem:[#allocation8 + $0x5c8] sm:$0xff] }
 0x38c   : > { %4192 = vst [vmem:[#allocation3 + $0xb48] sm:$0xff] %v4063_v27  ;;  %v4064_v24 = vpack.c.bf16 %v3916_v43, %v3912_v55  ;;  %v3917_v45 = vmul.f32 %v7007_v56, %v3638_v23  ;;  %v3640_v49 = vcvt.s32.f32 %v3384_v25  ;;  %v3385_v39 = vunpack.c.2.s8 %v3157_v20 }
 0x38d   : > { %v3918_v13 = vmul.f32 %v6977_v32, %v3639_v26  ;;  %v3922_v21 = vmul.f32 %v6977_v32, %v3643_v38  ;;  %v3644_v50 = vcvt.s32.f32 %v3388_v42  ;;  %v3389_v40 = vunpack.c.3.s8 %v3157_v20  ;;  %v3161_v20 = vld [vmem:[#allocation8 + $0x5d0] sm:$0xff] }
 0x38e   : > { %4193 = vst [vmem:[#allocation3 + $0xb50] sm:$0xff] %v4064_v24  ;;  %v4065_v37 = vpack.c.bf16 %v3917_v45, %v3913_v16  ;;  %v3919_v58 = vmul.f32 %v6985_v36, %v3640_v49  ;;  %v3641_v22 = vcvt.s32.f32 %v3385_v39  ;;  %v3386_v51 = vunpack.c.2.s8 %v3158_v63 }
 0x38f   : > { %v4066_v59 = vpack.c.bf16 %v3922_v21, %v3918_v13  ;;  %v3923_v52 = vmul.f32 %v6985_v36, %v3644_v50  ;;  %v3645_v1 = vcvt.s32.f32 %v3389_v40  ;;  %v3390_v3 = vunpack.c.3.s8 %v3158_v63 }
 0x390   : > { %4194 = vst [vmem:[#allocation3 + $0xb58] sm:$0xff] %v4065_v37  ;;  %v3920_v48 = vmul.f32 %v6997_v47, %v3641_v22  ;;  %v3642_v34 = vcvt.s32.f32 %v3386_v51  ;;  %v3391_v31 = vunpack.c.0.s8 %v3159_v30  ;;  %v3395_v5 = vunpack.c.1.s8 %v3159_v30 }
 0x391   : > { %4195 = vst [vmem:[#allocation3 + $0xb60] sm:$0xff] %v4066_v59  ;;  %v4067_v53 = vpack.c.bf16 %v3923_v52, %v3919_v58  ;;  %v3924_v10 = vmul.f32 %v6997_v47, %v3645_v1  ;;  %v3646_v62 = vcvt.s32.f32 %v3390_v3  ;;  %v3392_v0 = vunpack.c.0.s8 %v3160_v12 }
 0x392   : > { %v3921_v61 = vmul.f32 %v7007_v56, %v3642_v34  ;;  %v3647_v4 = vcvt.s32.f32 %v3391_v31  ;;  %v3651_v44 = vcvt.s32.f32 %v3395_v5  ;;  %v3396_v35 = vunpack.c.1.s8 %v3160_v12 }
 0x393   : > { %4196 = vst [vmem:[#allocation3 + $0xb68] sm:$0xff] %v4067_v53  ;;  %v4068_v63 = vpack.c.bf16 %v3924_v10, %v3920_v48  ;;  %v3925_v15 = vmul.f32 %v7007_v56, %v3646_v62  ;;  %v3648_v14 = vcvt.s32.f32 %v3392_v0  ;;  %v3393_v41 = vunpack.c.0.s8 %v3161_v20 }
 0x394   : > { %v3926_v8 = vmul.f32 %v6977_v32, %v3647_v4  ;;  %v3930_v2 = vmul.f32 %v6977_v32, %v3651_v44  ;;  %v3652_v60 = vcvt.s32.f32 %v3396_v35  ;;  %v3397_v46 = vunpack.c.1.s8 %v3161_v20 }
 0x395   : > { %4197 = vst [vmem:[#allocation3 + $0xb70] sm:$0xff] %v4068_v63  ;;  %v4069_v19 = vpack.c.bf16 %v3925_v15, %v3921_v61  ;;  %v3927_v7 = vmul.f32 %v6985_v36, %v3648_v14  ;;  %v3649_v9 = vcvt.s32.f32 %v3393_v41  ;;  %v3394_v54 = vunpack.c.0.s8 %v3162_v29  ;;  %v3166_v63 = vld [vmem:[#allocation8 + $0x5f8] sm:$0xff] }
 0x396   : > { %v4070_v33 = vpack.c.bf16 %v3930_v2, %v3926_v8  ;;  %v3931_v17 = vmul.f32 %v6985_v36, %v3652_v60  ;;  %v3653_v6 = vcvt.s32.f32 %v3397_v46  ;;  %v3398_v57 = vunpack.c.1.s8 %v3162_v29 }
 0x397   : > { %4198 = vst [vmem:[#allocation3 + $0xb78] sm:$0xff] %v4069_v19  ;;  %v3928_v55 = vmul.f32 %v6997_v47, %v3649_v9  ;;  %v3650_v18 = vcvt.s32.f32 %v3394_v54  ;;  %v3399_v28 = vunpack.c.2.s8 %v3159_v30  ;;  %v3403_v11 = vunpack.c.3.s8 %v3159_v30  ;;  %v3163_v30 = vld [vmem:[#allocation8 + $0x5e0] sm:$0xff] }
 0x398   : > { %4199 = vst [vmem:[#allocation3 + $0xb80] sm:$0xff] %v4070_v33  ;;  %v4071_v27 = vpack.c.bf16 %v3931_v17, %v3927_v7  ;;  %v3932_v43 = vmul.f32 %v6997_v47, %v3653_v6  ;;  %v3654_v23 = vcvt.s32.f32 %v3398_v57  ;;  %v3400_v25 = vunpack.c.2.s8 %v3160_v12 }
 0x399   : > { %v3929_v16 = vmul.f32 %v7007_v56, %v3650_v18  ;;  %v3655_v26 = vcvt.s32.f32 %v3399_v28  ;;  %v3659_v38 = vcvt.s32.f32 %v3403_v11  ;;  %v3404_v42 = vunpack.c.3.s8 %v3160_v12  ;;  %v3164_v12 = vld [vmem:[#allocation8 + $0x5e8] sm:$0xff] }
 0x39a   : > { %4200 = vst [vmem:[#allocation3 + $0xb88] sm:$0xff] %v4071_v27  ;;  %v4072_v24 = vpack.c.bf16 %v3932_v43, %v3928_v55  ;;  %v3933_v45 = vmul.f32 %v7007_v56, %v3654_v23  ;;  %v3656_v49 = vcvt.s32.f32 %v3400_v25  ;;  %v3401_v39 = vunpack.c.2.s8 %v3161_v20 }
 0x39b   : > { %v3934_v13 = vmul.f32 %v6977_v32, %v3655_v26  ;;  %v3938_v21 = vmul.f32 %v6977_v32, %v3659_v38  ;;  %v3660_v50 = vcvt.s32.f32 %v3404_v42  ;;  %v3405_v40 = vunpack.c.3.s8 %v3161_v20  ;;  %v3165_v20 = vld [vmem:[#allocation8 + $0x5f0] sm:$0xff] }
 0x39c   : > { %4201 = vst [vmem:[#allocation3 + $0xb90] sm:$0xff] %v4072_v24  ;;  %v4073_v37 = vpack.c.bf16 %v3933_v45, %v3929_v16  ;;  %v3935_v58 = vmul.f32 %v6985_v36, %v3656_v49  ;;  %v3657_v22 = vcvt.s32.f32 %v3401_v39  ;;  %v3402_v51 = vunpack.c.2.s8 %v3162_v29 }
 0x39d   : > { %v4074_v59 = vpack.c.bf16 %v3938_v21, %v3934_v13  ;;  %v3939_v52 = vmul.f32 %v6985_v36, %v3660_v50  ;;  %v3661_v1 = vcvt.s32.f32 %v3405_v40  ;;  %v3406_v3 = vunpack.c.3.s8 %v3162_v29 }
 0x39e   : > { %4202 = vst [vmem:[#allocation3 + $0xb98] sm:$0xff] %v4073_v37  ;;  %v3936_v48 = vmul.f32 %v6997_v47, %v3657_v22  ;;  %v3658_v34 = vcvt.s32.f32 %v3402_v51  ;;  %v3407_v31 = vunpack.c.0.s8 %v3163_v30  ;;  %v3411_v5 = vunpack.c.1.s8 %v3163_v30 }
 0x39f   : > { %4203 = vst [vmem:[#allocation3 + $0xba0] sm:$0xff] %v4074_v59  ;;  %v4075_v53 = vpack.c.bf16 %v3939_v52, %v3935_v58  ;;  %v3940_v10 = vmul.f32 %v6997_v47, %v3661_v1  ;;  %v3662_v62 = vcvt.s32.f32 %v3406_v3  ;;  %v3408_v0 = vunpack.c.0.s8 %v3164_v12 }
 0x3a0   : > { %v3937_v61 = vmul.f32 %v7007_v56, %v3658_v34  ;;  %v3663_v4 = vcvt.s32.f32 %v3407_v31  ;;  %v3667_v44 = vcvt.s32.f32 %v3411_v5  ;;  %v3412_v35 = vunpack.c.1.s8 %v3164_v12 }
 0x3a1   : > { %4204 = vst [vmem:[#allocation3 + $0xba8] sm:$0xff] %v4075_v53  ;;  %v4076_v29 = vpack.c.bf16 %v3940_v10, %v3936_v48  ;;  %v3941_v15 = vmul.f32 %v7007_v56, %v3662_v62  ;;  %v3664_v14 = vcvt.s32.f32 %v3408_v0  ;;  %v3409_v41 = vunpack.c.0.s8 %v3165_v20 }
 0x3a2   : > { %v3942_v8 = vmul.f32 %v6977_v32, %v3663_v4  ;;  %v3946_v2 = vmul.f32 %v6977_v32, %v3667_v44  ;;  %v3668_v60 = vcvt.s32.f32 %v3412_v35  ;;  %v3413_v46 = vunpack.c.1.s8 %v3165_v20 }
 0x3a3   : > { %4205 = vst [vmem:[#allocation3 + $0xbb0] sm:$0xff] %v4076_v29  ;;  %v4077_v19 = vpack.c.bf16 %v3941_v15, %v3937_v61  ;;  %v3943_v7 = vmul.f32 %v6985_v36, %v3664_v14  ;;  %v3665_v9 = vcvt.s32.f32 %v3409_v41  ;;  %v3410_v54 = vunpack.c.0.s8 %v3166_v63 }
 0x3a4   : > { %v4078_v33 = vpack.c.bf16 %v3946_v2, %v3942_v8  ;;  %v3947_v17 = vmul.f32 %v6985_v36, %v3668_v60  ;;  %v3669_v6 = vcvt.s32.f32 %v3413_v46  ;;  %v3414_v57 = vunpack.c.1.s8 %v3166_v63 }
 0x3a5   : > { %4206 = vst [vmem:[#allocation3 + $0xbb8] sm:$0xff] %v4077_v19  ;;  %v3944_v55 = vmul.f32 %v6997_v47, %v3665_v9  ;;  %v3666_v18 = vcvt.s32.f32 %v3410_v54  ;;  %v3415_v28 = vunpack.c.2.s8 %v3163_v30  ;;  %v3419_v11 = vunpack.c.3.s8 %v3163_v30 }
 0x3a6   : > { %4207 = vst [vmem:[#allocation3 + $0xbc0] sm:$0xff] %v4078_v33  ;;  %v4079_v27 = vpack.c.bf16 %v3947_v17, %v3943_v7  ;;  %v3948_v43 = vmul.f32 %v6997_v47, %v3669_v6  ;;  %v3670_v23 = vcvt.s32.f32 %v3414_v57  ;;  %v3416_v25 = vunpack.c.2.s8 %v3164_v12 }
 0x3a7   : > { %v3945_v16 = vmul.f32 %v7007_v56, %v3666_v18  ;;  %v3671_v26 = vcvt.s32.f32 %v3415_v28  ;;  %v3675_v38 = vcvt.s32.f32 %v3419_v11  ;;  %v3420_v42 = vunpack.c.3.s8 %v3164_v12 }
 0x3a8   : > { %4208 = vst [vmem:[#allocation3 + $0xbc8] sm:$0xff] %v4079_v27  ;;  %v4080_v24 = vpack.c.bf16 %v3948_v43, %v3944_v55  ;;  %v3949_v45 = vmul.f32 %v7007_v56, %v3670_v23  ;;  %v3672_v49 = vcvt.s32.f32 %v3416_v25  ;;  %v3417_v39 = vunpack.c.2.s8 %v3165_v20 }
 0x3a9   : > { %v3950_v13 = vmul.f32 %v6977_v32, %v3671_v26  ;;  %v3954_v21 = vmul.f32 %v6977_v32, %v3675_v38  ;;  %v3676_v50 = vcvt.s32.f32 %v3420_v42  ;;  %v3421_v40 = vunpack.c.3.s8 %v3165_v20 }
 0x3aa   : > { %4209 = vst [vmem:[#allocation3 + $0xbd0] sm:$0xff] %v4080_v24  ;;  %v4081_v30 = vpack.c.bf16 %v3949_v45, %v3945_v16  ;;  %v3951_v37 = vmul.f32 %v6985_v36, %v3672_v49  ;;  %v3673_v58 = vcvt.s32.f32 %v3417_v39  ;;  %v3418_v22 = vunpack.c.2.s8 %v3166_v63 }
 0x3ab   : > { %v4082_v51 = vpack.c.bf16 %v3954_v21, %v3950_v13  ;;  %v3955_v12 = vmul.f32 %v6985_v36, %v3676_v50  ;;  %v3677_v59 = vcvt.s32.f32 %v3421_v40  ;;  %v3422_v52 = vunpack.c.3.s8 %v3166_v63 }
 0x3ac   : > { %4210 = vst [vmem:[#allocation3 + $0xbd8] sm:$0xff] %v4081_v30  ;;  %v3952_v1 = vmul.f32 %v6997_v47, %v3673_v58  ;;  %v3674_v3 = vcvt.s32.f32 %v3418_v22 }
 0x3ad   : > { %4211 = vst [vmem:[#allocation3 + $0xbe0] sm:$0xff] %v4082_v51  ;;  %v4083_v48 = vpack.c.bf16 %v3955_v12, %v3951_v37  ;;  %v3956_v32 = vmul.f32 %v6997_v47, %v3677_v59  ;;  %v3678_v34 = vcvt.s32.f32 %v3422_v52 }
 0x3ae   : > { %v3953_v31 = vmul.f32 %v7007_v56, %v3674_v3 }
 0x3af   : > { %4212 = vst [vmem:[#allocation3 + $0xbe8] sm:$0xff] %v4083_v48  ;;  %v4084_v5 = vpack.c.bf16 %v3956_v32, %v3952_v1  ;;  %v3957_v20 = vmul.f32 %v7007_v56, %v3678_v34 }
 0x3b1   : > { %4213 = vst [vmem:[#allocation3 + $0xbf0] sm:$0xff] %v4084_v5  ;;  %v4085_v53 = vpack.c.bf16 %v3957_v20, %v3953_v31 }
 0x3b3   : > { %4214 = vst [vmem:[#allocation3 + $0xbf8] sm:$0xff] %v4085_v53 }
 0x3b4 PF: > { %v4224_v36 = vld [vmem:[#allocation2 + $0x8] sm:$0xff]  ;;  %v4223_v10 = vld [vmem:[#allocation2] sm:$0xff]  ;;  %v4226_v44 = vld [vmem:[#allocation2 + $0x18] sm:$0xff] }
 0x3b5   : > { %v4228_v62 = vld [vmem:[#allocation2 + $0x28] sm:$0xff]  ;;  %4313 = vmatprep.subr.bf16.mxu0 %v4224_v36  ;;  %v4227_v47 = vld [vmem:[#allocation2 + $0x20] sm:$0xff]  ;;  %4366 = vmatprep.subr.bf16.mxu1 %v4226_v44  ;;  %v4225_v35 = vld [vmem:[#allocation2 + $0x10] sm:$0xff] }
 0x3b6   : > { %4314 = vmatpush1.bf16.msra.mxu0 %v4223_v10  ;;  %v4232_v0 = vld [vmem:[#allocation2 + $0x48] sm:$0xff]  ;;  %v4231_v61 = vld [vmem:[#allocation2 + $0x40] sm:$0xff]  ;;  %v4218_v29 = vld [vmem:[%s6936_s6 + $0x18] sm:$0xff]  ;;  %4367 = vmatpush1.bf16.msra.mxu1 %v4225_v35 }
 0x3b7   : > { %4315 = vmatprep.subr.bf16.mxu0 %v4228_v62  ;;  %v4236_v4 = vld [vmem:[#allocation2 + $0x68] sm:$0xff]  ;;  %v4235_v56 = vld [vmem:[#allocation2 + $0x60] sm:$0xff]  ;;  %v4230_v41 = vld [vmem:[#allocation2 + $0x38] sm:$0xff] }
 0x3b8   : > { %v4216_v63 = vld [vmem:[%s6936_s6 + $0x8] sm:$0xff]  ;;  %4368 = vmatprep.subr.bf16.mxu1 %v4230_v41  ;;  %v4229_v8 = vld [vmem:[#allocation2 + $0x30] sm:$0xff]  ;;  %v4234_v2 = vld [vmem:[#allocation2 + $0x58] sm:$0xff] }
 0x3b9   : > { %v4240_v15 = vld [vmem:[#allocation2 + $0x88] sm:$0xff]  ;;  %v4289_v14 = vpack.c.bf16 %v4218_v29, %v4216_v63  ;;  %v4239_v60 = vld [vmem:[#allocation2 + $0x80] sm:$0xff]  ;;  %v4233_v19 = vld [vmem:[#allocation2 + $0x50] sm:$0xff] }
 0x3ba   : > { %4316 = vmatpush1.bf16.msra.mxu0 %v4227_v47  ;;  %v4244_v46 = vld [vmem:[#allocation2 + $0xa8] sm:$0xff]  ;;  %4369 = vmatpush1.bf16.msra.mxu1 %v4229_v8  ;;  %v4238_v7 = vld [vmem:[#allocation2 + $0x78] sm:$0xff]  ;;  %v4243_v9 = vld [vmem:[#allocation2 + $0xa0] sm:$0xff] }
 0x3bb   : > { %4317 = vmatprep.subr.bf16.mxu0 %v4232_v0  ;;  %4345 = vmatprep.mubr.bf16.mxu0 %v4289_v14  ;;  %v4248_v54 = vld [vmem:[#allocation2 + $0xc8] sm:$0xff]  ;;  %v4237_v33 = vld [vmem:[#allocation2 + $0x70] sm:$0xff]  ;;  %v4242_v17 = vld [vmem:[#allocation2 + $0x98] sm:$0xff] }
 0x3bc   : > { %4398 = vmatprep.mubr.bf16.mxu1 %v4289_v14  ;;  %4370 = vmatprep.subr.bf16.mxu1 %v4234_v2  ;;  %v4247_v6 = vld [vmem:[#allocation2 + $0xc0] sm:$0xff]  ;;  %v4252_v57 = vld [vmem:[#allocation2 + $0xe8] sm:$0xff]  ;;  %v4241_v55 = vld [vmem:[#allocation2 + $0x90] sm:$0xff] }
 0x3bd   : > { %v4246_v18 = vld [vmem:[#allocation2 + $0xb8] sm:$0xff]  ;;  %v4251_v28 = vld [vmem:[#allocation2 + $0xe0] sm:$0xff]  ;;  %v4256_v11 = vld [vmem:[#allocation2 + $0x108] sm:$0xff] }
 0x3be   : > { %4318 = vmatpush1.bf16.msra.mxu0 %v4231_v61  ;;  %4371 = vmatpush1.bf16.msra.mxu1 %v4233_v19  ;;  %v4245_v27 = vld [vmem:[#allocation2 + $0xb0] sm:$0xff]  ;;  %v4250_v43 = vld [vmem:[#allocation2 + $0xd8] sm:$0xff]  ;;  %v4255_v23 = vld [vmem:[#allocation2 + $0x100] sm:$0xff] }
 0x3bf   : > { %4319 = vmatprep.subr.bf16.mxu0 %v4236_v4  ;;  %4372 = vmatprep.subr.bf16.mxu1 %v4238_v7  ;;  %v4260_v25 = vld [vmem:[#allocation2 + $0x128] sm:$0xff]  ;;  %v4249_v16 = vld [vmem:[#allocation2 + $0xd0] sm:$0xff]  ;;  %v4254_v26 = vld [vmem:[#allocation2 + $0xf8] sm:$0xff] }
 0x3c0   : > { %v4259_v38 = vld [vmem:[#allocation2 + $0x120] sm:$0xff]  ;;  %v4264_v42 = vld [vmem:[#allocation2 + $0x148] sm:$0xff]  ;;  %v4253_v24 = vld [vmem:[#allocation2 + $0xf0] sm:$0xff] }
 0x3c1   : > { %v4258_v45 = vld [vmem:[#allocation2 + $0x118] sm:$0xff]  ;;  %v4263_v49 = vld [vmem:[#allocation2 + $0x140] sm:$0xff]  ;;  %v4268_v39 = vld [vmem:[#allocation2 + $0x168] sm:$0xff] }
 0x3c2   : > { %4320 = vmatpush1.bf16.msra.mxu0 %v4235_v56  ;;  %4373 = vmatpush1.bf16.msra.mxu1 %v4237_v33  ;;  %v4257_v13 = vld [vmem:[#allocation2 + $0x110] sm:$0xff]  ;;  %v4267_v21 = vld [vmem:[#allocation2 + $0x160] sm:$0xff]  ;;  %v4272_v50 = vld [vmem:[#allocation2 + $0x188] sm:$0xff] }
 0x3c3   : > { %4321 = vmatprep.subr.bf16.mxu0 %v4240_v15  ;;  %4374 = vmatprep.subr.bf16.mxu1 %v4242_v17  ;;  %v4262_v40 = vld [vmem:[#allocation2 + $0x138] sm:$0xff]  ;;  %v4261_v30 = vld [vmem:[#allocation2 + $0x130] sm:$0xff]  ;;  %v4271_v58 = vld [vmem:[#allocation2 + $0x180] sm:$0xff] }
 0x3c4   : > { %v4266_v37 = vld [vmem:[#allocation2 + $0x158] sm:$0xff]  ;;  %v4276_v22 = vld [vmem:[#allocation2 + $0x1a8] sm:$0xff]  ;;  %v4265_v51 = vld [vmem:[#allocation2 + $0x150] sm:$0xff] }
 0x3c5   : > { %v4270_v12 = vld [vmem:[#allocation2 + $0x178] sm:$0xff]  ;;  %v4275_v59 = vld [vmem:[#allocation2 + $0x1a0] sm:$0xff]  ;;  %v4280_v52 = vld [vmem:[#allocation2 + $0x1c8] sm:$0xff] }
 0x3c6   : > { %4322 = vmatpush1.bf16.msra.mxu0 %v4239_v60  ;;  %4375 = vmatpush1.bf16.msra.mxu1 %v4241_v55  ;;  %v4269_v1 = vld [vmem:[#allocation2 + $0x170] sm:$0xff]  ;;  %v4274_v3 = vld [vmem:[#allocation2 + $0x198] sm:$0xff]  ;;  %v4279_v48 = vld [vmem:[#allocation2 + $0x1c0] sm:$0xff] }
 0x3c7   : > { %4323 = vmatprep.subr.bf16.mxu0 %v4244_v46  ;;  %4376 = vmatprep.subr.bf16.mxu1 %v4246_v18  ;;  %v4284_v32 = vld [vmem:[#allocation2 + $0x1e8] sm:$0xff]  ;;  %v4273_v34 = vld [vmem:[#allocation2 + $0x190] sm:$0xff]  ;;  %v4215_v31 = vld [vmem:[%s6936_s6] sm:$0xff] }
 0x3c8   : > { %v4217_v5 = vld [vmem:[%s6936_s6 + $0x10] sm:$0xff]  ;;  %v4278_v20 = vld [vmem:[#allocation2 + $0x1b8] sm:$0xff]  ;;  %v4283_v53 = vld [vmem:[#allocation2 + $0x1e0] sm:$0xff] }
 0x3c9   : > { %v4220_v36 = vld [vmem:[%s6936_s6 + $0x28] sm:$0xff]  ;;  %v4222_v10 = vld [vmem:[%s6936_s6 + $0x38] sm:$0xff]  ;;  %v4277_v47 = vld [vmem:[#allocation2 + $0x1b0] sm:$0xff]  ;;  %v4288_v61 = vpack.c.bf16 %v4217_v5, %v4215_v31 }
 0x3ca   : > { %4324 = vmatpush1.bf16.msra.mxu0 %v4243_v9  ;;  %4377 = vmatpush1.bf16.msra.mxu1 %v4245_v27  ;;  %v4420_v62 = vld [vmem:[#allocation3 + $0x8] sm:$0xff]  ;;  %v4282_v0 = vld [vmem:[#allocation2 + $0x1d8] sm:$0xff]  ;;  %v4419_v4 = vld [vmem:[#allocation3] sm:$0xff]  ;;  %v4291_v56 = vpack.c.bf16 %v4222_v10, %v4220_v36 }
 0x3cb   : > { %4325 = vmatprep.subr.bf16.mxu0 %v4248_v54  ;;  %4378 = vmatprep.subr.bf16.mxu1 %v4250_v43  ;;  %v4424_v44 = vld [vmem:[#allocation3 + $0x28] sm:$0xff]  ;;  %v4281_v35 = vld [vmem:[#allocation2 + $0x1d0] sm:$0xff]  ;;  %v4219_v63 = vld [vmem:[%s6936_s6 + $0x20] sm:$0xff] }
 0x3cc   : > { %v4221_v29 = vld [vmem:[%s6936_s6 + $0x30] sm:$0xff]  ;;  %v4286_v15 = vld [vmem:[#allocation2 + $0x1f8] sm:$0xff]  ;;  %v4423_v14 = vld [vmem:[#allocation3 + $0x20] sm:$0xff] }
 0x3cd   : > { %v4428_v41 = vld [vmem:[#allocation3 + $0x48] sm:$0xff]  ;;  %v4290_v8 = vpack.c.bf16 %v4221_v29, %v4219_v63  ;;  %v4285_v2 = vld [vmem:[#allocation2 + $0x1f0] sm:$0xff]  ;;  %v4422_v60 = vld [vmem:[#allocation3 + $0x18] sm:$0xff] }
 0x3ce   : > { %4326 = vmatpush1.bf16.msra.mxu0 %v4247_v6  ;;  %4379 = vmatpush1.bf16.msra.mxu1 %v4249_v16  ;;  %v4427_v46 = vld [vmem:[#allocation3 + $0x40] sm:$0xff]  ;;  %v4432_v19 = vld [vmem:[#allocation3 + $0x68] sm:$0xff]  ;;  %v4421_v7 = vld [vmem:[#allocation3 + $0x10] sm:$0xff] }
 0x3cf   : > { %4327 = vmatprep.subr.bf16.mxu0 %v4252_v57  ;;  %4380 = vmatprep.subr.bf16.mxu1 %v4254_v26  ;;  %v4426_v9 = vld [vmem:[#allocation3 + $0x38] sm:$0xff]  ;;  %v4431_v54 = vld [vmem:[#allocation3 + $0x60] sm:$0xff]  ;;  %v4436_v33 = vld [vmem:[#allocation3 + $0x88] sm:$0xff] }
 0x3d0   : > { %v4425_v17 = vld [vmem:[#allocation3 + $0x30] sm:$0xff]  ;;  %v4430_v6 = vld [vmem:[#allocation3 + $0x58] sm:$0xff]  ;;  %v4435_v57 = vld [vmem:[#allocation3 + $0x80] sm:$0xff] }
 0x3d1   : > { %v4440_v55 = vld [vmem:[#allocation3 + $0xa8] sm:$0xff]  ;;  %v4429_v18 = vld [vmem:[#allocation3 + $0x50] sm:$0xff]  ;;  %v4466_v5 = vld [vmem:[#allocation3 + $0x178] sm:$0xff] }
 0x3d2   : > { %4328 = vmatpush1.bf16.msra.mxu0 %v4251_v28  ;;  %4381 = vmatpush1.bf16.msra.mxu1 %v4253_v24  ;;  %v4434_v28 = vld [vmem:[#allocation3 + $0x78] sm:$0xff]  ;;  %v4444_v27 = vld [vmem:[#allocation3 + $0xc8] sm:$0xff]  ;;  %v4433_v43 = vld [vmem:[#allocation3 + $0x70] sm:$0xff] }
 0x3d3   : > { %4329 = vmatprep.subr.bf16.mxu0 %v4256_v11  ;;  %4382 = vmatprep.subr.bf16.mxu1 %v4258_v45  ;;  %v4439_v11 = vld [vmem:[#allocation3 + $0xa0] sm:$0xff]  ;;  %v4448_v16 = vld [vmem:[#allocation3 + $0xe8] sm:$0xff]  ;;  %v4437_v26 = vld [vmem:[#allocation3 + $0x90] sm:$0xff] }
 0x3d4   : > { %v4452_v24 = vld [vmem:[#allocation3 + $0x108] sm:$0xff]  ;;  %v4441_v45 = vld [vmem:[#allocation3 + $0xb0] sm:$0xff]  ;;  %v4470_v36 = vld [vmem:[#allocation3 + $0x198] sm:$0xff] }
 0x3d5   : > { %v4461_v31 = vld [vmem:[#allocation3 + $0x150] sm:$0xff]  ;;  %v4479_v63 = vld [vmem:[#allocation3 + $0x1e0] sm:$0xff] }
 0x3d6   : > { %4330 = vmatpush1.bf16.msra.mxu0 %v4255_v23  ;;  %4383 = vmatpush1.bf16.msra.mxu1 %v4257_v13  ;;  %v4438_v23 = vld [vmem:[#allocation3 + $0x98] sm:$0xff]  ;;  %v4456_v13 = vld [vmem:[#allocation3 + $0x128] sm:$0xff]  ;;  %v4469_v10 = vld [vmem:[#allocation3 + $0x190] sm:$0xff] }
 0x3d7   : > { %4331 = vmatprep.subr.bf16.mxu0 %v4260_v25  ;;  %4384 = vmatprep.subr.bf16.mxu1 %v4262_v40  ;;  %v4443_v25 = vld [vmem:[#allocation3 + $0xc0] sm:$0xff]  ;;  %v4481_v29 = vld [vmem:[#allocation3 + $0x1f0] sm:$0xff] }
 0x3d8   : > { %v4455_v40 = vld [vmem:[#allocation3 + $0x120] sm:$0xff] }
 0x3da   : > { %4332 = vmatpush1.bf16.msra.mxu0 %v4259_v38  ;;  %4385 = vmatpush1.bf16.msra.mxu1 %v4261_v30  ;;  %v4442_v38 = vld [vmem:[#allocation3 + $0xb8] sm:$0xff]  ;;  %v4460_v30 = vld [vmem:[#allocation3 + $0x148] sm:$0xff] }
 0x3db   : > { %4333 = vmatprep.subr.bf16.mxu0 %v4264_v42  ;;  %4386 = vmatprep.subr.bf16.mxu1 %v4266_v37  ;;  %v4447_v42 = vld [vmem:[#allocation3 + $0xe0] sm:$0xff]  ;;  %v4449_v37 = vld [vmem:[#allocation3 + $0xf0] sm:$0xff] }
 0x3de   : > { %4334 = vmatpush1.bf16.msra.mxu0 %v4263_v49  ;;  %4387 = vmatpush1.bf16.msra.mxu1 %v4265_v51  ;;  %v4446_v49 = vld [vmem:[#allocation3 + $0xd8] sm:$0xff]  ;;  %v4464_v51 = vld [vmem:[#allocation3 + $0x168] sm:$0xff] }
 0x3df   : > { %4335 = vmatprep.subr.bf16.mxu0 %v4268_v39  ;;  %4388 = vmatprep.subr.bf16.mxu1 %v4270_v12  ;;  %v4451_v39 = vld [vmem:[#allocation3 + $0x100] sm:$0xff]  ;;  %v4453_v12 = vld [vmem:[#allocation3 + $0x110] sm:$0xff] }
 0x3e2   : > { %4336 = vmatpush1.bf16.msra.mxu0 %v4267_v21  ;;  %4389 = vmatpush1.bf16.msra.mxu1 %v4269_v1  ;;  %v4445_v21 = vld [vmem:[#allocation3 + $0xd0] sm:$0xff]  ;;  %v4468_v1 = vld [vmem:[#allocation3 + $0x188] sm:$0xff] }
 0x3e3   : > { %4337 = vmatprep.subr.bf16.mxu0 %v4272_v50  ;;  %4390 = vmatprep.subr.bf16.mxu1 %v4274_v3  ;;  %v4450_v50 = vld [vmem:[#allocation3 + $0xf8] sm:$0xff]  ;;  %v4457_v3 = vld [vmem:[#allocation3 + $0x130] sm:$0xff] }
 0x3e6   : > { %4338 = vmatpush1.bf16.msra.mxu0 %v4271_v58  ;;  %4391 = vmatpush1.bf16.msra.mxu1 %v4273_v34  ;;  %v4454_v58 = vld [vmem:[#allocation3 + $0x118] sm:$0xff]  ;;  %v4472_v34 = vld [vmem:[#allocation3 + $0x1a8] sm:$0xff] }
 0x3e7   : > { %4339 = vmatprep.subr.bf16.mxu0 %v4276_v22  ;;  %4392 = vmatprep.subr.bf16.mxu1 %v4278_v20  ;;  %v4459_v22 = vld [vmem:[#allocation3 + $0x140] sm:$0xff] }
 0x3e8   : > { %v4471_v20 = vld [vmem:[#allocation3 + $0x1a0] sm:$0xff] }
 0x3ea   : > { %4340 = vmatpush1.bf16.msra.mxu0 %v4275_v59  ;;  %4393 = vmatpush1.bf16.msra.mxu1 %v4277_v47  ;;  %v4458_v59 = vld [vmem:[#allocation3 + $0x138] sm:$0xff]  ;;  %v4473_v47 = vld [vmem:[#allocation3 + $0x1b0] sm:$0xff] }
 0x3eb   : > { %4341 = vmatprep.subr.bf16.mxu0 %v4280_v52  ;;  %4394 = vmatprep.subr.bf16.mxu1 %v4282_v0  ;;  %v4463_v52 = vld [vmem:[#allocation3 + $0x160] sm:$0xff]  ;;  %v4476_v0 = vld [vmem:[#allocation3 + $0x1c8] sm:$0xff] }
 0x3ee   : > { %4342 = vmatpush1.bf16.msra.mxu0 %v4279_v48  ;;  %4395 = vmatpush1.bf16.msra.mxu1 %v4281_v35  ;;  %v4462_v48 = vld [vmem:[#allocation3 + $0x158] sm:$0xff] }
 0x3ef   : > { %4343 = vmatprep.subr.bf16.mxu0 %v4284_v32  ;;  %4396 = vmatprep.subr.bf16.mxu1 %v4286_v15  ;;  %v4467_v32 = vld [vmem:[#allocation3 + $0x180] sm:$0xff]  ;;  %v4482_v35 = vld [vmem:[#allocation3 + $0x1f8] sm:$0xff]  ;;  %v4484_v15 = vld [vmem:[#allocation3 + $0x208] sm:$0xff] }
 0x3f2   : > { %4344 = vmatpush1.bf16.msra.mxu0 %v4283_v53  ;;  %4397 = vmatpush1.bf16.msra.mxu1 %v4285_v2  ;;  %v4465_v53 = vld [vmem:[#allocation3 + $0x170] sm:$0xff] }
 0x3f3   : > { %4578 = vmatprep.subr.bf16.mxu0 %v4420_v62  ;;  %4684 = vmatprep.subr.bf16.mxu1 %v4422_v60  ;;  %v4474_v62 = vld [vmem:[#allocation3 + $0x1b8] sm:$0xff] }
 0x3f4   : > { %v7917_v60 = vld [vmem:[#allocation11] ss:$8 sm:$0xf] }
 0x3f5   : > { %4346 = vmatmul.mubr.bf16.vlgmr.msra.gmra.mrb[0].mxu0 %v4288_v61  ;;  %4399 = vmatmul.mubr.bf16.vlgmr.msra.gmra.mrb[0].mxu1 %v4288_v61  ;;  %v4478_v61 = vld [vmem:[#allocation3 + $0x1d8] sm:$0xff] }
 0x3f6   : > { %4355 = vmatprep.mubr.bf16.mxu0 %v4291_v56  ;;  %4579 = vmatpush1.bf16.msra.mxu0 %v4419_v4  ;;  %v4475_v4 = vld [vmem:[#allocation3 + $0x1c0] sm:$0xff] }
 0x3f7   : > { %4580 = vmatprep.subr.bf16.mxu0 %v4424_v44  ;;  %4408 = vmatprep.mubr.bf16.mxu1 %v4291_v56  ;;  %v4477_v56 = vld [vmem:[#allocation3 + $0x1d0] sm:$0xff]  ;;  %v4480_v44 = vld [vmem:[#allocation3 + $0x1e8] sm:$0xff] }
 0x3f8   : > { %4685 = vmatpush1.bf16.msra.mxu1 %v4421_v7 }
 0x3f9   : > { %4686 = vmatprep.subr.bf16.mxu1 %v4426_v9 }
 0x3fa   : > { %4581 = vmatpush1.bf16.msra.mxu0 %v4423_v14  ;;  %v4486_v14 = vld [vmem:[#allocation3 + $0x218] sm:$0xff] }
 0x3fb   : > { %4582 = vmatprep.subr.bf16.mxu0 %v4428_v41  ;;  %v4293_v41 = vlaneseq }
 0x3fc   : > { %4687 = vmatpush1.bf16.msra.mxu1 %v4425_v17 }
 0x3fd   : > { %4356 = vmatmul.mubr.bf16.gmra.mrb[4].mxu0 %v4290_v8  ;;  %4688 = vmatprep.subr.bf16.mxu1 %v4430_v6 }
 0x3fe   : > { %4583 = vmatpush1.bf16.msra.mxu0 %v4427_v46  ;;  %4409 = vmatmul.mubr.bf16.gmra.mrb[4].mxu1 %v4290_v8  ;;  %v7912_v8 = vshrl.u32 %v4293_v41, 7  ;;  %v4507_v41 = vld [vmem:[#allocation3 + $0x2c0] sm:$0xff] }
 0x3ff   : > { %4584 = vmatprep.subr.bf16.mxu0 %v4432_v19 }
 0x400   : > { %4689 = vmatpush1.bf16.msra.mxu1 %v4429_v18  ;;  %v7915_v2 = vsub.s32 1, %v7912_v8  ;;  %v7920_v46 = vsub.s32 0, %v7912_v8  ;;  %v7933_v18 = vsub.s32 3, %v7912_v8 }
 0x401   : > { %4690 = vmatprep.subr.bf16.mxu1 %v4434_v28 }
 0x402   : > { %4585 = vmatpush1.bf16.msra.mxu0 %v4431_v54  ;;  %v4300_v7 = vrot.slane %v7917_v60, %v7915_v2  ;;  %v4296_v9 = vrot.slane %v7917_v60, %v7920_v46 }
 0x403   : > { %4586 = vmatprep.subr.bf16.mxu0 %v4436_v33 }
 0x404   : > { %4691 = vmatpush1.bf16.msra.mxu1 %v4433_v43  ;;  %v4483_v43 = vld [vmem:[#allocation3 + $0x200] sm:$0xff] }
 0x405   : > { %4692 = vmatprep.subr.bf16.mxu1 %v4438_v23  ;;  %v4485_v23 = vld [vmem:[#allocation3 + $0x210] sm:$0xff] }
 0x406   : > { %4587 = vmatpush1.bf16.msra.mxu0 %v4435_v57 }
 0x407   : > { %4588 = vmatprep.subr.bf16.mxu0 %v4440_v55 }
 0x408   : > { %4693 = vmatpush1.bf16.msra.mxu1 %v4437_v26 }
 0x409   : > { %4694 = vmatprep.subr.bf16.mxu1 %v4442_v38  ;;  %v7943_v38 = vrot.slane %v7917_v60, %v7933_v18 }
 0x40a   : > { %4589 = vmatpush1.bf16.msra.mxu0 %v4439_v11 }
 0x40b   : > { %4590 = vmatprep.subr.bf16.mxu0 %v4444_v27 }
 0x40c   : > { %4695 = vmatpush1.bf16.msra.mxu1 %v4441_v45 }
 0x40d   : > { %4696 = vmatprep.subr.bf16.mxu1 %v4446_v49 }
 0x40e   : > { %4591 = vmatpush1.bf16.msra.mxu0 %v4443_v25  ;;  %v4488_v25 = vld [vmem:[#allocation3 + $0x228] sm:$0xff] }
 0x40f   : > { %4592 = vmatprep.subr.bf16.mxu0 %v4448_v16  ;;  %v4490_v16 = vld [vmem:[#allocation3 + $0x238] sm:$0xff] }
 0x410   : > { %4697 = vmatpush1.bf16.msra.mxu1 %v4445_v21  ;;  %v4489_v21 = vld [vmem:[#allocation3 + $0x230] sm:$0xff] }
 0x411   : > { %4698 = vmatprep.subr.bf16.mxu1 %v4450_v50 }
 0x412   : > { %4593 = vmatpush1.bf16.msra.mxu0 %v4447_v42 }
 0x413   : > { %4594 = vmatprep.subr.bf16.mxu0 %v4452_v24 }
 0x414   : > { %4699 = vmatpush1.bf16.msra.mxu1 %v4449_v37  ;;  %v4492_v37 = vld [vmem:[#allocation3 + $0x248] sm:$0xff] }
 0x415   : > { %4700 = vmatprep.subr.bf16.mxu1 %v4454_v58  ;;  %v4494_v58 = vld [vmem:[#allocation3 + $0x258] sm:$0xff] }
 0x416   : > { %4595 = vmatpush1.bf16.msra.mxu0 %v4451_v39 }
 0x417   : > { %4596 = vmatprep.subr.bf16.mxu0 %v4456_v13  ;;  %v4487_v13 = vld [vmem:[#allocation3 + $0x220] sm:$0xff] }
 0x418   : > { %4701 = vmatpush1.bf16.msra.mxu1 %v4453_v12 }
 0x419   : > { %4702 = vmatprep.subr.bf16.mxu1 %v4458_v59 }
 0x41a   : > { %4597 = vmatpush1.bf16.msra.mxu0 %v4455_v40 }
 0x41b   : > { %4598 = vmatprep.subr.bf16.mxu0 %v4460_v30 }
 0x41c   : > { %4703 = vmatpush1.bf16.msra.mxu1 %v4457_v3 }
 0x41d   : > { %4704 = vmatprep.subr.bf16.mxu1 %v4462_v48  ;;  %v4491_v48 = vld [vmem:[#allocation3 + $0x240] sm:$0xff] }
 0x41e   : > { %4599 = vmatpush1.bf16.msra.mxu0 %v4459_v22 }
 0x41f   : > { %4600 = vmatprep.subr.bf16.mxu0 %v4464_v51 }
 0x420   : > { %4705 = vmatpush1.bf16.msra.mxu1 %v4461_v31  ;;  %v4498_v31 = vld [vmem:[#allocation3 + $0x278] sm:$0xff] }
 0x421   : > { %4706 = vmatprep.subr.bf16.mxu1 %v4466_v5 }
 0x422   : > { %4601 = vmatpush1.bf16.msra.mxu0 %v4463_v52 }
 0x423   : > { %4602 = vmatprep.subr.bf16.mxu0 %v4468_v1 }
 0x424   : > { %4707 = vmatpush1.bf16.msra.mxu1 %v4465_v53  ;;  %v4495_v53 = vld [vmem:[#allocation3 + $0x260] sm:$0xff] }
 0x425   : > { %4708 = vmatprep.subr.bf16.mxu1 %v4470_v36  ;;  %v4497_v36 = vld [vmem:[#allocation3 + $0x270] sm:$0xff] }
 0x426   : > { %4603 = vmatpush1.bf16.msra.mxu0 %v4467_v32  ;;  %v4493_v32 = vld [vmem:[#allocation3 + $0x250] sm:$0xff] }
 0x427   : > { %4604 = vmatprep.subr.bf16.mxu0 %v4472_v34  ;;  %v4496_v34 = vld [vmem:[#allocation3 + $0x268] sm:$0xff] }
 0x428   : > { %4709 = vmatpush1.bf16.msra.mxu1 %v4469_v10 }
 0x429   : > { %4710 = vmatprep.subr.bf16.mxu1 %v4474_v62  ;;  %v4500_v62 = vld [vmem:[#allocation3 + $0x288] sm:$0xff] }
 0x42a   : > { %4605 = vmatpush1.bf16.msra.mxu0 %v4471_v20 }
 0x42b   : > { %4606 = vmatprep.subr.bf16.mxu0 %v4476_v0 }
 0x42c   : > { %4711 = vmatpush1.bf16.msra.mxu1 %v4473_v47  ;;  %v4502_v47 = vld [vmem:[#allocation3 + $0x298] sm:$0xff] }
 0x42d   : > { %4712 = vmatprep.subr.bf16.mxu1 %v4478_v61 }
 0x42e   : > { %4607 = vmatpush1.bf16.msra.mxu0 %v4475_v4  ;;  %v4499_v4 = vld [vmem:[#allocation3 + $0x280] sm:$0xff] }
 0x42f   : > { %4608 = vmatprep.subr.bf16.mxu0 %v4480_v44  ;;  %v4504_v44 = vld [vmem:[#allocation3 + $0x2a8] sm:$0xff] }
 0x430   : > { %4713 = vmatpush1.bf16.msra.mxu1 %v4477_v56  ;;  %v4501_v56 = vld [vmem:[#allocation3 + $0x290] sm:$0xff] }
 0x431   : > { %4714 = vmatprep.subr.bf16.mxu1 %v4482_v35  ;;  %v4506_v35 = vld [vmem:[#allocation3 + $0x2b8] sm:$0xff] }
 0x432   : > { %4609 = vmatpush1.bf16.msra.mxu0 %v4479_v63  ;;  %v4503_v63 = vld [vmem:[#allocation3 + $0x2a0] sm:$0xff] }
 0x433   : > { %4631 = vmatprep.subr.bf16.mxu0 %v4484_v15  ;;  %v4508_v15 = vld [vmem:[#allocation3 + $0x2c8] sm:$0xff] }
 0x434   : > { %4715 = vmatpush1.bf16.msra.mxu1 %v4481_v29  ;;  %v4505_v29 = vld [vmem:[#allocation3 + $0x2b0] sm:$0xff] }
 0x435   : > { %4737 = vmatprep.subr.bf16.mxu1 %v4486_v14  ;;  %v4510_v14 = vld [vmem:[#allocation3 + $0x2d8] sm:$0xff] }
 0x4c8   : > { %v4347_v19 = vpop.f32.mrb[0].mxu0  ;;  %v7949_v39 = vpop.f32.mrb[0].mxu1 }
 0x4c9   : > { %v4349_v54 = vpop.f32.mrb[1].mxu0  ;;  %v7935_v28 = vadd.f32 %v4347_v19, %v4296_v9  ;;  %v4402_v30 = vpop.f32.mrb[1].mxu1  ;;  %v4509_v19 = vld [vmem:[#allocation3 + $0x2d0] sm:$0xff] }
 0x4ca   : > { %v4351_v33 = vpop.f32.mrb[2].mxu0  ;;  %v7928_v57 = vadd.f32 %v4349_v54, %v4300_v7  ;;  %v7956_v51 = vadd.f32 %v4402_v30, %v7943_v38  ;;  %v7958_v12 = vpop.f32.mrb[2].mxu1  ;;  %v4511_v54 = vld [vmem:[#allocation3 + $0x2e0] sm:$0xff]  ;;  %v4530_v30 = vld [vmem:[#allocation3 + $0x378] sm:$0xff] }
 0x4cb   : > { %v7926_v17 = vadd.f32 %v4351_v33, %v4296_v9  ;;  %v4353_v6 = vpop.f32.mrb[3].mxu0  ;;  %v4406_v52 = vpop.f32.mrb[3].mxu1  ;;  %v4513_v33 = vld [vmem:[#allocation3 + $0x2f0] sm:$0xff] }
 0x4cc   : > { %v7930_v55 = vadd.f32 %v4353_v6, %v4300_v7  ;;  %v7965_v3 = vadd.f32 %v4406_v52, %v7943_v38  ;;  %v4516_v6 = vld [vmem:[#allocation3 + $0x308] sm:$0xff]  ;;  %v4534_v52 = vld [vmem:[#allocation3 + $0x398] sm:$0xff] }
 0x4cd   : > { %v4549_v27 = vpack.c.bf16 %v7926_v17, %v7935_v28 }
 0x4ce   : > { %v4550_v11 = vpack.c.bf16 %v7930_v55, %v7928_v57  ;;  %v4552_v5 = vpack.c.bf16 %v7965_v3, %v7956_v51 }
 0x4d0   : > { %4610 = vmatprep.mubr.bf16.mxu0 %v4550_v11  ;;  %4716 = vmatprep.mubr.bf16.mxu1 %v4550_v11  ;;  %v4357_v26 = vpop.f32.mrb[4].mxu0  ;;  %v4518_v11 = vld [vmem:[#allocation3 + $0x318] sm:$0xff] }
 0x4d1   : > { %4611 = vmatmul.mubr.bf16.vlgmr.msra.gmra.mrb[8].mxu0 %v4549_v27  ;;  %4717 = vmatmul.mubr.bf16.vlgmr.msra.gmra.mrb[8].mxu1 %v4549_v27  ;;  %v7945_v42 = vadd.f32 %v4357_v26, %v4296_v9  ;;  %v4359_v24 = vpop.f32.mrb[5].mxu0  ;;  %v7969_v20 = vpop.f32.mrb[4].mxu1  ;;  %v4515_v27 = vld [vmem:[#allocation3 + $0x300] sm:$0xff]  ;;  %v4521_v26 = vld [vmem:[#allocation3 + $0x330] sm:$0xff] }
 0x4d2   : > { %4632 = vmatpush1.bf16.msra.mxu0 %v4483_v43  ;;  %4738 = vmatpush1.bf16.msra.mxu1 %v4485_v23  ;;  %v7947_v45 = vadd.f32 %v4359_v24, %v4300_v7  ;;  %v4361_v49 = vpop.f32.mrb[6].mxu0  ;;  %v7971_v10 = vpop.f32.mrb[5].mxu1  ;;  %v4517_v43 = vld [vmem:[#allocation3 + $0x310] sm:$0xff]  ;;  %v4520_v23 = vld [vmem:[#allocation3 + $0x328] sm:$0xff] }
 0x4d3   : > { %4633 = vmatprep.subr.bf16.mxu0 %v4488_v25  ;;  %4739 = vmatprep.subr.bf16.mxu1 %v4490_v16  ;;  %v7951_v50 = vadd.f32 %v4361_v49, %v4296_v9  ;;  %v4363_v40 = vpop.f32.mrb[7].mxu0  ;;  %v7973_v0 = vpop.f32.mrb[6].mxu1  ;;  %v4514_v9 = vld [vmem:[#allocation3 + $0x2f8] sm:$0xff]  ;;  %v4519_v16 = vld [vmem:[#allocation3 + $0x320] sm:$0xff]  ;;  %v4524_v24 = vld [vmem:[#allocation3 + $0x348] sm:$0xff] }
 0x4d4   : > { %v7953_v22 = vadd.f32 %v4363_v40, %v4300_v7  ;;  %v7975_v61 = vpop.f32.mrb[7].mxu1  ;;  %v4512_v7 = vld [vmem:[#allocation3 + $0x2e8] sm:$0xff]  ;;  %v4522_v25 = vld [vmem:[#allocation3 + $0x338] sm:$0xff] }
 0x4d5   : > { %v4553_v59 = vpack.c.bf16 %v7951_v50, %v7945_v42  ;;  %v4526_v49 = vld [vmem:[#allocation3 + $0x358] sm:$0xff]  ;;  %v4528_v40 = vld [vmem:[#allocation3 + $0x368] sm:$0xff] }
 0x4d6   : > { %4634 = vmatpush1.bf16.msra.mxu0 %v4487_v13  ;;  %4740 = vmatpush1.bf16.msra.mxu1 %v4489_v21  ;;  %v4554_v1 = vpack.c.bf16 %v7953_v22, %v7947_v45  ;;  %v4523_v13 = vld [vmem:[#allocation3 + $0x340] sm:$0xff]  ;;  %v4525_v21 = vld [vmem:[#allocation3 + $0x350] sm:$0xff] }
 0x4d7   : > { %4635 = vmatprep.subr.bf16.mxu0 %v4492_v37  ;;  %4741 = vmatprep.subr.bf16.mxu1 %v4494_v58  ;;  %v4527_v37 = vld [vmem:[#allocation3 + $0x360] sm:$0xff]  ;;  %v4529_v58 = vld [vmem:[#allocation3 + $0x370] sm:$0xff] }
 0x4d8   : > { %4620 = vmatprep.mubr.bf16.mxu0 %v4554_v1  ;;  %4726 = vmatprep.mubr.bf16.mxu1 %v4554_v1  ;;  %v4531_v1 = vld [vmem:[#allocation3 + $0x380] sm:$0xff] }
 0x4d9   : > { %4621 = vmatmul.mubr.bf16.gmra.mrb[12].mxu0 %v4553_v59  ;;  %4727 = vmatmul.mubr.bf16.gmra.mrb[12].mxu1 %v4553_v59  ;;  %v4532_v59 = vld [vmem:[#allocation3 + $0x388] sm:$0xff] }
 0x4da   : > { %4636 = vmatpush1.bf16.msra.mxu0 %v4491_v48  ;;  %4742 = vmatpush1.bf16.msra.mxu1 %v4493_v32  ;;  %v4533_v48 = vld [vmem:[#allocation3 + $0x390] sm:$0xff]  ;;  %v4536_v32 = vld [vmem:[#allocation3 + $0x3a8] sm:$0xff] }
 0x4db   : > { %4637 = vmatprep.subr.bf16.mxu0 %v4496_v34  ;;  %4743 = vmatprep.subr.bf16.mxu1 %v4498_v31  ;;  %v4538_v34 = vld [vmem:[#allocation3 + $0x3b8] sm:$0xff]  ;;  %v7978_v31 = vsub.s32 2, %v7912_v8  ;;  %v7984_v8 = vadd.f32 %v7971_v10, %v7943_v38 }
 0x4dc   : > { %4663 = vmatprep.mubr.bf16.mxu0 %v4552_v5  ;;  %4769 = vmatprep.mubr.bf16.mxu1 %v4552_v5  ;;  %v4535_v5 = vld [vmem:[#allocation3 + $0x3a0] sm:$0xff] }
 0x4de   : > { %4638 = vmatpush1.bf16.msra.mxu0 %v4495_v53  ;;  %4744 = vmatpush1.bf16.msra.mxu1 %v4497_v36  ;;  %v4537_v53 = vld [vmem:[#allocation3 + $0x3b0] sm:$0xff]  ;;  %v4540_v36 = vld [vmem:[#allocation3 + $0x3c8] sm:$0xff] }
 0x4df   : > { %4639 = vmatprep.subr.bf16.mxu0 %v4500_v62  ;;  %4745 = vmatprep.subr.bf16.mxu1 %v4502_v47  ;;  %v4542_v62 = vld [vmem:[#allocation3 + $0x3d8] sm:$0xff]  ;;  %v4304_v47 = vrot.slane %v7917_v60, %v7978_v31 }
 0x4e1   : > { %v7994_v60 = vadd.f32 %v7958_v12, %v4304_v47  ;;  %v8001_v12 = vadd.f32 %v7969_v20, %v4304_v47  ;;  %v4848_v20 = vld [vmem:[#allocation3 + $0x448] sm:$0xff] }
 0x4e2   : > { %4640 = vmatpush1.bf16.msra.mxu0 %v4499_v4  ;;  %4746 = vmatpush1.bf16.msra.mxu1 %v4501_v56  ;;  %v4539_v4 = vld [vmem:[#allocation3 + $0x3c0] sm:$0xff]  ;;  %v4541_v56 = vld [vmem:[#allocation3 + $0x3d0] sm:$0xff] }
 0x4e3   : > { %4641 = vmatprep.subr.bf16.mxu0 %v4504_v44  ;;  %4747 = vmatprep.subr.bf16.mxu1 %v4506_v35  ;;  %v4544_v44 = vld [vmem:[#allocation3 + $0x3e8] sm:$0xff]  ;;  %v4546_v35 = vld [vmem:[#allocation3 + $0x3f8] sm:$0xff] }
 0x4e6   : > { %4642 = vmatpush1.bf16.msra.mxu0 %v4503_v63  ;;  %4748 = vmatpush1.bf16.msra.mxu1 %v4505_v29  ;;  %v7988_v63 = vadd.f32 %v7975_v61, %v7943_v38  ;;  %v7991_v29 = vadd.f32 %v7949_v39, %v4304_v47  ;;  %v4839_v39 = vld [vmem:[#allocation3 + $0x400] sm:$0xff]  ;;  %v4841_v61 = vld [vmem:[#allocation3 + $0x410] sm:$0xff] }
 0x4e7   : > { %4643 = vmatprep.subr.bf16.mxu0 %v4508_v15  ;;  %4749 = vmatprep.subr.bf16.mxu1 %v4510_v14  ;;  %v4543_v15 = vld [vmem:[#allocation3 + $0x3e0] sm:$0xff]  ;;  %v4545_v14 = vld [vmem:[#allocation3 + $0x3f0] sm:$0xff] }
 0x4e8   : > { %v4556_v10 = vpack.c.bf16 %v7988_v63, %v7984_v8  ;;  %v4551_v38 = vpack.c.bf16 %v7994_v60, %v7991_v29 }
 0x4ea   : > { %4644 = vmatpush1.bf16.msra.mxu0 %v4507_v41  ;;  %4750 = vmatpush1.bf16.msra.mxu1 %v4509_v19  ;;  %v4840_v41 = vld [vmem:[#allocation3 + $0x408] sm:$0xff]  ;;  %v4842_v19 = vld [vmem:[#allocation3 + $0x418] sm:$0xff] }
 0x4eb   : > { %4645 = vmatprep.subr.bf16.mxu0 %v4512_v7  ;;  %4751 = vmatprep.subr.bf16.mxu1 %v4514_v9  ;;  %v8004_v7 = vadd.f32 %v7973_v0, %v4304_v47  ;;  %v4844_v9 = vld [vmem:[#allocation3 + $0x428] sm:$0xff]  ;;  %v4847_v0 = vld [vmem:[#allocation3 + $0x440] sm:$0xff] }
 0x4ec   : > { %v4871_v47 = vld [vmem:[#allocation3 + $0x500] sm:$0xff] }
 0x4ee   : > { %4646 = vmatpush1.bf16.msra.mxu0 %v4511_v54  ;;  %4752 = vmatpush1.bf16.msra.mxu1 %v4513_v33  ;;  %v4846_v54 = vld [vmem:[#allocation3 + $0x438] sm:$0xff]  ;;  %v4843_v33 = vld [vmem:[#allocation3 + $0x420] sm:$0xff] }
 0x4ef   : > { %4647 = vmatprep.subr.bf16.mxu0 %v4516_v6  ;;  %4753 = vmatprep.subr.bf16.mxu1 %v4518_v11  ;;  %v4845_v6 = vld [vmem:[#allocation3 + $0x430] sm:$0xff]  ;;  %v4555_v11 = vpack.c.bf16 %v8004_v7, %v8001_v12 }
 0x4f2   : > { %4648 = vmatpush1.bf16.msra.mxu0 %v4515_v27  ;;  %4754 = vmatpush1.bf16.msra.mxu1 %v4517_v43  ;;  %v4850_v27 = vld [vmem:[#allocation3 + $0x458] sm:$0xff]  ;;  %v4849_v43 = vld [vmem:[#allocation3 + $0x450] sm:$0xff] }
 0x4f3   : > { %4649 = vmatprep.subr.bf16.mxu0 %v4520_v23  ;;  %4755 = vmatprep.subr.bf16.mxu1 %v4522_v25  ;;  %v4852_v23 = vld [vmem:[#allocation3 + $0x468] sm:$0xff]  ;;  %v4854_v25 = vld [vmem:[#allocation3 + $0x478] sm:$0xff] }
 0x4f6   : > { %4650 = vmatpush1.bf16.msra.mxu0 %v4519_v16  ;;  %4756 = vmatpush1.bf16.msra.mxu1 %v4521_v26  ;;  %v4851_v16 = vld [vmem:[#allocation3 + $0x460] sm:$0xff]  ;;  %v4853_v26 = vld [vmem:[#allocation3 + $0x470] sm:$0xff] }
 0x4f7   : > { %4651 = vmatprep.subr.bf16.mxu0 %v4524_v24  ;;  %4757 = vmatprep.subr.bf16.mxu1 %v4526_v49  ;;  %v4856_v24 = vld [vmem:[#allocation3 + $0x488] sm:$0xff]  ;;  %v4858_v49 = vld [vmem:[#allocation3 + $0x498] sm:$0xff] }
 0x4fa   : > { %4652 = vmatpush1.bf16.msra.mxu0 %v4523_v13  ;;  %4758 = vmatpush1.bf16.msra.mxu1 %v4525_v21  ;;  %v4855_v13 = vld [vmem:[#allocation3 + $0x480] sm:$0xff]  ;;  %v4857_v21 = vld [vmem:[#allocation3 + $0x490] sm:$0xff] }
 0x4fb   : > { %4653 = vmatprep.subr.bf16.mxu0 %v4528_v40  ;;  %4759 = vmatprep.subr.bf16.mxu1 %v4530_v30  ;;  %v4860_v40 = vld [vmem:[#allocation3 + $0x4a8] sm:$0xff]  ;;  %v4862_v30 = vld [vmem:[#allocation3 + $0x4b8] sm:$0xff] }
 0x4fe   : > { %4654 = vmatpush1.bf16.msra.mxu0 %v4527_v37  ;;  %4760 = vmatpush1.bf16.msra.mxu1 %v4529_v58  ;;  %v4859_v37 = vld [vmem:[#allocation3 + $0x4a0] sm:$0xff]  ;;  %v4861_v58 = vld [vmem:[#allocation3 + $0x4b0] sm:$0xff] }
 0x4ff   : > { %4655 = vmatprep.subr.bf16.mxu0 %v4532_v59  ;;  %4761 = vmatprep.subr.bf16.mxu1 %v4534_v52  ;;  %v4864_v59 = vld [vmem:[#allocation3 + $0x4c8] sm:$0xff]  ;;  %v4866_v52 = vld [vmem:[#allocation3 + $0x4d8] sm:$0xff] }
 0x502   : > { %4656 = vmatpush1.bf16.msra.mxu0 %v4531_v1  ;;  %4762 = vmatpush1.bf16.msra.mxu1 %v4533_v48  ;;  %v4863_v1 = vld [vmem:[#allocation3 + $0x4c0] sm:$0xff]  ;;  %v4865_v48 = vld [vmem:[#allocation3 + $0x4d0] sm:$0xff] }
 0x503   : > { %4657 = vmatprep.subr.bf16.mxu0 %v4536_v32  ;;  %4763 = vmatprep.subr.bf16.mxu1 %v4538_v34  ;;  %v4868_v32 = vld [vmem:[#allocation3 + $0x4e8] sm:$0xff]  ;;  %v4870_v34 = vld [vmem:[#allocation3 + $0x4f8] sm:$0xff] }
 0x506   : > { %4658 = vmatpush1.bf16.msra.mxu0 %v4535_v5  ;;  %4764 = vmatpush1.bf16.msra.mxu1 %v4537_v53  ;;  %v4867_v5 = vld [vmem:[#allocation3 + $0x4e0] sm:$0xff]  ;;  %v4869_v53 = vld [vmem:[#allocation3 + $0x4f0] sm:$0xff] }
 0x507   : > { %4659 = vmatprep.subr.bf16.mxu0 %v4540_v36  ;;  %4765 = vmatprep.subr.bf16.mxu1 %v4542_v62  ;;  %v4872_v36 = vld [vmem:[#allocation3 + $0x508] sm:$0xff]  ;;  %v4874_v62 = vld [vmem:[#allocation3 + $0x518] sm:$0xff] }
 0x50a   : > { %4660 = vmatpush1.bf16.msra.mxu0 %v4539_v4  ;;  %4766 = vmatpush1.bf16.msra.mxu1 %v4541_v56  ;;  %v4873_v4 = vld [vmem:[#allocation3 + $0x510] sm:$0xff]  ;;  %v4876_v56 = vld [vmem:[#allocation3 + $0x528] sm:$0xff] }
 0x50b   : > { %4661 = vmatprep.subr.bf16.mxu0 %v4544_v44  ;;  %4767 = vmatprep.subr.bf16.mxu1 %v4546_v35  ;;  %v4878_v44 = vld [vmem:[#allocation3 + $0x538] sm:$0xff]  ;;  %v4875_v35 = vld [vmem:[#allocation3 + $0x520] sm:$0xff] }
 0x50e   : > { %4662 = vmatpush1.bf16.msra.mxu0 %v4543_v15  ;;  %4768 = vmatpush1.bf16.msra.mxu1 %v4545_v14  ;;  %v4877_v15 = vld [vmem:[#allocation3 + $0x530] sm:$0xff]  ;;  %v4880_v14 = vld [vmem:[#allocation3 + $0x548] sm:$0xff] }
 0x50f   : > { %4998 = vmatprep.subr.bf16.mxu0 %v4840_v41  ;;  %5104 = vmatprep.subr.bf16.mxu1 %v4842_v19  ;;  %v4882_v41 = vld [vmem:[#allocation3 + $0x558] sm:$0xff]  ;;  %v4879_v19 = vld [vmem:[#allocation3 + $0x540] sm:$0xff] }
 0x511   : > { %4664 = vmatmul.mubr.bf16.vlgmr.msra.gmra.mrb[8].mxu0 %v4551_v38  ;;  %4770 = vmatmul.mubr.bf16.vlgmr.msra.gmra.mrb[8].mxu1 %v4551_v38  ;;  %v4884_v38 = vld [vmem:[#allocation3 + $0x568] sm:$0xff] }
 0x512   : > { %4673 = vmatprep.mubr.bf16.mxu0 %v4556_v10  ;;  %4779 = vmatprep.mubr.bf16.mxu1 %v4556_v10  ;;  %v4881_v10 = vld [vmem:[#allocation3 + $0x550] sm:$0xff] }
 0x513   : > { %4999 = vmatpush1.bf16.msra.mxu0 %v4839_v39  ;;  %5105 = vmatpush1.bf16.msra.mxu1 %v4841_v61  ;;  %v4886_v39 = vld [vmem:[#allocation3 + $0x578] sm:$0xff]  ;;  %v4883_v61 = vld [vmem:[#allocation3 + $0x560] sm:$0xff] }
 0x514   : > { %5000 = vmatprep.subr.bf16.mxu0 %v4844_v9  ;;  %5106 = vmatprep.subr.bf16.mxu1 %v4846_v54  ;;  %v4885_v9 = vld [vmem:[#allocation3 + $0x570] sm:$0xff]  ;;  %v4888_v54 = vld [vmem:[#allocation3 + $0x588] sm:$0xff] }
 0x517   : > { %5001 = vmatpush1.bf16.msra.mxu0 %v4843_v33  ;;  %5107 = vmatpush1.bf16.msra.mxu1 %v4845_v6  ;;  %v4890_v33 = vld [vmem:[#allocation3 + $0x598] sm:$0xff]  ;;  %v4887_v6 = vld [vmem:[#allocation3 + $0x580] sm:$0xff] }
 0x518   : > { %5002 = vmatprep.subr.bf16.mxu0 %v4848_v20  ;;  %5108 = vmatprep.subr.bf16.mxu1 %v4850_v27  ;;  %v4892_v20 = vld [vmem:[#allocation3 + $0x5a8] sm:$0xff]  ;;  %v4894_v27 = vld [vmem:[#allocation3 + $0x5b8] sm:$0xff] }
 0x519   : > { %4674 = vmatmul.mubr.bf16.gmra.mrb[12].mxu0 %v4555_v11  ;;  %4780 = vmatmul.mubr.bf16.gmra.mrb[12].mxu1 %v4555_v11  ;;  %v4889_v11 = vld [vmem:[#allocation3 + $0x590] sm:$0xff] }
 0x51b   : > { %5003 = vmatpush1.bf16.msra.mxu0 %v4847_v0  ;;  %5109 = vmatpush1.bf16.msra.mxu1 %v4849_v43  ;;  %v4891_v0 = vld [vmem:[#allocation3 + $0x5a0] sm:$0xff]  ;;  %v4893_v43 = vld [vmem:[#allocation3 + $0x5b0] sm:$0xff] }
 0x51c   : > { %5004 = vmatprep.subr.bf16.mxu0 %v4852_v23  ;;  %5110 = vmatprep.subr.bf16.mxu1 %v4854_v25  ;;  %v4896_v23 = vld [vmem:[#allocation3 + $0x5c8] sm:$0xff]  ;;  %v4898_v25 = vld [vmem:[#allocation3 + $0x5d8] sm:$0xff] }
 0x51f   : > { %5005 = vmatpush1.bf16.msra.mxu0 %v4851_v16  ;;  %5111 = vmatpush1.bf16.msra.mxu1 %v4853_v26  ;;  %v4895_v16 = vld [vmem:[#allocation3 + $0x5c0] sm:$0xff]  ;;  %v4897_v26 = vld [vmem:[#allocation3 + $0x5d0] sm:$0xff] }
 0x520   : > { %5006 = vmatprep.subr.bf16.mxu0 %v4856_v24  ;;  %5112 = vmatprep.subr.bf16.mxu1 %v4858_v49  ;;  %v4900_v24 = vld [vmem:[#allocation3 + $0x5e8] sm:$0xff]  ;;  %v4902_v49 = vld [vmem:[#allocation3 + $0x5f8] sm:$0xff] }
 0x523   : > { %5007 = vmatpush1.bf16.msra.mxu0 %v4855_v13  ;;  %5113 = vmatpush1.bf16.msra.mxu1 %v4857_v21  ;;  %v4899_v13 = vld [vmem:[#allocation3 + $0x5e0] sm:$0xff]  ;;  %v4901_v21 = vld [vmem:[#allocation3 + $0x5f0] sm:$0xff] }
 0x524   : > { %5008 = vmatprep.subr.bf16.mxu0 %v4860_v40  ;;  %5114 = vmatprep.subr.bf16.mxu1 %v4862_v30  ;;  %v4904_v40 = vld [vmem:[#allocation3 + $0x608] sm:$0xff]  ;;  %v4906_v30 = vld [vmem:[#allocation3 + $0x618] sm:$0xff] }
 0x527   : > { %5009 = vmatpush1.bf16.msra.mxu0 %v4859_v37  ;;  %5115 = vmatpush1.bf16.msra.mxu1 %v4861_v58  ;;  %v4548_v37 = vld [vmem:[#allocation11 + $0x1] ss:$8 sm:$0xf] }
 0x528   : > { %5010 = vmatprep.subr.bf16.mxu0 %v4864_v59  ;;  %5116 = vmatprep.subr.bf16.mxu1 %v4866_v52  ;;  %v8009_v58 = vrot.slane %v4548_v37, %v7920_v46  ;;  %v8012_v59 = vrot.slane %v4548_v37, %v7978_v31  ;;  %v8015_v52 = vrot.slane %v4548_v37, %v7915_v2 }
 0x52b   : > { %5011 = vmatpush1.bf16.msra.mxu0 %v4863_v1  ;;  %5117 = vmatpush1.bf16.msra.mxu1 %v4865_v48  ;;  %v8018_v1 = vrot.slane %v4548_v37, %v7933_v18 }
 0x52c   : > { %5012 = vmatprep.subr.bf16.mxu0 %v4868_v32  ;;  %5118 = vmatprep.subr.bf16.mxu1 %v4870_v34 }
 0x52f   : > { %5013 = vmatpush1.bf16.msra.mxu0 %v4867_v5  ;;  %5119 = vmatpush1.bf16.msra.mxu1 %v4869_v53 }
 0x530   : > { %5014 = vmatprep.subr.bf16.mxu0 %v4872_v36  ;;  %5120 = vmatprep.subr.bf16.mxu1 %v4874_v62 }
 0x533   : > { %5015 = vmatpush1.bf16.msra.mxu0 %v4871_v47  ;;  %5121 = vmatpush1.bf16.msra.mxu1 %v4873_v4 }
 0x534   : > { %5016 = vmatprep.subr.bf16.mxu0 %v4876_v56  ;;  %5122 = vmatprep.subr.bf16.mxu1 %v4878_v44 }
 0x537   : > { %5017 = vmatpush1.bf16.msra.mxu0 %v4875_v35  ;;  %5123 = vmatpush1.bf16.msra.mxu1 %v4877_v15 }
 0x538   : > { %5018 = vmatprep.subr.bf16.mxu0 %v4880_v14  ;;  %5124 = vmatprep.subr.bf16.mxu1 %v4882_v41 }
 0x53b   : > { %5019 = vmatpush1.bf16.msra.mxu0 %v4879_v19  ;;  %5125 = vmatpush1.bf16.msra.mxu1 %v4881_v10 }
 0x53c   : > { %5020 = vmatprep.subr.bf16.mxu0 %v4884_v38  ;;  %5126 = vmatprep.subr.bf16.mxu1 %v4886_v39 }
 0x53f   : > { %5021 = vmatpush1.bf16.msra.mxu0 %v4883_v61  ;;  %5127 = vmatpush1.bf16.msra.mxu1 %v4885_v9 }
 0x540   : > { %5022 = vmatprep.subr.bf16.mxu0 %v4888_v54  ;;  %5128 = vmatprep.subr.bf16.mxu1 %v4890_v33 }
 0x543   : > { %5023 = vmatpush1.bf16.msra.mxu0 %v4887_v6  ;;  %5129 = vmatpush1.bf16.msra.mxu1 %v4889_v11 }
 0x544   : > { %5024 = vmatprep.subr.bf16.mxu0 %v4892_v20  ;;  %5130 = vmatprep.subr.bf16.mxu1 %v4894_v27 }
 0x547   : > { %5025 = vmatpush1.bf16.msra.mxu0 %v4891_v0  ;;  %5131 = vmatpush1.bf16.msra.mxu1 %v4893_v43 }
 0x548   : > { %5026 = vmatprep.subr.bf16.mxu0 %v4896_v23  ;;  %5132 = vmatprep.subr.bf16.mxu1 %v4898_v25 }
 0x54b   : > { %5027 = vmatpush1.bf16.msra.mxu0 %v4895_v16  ;;  %5133 = vmatpush1.bf16.msra.mxu1 %v4897_v26 }
 0x54c   : > { %5028 = vmatprep.subr.bf16.mxu0 %v4900_v24  ;;  %5134 = vmatprep.subr.bf16.mxu1 %v4902_v49 }
 0x54f   : > { %5029 = vmatpush1.bf16.msra.mxu0 %v4899_v13  ;;  %5135 = vmatpush1.bf16.msra.mxu1 %v4901_v21 }
 0x550   : > { %5051 = vmatprep.subr.bf16.mxu0 %v4904_v40  ;;  %5157 = vmatprep.subr.bf16.mxu1 %v4906_v30 }
 0x5e4   : > { %v4665_v48 = vpop.f32.mrb[8].mxu0  ;;  %v4771_v32 = vpop.f32.mrb[8].mxu1 }
 0x5e5   : > { %v6285_v34 = vadd.f32 %v4665_v48, %v8009_v58  ;;  %v6293_v5 = vadd.f32 %v4771_v32, %v8012_v59  ;;  %v4667_v53 = vpop.f32.mrb[9].mxu0  ;;  %v4773_v36 = vpop.f32.mrb[9].mxu1 }
 0x5e6   : > { %v6286_v62 = vadd.f32 %v4667_v53, %v8015_v52  ;;  %v6294_v47 = vadd.f32 %v4773_v36, %v8018_v1  ;;  %v4669_v4 = vpop.f32.mrb[10].mxu0  ;;  %v4775_v56 = vpop.f32.mrb[10].mxu1 }
 0x5e7   : > { %vm4790_vm0 = vcmp.gt.f32.partialorder %v6285_v34, 0.0  ;;  %v4806_v44 = vmul.f32 0.1, %v6285_v34  ;;  %vm4792_vm1 = vcmp.gt.f32.partialorder %v6293_v5, 0.0  ;;  %v4808_v35 = vmul.f32 0.1, %v6293_v5 }
 0x5e8   : > { %vm4791_vm2 = vcmp.gt.f32.partialorder %v6286_v62, 0.0  ;;  %v4807_v15 = vmul.f32 0.1, %v6286_v62  ;;  %vm4793_vm3 = vcmp.gt.f32.partialorder %v6294_v47, 0.0  ;;  %v6287_v14 = vadd.f32 %v4669_v4, %v8009_v58  ;;  %v4671_v19 = vpop.f32.mrb[11].mxu0  ;;  %v4777_v10 = vpop.f32.mrb[11].mxu1 }
 0x5e9   : > { %v6295_v41 = vadd.f32 %v4775_v56, %v8012_v59  ;;  %v4822_v38 = vsel %vm4790_vm0, %v6285_v34, %v4806_v44  ;;  %v4809_v39 = vmul.f32 0.1, %v6294_v47  ;;  %v6288_v61 = vadd.f32 %v4671_v19, %v8015_v52 }
 0x5ea   : > { %v6296_v9 = vadd.f32 %v4777_v10, %v8018_v1  ;;  %vm4794_vm4 = vcmp.gt.f32.partialorder %v6287_v14, 0.0  ;;  %v4810_v54 = vmul.f32 0.1, %v6287_v14  ;;  %v4824_v6 = vsel %vm4792_vm1, %v6293_v5, %v4808_v35  ;;  %v4905_v10 = vld [vmem:[#allocation3 + $0x610] sm:$0xff] }
 0x5eb   : > { %vm4796_vm5 = vcmp.gt.f32.partialorder %v6295_v41, 0.0  ;;  %v4812_v33 = vmul.f32 0.1, %v6295_v41  ;;  %vm4795_vm6 = vcmp.gt.f32.partialorder %v6288_v61, 0.0  ;;  %v4811_v11 = vmul.f32 0.1, %v6288_v61 }
 0x5ec   : > { %v4813_v20 = vmul.f32 0.1, %v6296_v9  ;;  %v4826_v27 = vsel %vm4794_vm4, %v6287_v14, %v4810_v54  ;;  %vm4797_vm7 = vcmp.gt.f32.partialorder %v6296_v9, 0.0  ;;  %v4675_v43 = vpop.f32.mrb[12].mxu0  ;;  %v4781_v23 = vpop.f32.mrb[12].mxu1  ;;  %v4823_v25 = vsel %vm4791_vm2, %v6286_v62, %v4807_v15 }
 0x5ed   : > { %v4828_v0 = vsel %vm4796_vm5, %v6295_v41, %v4812_v33  ;;  %v4969_v16 = vpack.c.bf16 %v4826_v27, %v4822_v38  ;;  %v6289_v24 = vadd.f32 %v4675_v43, %v8009_v58  ;;  %v6297_v49 = vadd.f32 %v4781_v23, %v8012_v59  ;;  %v4677_v13 = vpop.f32.mrb[13].mxu0  ;;  %v4783_v21 = vpop.f32.mrb[13].mxu1  ;;  %v4903_v41 = vld [vmem:[#allocation3 + $0x600] sm:$0xff]  ;;  %v4908_v38 = vld [vmem:[#allocation3 + $0x628] sm:$0xff] }
 0x5ee   : > { %v8030_v26 = vpack.c.bf16 %v4828_v0, %v4824_v6  ;;  %v6290_v40 = vadd.f32 %v4677_v13, %v8015_v52  ;;  %v6298_v30 = vadd.f32 %v4783_v21, %v8018_v1  ;;  %v4679_v37 = vpop.f32.mrb[14].mxu0  ;;  %v4785_v48 = vpop.f32.mrb[14].mxu1  ;;  %v4827_v32 = vsel %vm4795_vm6, %v6288_v61, %v4811_v11  ;;  %v4907_v11 = vld [vmem:[#allocation3 + $0x620] sm:$0xff]  ;;  %v4914_v21 = vld [vmem:[#allocation3 + $0x658] sm:$0xff] }
 0x5ef   : > { %v4825_v34 = vsel %vm4793_vm3, %v6294_v47, %v4809_v39  ;;  %vm4798_vm8 = vcmp.gt.f32.partialorder %v6289_v24, 0.0  ;;  %v4814_v5 = vmul.f32 0.1, %v6289_v24  ;;  %vm4800_vm9 = vcmp.gt.f32.partialorder %v6297_v49, 0.0  ;;  %v4681_v35 = vpop.f32.mrb[15].mxu0  ;;  %v4787_v15 = vpop.f32.mrb[15].mxu1 }
 0x5f0   : > { %v4829_v53 = vsel %vm4797_vm7, %v6296_v9, %v4813_v20  ;;  %v4816_v36 = vmul.f32 0.1, %v6297_v49  ;;  %vm4799_vm10 = vcmp.gt.f32.partialorder %v6290_v40, 0.0  ;;  %v4815_v62 = vmul.f32 0.1, %v6290_v40  ;;  %v4910_v39 = vld [vmem:[#allocation3 + $0x638] sm:$0xff] }
 0x5f1   : > { %vm4801_vm11 = vcmp.gt.f32.partialorder %v6298_v30, 0.0  ;;  %v4817_v4 = vmul.f32 0.1, %v6298_v30  ;;  %v6291_v56 = vadd.f32 %v4679_v37, %v8009_v58  ;;  %v6299_v44 = vadd.f32 %v4785_v48, %v8012_v59  ;;  %v4909_v20 = vld [vmem:[#allocation3 + $0x630] sm:$0xff]  ;;  %v4916_v48 = vld [vmem:[#allocation3 + $0x668] sm:$0xff] }
 0x5f2   : > { %v4970_v14 = vpack.c.bf16 %v4827_v32, %v4823_v25  ;;  %v6292_v47 = vadd.f32 %v4681_v35, %v8015_v52  ;;  %v6300_v19 = vadd.f32 %v4787_v15, %v8018_v1  ;;  %v4830_v61 = vsel %vm4798_vm8, %v6289_v24, %v4814_v5  ;;  %v4912_v25 = vld [vmem:[#allocation3 + $0x648] sm:$0xff]  ;;  %v4913_v37 = vld [vmem:[#allocation3 + $0x650] sm:$0xff]  ;;  %v4918_v32 = vld [vmem:[#allocation3 + $0x678] sm:$0xff] }
 0x5f3   : > { %v4972_v9 = vpack.c.bf16 %v4829_v53, %v4825_v34  ;;  %vm4802_vm12 = vcmp.gt.f32.partialorder %v6291_v56, 0.0  ;;  %v4818_v54 = vmul.f32 0.1, %v6291_v56  ;;  %vm4804_vm13 = vcmp.gt.f32.partialorder %v6299_v44, 0.0  ;;  %v4917_v34 = vld [vmem:[#allocation3 + $0x670] sm:$0xff]  ;;  %v4920_v5 = vld [vmem:[#allocation3 + $0x688] sm:$0xff] }
 0x5f4   : > { %v4820_v58 = vmul.f32 0.1, %v6299_v44  ;;  %5030 = vmatprep.mubr.bf16.mxu0 %v4970_v14  ;;  %5136 = vmatprep.mubr.bf16.mxu1 %v4970_v14  ;;  %vm4803_vm14 = vcmp.gt.f32.partialorder %v6292_v47, 0.0  ;;  %v4819_v59 = vmul.f32 0.1, %v6292_v47  ;;  %vm4805_vm15 = vcmp.gt.f32.partialorder %v6300_v19, 0.0 }
 0x5f5   : > { %v4821_v33 = vmul.f32 0.1, %v6300_v19  ;;  %5031 = vmatmul.mubr.bf16.vlgmr.msra.gmra.mrb[16].mxu0 %v4969_v16  ;;  %5137 = vmatmul.mubr.bf16.vlgmr.msra.gmra.mrb[16].mxu1 %v4969_v16  ;;  %v4831_v52 = vsel %vm4799_vm10, %v6290_v40, %v4815_v62  ;;  %v4834_v1 = vsel %vm4802_vm12, %v6291_v56, %v4818_v54  ;;  %v4833_v6 = vsel %vm4801_vm11, %v6298_v30, %v4817_v4  ;;  %v4911_v30 = vld [vmem:[#allocation3 + $0x640] sm:$0xff]  ;;  %v4922_v53 = vld [vmem:[#allocation3 + $0x698] sm:$0xff]  ;;  %v4921_v62 = vld [vmem:[#allocation3 + $0x690] sm:$0xff] }
 0x5f6   : > { %5052 = vmatpush1.bf16.msra.mxu0 %v4903_v41  ;;  %5158 = vmatpush1.bf16.msra.mxu1 %v4905_v10  ;;  %v4835_v27 = vsel %vm4803_vm14, %v6292_v47, %v4819_v59  ;;  %v4973_v0 = vpack.c.bf16 %v4834_v1, %v4830_v61  ;;  %v4832_v16 = vsel %vm4800_vm9, %v6297_v49, %v4816_v36  ;;  %v4915_v49 = vld [vmem:[#allocation3 + $0x660] sm:$0xff]  ;;  %v4924_v4 = vld [vmem:[#allocation3 + $0x6a8] sm:$0xff]  ;;  %v4926_v56 = vld [vmem:[#allocation3 + $0x6b8] sm:$0xff] }
 0x5f7   : > { %5053 = vmatprep.subr.bf16.mxu0 %v4908_v38  ;;  %5159 = vmatprep.subr.bf16.mxu1 %v4910_v39  ;;  %v4837_v43 = vsel %vm4805_vm15, %v6300_v19, %v4821_v33  ;;  %v4974_v23 = vpack.c.bf16 %v4835_v27, %v4831_v52  ;;  %v4836_v13 = vsel %vm4804_vm13, %v6299_v44, %v4820_v58  ;;  %v4919_v36 = vld [vmem:[#allocation3 + $0x680] sm:$0xff]  ;;  %v4925_v35 = vld [vmem:[#allocation3 + $0x6b0] sm:$0xff]  ;;  %v4928_v15 = vld [vmem:[#allocation3 + $0x6c8] sm:$0xff] }
 0x5f8   : > { %v8046_v24 = vpack.c.bf16 %v4837_v43, %v4833_v6  ;;  %v8050_v40 = vpack.c.bf16 %v4836_v13, %v4832_v16  ;;  %v4923_v44 = vld [vmem:[#allocation3 + $0x6a0] sm:$0xff]  ;;  %v4930_v14 = vld [vmem:[#allocation3 + $0x6d8] sm:$0xff]  ;;  %v4929_v47 = vld [vmem:[#allocation3 + $0x6d0] sm:$0xff] }
 0x5f9   : > { %5040 = vmatprep.mubr.bf16.mxu0 %v4974_v23  ;;  %5146 = vmatprep.mubr.bf16.mxu1 %v4974_v23  ;;  %v4927_v41 = vld [vmem:[#allocation3 + $0x6c0] sm:$0xff]  ;;  %v4932_v19 = vld [vmem:[#allocation3 + $0x6e8] sm:$0xff]  ;;  %v4934_v10 = vld [vmem:[#allocation3 + $0x6f8] sm:$0xff] }
 0x5fa   : > { %5054 = vmatpush1.bf16.msra.mxu0 %v4907_v11  ;;  %5160 = vmatpush1.bf16.msra.mxu1 %v4909_v20  ;;  %v4931_v38 = vld [vmem:[#allocation3 + $0x6e0] sm:$0xff]  ;;  %v4933_v39 = vld [vmem:[#allocation3 + $0x6f0] sm:$0xff]  ;;  %v4936_v61 = vld [vmem:[#allocation3 + $0x708] sm:$0xff] }
 0x5fb   : > { %5055 = vmatprep.subr.bf16.mxu0 %v4912_v25  ;;  %5161 = vmatprep.subr.bf16.mxu1 %v4914_v21  ;;  %v4935_v54 = vld [vmem:[#allocation3 + $0x700] sm:$0xff]  ;;  %v4937_v58 = vld [vmem:[#allocation3 + $0x710] sm:$0xff]  ;;  %v4940_v59 = vld [vmem:[#allocation3 + $0x728] sm:$0xff] }
 0x5fc   : > { %v4942_v33 = vld [vmem:[#allocation3 + $0x738] sm:$0xff]  ;;  %v4939_v52 = vld [vmem:[#allocation3 + $0x720] sm:$0xff]  ;;  %v4941_v1 = vld [vmem:[#allocation3 + $0x730] sm:$0xff] }
 0x5fd   : > { %5041 = vmatmul.mubr.bf16.gmra.mrb[20].mxu0 %v4973_v0  ;;  %5147 = vmatmul.mubr.bf16.gmra.mrb[20].mxu1 %v4973_v0  ;;  %v4944_v6 = vld [vmem:[#allocation3 + $0x748] sm:$0xff]  ;;  %v4946_v11 = vld [vmem:[#allocation3 + $0x758] sm:$0xff]  ;;  %v4943_v20 = vld [vmem:[#allocation3 + $0x740] sm:$0xff] }
 0x5fe   : > { %5056 = vmatpush1.bf16.msra.mxu0 %v4911_v30  ;;  %5162 = vmatpush1.bf16.msra.mxu1 %v4913_v37  ;;  %v4945_v27 = vld [vmem:[#allocation3 + $0x750] sm:$0xff]  ;;  %v4948_v0 = vld [vmem:[#allocation3 + $0x768] sm:$0xff]  ;;  %v4950_v43 = vld [vmem:[#allocation3 + $0x778] sm:$0xff] }
 0x5ff   : > { %5083 = vmatprep.mubr.bf16.mxu0 %v4972_v9  ;;  %5189 = vmatprep.mubr.bf16.mxu1 %v4972_v9  ;;  %v4938_v9 = vld [vmem:[#allocation3 + $0x718] sm:$0xff]  ;;  %v4947_v23 = vld [vmem:[#allocation3 + $0x760] sm:$0xff]  ;;  %v4949_v25 = vld [vmem:[#allocation3 + $0x770] sm:$0xff] }
 0x600   : > { %5057 = vmatprep.subr.bf16.mxu0 %v4916_v48  ;;  %5163 = vmatprep.subr.bf16.mxu1 %v4918_v32  ;;  %v4952_v16 = vld [vmem:[#allocation3 + $0x788] sm:$0xff]  ;;  %v4954_v13 = vld [vmem:[#allocation3 + $0x798] sm:$0xff]  ;;  %v4951_v21 = vld [vmem:[#allocation3 + $0x780] sm:$0xff] }
 0x601   : > { %v4953_v30 = vld [vmem:[#allocation3 + $0x790] sm:$0xff]  ;;  %v4956_v37 = vld [vmem:[#allocation3 + $0x7a8] sm:$0xff]  ;;  %v4958_v48 = vld [vmem:[#allocation3 + $0x7b8] sm:$0xff] }
 0x602   : > { %5058 = vmatpush1.bf16.msra.mxu0 %v4915_v49  ;;  %5164 = vmatpush1.bf16.msra.mxu1 %v4917_v34  ;;  %v4955_v32 = vld [vmem:[#allocation3 + $0x7a0] sm:$0xff]  ;;  %v4957_v49 = vld [vmem:[#allocation3 + $0x7b0] sm:$0xff]  ;;  %v4960_v34 = vld [vmem:[#allocation3 + $0x7c8] sm:$0xff] }
 0x603   : > { %5059 = vmatprep.subr.bf16.mxu0 %v4920_v5  ;;  %5165 = vmatprep.subr.bf16.mxu1 %v4922_v53  ;;  %v4962_v5 = vld [vmem:[#allocation3 + $0x7d8] sm:$0xff]  ;;  %v4959_v53 = vld [vmem:[#allocation3 + $0x7c0] sm:$0xff] }
 0x606   : > { %5060 = vmatpush1.bf16.msra.mxu0 %v4919_v36  ;;  %5166 = vmatpush1.bf16.msra.mxu1 %v4921_v62  ;;  %v4961_v36 = vld [vmem:[#allocation3 + $0x7d0] sm:$0xff]  ;;  %v4964_v62 = vld [vmem:[#allocation3 + $0x7e8] sm:$0xff] }
 0x607   : > { %5061 = vmatprep.subr.bf16.mxu0 %v4924_v4  ;;  %5167 = vmatprep.subr.bf16.mxu1 %v4926_v56  ;;  %v4966_v4 = vld [vmem:[#allocation3 + $0x7f8] sm:$0xff]  ;;  %v4963_v56 = vld [vmem:[#allocation3 + $0x7e0] sm:$0xff] }
 0x60a   : > { %5062 = vmatpush1.bf16.msra.mxu0 %v4923_v44  ;;  %5168 = vmatpush1.bf16.msra.mxu1 %v4925_v35  ;;  %v4965_v44 = vld [vmem:[#allocation3 + $0x7f0] sm:$0xff]  ;;  %v5260_v35 = vld [vmem:[#allocation3 + $0x808] sm:$0xff] }
 0x60b   : > { %5063 = vmatprep.subr.bf16.mxu0 %v4928_v15  ;;  %5169 = vmatprep.subr.bf16.mxu1 %v4930_v14  ;;  %v5262_v15 = vld [vmem:[#allocation3 + $0x818] sm:$0xff]  ;;  %v5259_v14 = vld [vmem:[#allocation3 + $0x800] sm:$0xff] }
 0x60e   : > { %5064 = vmatpush1.bf16.msra.mxu0 %v4927_v41  ;;  %5170 = vmatpush1.bf16.msra.mxu1 %v4929_v47  ;;  %v5261_v41 = vld [vmem:[#allocation3 + $0x810] sm:$0xff]  ;;  %v5264_v47 = vld [vmem:[#allocation3 + $0x828] sm:$0xff] }
 0x60f   : > { %5065 = vmatprep.subr.bf16.mxu0 %v4932_v19  ;;  %5171 = vmatprep.subr.bf16.mxu1 %v4934_v10  ;;  %v5266_v19 = vld [vmem:[#allocation3 + $0x838] sm:$0xff]  ;;  %v5263_v10 = vld [vmem:[#allocation3 + $0x820] sm:$0xff] }
 0x612   : > { %5066 = vmatpush1.bf16.msra.mxu0 %v4931_v38  ;;  %5172 = vmatpush1.bf16.msra.mxu1 %v4933_v39  ;;  %v5265_v38 = vld [vmem:[#allocation3 + $0x830] sm:$0xff]  ;;  %v5268_v39 = vld [vmem:[#allocation3 + $0x848] sm:$0xff] }
 0x613   : > { %5067 = vmatprep.subr.bf16.mxu0 %v4936_v61  ;;  %5173 = vmatprep.subr.bf16.mxu1 %v4938_v9  ;;  %v5270_v61 = vld [vmem:[#allocation3 + $0x858] sm:$0xff]  ;;  %v5267_v9 = vld [vmem:[#allocation3 + $0x840] sm:$0xff] }
 0x616   : > { %5068 = vmatpush1.bf16.msra.mxu0 %v4935_v54  ;;  %5174 = vmatpush1.bf16.msra.mxu1 %v4937_v58  ;;  %v5272_v54 = vld [vmem:[#allocation3 + $0x868] sm:$0xff]  ;;  %v5271_v58 = vld [vmem:[#allocation3 + $0x860] sm:$0xff] }
 0x617   : > { %5069 = vmatprep.subr.bf16.mxu0 %v4940_v59  ;;  %5175 = vmatprep.subr.bf16.mxu1 %v4942_v33  ;;  %v5273_v59 = vld [vmem:[#allocation3 + $0x870] sm:$0xff]  ;;  %v5276_v33 = vld [vmem:[#allocation3 + $0x888] sm:$0xff] }
 0x61a   : > { %5070 = vmatpush1.bf16.msra.mxu0 %v4939_v52  ;;  %5176 = vmatpush1.bf16.msra.mxu1 %v4941_v1  ;;  %v5278_v52 = vld [vmem:[#allocation3 + $0x898] sm:$0xff]  ;;  %v5275_v1 = vld [vmem:[#allocation3 + $0x880] sm:$0xff] }
 0x61b   : > { %5071 = vmatprep.subr.bf16.mxu0 %v4944_v6  ;;  %5177 = vmatprep.subr.bf16.mxu1 %v4946_v11  ;;  %v5277_v6 = vld [vmem:[#allocation3 + $0x890] sm:$0xff]  ;;  %v5280_v11 = vld [vmem:[#allocation3 + $0x8a8] sm:$0xff] }
 0x61e   : > { %5072 = vmatpush1.bf16.msra.mxu0 %v4943_v20  ;;  %5178 = vmatpush1.bf16.msra.mxu1 %v4945_v27  ;;  %v5282_v20 = vld [vmem:[#allocation3 + $0x8b8] sm:$0xff]  ;;  %v5281_v27 = vld [vmem:[#allocation3 + $0x8b0] sm:$0xff] }
 0x61f   : > { %5073 = vmatprep.subr.bf16.mxu0 %v4948_v0  ;;  %5179 = vmatprep.subr.bf16.mxu1 %v4950_v43  ;;  %v5284_v0 = vld [vmem:[#allocation3 + $0x8c8] sm:$0xff]  ;;  %v5286_v43 = vld [vmem:[#allocation3 + $0x8d8] sm:$0xff] }
 0x622   : > { %5074 = vmatpush1.bf16.msra.mxu0 %v4947_v23  ;;  %5180 = vmatpush1.bf16.msra.mxu1 %v4949_v25  ;;  %v5283_v23 = vld [vmem:[#allocation3 + $0x8c0] sm:$0xff]  ;;  %v5285_v25 = vld [vmem:[#allocation3 + $0x8d0] sm:$0xff] }
 0x623   : > { %5075 = vmatprep.subr.bf16.mxu0 %v4952_v16  ;;  %5181 = vmatprep.subr.bf16.mxu1 %v4954_v13  ;;  %v5288_v16 = vld [vmem:[#allocation3 + $0x8e8] sm:$0xff]  ;;  %v5290_v13 = vld [vmem:[#allocation3 + $0x8f8] sm:$0xff] }
 0x626   : > { %5076 = vmatpush1.bf16.msra.mxu0 %v4951_v21  ;;  %5182 = vmatpush1.bf16.msra.mxu1 %v4953_v30  ;;  %v5287_v21 = vld [vmem:[#allocation3 + $0x8e0] sm:$0xff]  ;;  %v5289_v30 = vld [vmem:[#allocation3 + $0x8f0] sm:$0xff] }
 0x627   : > { %5077 = vmatprep.subr.bf16.mxu0 %v4956_v37  ;;  %5183 = vmatprep.subr.bf16.mxu1 %v4958_v48  ;;  %v5292_v37 = vld [vmem:[#allocation3 + $0x908] sm:$0xff]  ;;  %v5294_v48 = vld [vmem:[#allocation3 + $0x918] sm:$0xff] }
 0x62a   : > { %5078 = vmatpush1.bf16.msra.mxu0 %v4955_v32  ;;  %5184 = vmatpush1.bf16.msra.mxu1 %v4957_v49  ;;  %v5291_v32 = vld [vmem:[#allocation3 + $0x900] sm:$0xff]  ;;  %v5293_v49 = vld [vmem:[#allocation3 + $0x910] sm:$0xff] }
 0x62b   : > { %5079 = vmatprep.subr.bf16.mxu0 %v4960_v34  ;;  %5185 = vmatprep.subr.bf16.mxu1 %v4962_v5  ;;  %v5296_v34 = vld [vmem:[#allocation3 + $0x928] sm:$0xff]  ;;  %v5298_v5 = vld [vmem:[#allocation3 + $0x938] sm:$0xff] }
 0x62e   : > { %5080 = vmatpush1.bf16.msra.mxu0 %v4959_v53  ;;  %5186 = vmatpush1.bf16.msra.mxu1 %v4961_v36  ;;  %v5295_v53 = vld [vmem:[#allocation3 + $0x920] sm:$0xff]  ;;  %v5297_v36 = vld [vmem:[#allocation3 + $0x930] sm:$0xff] }
 0x62f   : > { %5081 = vmatprep.subr.bf16.mxu0 %v4964_v62  ;;  %5187 = vmatprep.subr.bf16.mxu1 %v4966_v4  ;;  %v5300_v62 = vld [vmem:[#allocation3 + $0x948] sm:$0xff]  ;;  %v5302_v4 = vld [vmem:[#allocation3 + $0x958] sm:$0xff] }
 0x632   : > { %5082 = vmatpush1.bf16.msra.mxu0 %v4963_v56  ;;  %5188 = vmatpush1.bf16.msra.mxu1 %v4965_v44  ;;  %v5299_v56 = vld [vmem:[#allocation3 + $0x940] sm:$0xff]  ;;  %v5301_v44 = vld [vmem:[#allocation3 + $0x950] sm:$0xff] }
 0x633   : > { %5418 = vmatprep.subr.bf16.mxu0 %v5260_v35  ;;  %5524 = vmatprep.subr.bf16.mxu1 %v5262_v15  ;;  %v5304_v35 = vld [vmem:[#allocation3 + $0x968] sm:$0xff]  ;;  %v5306_v15 = vld [vmem:[#allocation3 + $0x978] sm:$0xff] }
 0x635   : > { %5084 = vmatmul.mubr.bf16.vlgmr.msra.gmra.mrb[16].mxu0 %v8030_v26  ;;  %5190 = vmatmul.mubr.bf16.vlgmr.msra.gmra.mrb[16].mxu1 %v8030_v26  ;;  %v5269_v26 = vld [vmem:[#allocation3 + $0x850] sm:$0xff] }
 0x636   : > { %5093 = vmatprep.mubr.bf16.mxu0 %v8046_v24  ;;  %5199 = vmatprep.mubr.bf16.mxu1 %v8046_v24  ;;  %v5274_v24 = vld [vmem:[#allocation3 + $0x878] sm:$0xff] }
 0x637   : > { %5419 = vmatpush1.bf16.msra.mxu0 %v5259_v14  ;;  %5525 = vmatpush1.bf16.msra.mxu1 %v5261_v41  ;;  %v5303_v14 = vld [vmem:[#allocation3 + $0x960] sm:$0xff]  ;;  %v5305_v41 = vld [vmem:[#allocation3 + $0x970] sm:$0xff] }
 0x638   : > { %5420 = vmatprep.subr.bf16.mxu0 %v5264_v47  ;;  %5526 = vmatprep.subr.bf16.mxu1 %v5266_v19  ;;  %v5308_v47 = vld [vmem:[#allocation3 + $0x988] sm:$0xff]  ;;  %v5310_v19 = vld [vmem:[#allocation3 + $0x998] sm:$0xff] }
 0x63b   : > { %5421 = vmatpush1.bf16.msra.mxu0 %v5263_v10  ;;  %5527 = vmatpush1.bf16.msra.mxu1 %v5265_v38  ;;  %v5307_v10 = vld [vmem:[#allocation3 + $0x980] sm:$0xff]  ;;  %v5309_v38 = vld [vmem:[#allocation3 + $0x990] sm:$0xff] }
 0x63c   : > { %5422 = vmatprep.subr.bf16.mxu0 %v5268_v39  ;;  %5528 = vmatprep.subr.bf16.mxu1 %v5270_v61  ;;  %v5312_v39 = vld [vmem:[#allocation3 + $0x9a8] sm:$0xff]  ;;  %v5314_v61 = vld [vmem:[#allocation3 + $0x9b8] sm:$0xff] }
 0x63d   : > { %5094 = vmatmul.mubr.bf16.gmra.mrb[20].mxu0 %v8050_v40  ;;  %5200 = vmatmul.mubr.bf16.gmra.mrb[20].mxu1 %v8050_v40  ;;  %v5279_v40 = vld [vmem:[#allocation3 + $0x8a0] sm:$0xff] }
 0x63f   : > { %5423 = vmatpush1.bf16.msra.mxu0 %v5267_v9  ;;  %5529 = vmatpush1.bf16.msra.mxu1 %v5269_v26  ;;  %v5311_v9 = vld [vmem:[#allocation3 + $0x9a0] sm:$0xff]  ;;  %v5313_v26 = vld [vmem:[#allocation3 + $0x9b0] sm:$0xff] }
 0x640   : > { %5424 = vmatprep.subr.bf16.mxu0 %v5272_v54  ;;  %5530 = vmatprep.subr.bf16.mxu1 %v5274_v24  ;;  %v5316_v54 = vld [vmem:[#allocation3 + $0x9c8] sm:$0xff]  ;;  %v5318_v24 = vld [vmem:[#allocation3 + $0x9d8] sm:$0xff] }
 0x643   : > { %5425 = vmatpush1.bf16.msra.mxu0 %v5271_v58  ;;  %5531 = vmatpush1.bf16.msra.mxu1 %v5273_v59  ;;  %v5315_v58 = vld [vmem:[#allocation3 + $0x9c0] sm:$0xff]  ;;  %v5317_v59 = vld [vmem:[#allocation3 + $0x9d0] sm:$0xff] }
 0x644   : > { %5426 = vmatprep.subr.bf16.mxu0 %v5276_v33  ;;  %5532 = vmatprep.subr.bf16.mxu1 %v5278_v52  ;;  %v5320_v33 = vld [vmem:[#allocation3 + $0x9e8] sm:$0xff]  ;;  %v5322_v52 = vld [vmem:[#allocation3 + $0x9f8] sm:$0xff] }
 0x647   : > { %5427 = vmatpush1.bf16.msra.mxu0 %v5275_v1  ;;  %5533 = vmatpush1.bf16.msra.mxu1 %v5277_v6  ;;  %v5319_v1 = vld [vmem:[#allocation3 + $0x9e0] sm:$0xff]  ;;  %v5321_v6 = vld [vmem:[#allocation3 + $0x9f0] sm:$0xff] }
 0x648   : > { %5428 = vmatprep.subr.bf16.mxu0 %v5280_v11  ;;  %5534 = vmatprep.subr.bf16.mxu1 %v5282_v20  ;;  %v5324_v11 = vld [vmem:[#allocation3 + $0xa08] sm:$0xff]  ;;  %v5326_v20 = vld [vmem:[#allocation3 + $0xa18] sm:$0xff] }
 0x64b   : > { %5429 = vmatpush1.bf16.msra.mxu0 %v5279_v40  ;;  %5535 = vmatpush1.bf16.msra.mxu1 %v5281_v27  ;;  %v4968_v40 = vld [vmem:[#allocation11 + $0x2] ss:$8 sm:$0xf] }
 0x64c   : > { %5430 = vmatprep.subr.bf16.mxu0 %v5284_v0  ;;  %5536 = vmatprep.subr.bf16.mxu1 %v5286_v43  ;;  %v8059_v27 = vrot.slane %v4968_v40, %v7920_v46  ;;  %v8062_v0 = vrot.slane %v4968_v40, %v7978_v31  ;;  %v8065_v43 = vrot.slane %v4968_v40, %v7915_v2 }
 0x64f   : > { %5431 = vmatpush1.bf16.msra.mxu0 %v5283_v23  ;;  %5537 = vmatpush1.bf16.msra.mxu1 %v5285_v25  ;;  %v8068_v23 = vrot.slane %v4968_v40, %v7933_v18 }
 0x650   : > { %5432 = vmatprep.subr.bf16.mxu0 %v5288_v16  ;;  %5538 = vmatprep.subr.bf16.mxu1 %v5290_v13 }
 0x653   : > { %5433 = vmatpush1.bf16.msra.mxu0 %v5287_v21  ;;  %5539 = vmatpush1.bf16.msra.mxu1 %v5289_v30 }
 0x654   : > { %5434 = vmatprep.subr.bf16.mxu0 %v5292_v37  ;;  %5540 = vmatprep.subr.bf16.mxu1 %v5294_v48 }
 0x657   : > { %5435 = vmatpush1.bf16.msra.mxu0 %v5291_v32  ;;  %5541 = vmatpush1.bf16.msra.mxu1 %v5293_v49 }
 0x658   : > { %5436 = vmatprep.subr.bf16.mxu0 %v5296_v34  ;;  %5542 = vmatprep.subr.bf16.mxu1 %v5298_v5 }
 0x65b   : > { %5437 = vmatpush1.bf16.msra.mxu0 %v5295_v53  ;;  %5543 = vmatpush1.bf16.msra.mxu1 %v5297_v36 }
 0x65c   : > { %5438 = vmatprep.subr.bf16.mxu0 %v5300_v62  ;;  %5544 = vmatprep.subr.bf16.mxu1 %v5302_v4 }
 0x65f   : > { %5439 = vmatpush1.bf16.msra.mxu0 %v5299_v56  ;;  %5545 = vmatpush1.bf16.msra.mxu1 %v5301_v44 }
 0x660   : > { %5440 = vmatprep.subr.bf16.mxu0 %v5304_v35  ;;  %5546 = vmatprep.subr.bf16.mxu1 %v5306_v15 }
 0x663   : > { %5441 = vmatpush1.bf16.msra.mxu0 %v5303_v14  ;;  %5547 = vmatpush1.bf16.msra.mxu1 %v5305_v41 }
 0x664   : > { %5442 = vmatprep.subr.bf16.mxu0 %v5308_v47  ;;  %5548 = vmatprep.subr.bf16.mxu1 %v5310_v19 }
 0x667   : > { %5443 = vmatpush1.bf16.msra.mxu0 %v5307_v10  ;;  %5549 = vmatpush1.bf16.msra.mxu1 %v5309_v38 }
 0x668   : > { %5444 = vmatprep.subr.bf16.mxu0 %v5312_v39  ;;  %5550 = vmatprep.subr.bf16.mxu1 %v5314_v61 }
 0x66b   : > { %5445 = vmatpush1.bf16.msra.mxu0 %v5311_v9  ;;  %5551 = vmatpush1.bf16.msra.mxu1 %v5313_v26 }
 0x66c   : > { %5446 = vmatprep.subr.bf16.mxu0 %v5316_v54  ;;  %5552 = vmatprep.subr.bf16.mxu1 %v5318_v24 }
 0x66f   : > { %5447 = vmatpush1.bf16.msra.mxu0 %v5315_v58  ;;  %5553 = vmatpush1.bf16.msra.mxu1 %v5317_v59 }
 0x670   : > { %5448 = vmatprep.subr.bf16.mxu0 %v5320_v33  ;;  %5554 = vmatprep.subr.bf16.mxu1 %v5322_v52 }
 0x673   : > { %5449 = vmatpush1.bf16.msra.mxu0 %v5319_v1  ;;  %5555 = vmatpush1.bf16.msra.mxu1 %v5321_v6 }
 0x674   : > { %5471 = vmatprep.subr.bf16.mxu0 %v5324_v11  ;;  %5577 = vmatprep.subr.bf16.mxu1 %v5326_v20 }
 0x708   : > { %v5085_v25 = vpop.f32.mrb[16].mxu0  ;;  %v5191_v16 = vpop.f32.mrb[16].mxu1 }
 0x709   : > { %v6301_v13 = vadd.f32 %v5085_v25, %v8059_v27  ;;  %v6309_v21 = vadd.f32 %v5191_v16, %v8062_v0  ;;  %v5087_v30 = vpop.f32.mrb[17].mxu0  ;;  %v5193_v37 = vpop.f32.mrb[17].mxu1 }
 0x70a   : > { %v6302_v48 = vadd.f32 %v5087_v30, %v8065_v43  ;;  %v6310_v32 = vadd.f32 %v5193_v37, %v8068_v23  ;;  %v5089_v49 = vpop.f32.mrb[18].mxu0  ;;  %v5195_v34 = vpop.f32.mrb[18].mxu1 }
 0x70b   : > { %vm5210_vm0 = vcmp.gt.f32.partialorder %v6301_v13, 0.0  ;;  %v5226_v5 = vmul.f32 0.1, %v6301_v13  ;;  %vm5212_vm1 = vcmp.gt.f32.partialorder %v6309_v21, 0.0  ;;  %v5228_v53 = vmul.f32 0.1, %v6309_v21 }
 0x70c   : > { %vm5211_vm2 = vcmp.gt.f32.partialorder %v6302_v48, 0.0  ;;  %v5227_v36 = vmul.f32 0.1, %v6302_v48  ;;  %vm5213_vm3 = vcmp.gt.f32.partialorder %v6310_v32, 0.0  ;;  %v6303_v62 = vadd.f32 %v5089_v49, %v8059_v27  ;;  %v5091_v56 = vpop.f32.mrb[19].mxu0  ;;  %v5197_v44 = vpop.f32.mrb[19].mxu1 }
 0x70d   : > { %v6311_v4 = vadd.f32 %v5195_v34, %v8062_v0  ;;  %v5242_v35 = vsel %vm5210_vm0, %v6301_v13, %v5226_v5  ;;  %v5229_v15 = vmul.f32 0.1, %v6310_v32  ;;  %v6304_v14 = vadd.f32 %v5091_v56, %v8065_v43 }
 0x70e   : > { %v6312_v41 = vadd.f32 %v5197_v44, %v8068_v23  ;;  %vm5214_vm4 = vcmp.gt.f32.partialorder %v6303_v62, 0.0  ;;  %v5230_v47 = vmul.f32 0.1, %v6303_v62  ;;  %v5244_v10 = vsel %vm5212_vm1, %v6309_v21, %v5228_v53  ;;  %v5325_v44 = vld [vmem:[#allocation3 + $0xa10] sm:$0xff] }
 0x70f   : > { %vm5216_vm5 = vcmp.gt.f32.partialorder %v6311_v4, 0.0  ;;  %v5232_v19 = vmul.f32 0.1, %v6311_v4  ;;  %vm5215_vm6 = vcmp.gt.f32.partialorder %v6304_v14, 0.0  ;;  %v5231_v38 = vmul.f32 0.1, %v6304_v14 }
 0x710   : > { %v5233_v39 = vmul.f32 0.1, %v6312_v41  ;;  %v5246_v61 = vsel %vm5214_vm4, %v6303_v62, %v5230_v47  ;;  %vm5217_vm7 = vcmp.gt.f32.partialorder %v6312_v41, 0.0  ;;  %v5095_v26 = vpop.f32.mrb[20].mxu0  ;;  %v5201_v54 = vpop.f32.mrb[20].mxu1  ;;  %v5243_v24 = vsel %vm5211_vm2, %v6302_v48, %v5227_v36 }
 0x711   : > { %v5248_v9 = vsel %vm5216_vm5, %v6311_v4, %v5232_v19  ;;  %v5389_v58 = vpack.c.bf16 %v5246_v61, %v5242_v35  ;;  %v6305_v33 = vadd.f32 %v5095_v26, %v8059_v27  ;;  %v6313_v52 = vadd.f32 %v5201_v54, %v8062_v0  ;;  %v5097_v1 = vpop.f32.mrb[21].mxu0  ;;  %v5203_v6 = vpop.f32.mrb[21].mxu1  ;;  %v5323_v4 = vld [vmem:[#allocation3 + $0xa00] sm:$0xff]  ;;  %v5328_v35 = vld [vmem:[#allocation3 + $0xa28] sm:$0xff] }
 0x712   : > { %v8080_v59 = vpack.c.bf16 %v5248_v9, %v5244_v10  ;;  %v6306_v11 = vadd.f32 %v5097_v1, %v8065_v43  ;;  %v6314_v20 = vadd.f32 %v5203_v6, %v8068_v23  ;;  %v5099_v40 = vpop.f32.mrb[22].mxu0  ;;  %v5205_v25 = vpop.f32.mrb[22].mxu1  ;;  %v5247_v16 = vsel %vm5215_vm6, %v6304_v14, %v5231_v38  ;;  %v5327_v38 = vld [vmem:[#allocation3 + $0xa20] sm:$0xff]  ;;  %v5334_v6 = vld [vmem:[#allocation3 + $0xa58] sm:$0xff] }
 0x713   : > { %v5245_v13 = vsel %vm5213_vm3, %v6310_v32, %v5229_v15  ;;  %vm5218_vm8 = vcmp.gt.f32.partialorder %v6305_v33, 0.0  ;;  %v5234_v21 = vmul.f32 0.1, %v6305_v33  ;;  %vm5220_vm9 = vcmp.gt.f32.partialorder %v6313_v52, 0.0  ;;  %v5101_v53 = vpop.f32.mrb[23].mxu0  ;;  %v5207_v36 = vpop.f32.mrb[23].mxu1 }
 0x714   : > { %v5249_v30 = vsel %vm5217_vm7, %v6312_v41, %v5233_v39  ;;  %v5236_v37 = vmul.f32 0.1, %v6313_v52  ;;  %vm5219_vm10 = vcmp.gt.f32.partialorder %v6306_v11, 0.0  ;;  %v5235_v48 = vmul.f32 0.1, %v6306_v11  ;;  %v5330_v15 = vld [vmem:[#allocation3 + $0xa38] sm:$0xff] }
 0x715   : > { %vm5221_vm11 = vcmp.gt.f32.partialorder %v6314_v20, 0.0  ;;  %v5237_v49 = vmul.f32 0.1, %v6314_v20  ;;  %v6307_v34 = vadd.f32 %v5099_v40, %v8059_v27  ;;  %v6315_v5 = vadd.f32 %v5205_v25, %v8062_v0  ;;  %v5329_v39 = vld [vmem:[#allocation3 + $0xa30] sm:$0xff]  ;;  %v5336_v25 = vld [vmem:[#allocation3 + $0xa68] sm:$0xff] }
 0x716   : > { %v5390_v62 = vpack.c.bf16 %v5247_v16, %v5243_v24  ;;  %v6308_v32 = vadd.f32 %v5101_v53, %v8065_v43  ;;  %v6316_v56 = vadd.f32 %v5207_v36, %v8068_v23  ;;  %v5250_v14 = vsel %vm5218_vm8, %v6305_v33, %v5234_v21  ;;  %v5332_v24 = vld [vmem:[#allocation3 + $0xa48] sm:$0xff]  ;;  %v5333_v40 = vld [vmem:[#allocation3 + $0xa50] sm:$0xff]  ;;  %v5338_v16 = vld [vmem:[#allocation3 + $0xa78] sm:$0xff] }
 0x717   : > { %v5392_v41 = vpack.c.bf16 %v5249_v30, %v5245_v13  ;;  %vm5222_vm12 = vcmp.gt.f32.partialorder %v6307_v34, 0.0  ;;  %v5238_v47 = vmul.f32 0.1, %v6307_v34  ;;  %vm5224_vm13 = vcmp.gt.f32.partialorder %v6315_v5, 0.0  ;;  %v5337_v13 = vld [vmem:[#allocation3 + $0xa70] sm:$0xff]  ;;  %v5340_v21 = vld [vmem:[#allocation3 + $0xa88] sm:$0xff] }
 0x718   : > { %v5240_v27 = vmul.f32 0.1, %v6315_v5  ;;  %5450 = vmatprep.mubr.bf16.mxu0 %v5390_v62  ;;  %5556 = vmatprep.mubr.bf16.mxu1 %v5390_v62  ;;  %vm5223_vm14 = vcmp.gt.f32.partialorder %v6308_v32, 0.0  ;;  %v5239_v0 = vmul.f32 0.1, %v6308_v32  ;;  %vm5225_vm15 = vcmp.gt.f32.partialorder %v6316_v56, 0.0 }
 0x719   : > { %v5241_v19 = vmul.f32 0.1, %v6316_v56  ;;  %5451 = vmatmul.mubr.bf16.vlgmr.msra.gmra.mrb[24].mxu0 %v5389_v58  ;;  %5557 = vmatmul.mubr.bf16.vlgmr.msra.gmra.mrb[24].mxu1 %v5389_v58  ;;  %v5251_v43 = vsel %vm5219_vm10, %v6306_v11, %v5235_v48  ;;  %v5254_v23 = vsel %vm5222_vm12, %v6307_v34, %v5238_v47  ;;  %v5253_v10 = vsel %vm5221_vm11, %v6314_v20, %v5237_v49  ;;  %v5331_v20 = vld [vmem:[#allocation3 + $0xa40] sm:$0xff]  ;;  %v5342_v30 = vld [vmem:[#allocation3 + $0xa98] sm:$0xff]  ;;  %v5341_v48 = vld [vmem:[#allocation3 + $0xa90] sm:$0xff] }
 0x71a   : > { %5472 = vmatpush1.bf16.msra.mxu0 %v5323_v4  ;;  %5578 = vmatpush1.bf16.msra.mxu1 %v5325_v44  ;;  %v5255_v61 = vsel %vm5223_vm14, %v6308_v32, %v5239_v0  ;;  %v5393_v9 = vpack.c.bf16 %v5254_v23, %v5250_v14  ;;  %v5252_v58 = vsel %vm5220_vm9, %v6313_v52, %v5236_v37  ;;  %v5335_v52 = vld [vmem:[#allocation3 + $0xa60] sm:$0xff]  ;;  %v5344_v49 = vld [vmem:[#allocation3 + $0xaa8] sm:$0xff]  ;;  %v5346_v34 = vld [vmem:[#allocation3 + $0xab8] sm:$0xff]  ;;  %vm6062_vm4 = vcmask 7168  }
 0x71b   : > { %5473 = vmatprep.subr.bf16.mxu0 %v5328_v35  ;;  %5579 = vmatprep.subr.bf16.mxu1 %v5330_v15  ;;  %v5257_v26 = vsel %vm5225_vm15, %v6316_v56, %v5241_v19  ;;  %v5394_v54 = vpack.c.bf16 %v5255_v61, %v5251_v43  ;;  %v5256_v1 = vsel %vm5224_vm13, %v6315_v5, %v5240_v27  ;;  %v5339_v37 = vld [vmem:[#allocation3 + $0xa80] sm:$0xff]  ;;  %v5345_v53 = vld [vmem:[#allocation3 + $0xab0] sm:$0xff]  ;;  %v5348_v36 = vld [vmem:[#allocation3 + $0xac8] sm:$0xff] }
 0x71c   : > { %v8096_v33 = vpack.c.bf16 %v5257_v26, %v5253_v10  ;;  %v8100_v11 = vpack.c.bf16 %v5256_v1, %v5252_v58  ;;  %v5343_v5 = vld [vmem:[#allocation3 + $0xaa0] sm:$0xff]  ;;  %v5350_v62 = vld [vmem:[#allocation3 + $0xad8] sm:$0xff]  ;;  %v5349_v32 = vld [vmem:[#allocation3 + $0xad0] sm:$0xff] }
 0x71d   : > { %5460 = vmatprep.mubr.bf16.mxu0 %v5394_v54  ;;  %5566 = vmatprep.mubr.bf16.mxu1 %v5394_v54  ;;  %v5347_v4 = vld [vmem:[#allocation3 + $0xac0] sm:$0xff]  ;;  %v5352_v56 = vld [vmem:[#allocation3 + $0xae8] sm:$0xff]  ;;  %v5354_v44 = vld [vmem:[#allocation3 + $0xaf8] sm:$0xff] }
 0x71e   : > { %5474 = vmatpush1.bf16.msra.mxu0 %v5327_v38  ;;  %5580 = vmatpush1.bf16.msra.mxu1 %v5329_v39  ;;  %v5351_v35 = vld [vmem:[#allocation3 + $0xae0] sm:$0xff]  ;;  %v5353_v15 = vld [vmem:[#allocation3 + $0xaf0] sm:$0xff]  ;;  %v5356_v14 = vld [vmem:[#allocation3 + $0xb08] sm:$0xff] }
 0x71f   : > { %5475 = vmatprep.subr.bf16.mxu0 %v5332_v24  ;;  %5581 = vmatprep.subr.bf16.mxu1 %v5334_v6  ;;  %v5355_v47 = vld [vmem:[#allocation3 + $0xb00] sm:$0xff]  ;;  %v5357_v27 = vld [vmem:[#allocation3 + $0xb10] sm:$0xff]  ;;  %v5360_v0 = vld [vmem:[#allocation3 + $0xb28] sm:$0xff] }
 0x720   : > { %v5362_v19 = vld [vmem:[#allocation3 + $0xb38] sm:$0xff]  ;;  %v5359_v43 = vld [vmem:[#allocation3 + $0xb20] sm:$0xff]  ;;  %v5361_v23 = vld [vmem:[#allocation3 + $0xb30] sm:$0xff] }
 0x721   : > { %5461 = vmatmul.mubr.bf16.gmra.mrb[28].mxu0 %v5393_v9  ;;  %5567 = vmatmul.mubr.bf16.gmra.mrb[28].mxu1 %v5393_v9  ;;  %v5364_v10 = vld [vmem:[#allocation3 + $0xb48] sm:$0xff]  ;;  %v5366_v38 = vld [vmem:[#allocation3 + $0xb58] sm:$0xff]  ;;  %v5363_v39 = vld [vmem:[#allocation3 + $0xb40] sm:$0xff] }
 0x722   : > { %5476 = vmatpush1.bf16.msra.mxu0 %v5331_v20  ;;  %5582 = vmatpush1.bf16.msra.mxu1 %v5333_v40  ;;  %v5365_v61 = vld [vmem:[#allocation3 + $0xb50] sm:$0xff]  ;;  %v5368_v9 = vld [vmem:[#allocation3 + $0xb68] sm:$0xff]  ;;  %v5370_v26 = vld [vmem:[#allocation3 + $0xb78] sm:$0xff] }
 0x723   : > { %5503 = vmatprep.mubr.bf16.mxu0 %v5392_v41  ;;  %5609 = vmatprep.mubr.bf16.mxu1 %v5392_v41  ;;  %v5358_v41 = vld [vmem:[#allocation3 + $0xb18] sm:$0xff]  ;;  %v5367_v54 = vld [vmem:[#allocation3 + $0xb60] sm:$0xff]  ;;  %v5369_v24 = vld [vmem:[#allocation3 + $0xb70] sm:$0xff] }
 0x724   : > { %5477 = vmatprep.subr.bf16.mxu0 %v5336_v25  ;;  %5583 = vmatprep.subr.bf16.mxu1 %v5338_v16  ;;  %v5372_v58 = vld [vmem:[#allocation3 + $0xb88] sm:$0xff]  ;;  %v5374_v1 = vld [vmem:[#allocation3 + $0xb98] sm:$0xff]  ;;  %v5371_v6 = vld [vmem:[#allocation3 + $0xb80] sm:$0xff] }
 0x725   : > { %v5373_v20 = vld [vmem:[#allocation3 + $0xb90] sm:$0xff]  ;;  %v5376_v40 = vld [vmem:[#allocation3 + $0xba8] sm:$0xff]  ;;  %v5378_v25 = vld [vmem:[#allocation3 + $0xbb8] sm:$0xff] }
 0x726   : > { %5478 = vmatpush1.bf16.msra.mxu0 %v5335_v52  ;;  %5584 = vmatpush1.bf16.msra.mxu1 %v5337_v13  ;;  %v5375_v16 = vld [vmem:[#allocation3 + $0xba0] sm:$0xff]  ;;  %v5377_v52 = vld [vmem:[#allocation3 + $0xbb0] sm:$0xff]  ;;  %v5380_v13 = vld [vmem:[#allocation3 + $0xbc8] sm:$0xff] }
 0x727   : > { %5479 = vmatprep.subr.bf16.mxu0 %v5340_v21  ;;  %5585 = vmatprep.subr.bf16.mxu1 %v5342_v30  ;;  %v5382_v21 = vld [vmem:[#allocation3 + $0xbd8] sm:$0xff]  ;;  %v5379_v30 = vld [vmem:[#allocation3 + $0xbc0] sm:$0xff] }
 0x72a   : > { %5480 = vmatpush1.bf16.msra.mxu0 %v5339_v37  ;;  %5586 = vmatpush1.bf16.msra.mxu1 %v5341_v48  ;;  %v5381_v37 = vld [vmem:[#allocation3 + $0xbd0] sm:$0xff]  ;;  %v5384_v48 = vld [vmem:[#allocation3 + $0xbe8] sm:$0xff] }
 0x72b   : > { %5481 = vmatprep.subr.bf16.mxu0 %v5344_v49  ;;  %5587 = vmatprep.subr.bf16.mxu1 %v5346_v34  ;;  %v5386_v49 = vld [vmem:[#allocation3 + $0xbf8] sm:$0xff]  ;;  %v5383_v34 = vld [vmem:[#allocation3 + $0xbe0] sm:$0xff] }
 0x72e   : > { %5482 = vmatpush1.bf16.msra.mxu0 %v5343_v5  ;;  %5588 = vmatpush1.bf16.msra.mxu1 %v5345_v53  ;;  %v5385_v5 = vld [vmem:[#allocation3 + $0xbf0] sm:$0xff]  ;;  %v6467_v53 = vld [vmem:[#allocation9 + $0x40] sm:$0xff]  }
 0x72f   : > { %5483 = vmatprep.subr.bf16.mxu0 %v5348_v36  ;;  %5589 = vmatprep.subr.bf16.mxu1 %v5350_v62  ;;  %v6468_v36 = vld [vmem:[#allocation9 + $0xc0] sm:$0xff]  }
 0x730   : > { %v6469_v62 = vld [vmem:[#allocation9] sm:$0xff]  }
 0x732   : > { %5484 = vmatpush1.bf16.msra.mxu0 %v5347_v4  ;;  %5590 = vmatpush1.bf16.msra.mxu1 %v5349_v32  ;;  %v6470_v4 = vld [vmem:[#allocation9 + $0x80] sm:$0xff]   ;;  %v6471_v32 = vld [vmem:[#allocation9 + $0x48] sm:$0xff]  }
 0x733   : > { %5485 = vmatprep.subr.bf16.mxu0 %v5352_v56  ;;  %5591 = vmatprep.subr.bf16.mxu1 %v5354_v44  ;;  %v6472_v56 = vld [vmem:[#allocation9 + $0xc8] sm:$0xff]  }
 0x734   : > { %v6473_v44 = vld [vmem:[#allocation9 + $0x8] sm:$0xff]  }
 0x736   : > { %5486 = vmatpush1.bf16.msra.mxu0 %v5351_v35  ;;  %5592 = vmatpush1.bf16.msra.mxu1 %v5353_v15  ;;  %v6474_v35 = vld [vmem:[#allocation9 + $0x88] sm:$0xff]   ;;  %v6475_v15 = vld [vmem:[#allocation9 + $0x50] sm:$0xff]  }
 0x737   : > { %5487 = vmatprep.subr.bf16.mxu0 %v5356_v14  ;;  %5593 = vmatprep.subr.bf16.mxu1 %v5358_v41  ;;  %v6476_v14 = vld [vmem:[#allocation9 + $0xd0] sm:$0xff]  }
 0x738   : > { %v6477_v41 = vld [vmem:[#allocation9 + $0x10] sm:$0xff]  }
 0x73a   : > { %5488 = vmatpush1.bf16.msra.mxu0 %v5355_v47  ;;  %5594 = vmatpush1.bf16.msra.mxu1 %v5357_v27  ;;  %v6478_v47 = vld [vmem:[#allocation9 + $0x90] sm:$0xff]   ;;  %v6479_v27 = vld [vmem:[#allocation9 + $0x58] sm:$0xff]  }
 0x73b   : > { %5489 = vmatprep.subr.bf16.mxu0 %v5360_v0  ;;  %5595 = vmatprep.subr.bf16.mxu1 %v5362_v19  ;;  %v6482_v0 = vld [vmem:[#allocation9 + $0x98] sm:$0xff]   ;;  %v6483_v19 = vld [vmem:[#allocation9 + $0x60] sm:$0xff]  }
 0x73e   : > { %5490 = vmatpush1.bf16.msra.mxu0 %v5359_v43  ;;  %5596 = vmatpush1.bf16.msra.mxu1 %v5361_v23  ;;  %v6484_v43 = vld [vmem:[#allocation9 + $0xe0] sm:$0xff]  }
 0x73f   : > { %5491 = vmatprep.subr.bf16.mxu0 %v5364_v10  ;;  %5597 = vmatprep.subr.bf16.mxu1 %v5366_v38  ;;  %v6485_v23 = vld [vmem:[#allocation9 + $0x20] sm:$0xff]   ;;  %v6487_v38 = vld [vmem:[#allocation9 + $0x68] sm:$0xff]  }
 0x740   : > { %v6486_v10 = vld [vmem:[#allocation9 + $0xa0] sm:$0xff]  }
 0x742   : > { %5492 = vmatpush1.bf16.msra.mxu0 %v5363_v39  ;;  %5598 = vmatpush1.bf16.msra.mxu1 %v5365_v61  ;;  %v6488_v39 = vld [vmem:[#allocation9 + $0xe8] sm:$0xff]  }
 0x743   : > { %5493 = vmatprep.subr.bf16.mxu0 %v5368_v9  ;;  %5599 = vmatprep.subr.bf16.mxu1 %v5370_v26  ;;  %v6489_v61 = vld [vmem:[#allocation9 + $0x28] sm:$0xff]   ;;  %v6491_v9 = vld [vmem:[#allocation9 + $0x70] sm:$0xff]  }
 0x744   : > { %v6492_v26 = vld [vmem:[#allocation9 + $0xf0] sm:$0xff]  }
 0x746   : > { %5494 = vmatpush1.bf16.msra.mxu0 %v5367_v54  ;;  %5600 = vmatpush1.bf16.msra.mxu1 %v5369_v24  ;;  %v6493_v54 = vld [vmem:[#allocation9 + $0x30] sm:$0xff]  }
 0x747   : > { %5495 = vmatprep.subr.bf16.mxu0 %v5372_v58  ;;  %5601 = vmatprep.subr.bf16.mxu1 %v5374_v1  ;;  %v6494_v24 = vld [vmem:[#allocation9 + $0xb0] sm:$0xff]   ;;  %v6495_v58 = vld [vmem:[#allocation9 + $0x78] sm:$0xff]  }
 0x748   : > { %v6496_v1 = vld [vmem:[#allocation9 + $0xf8] sm:$0xff]  }
 0x74a   : > { %5496 = vmatpush1.bf16.msra.mxu0 %v5371_v6  ;;  %5602 = vmatpush1.bf16.msra.mxu1 %v5373_v20  ;;  %v6497_v6 = vld [vmem:[#allocation9 + $0x38] sm:$0xff]  }
 0x74b   : > { %5497 = vmatprep.subr.bf16.mxu0 %v5376_v40  ;;  %5603 = vmatprep.subr.bf16.mxu1 %v5378_v25  ;;  %v6498_v20 = vld [vmem:[#allocation9 + $0xb8] sm:$0xff]  }
 0x74c   : > { %v5388_v40 = vld [vmem:[#allocation11 + $0x3] ss:$8 sm:$0xf] }
 0x74d   : > { %v5401_v25 = vrot.slane %v5388_v40, %v7920_v46 }
 0x74e   : > { %5498 = vmatpush1.bf16.msra.mxu0 %v5375_v16  ;;  %5604 = vmatpush1.bf16.msra.mxu1 %v5377_v52  ;;  %v5409_v16 = vrot.slane %v5388_v40, %v7978_v31  ;;  %v5405_v52 = vrot.slane %v5388_v40, %v7915_v2 }
 0x74f   : > { %5499 = vmatprep.subr.bf16.mxu0 %v5380_v13  ;;  %5605 = vmatprep.subr.bf16.mxu1 %v5382_v21  ;;  %v5413_v13 = vrot.slane %v5388_v40, %v7933_v18 }
 0x752   : > { %5500 = vmatpush1.bf16.msra.mxu0 %v5379_v30  ;;  %5606 = vmatpush1.bf16.msra.mxu1 %v5381_v37 }
 0x753   : > { %5501 = vmatprep.subr.bf16.mxu0 %v5384_v48  ;;  %5607 = vmatprep.subr.bf16.mxu1 %v5386_v49 }
 0x756   : > { %5502 = vmatpush1.bf16.msra.mxu0 %v5383_v34  ;;  %5608 = vmatpush1.bf16.msra.mxu1 %v5385_v5 }
 0x757   : > { %6229 = vmatprep.subr.bf16.mxu0 %v6467_v53  ;;  %6257 = vmatprep.subr.bf16.mxu1 %v6468_v36 }
 0x759   : > { %5504 = vmatmul.mubr.bf16.vlgmr.msra.gmra.mrb[24].mxu0 %v8080_v59  ;;  %5610 = vmatmul.mubr.bf16.vlgmr.msra.gmra.mrb[24].mxu1 %v8080_v59  ;;  %v6480_v59 = vld [vmem:[#allocation9 + $0xd8] sm:$0xff]  }
 0x75a   : > { %5513 = vmatprep.mubr.bf16.mxu0 %v8096_v33  ;;  %5619 = vmatprep.mubr.bf16.mxu1 %v8096_v33  ;;  %v6481_v33 = vld [vmem:[#allocation9 + $0x18] sm:$0xff]  }
 0x75b   : > { %6230 = vmatpush3.bf16.msra.mxu0 %v6469_v62  ;;  %6258 = vmatpush3.bf16.msra.mxu1 %v6470_v4 }
 0x75c   : > { %6231 = vmatprep.subr.bf16.mxu0 %v6471_v32  ;;  %6259 = vmatprep.subr.bf16.mxu1 %v6472_v56 }
 0x75f   : > { %6232 = vmatpush3.bf16.msra.mxu0 %v6473_v44  ;;  %6260 = vmatpush3.bf16.msra.mxu1 %v6474_v35 }
 0x760   : > { %6233 = vmatprep.subr.bf16.mxu0 %v6475_v15  ;;  %6261 = vmatprep.subr.bf16.mxu1 %v6476_v14 }
 0x761   : > { %5514 = vmatmul.mubr.bf16.gmra.mrb[28].mxu0 %v8100_v11  ;;  %5620 = vmatmul.mubr.bf16.gmra.mrb[28].mxu1 %v8100_v11  ;;  %v6490_v11 = vld [vmem:[#allocation9 + $0xa8] sm:$0xff]  }
 0x763   : > { %6234 = vmatpush3.bf16.msra.mxu0 %v6477_v41  ;;  %6262 = vmatpush3.bf16.msra.mxu1 %v6478_v47 }
 0x764   : > { %6235 = vmatprep.subr.bf16.mxu0 %v6479_v27  ;;  %6263 = vmatprep.subr.bf16.mxu1 %v6480_v59 }
 0x767   : > { %6236 = vmatpush3.bf16.msra.mxu0 %v6481_v33  ;;  %6264 = vmatpush3.bf16.msra.mxu1 %v6482_v0 }
 0x768   : > { %6237 = vmatprep.subr.bf16.mxu0 %v6483_v19  ;;  %6265 = vmatprep.subr.bf16.mxu1 %v6484_v43 }
 0x76b   : > { %6238 = vmatpush3.bf16.msra.mxu0 %v6485_v23  ;;  %6266 = vmatpush3.bf16.msra.mxu1 %v6486_v10 }
 0x76c   : > { %6239 = vmatprep.subr.bf16.mxu0 %v6487_v38  ;;  %6267 = vmatprep.subr.bf16.mxu1 %v6488_v39 }
 0x76f   : > { %6240 = vmatpush3.bf16.msra.mxu0 %v6489_v61  ;;  %6268 = vmatpush3.bf16.msra.mxu1 %v6490_v11 }
 0x770   : > { %6241 = vmatprep.subr.bf16.mxu0 %v6491_v9  ;;  %6269 = vmatprep.subr.bf16.mxu1 %v6492_v26 }
 0x773   : > { %6242 = vmatpush3.bf16.msra.mxu0 %v6493_v54  ;;  %6270 = vmatpush3.bf16.msra.mxu1 %v6494_v24 }
 0x774   : > { %6243 = vmatprep.subr.bf16.mxu0 %v6495_v58  ;;  %6271 = vmatprep.subr.bf16.mxu1 %v6496_v1 }
 0x777   : > { %6244 = vmatpush3.bf16.msra.mxu0 %v6497_v6  ;;  %6272 = vmatpush3.bf16.msra.mxu1 %v6498_v20 }
 0x82c   : > { %v5505_v21 = vpop.f32.mrb[24].mxu0  ;;  %v5611_v30 = vpop.f32.mrb[24].mxu1 }
 0x82d   : > { %v6317_v37 = vadd.f32 %v5505_v21, %v5401_v25  ;;  %v6325_v48 = vadd.f32 %v5611_v30, %v5409_v16  ;;  %v5507_v49 = vpop.f32.mrb[25].mxu0  ;;  %v5613_v34 = vpop.f32.mrb[25].mxu1 }
 0x82e   : > { %v6318_v5 = vadd.f32 %v5507_v49, %v5405_v52  ;;  %v6326_v53 = vadd.f32 %v5613_v34, %v5413_v13  ;;  %v5509_v36 = vpop.f32.mrb[26].mxu0  ;;  %v5615_v62 = vpop.f32.mrb[26].mxu1 }
 0x82f   : > { %v5630_v4 = vadd.f32 %v6317_v37, %v7935_v28  ;;  %v5632_v46 = vadd.f32 %v6325_v48, %v7991_v29  ;;  %v6319_v32 = vadd.f32 %v5509_v36, %v5401_v25  ;;  %v6327_v31 = vadd.f32 %v5615_v62, %v5409_v16  ;;  %v5511_v56 = vpop.f32.mrb[27].mxu0  ;;  %v5617_v2 = vpop.f32.mrb[27].mxu1 }
 0x830   : > { %v5631_v18 = vadd.f32 %v6318_v5, %v7928_v57  ;;  %v5633_v44 = vadd.f32 %v6326_v53, %v7956_v51  ;;  %v6320_v35 = vadd.f32 %v5511_v56, %v5405_v52  ;;  %v6328_v15 = vadd.f32 %v5617_v2, %v5413_v13 }
 0x831   : > { %v5634_v14 = vadd.f32 %v6319_v32, %v7926_v17  ;;  %v5636_v41 = vadd.f32 %v6327_v31, %v7994_v60  ;;  %v5646_v27 = vmax.f32 %v5630_v4, 0.0  ;;  %v5648_v29 = vmax.f32 %v5632_v46, 0.0 }
 0x832   : > { %v5635_v47 = vadd.f32 %v6320_v35, %v7930_v55  ;;  %v5637_v28 = vadd.f32 %v6328_v15, %v7965_v3  ;;  %v5647_v0 = vmax.f32 %v5631_v18, 0.0  ;;  %v5649_v19 = vmax.f32 %v5633_v44, 0.0 }
 0x833   : > { %v5650_v59 = vmax.f32 %v5634_v14, 0.0  ;;  %v5652_v33 = vmax.f32 %v5636_v41, 0.0 }
 0x834   : > { %v5651_v43 = vmax.f32 %v5635_v47, 0.0  ;;  %v5653_v57 = vmax.f32 %v5637_v28, 0.0  ;;  %v5515_v23 = vpop.f32.mrb[28].mxu0  ;;  %v5621_v51 = vpop.f32.mrb[28].mxu1 }
 0x835   : > { %v5727_v10 = vpack.c.bf16 %v5650_v59, %v5646_v27  ;;  %v5729_v38 = vpack.c.bf16 %v5652_v33, %v5648_v29  ;;  %v6321_v39 = vadd.f32 %v5515_v23, %v5401_v25  ;;  %v6329_v17 = vadd.f32 %v5621_v51, %v5409_v16  ;;  %v5517_v61 = vpop.f32.mrb[29].mxu0  ;;  %v5623_v60 = vpop.f32.mrb[29].mxu1  ;;  %v6037_v33 = vld [vmem:[#allocation11 + $0x5] ss:$0 sm:$0xff] }
 0x836   : > { %v6322_v11 = vadd.f32 %v5517_v61, %v5405_v52  ;;  %v6330_v55 = vadd.f32 %v5623_v60, %v5413_v13  ;;  %v5519_v9 = vpop.f32.mrb[30].mxu0  ;;  %v5625_v3 = vpop.f32.mrb[30].mxu1  ;;  %v5728_v26 = vpack.c.bf16 %v5651_v43, %v5647_v0  ;;  %v5730_v54 = vpack.c.bf16 %v5653_v57, %v5649_v19 }
 0x837   : > { %v5638_v24 = vadd.f32 %v6321_v39, %v7945_v42  ;;  %v5640_v58 = vadd.f32 %v6329_v17, %v8001_v12  ;;  %v6323_v1 = vadd.f32 %v5519_v9, %v5401_v25  ;;  %v6331_v6 = vadd.f32 %v5625_v3, %v5409_v16  ;;  %v5521_v20 = vpop.f32.mrb[31].mxu0  ;;  %v5627_v40 = vpop.f32.mrb[31].mxu1 }
 0x838   : > { %v5639_v21 = vadd.f32 %v6322_v11, %v7947_v45  ;;  %v5641_v30 = vadd.f32 %v6330_v55, %v7984_v8  ;;  %v6324_v37 = vadd.f32 %v5521_v20, %v5405_v52  ;;  %v6332_v48 = vadd.f32 %v5627_v40, %v5413_v13  ;;  %5959 = vmatprep.mubr.bf16.mxu0 %v5728_v26 }
 0x839   : > { %v5642_v49 = vadd.f32 %v6323_v1, %v7951_v50  ;;  %v5644_v34 = vadd.f32 %v6331_v6, %v8004_v7  ;;  %6008 = vmatprep.mubr.bf16.mxu1 %v5730_v54  ;;  %5960 = vmatmul.mubr.bf16.vlgmr.msra.gmra.mrb[32].mxu0 %v5727_v10  ;;  %v5654_v25 = vmax.f32 %v5638_v24, 0.0  ;;  %v5656_v16 = vmax.f32 %v5640_v58, 0.0 }
 0x83a   : > { %v5643_v42 = vadd.f32 %v6324_v37, %v7953_v22  ;;  %v5645_v12 = vadd.f32 %v6332_v48, %v7988_v63  ;;  %6009 = vmatmul.mubr.bf16.vlgmr.msra.gmra.mrb[32].mxu1 %v5729_v38  ;;  %v5655_v53 = vmax.f32 %v5639_v21, 0.0  ;;  %v5657_v8 = vmax.f32 %v5641_v30, 0.0  ;;  %v5726_v63 = vld [vmem:[#allocation11 + $0x4] ss:$0 sm:$0xff] }
 0x83b   : > { %v5658_v5 = vmax.f32 %v5642_v49, 0.0  ;;  %v5660_v45 = vmax.f32 %v5644_v34, 0.0 }
 0x83c   : > { %v5659_v52 = vmax.f32 %v5643_v42, 0.0  ;;  %v5661_v13 = vmax.f32 %v5645_v12, 0.0 }
 0x83d   : > { %v5731_v36 = vpack.c.bf16 %v5658_v5, %v5654_v25  ;;  %v5733_v62 = vpack.c.bf16 %v5660_v45, %v5656_v16 }
 0x83e   : > { %v5732_v50 = vpack.c.bf16 %v5659_v52, %v5655_v53  ;;  %v5734_v4 = vpack.c.bf16 %v5661_v13, %v5657_v8 }
 0x840   : > { %5967 = vmatprep.mubr.bf16.mxu0 %v5732_v50  ;;  %6016 = vmatprep.mubr.bf16.mxu1 %v5734_v4 }
 0x841   : > { %5968 = vmatmul.mubr.bf16.gmra.mrb[36].mxu0 %v5731_v36 }
 0x842   : > { %6017 = vmatmul.mubr.bf16.gmra.mrb[36].mxu1 %v5733_v62 }
 0x90c   : > { %v6245_v22 = vpop.f32.mrb[32].mxu0 }
 0x90d   : > { %v6273_v7 = vpop.f32.mrb[32].mxu1  ;;  %v6246_v46 = vpop.f32.mrb[33].mxu0 }
 0x90e   : > { %v6247_v32 = vadd.f32 %v6246_v46, %v6245_v22  ;;  %v6274_v31 = vpop.f32.mrb[33].mxu1  ;;  %v6248_v56 = vpop.f32.mrb[34].mxu0 }
 0x90f   : > { %v6275_v2 = vadd.f32 %v6274_v31, %v6273_v7  ;;  %v6276_v18 = vpop.f32.mrb[34].mxu1  ;;  %v6249_v44 = vpop.f32.mrb[35].mxu0 }
 0x910   : > { %v5962_v35 = vadd.f32 %v6247_v32, %v5726_v63  ;;  %v6250_v15 = vadd.f32 %v6249_v44, %v6248_v56  ;;  %v6277_v14 = vpop.f32.mrb[35].mxu1 }
 0x911   : > { %v6278_v41 = vadd.f32 %v6277_v14, %v6276_v18 }
 0x912   : > { %v6011_v47 = vadd.f32 %v6275_v2, %v5962_v35  ;;  %v5965_v28 = vadd.f32 %v6250_v15, %v5726_v63 }
 0x914   : > { %v6014_v27 = vadd.f32 %v6278_v41, %v5965_v28  ;;  %v6251_v29 = vpop.f32.mrb[36].mxu0  ;;  %vm6025_vm0 = vcmp.gt.f32.partialorder %v6011_v47, 0.0  ;;  %v6029_v59 = vmul.f32 0.01, %v6011_v47 }
 0x915   : > { %v6279_v0 = vpop.f32.mrb[36].mxu1  ;;  %v6252_v19 = vpop.f32.mrb[37].mxu0 }
 0x916   : > { %v6253_v43 = vadd.f32 %v6252_v19, %v6251_v29  ;;  %v6280_v57 = vpop.f32.mrb[37].mxu1  ;;  %v6254_v23 = vpop.f32.mrb[38].mxu0  ;;  %v6033_v51 = vsel %vm6025_vm0, %v6011_v47, %v6029_v59  ;;  %vm6026_vm1 = vcmp.gt.f32.partialorder %v6014_v27, 0.0  ;;  %v6030_v10 = vmul.f32 0.01, %v6014_v27 }
 0x917   : > { %v6281_v38 = vadd.f32 %v6280_v57, %v6279_v0  ;;  %v6282_v39 = vpop.f32.mrb[38].mxu1  ;;  %v6255_v17 = vpop.f32.mrb[39].mxu0  ;;  %v6038_v61 = vmul.f32 %v6037_v33, %v6033_v51 }
 0x918   : > { %v5970_v60 = vadd.f32 %v6253_v43, %v5726_v63  ;;  %v6256_v11 = vadd.f32 %v6255_v17, %v6254_v23  ;;  %v6283_v55 = vpop.f32.mrb[39].mxu1  ;;  %v6034_v9 = vsel %vm6026_vm1, %v6014_v27, %v6030_v10 }
 0x919   : > { %v6284_v3 = vadd.f32 %v6283_v55, %v6282_v39  ;;  %6042 = vadd.xlane.f32.xlu0 %v6038_v61  ;;  %v6039_v24 = vmul.f32 %v6037_v33, %v6034_v9 }
 0x91a   : > { %v6019_v26 = vadd.f32 %v6281_v38, %v5970_v60  ;;  %v5973_v54 = vadd.f32 %v6256_v11, %v5726_v63 }
 0x91c   : > { %v6022_v58 = vadd.f32 %v6284_v3, %v5973_v54  ;;  %vm6027_vm2 = vcmp.gt.f32.partialorder %v6019_v26, 0.0  ;;  %v6031_v1 = vmul.f32 0.01, %v6019_v26 }
 0x91d   : > { %6044 = vadd.xlane.f32.xlu0 %v6039_v24 }
 0x91e   : > { %v6035_v6 = vsel %vm6027_vm2, %v6019_v26, %v6031_v1  ;;  %vm6028_vm3 = vcmp.gt.f32.partialorder %v6022_v58, 0.0  ;;  %v6032_v20 = vmul.f32 0.01, %v6022_v58 }
 0x91f   : > { %v6040_v40 = vmul.f32 %v6037_v33, %v6035_v6 }
 0x920   : > { %v6036_v21 = vsel %vm6028_vm3, %v6022_v58, %v6032_v20 }
 0x921   : > { %6046 = vadd.xlane.f32.xlu1 %v6040_v40  ;;  %v6041_v30 = vmul.f32 %v6037_v33, %v6036_v21 }
 0x925   : > { %6048 = vadd.xlane.f32.xlu1 %v6041_v30 }
 0x9a6   : > { %v6043_v37 = vpop.xlane.xlu0 %6042 }
 0x9a7   : > { %6499 = vtanh.f32 %v6043_v37 }
 0x9aa   : > { %v6045_v48 = vpop.xlane.xlu0 %6044 }
 0x9ab   : > { %6501 = vtanh.f32 %v6045_v48 }
 0x9ae   : > { %v6047_v49 = vpop.xlane.xlu1 %6046 }
 0x9af   : > { %6503 = vtanh.f32 %v6047_v49 }
 0x9b1   : > { %v6500_v34 = vpop.eup %6499 }
 0x9b2   : > { %v6054_v42 = vadd.f32 1.0, %v6500_v34  ;;  %v6049_v12 = vpop.xlane.xlu1 %6048 }
 0x9b3   : > { %6505 = vtanh.f32 %v6049_v12 }
 0x9b4   : > { %v6058_v25 = vmul.f32 0.5, %v6054_v42 }
 0x9b5   : > { %v6502_v16 = vpop.eup %6501 }
 0x9b6   : > { %6063 = vst.msk [vmem:[%s6954_s25] sm:$0xff] %vm6062_vm4, %v6058_v25  ;;  %v6055_v5 = vadd.f32 1.0, %v6502_v16 }
 0x9b8   : > { %v6059_v45 = vmul.f32 0.5, %v6055_v5 }
 0x9b9   : > { %v6504_v53 = vpop.eup %6503 }
 0x9ba   : > { %6064 = vst.msk [vmem:[%s6954_s25 + $0x8] sm:$0xff] %vm6062_vm4, %v6059_v45  ;;  %v6056_v8 = vadd.f32 1.0, %v6504_v53 }
 0x9bc   : > { %v6060_v52 = vmul.f32 0.5, %v6056_v8 }
 0x9bd   : > { %v6506_v13 = vpop.eup %6505 }
 0x9be   : > { %6065 = vst.msk [vmem:[%s6954_s25 + $0x10] sm:$0xff] %vm6062_vm4, %v6060_v52  ;;  %v6057_v36 = vadd.f32 1.0, %v6506_v13 }
 0x9c0   : > { %v6061_v62 = vmul.f32 0.5, %v6057_v36 }
 0x9c2   : > { %6066 = vst.msk [vmem:[%s6954_s25 + $0x18] sm:$0xff] %vm6062_vm4, %v6061_v62 }
 0x9c3 PF: > { %p17_p5 = scmp.ge.s32.totalorder %s6880_s10, 6   ;;  %s8166_s18 = smov %s6683_s19 }
 0x9c4   : > { %s8167_s19 = smov %s6687_s20  ;;  %s8168_s20 = smov %s6889_s9 }
 0x9c5   : > { %s8169_s21 = smov %s6880_s10  ;;  %19 = sbr.rel (!%p17_p5) target bundleno = 5 (0x5), region = 113 }
 0x9cc   :  { %6089 = vsyncpa [#allocation5], 1 }
 0x9cd   :  { %6091 = vsyncpa [#allocation5 + $0x1], 1 }
 0x9ce   :  { %6092 = vsyncpa [#allocation7], 1 }
 0x9cf   :  { %6093 = vsyncpa [#allocation10], 1 }

</bundles_post_ra>
